<compile_context>
chip_gen: v6e
topology: v6e:2x2x1
jax: 0.10.0
libtpu: 0.0.40
codegen_flags: <defaults>
</compile_context>

<pallas_src>
import jax
import jax.numpy as jnp
from jax.experimental import pallas as pl
from jax.experimental.pallas import tpu as pltpu

BN_EPS = 1e-5

# (in, out) sizes of the 6 linear layers
LAYER_DIMS = [(28 * 28, 512), (512, 512), (512, 256), (256, 128), (128, 64), (64, 10)]
OUT_PAD = 128  # lane-dense padded width of the final (64 -> 10) layer


def _bn_relu_layer(h, w_ref, b_ref, g_ref, be_ref, inv_b):
    """x @ W + b -> BatchNorm1d(train) -> ReLU, BN folded into one FMA."""
    # MXU matmul in bf16 with f32 accumulation; bias add in f32.
    y = jnp.dot(h.astype(jnp.bfloat16), w_ref[...],
                preferred_element_type=jnp.float32) + b_ref[...]
    # One-pass batch statistics (biased variance), all in f32.
    s = jnp.sum(y, axis=0, keepdims=True)
    sq = jnp.sum(y * y, axis=0, keepdims=True)
    mean = s * inv_b
    var = jnp.maximum(sq * inv_b - mean * mean, 0.0)   # guard f32 cancellation
    # Folded affine: one multiply-add per element (rsqrt runs on the EUP slot).
    scale = g_ref[...] * jax.lax.rsqrt(var + BN_EPS)
    shift = be_ref[...] - mean * scale
    return jnp.maximum(y * scale + shift, 0.0)


def basic_nn_kernel(
    x_ref,
    w1_ref, b1_ref, g1_ref, be1_ref,
    w2_ref, b2_ref, g2_ref, be2_ref,
    w3_ref, b3_ref, g3_ref, be3_ref,
    w4_ref, b4_ref, g4_ref, be4_ref,
    w5_ref, b5_ref, g5_ref, be5_ref,
    w6_ref, b6_ref,
    o_ref,
):
    inv_b = 1.0 / x_ref.shape[0]   # static at trace time

    h = x_ref[...]                 # bf16 input (cast in wrapper)
    h = _bn_relu_layer(h, w1_ref, b1_ref, g1_ref, be1_ref, inv_b)
    h = _bn_relu_layer(h, w2_ref, b2_ref, g2_ref, be2_ref, inv_b)
    h = _bn_relu_layer(h, w3_ref, b3_ref, g3_ref, be3_ref, inv_b)
    h = _bn_relu_layer(h, w4_ref, b4_ref, g4_ref, be4_ref, inv_b)
    h = _bn_relu_layer(h, w5_ref, b5_ref, g5_ref, be5_ref, inv_b)

    # Final linear (no BN/ReLU), lane-dense: 128 padded output features.
    o_ref[...] = (
        jnp.dot(h.astype(jnp.bfloat16), w6_ref[...],
                preferred_element_type=jnp.float32) + b6_ref[...]
    ).astype(o_ref.dtype)


@jax.jit
def basic_nn_forward(x, params):
    """x: (B, 784) float32 (or bf16).  params: flat list of 22 arrays."""
    B = x.shape[0]
    x_bf16 = x.astype(jnp.bfloat16)       # halve input DMA; matmul runs in bf16
    n_inputs = 1 + len(params)
    vmem_spec = pl.BlockSpec(memory_space=pltpu.MemorySpace.VMEM)
    out_padded = pl.pallas_call(
        basic_nn_kernel,
        out_shape=jax.ShapeDtypeStruct((B, OUT_PAD), jnp.float32),
        in_specs=[vmem_spec] * n_inputs,
        out_specs=vmem_spec,
        compiler_params=pltpu.CompilerParams(vmem_limit_bytes=16 << 20),
    )(x_bf16, *params)
    return out_padded[:, : LAYER_DIMS[-1][1]]   # strip the zero-padded logits


def init_params(key):
    """Deterministic init mimicking PyTorch defaults (shapes are what matter).

    Weights are stored transposed as (in, out) == PyTorch weight.T, cast to
    bf16.  Biases and BN gamma/beta stay f32 (elementwise math stays f32).
    The final layer is zero-padded from 10 to OUT_PAD=128 output features.
    """
    params = []
    for li, (fan_in, fan_out) in enumerate(LAYER_DIMS):
        key, kw, kb = jax.random.split(key, 3)
        bound = 1.0 / jnp.sqrt(fan_in)
        w = jax.random.uniform(kw, (fan_in, fan_out), jnp.float32, -bound, bound)
        b = jax.random.uniform(kb, (1, fan_out), jnp.float32, -bound, bound)
        if li == len(LAYER_DIMS) - 1:
            # pad logits to a lane-dense 128-wide slab (extra columns are zero)
            w = jnp.pad(w, ((0, 0), (0, OUT_PAD - fan_out)))
            b = jnp.pad(b, ((0, 0), (0, OUT_PAD - fan_out)))
        params += [w.astype(jnp.bfloat16), b]
        if li < len(LAYER_DIMS) - 1:          # BN after every layer but the last
            params += [jnp.ones((1, fan_out), jnp.float32),
                       jnp.zeros((1, fan_out), jnp.float32)]
    return params


def reference_forward(x, params):
    """Pure-JAX reference with identical math (bf16 matmuls, f32 acc, folded BN)."""
    p = list(params)
    h = x.astype(jnp.bfloat16)
    for li in range(len(LAYER_DIMS)):
        w, b = p.pop(0), p.pop(0)
        y = jnp.dot(h.astype(jnp.bfloat16), w,
                    preferred_element_type=jnp.float32) + b
        if li < len(LAYER_DIMS) - 1:
            g, be = p.pop(0), p.pop(0)
            mean = jnp.mean(y, axis=0, keepdims=True)
            var = jnp.maximum(jnp.mean(y * y, axis=0, keepdims=True) - mean * mean, 0.0)
            scale = g * jax.lax.rsqrt(var + BN_EPS)
            shift = be - mean * scale
            y = jnp.maximum(y * scale + shift, 0.0)
        h = y
    return h[:, : LAYER_DIMS[-1][1]]


if __name__ == "__main__":
    key = jax.random.PRNGKey(0)
    kx, kp = jax.random.split(key)

    # B=128 so each matmul fills the MXU rows and the ~1.7 MB bf16 weight DMA
    # is amortized across the batch (still a small problem size).
    B = 128
    x = jax.random.normal(kx, (B, 28 * 28), jnp.float32)
    params = init_params(kp)

    out = basic_nn_forward(x, params)
    out = jax.block_until_ready(out)

    ref = reference_forward(x, params)
    assert out.shape == (B, 10), out.shape
    assert jnp.allclose(out, ref, atol=1e-2, rtol=1e-2), (
        float(jnp.max(jnp.abs(out - ref)))
    )
    print("KERNEL_OK")
</pallas_src>

<mosaic_0001>
module attributes {stable_mosaic.version = 11 : i64} {
  func.func @basic_nn_kernel(%arg0: memref<128x784xbf16, #tpu.memory_space<vmem>>, %arg1: memref<784x512xbf16, #tpu.memory_space<vmem>>, %arg2: memref<1x512xf32, #tpu.memory_space<vmem>>, %arg3: memref<1x512xf32, #tpu.memory_space<vmem>>, %arg4: memref<1x512xf32, #tpu.memory_space<vmem>>, %arg5: memref<512x512xbf16, #tpu.memory_space<vmem>>, %arg6: memref<1x512xf32, #tpu.memory_space<vmem>>, %arg7: memref<1x512xf32, #tpu.memory_space<vmem>>, %arg8: memref<1x512xf32, #tpu.memory_space<vmem>>, %arg9: memref<512x256xbf16, #tpu.memory_space<vmem>>, %arg10: memref<1x256xf32, #tpu.memory_space<vmem>>, %arg11: memref<1x256xf32, #tpu.memory_space<vmem>>, %arg12: memref<1x256xf32, #tpu.memory_space<vmem>>, %arg13: memref<256x128xbf16, #tpu.memory_space<vmem>>, %arg14: memref<1x128xf32, #tpu.memory_space<vmem>>, %arg15: memref<1x128xf32, #tpu.memory_space<vmem>>, %arg16: memref<1x128xf32, #tpu.memory_space<vmem>>, %arg17: memref<128x64xbf16, #tpu.memory_space<vmem>>, %arg18: memref<1x64xf32, #tpu.memory_space<vmem>>, %arg19: memref<1x64xf32, #tpu.memory_space<vmem>>, %arg20: memref<1x64xf32, #tpu.memory_space<vmem>>, %arg21: memref<64x128xbf16, #tpu.memory_space<vmem>>, %arg22: memref<1x128xf32, #tpu.memory_space<vmem>>, %arg23: memref<128x128xf32, #tpu.memory_space<vmem>>) attributes {dimension_semantics = [], scalar_prefetch = 0 : i64, scratch_operands = 0 : i64, tpu.core_type = #tpu.core_type<tc>} {
    %c0 = arith.constant 0 : index
    %c0_0 = arith.constant 0 : index
    %0 = vector.load %arg0[%c0, %c0_0] : memref<128x784xbf16, #tpu.memory_space<vmem>>, vector<128x784xbf16>
    %c0_1 = arith.constant 0 : index
    %c0_2 = arith.constant 0 : index
    %1 = vector.load %arg1[%c0_1, %c0_2] : memref<784x512xbf16, #tpu.memory_space<vmem>>, vector<784x512xbf16>
    %cst = arith.constant dense<0.000000e+00> : vector<128x512xf32>
    %2 = tpu.matmul %0, %1, %cst {dimension_numbers = #tpu.dot_dimension_numbers<[1], [0], [0], [1], [0, 0, 1, 1], [], []>} : vector<128x784xbf16>, vector<784x512xbf16>, vector<128x512xf32> -> vector<128x512xf32>
    %c0_3 = arith.constant 0 : index
    %c0_4 = arith.constant 0 : index
    %3 = vector.load %arg2[%c0_3, %c0_4] : memref<1x512xf32, #tpu.memory_space<vmem>>, vector<1x512xf32>
    %4 = vector.broadcast %3 : vector<1x512xf32> to vector<128x512xf32>
    %5 = arith.addf %2, %4 : vector<128x512xf32>
    %cst_5 = arith.constant dense<0.000000e+00> : vector<512xf32>
    %6 = vector.multi_reduction <add>, %5, %cst_5 [0] : vector<128x512xf32> to vector<512xf32>
    %7 = vector.shape_cast %6 : vector<512xf32> to vector<1x512xf32>
    %8 = arith.mulf %5, %5 : vector<128x512xf32>
    %cst_6 = arith.constant dense<0.000000e+00> : vector<512xf32>
    %9 = vector.multi_reduction <add>, %8, %cst_6 [0] : vector<128x512xf32> to vector<512xf32>
    %10 = vector.shape_cast %9 : vector<512xf32> to vector<1x512xf32>
    %cst_7 = arith.constant 7.812500e-03 : f32
    %11 = vector.broadcast %cst_7 : f32 to vector<1x512xf32>
    %12 = arith.mulf %7, %11 : vector<1x512xf32>
    %cst_8 = arith.constant 7.812500e-03 : f32
    %13 = vector.broadcast %cst_8 : f32 to vector<1x512xf32>
    %14 = arith.mulf %10, %13 : vector<1x512xf32>
    %15 = arith.mulf %12, %12 : vector<1x512xf32>
    %16 = arith.subf %14, %15 : vector<1x512xf32>
    %cst_9 = arith.constant 0.000000e+00 : f32
    %17 = vector.broadcast %cst_9 : f32 to vector<1x512xf32>
    %18 = arith.maximumf %16, %17 : vector<1x512xf32>
    %c0_10 = arith.constant 0 : index
    %c0_11 = arith.constant 0 : index
    %19 = vector.load %arg3[%c0_10, %c0_11] : memref<1x512xf32, #tpu.memory_space<vmem>>, vector<1x512xf32>
    %cst_12 = arith.constant 9.99999974E-6 : f32
    %20 = vector.broadcast %cst_12 : f32 to vector<1x512xf32>
    %21 = arith.addf %18, %20 : vector<1x512xf32>
    %22 = math.rsqrt %21 : vector<1x512xf32>
    %23 = arith.mulf %19, %22 : vector<1x512xf32>
    %c0_13 = arith.constant 0 : index
    %c0_14 = arith.constant 0 : index
    %24 = vector.load %arg4[%c0_13, %c0_14] : memref<1x512xf32, #tpu.memory_space<vmem>>, vector<1x512xf32>
    %25 = arith.mulf %12, %23 : vector<1x512xf32>
    %26 = arith.subf %24, %25 : vector<1x512xf32>
    %27 = vector.broadcast %23 : vector<1x512xf32> to vector<128x512xf32>
    %28 = arith.mulf %5, %27 : vector<128x512xf32>
    %29 = vector.broadcast %26 : vector<1x512xf32> to vector<128x512xf32>
    %30 = arith.addf %28, %29 : vector<128x512xf32>
    %cst_15 = arith.constant 0.000000e+00 : f32
    %31 = vector.broadcast %cst_15 : f32 to vector<128x512xf32>
    %32 = arith.maximumf %30, %31 : vector<128x512xf32>
    %33 = arith.truncf %32 : vector<128x512xf32> to vector<128x512xbf16>
    %c0_16 = arith.constant 0 : index
    %c0_17 = arith.constant 0 : index
    %34 = vector.load %arg5[%c0_16, %c0_17] : memref<512x512xbf16, #tpu.memory_space<vmem>>, vector<512x512xbf16>
    %cst_18 = arith.constant dense<0.000000e+00> : vector<128x512xf32>
    %35 = tpu.matmul %33, %34, %cst_18 {dimension_numbers = #tpu.dot_dimension_numbers<[1], [0], [0], [1], [0, 0, 1, 1], [], []>} : vector<128x512xbf16>, vector<512x512xbf16>, vector<128x512xf32> -> vector<128x512xf32>
    %c0_19 = arith.constant 0 : index
    %c0_20 = arith.constant 0 : index
    %36 = vector.load %arg6[%c0_19, %c0_20] : memref<1x512xf32, #tpu.memory_space<vmem>>, vector<1x512xf32>
    %37 = vector.broadcast %36 : vector<1x512xf32> to vector<128x512xf32>
    %38 = arith.addf %35, %37 : vector<128x512xf32>
    %cst_21 = arith.constant dense<0.000000e+00> : vector<512xf32>
    %39 = vector.multi_reduction <add>, %38, %cst_21 [0] : vector<128x512xf32> to vector<512xf32>
    %40 = vector.shape_cast %39 : vector<512xf32> to vector<1x512xf32>
    %41 = arith.mulf %38, %38 : vector<128x512xf32>
    %cst_22 = arith.constant dense<0.000000e+00> : vector<512xf32>
    %42 = vector.multi_reduction <add>, %41, %cst_22 [0] : vector<128x512xf32> to vector<512xf32>
    %43 = vector.shape_cast %42 : vector<512xf32> to vector<1x512xf32>
    %cst_23 = arith.constant 7.812500e-03 : f32
    %44 = vector.broadcast %cst_23 : f32 to vector<1x512xf32>
    %45 = arith.mulf %40, %44 : vector<1x512xf32>
    %cst_24 = arith.constant 7.812500e-03 : f32
    %46 = vector.broadcast %cst_24 : f32 to vector<1x512xf32>
    %47 = arith.mulf %43, %46 : vector<1x512xf32>
    %48 = arith.mulf %45, %45 : vector<1x512xf32>
    %49 = arith.subf %47, %48 : vector<1x512xf32>
    %cst_25 = arith.constant 0.000000e+00 : f32
    %50 = vector.broadcast %cst_25 : f32 to vector<1x512xf32>
    %51 = arith.maximumf %49, %50 : vector<1x512xf32>
    %c0_26 = arith.constant 0 : index
    %c0_27 = arith.constant 0 : index
    %52 = vector.load %arg7[%c0_26, %c0_27] : memref<1x512xf32, #tpu.memory_space<vmem>>, vector<1x512xf32>
    %cst_28 = arith.constant 9.99999974E-6 : f32
    %53 = vector.broadcast %cst_28 : f32 to vector<1x512xf32>
    %54 = arith.addf %51, %53 : vector<1x512xf32>
    %55 = math.rsqrt %54 : vector<1x512xf32>
    %56 = arith.mulf %52, %55 : vector<1x512xf32>
    %c0_29 = arith.constant 0 : index
    %c0_30 = arith.constant 0 : index
    %57 = vector.load %arg8[%c0_29, %c0_30] : memref<1x512xf32, #tpu.memory_space<vmem>>, vector<1x512xf32>
    %58 = arith.mulf %45, %56 : vector<1x512xf32>
    %59 = arith.subf %57, %58 : vector<1x512xf32>
    %60 = vector.broadcast %56 : vector<1x512xf32> to vector<128x512xf32>
    %61 = arith.mulf %38, %60 : vector<128x512xf32>
    %62 = vector.broadcast %59 : vector<1x512xf32> to vector<128x512xf32>
    %63 = arith.addf %61, %62 : vector<128x512xf32>
    %cst_31 = arith.constant 0.000000e+00 : f32
    %64 = vector.broadcast %cst_31 : f32 to vector<128x512xf32>
    %65 = arith.maximumf %63, %64 : vector<128x512xf32>
    %66 = arith.truncf %65 : vector<128x512xf32> to vector<128x512xbf16>
    %c0_32 = arith.constant 0 : index
    %c0_33 = arith.constant 0 : index
    %67 = vector.load %arg9[%c0_32, %c0_33] : memref<512x256xbf16, #tpu.memory_space<vmem>>, vector<512x256xbf16>
    %cst_34 = arith.constant dense<0.000000e+00> : vector<128x256xf32>
    %68 = tpu.matmul %66, %67, %cst_34 {dimension_numbers = #tpu.dot_dimension_numbers<[1], [0], [0], [1], [0, 0, 1, 1], [], []>} : vector<128x512xbf16>, vector<512x256xbf16>, vector<128x256xf32> -> vector<128x256xf32>
    %c0_35 = arith.constant 0 : index
    %c0_36 = arith.constant 0 : index
    %69 = vector.load %arg10[%c0_35, %c0_36] : memref<1x256xf32, #tpu.memory_space<vmem>>, vector<1x256xf32>
    %70 = vector.broadcast %69 : vector<1x256xf32> to vector<128x256xf32>
    %71 = arith.addf %68, %70 : vector<128x256xf32>
    %cst_37 = arith.constant dense<0.000000e+00> : vector<256xf32>
    %72 = vector.multi_reduction <add>, %71, %cst_37 [0] : vector<128x256xf32> to vector<256xf32>
    %73 = vector.shape_cast %72 : vector<256xf32> to vector<1x256xf32>
    %74 = arith.mulf %71, %71 : vector<128x256xf32>
    %cst_38 = arith.constant dense<0.000000e+00> : vector<256xf32>
    %75 = vector.multi_reduction <add>, %74, %cst_38 [0] : vector<128x256xf32> to vector<256xf32>
    %76 = vector.shape_cast %75 : vector<256xf32> to vector<1x256xf32>
    %cst_39 = arith.constant 7.812500e-03 : f32
    %77 = vector.broadcast %cst_39 : f32 to vector<1x256xf32>
    %78 = arith.mulf %73, %77 : vector<1x256xf32>
    %cst_40 = arith.constant 7.812500e-03 : f32
    %79 = vector.broadcast %cst_40 : f32 to vector<1x256xf32>
    %80 = arith.mulf %76, %79 : vector<1x256xf32>
    %81 = arith.mulf %78, %78 : vector<1x256xf32>
    %82 = arith.subf %80, %81 : vector<1x256xf32>
    %cst_41 = arith.constant 0.000000e+00 : f32
    %83 = vector.broadcast %cst_41 : f32 to vector<1x256xf32>
    %84 = arith.maximumf %82, %83 : vector<1x256xf32>
    %c0_42 = arith.constant 0 : index
    %c0_43 = arith.constant 0 : index
    %85 = vector.load %arg11[%c0_42, %c0_43] : memref<1x256xf32, #tpu.memory_space<vmem>>, vector<1x256xf32>
    %cst_44 = arith.constant 9.99999974E-6 : f32
    %86 = vector.broadcast %cst_44 : f32 to vector<1x256xf32>
    %87 = arith.addf %84, %86 : vector<1x256xf32>
    %88 = math.rsqrt %87 : vector<1x256xf32>
    %89 = arith.mulf %85, %88 : vector<1x256xf32>
    %c0_45 = arith.constant 0 : index
    %c0_46 = arith.constant 0 : index
    %90 = vector.load %arg12[%c0_45, %c0_46] : memref<1x256xf32, #tpu.memory_space<vmem>>, vector<1x256xf32>
    %91 = arith.mulf %78, %89 : vector<1x256xf32>
    %92 = arith.subf %90, %91 : vector<1x256xf32>
    %93 = vector.broadcast %89 : vector<1x256xf32> to vector<128x256xf32>
    %94 = arith.mulf %71, %93 : vector<128x256xf32>
    %95 = vector.broadcast %92 : vector<1x256xf32> to vector<128x256xf32>
    %96 = arith.addf %94, %95 : vector<128x256xf32>
    %cst_47 = arith.constant 0.000000e+00 : f32
    %97 = vector.broadcast %cst_47 : f32 to vector<128x256xf32>
    %98 = arith.maximumf %96, %97 : vector<128x256xf32>
    %99 = arith.truncf %98 : vector<128x256xf32> to vector<128x256xbf16>
    %c0_48 = arith.constant 0 : index
    %c0_49 = arith.constant 0 : index
    %100 = vector.load %arg13[%c0_48, %c0_49] : memref<256x128xbf16, #tpu.memory_space<vmem>>, vector<256x128xbf16>
    %cst_50 = arith.constant dense<0.000000e+00> : vector<128x128xf32>
    %101 = tpu.matmul %99, %100, %cst_50 {dimension_numbers = #tpu.dot_dimension_numbers<[1], [0], [0], [1], [0, 0, 1, 1], [], []>} : vector<128x256xbf16>, vector<256x128xbf16>, vector<128x128xf32> -> vector<128x128xf32>
    %c0_51 = arith.constant 0 : index
    %c0_52 = arith.constant 0 : index
    %102 = vector.load %arg14[%c0_51, %c0_52] : memref<1x128xf32, #tpu.memory_space<vmem>>, vector<1x128xf32>
    %103 = vector.broadcast %102 : vector<1x128xf32> to vector<128x128xf32>
    %104 = arith.addf %101, %103 : vector<128x128xf32>
    %cst_53 = arith.constant dense<0.000000e+00> : vector<128xf32>
    %105 = vector.multi_reduction <add>, %104, %cst_53 [0] : vector<128x128xf32> to vector<128xf32>
    %106 = vector.shape_cast %105 : vector<128xf32> to vector<1x128xf32>
    %107 = arith.mulf %104, %104 : vector<128x128xf32>
    %cst_54 = arith.constant dense<0.000000e+00> : vector<128xf32>
    %108 = vector.multi_reduction <add>, %107, %cst_54 [0] : vector<128x128xf32> to vector<128xf32>
    %109 = vector.shape_cast %108 : vector<128xf32> to vector<1x128xf32>
    %cst_55 = arith.constant 7.812500e-03 : f32
    %110 = vector.broadcast %cst_55 : f32 to vector<1x128xf32>
    %111 = arith.mulf %106, %110 : vector<1x128xf32>
    %cst_56 = arith.constant 7.812500e-03 : f32
    %112 = vector.broadcast %cst_56 : f32 to vector<1x128xf32>
    %113 = arith.mulf %109, %112 : vector<1x128xf32>
    %114 = arith.mulf %111, %111 : vector<1x128xf32>
    %115 = arith.subf %113, %114 : vector<1x128xf32>
    %cst_57 = arith.constant 0.000000e+00 : f32
    %116 = vector.broadcast %cst_57 : f32 to vector<1x128xf32>
    %117 = arith.maximumf %115, %116 : vector<1x128xf32>
    %c0_58 = arith.constant 0 : index
    %c0_59 = arith.constant 0 : index
    %118 = vector.load %arg15[%c0_58, %c0_59] : memref<1x128xf32, #tpu.memory_space<vmem>>, vector<1x128xf32>
    %cst_60 = arith.constant 9.99999974E-6 : f32
    %119 = vector.broadcast %cst_60 : f32 to vector<1x128xf32>
    %120 = arith.addf %117, %119 : vector<1x128xf32>
    %121 = math.rsqrt %120 : vector<1x128xf32>
    %122 = arith.mulf %118, %121 : vector<1x128xf32>
    %c0_61 = arith.constant 0 : index
    %c0_62 = arith.constant 0 : index
    %123 = vector.load %arg16[%c0_61, %c0_62] : memref<1x128xf32, #tpu.memory_space<vmem>>, vector<1x128xf32>
    %124 = arith.mulf %111, %122 : vector<1x128xf32>
    %125 = arith.subf %123, %124 : vector<1x128xf32>
    %126 = vector.broadcast %122 : vector<1x128xf32> to vector<128x128xf32>
    %127 = arith.mulf %104, %126 : vector<128x128xf32>
    %128 = vector.broadcast %125 : vector<1x128xf32> to vector<128x128xf32>
    %129 = arith.addf %127, %128 : vector<128x128xf32>
    %cst_63 = arith.constant 0.000000e+00 : f32
    %130 = vector.broadcast %cst_63 : f32 to vector<128x128xf32>
    %131 = arith.maximumf %129, %130 : vector<128x128xf32>
    %132 = arith.truncf %131 : vector<128x128xf32> to vector<128x128xbf16>
    %c0_64 = arith.constant 0 : index
    %c0_65 = arith.constant 0 : index
    %133 = vector.load %arg17[%c0_64, %c0_65] : memref<128x64xbf16, #tpu.memory_space<vmem>>, vector<128x64xbf16>
    %cst_66 = arith.constant dense<0.000000e+00> : vector<128x64xf32>
    %134 = tpu.matmul %132, %133, %cst_66 {dimension_numbers = #tpu.dot_dimension_numbers<[1], [0], [0], [1], [0, 0, 1, 1], [], []>} : vector<128x128xbf16>, vector<128x64xbf16>, vector<128x64xf32> -> vector<128x64xf32>
    %c0_67 = arith.constant 0 : index
    %c0_68 = arith.constant 0 : index
    %135 = vector.load %arg18[%c0_67, %c0_68] : memref<1x64xf32, #tpu.memory_space<vmem>>, vector<1x64xf32>
    %136 = vector.broadcast %135 : vector<1x64xf32> to vector<128x64xf32>
    %137 = arith.addf %134, %136 : vector<128x64xf32>
    %cst_69 = arith.constant dense<0.000000e+00> : vector<64xf32>
    %138 = vector.multi_reduction <add>, %137, %cst_69 [0] : vector<128x64xf32> to vector<64xf32>
    %139 = vector.shape_cast %138 : vector<64xf32> to vector<1x64xf32>
    %140 = arith.mulf %137, %137 : vector<128x64xf32>
    %cst_70 = arith.constant dense<0.000000e+00> : vector<64xf32>
    %141 = vector.multi_reduction <add>, %140, %cst_70 [0] : vector<128x64xf32> to vector<64xf32>
    %142 = vector.shape_cast %141 : vector<64xf32> to vector<1x64xf32>
    %cst_71 = arith.constant 7.812500e-03 : f32
    %143 = vector.broadcast %cst_71 : f32 to vector<1x64xf32>
    %144 = arith.mulf %139, %143 : vector<1x64xf32>
    %cst_72 = arith.constant 7.812500e-03 : f32
    %145 = vector.broadcast %cst_72 : f32 to vector<1x64xf32>
    %146 = arith.mulf %142, %145 : vector<1x64xf32>
    %147 = arith.mulf %144, %144 : vector<1x64xf32>
    %148 = arith.subf %146, %147 : vector<1x64xf32>
    %cst_73 = arith.constant 0.000000e+00 : f32
    %149 = vector.broadcast %cst_73 : f32 to vector<1x64xf32>
    %150 = arith.maximumf %148, %149 : vector<1x64xf32>
    %c0_74 = arith.constant 0 : index
    %c0_75 = arith.constant 0 : index
    %151 = vector.load %arg19[%c0_74, %c0_75] : memref<1x64xf32, #tpu.memory_space<vmem>>, vector<1x64xf32>
    %cst_76 = arith.constant 9.99999974E-6 : f32
    %152 = vector.broadcast %cst_76 : f32 to vector<1x64xf32>
    %153 = arith.addf %150, %152 : vector<1x64xf32>
    %154 = math.rsqrt %153 : vector<1x64xf32>
    %155 = arith.mulf %151, %154 : vector<1x64xf32>
    %c0_77 = arith.constant 0 : index
    %c0_78 = arith.constant 0 : index
    %156 = vector.load %arg20[%c0_77, %c0_78] : memref<1x64xf32, #tpu.memory_space<vmem>>, vector<1x64xf32>
    %157 = arith.mulf %144, %155 : vector<1x64xf32>
    %158 = arith.subf %156, %157 : vector<1x64xf32>
    %159 = vector.broadcast %155 : vector<1x64xf32> to vector<128x64xf32>
    %160 = arith.mulf %137, %159 : vector<128x64xf32>
    %161 = vector.broadcast %158 : vector<1x64xf32> to vector<128x64xf32>
    %162 = arith.addf %160, %161 : vector<128x64xf32>
    %cst_79 = arith.constant 0.000000e+00 : f32
    %163 = vector.broadcast %cst_79 : f32 to vector<128x64xf32>
    %164 = arith.maximumf %162, %163 : vector<128x64xf32>
    %165 = arith.truncf %164 : vector<128x64xf32> to vector<128x64xbf16>
    %c0_80 = arith.constant 0 : index
    %c0_81 = arith.constant 0 : index
    %166 = vector.load %arg21[%c0_80, %c0_81] : memref<64x128xbf16, #tpu.memory_space<vmem>>, vector<64x128xbf16>
    %cst_82 = arith.constant dense<0.000000e+00> : vector<128x128xf32>
    %167 = tpu.matmul %165, %166, %cst_82 {dimension_numbers = #tpu.dot_dimension_numbers<[1], [0], [0], [1], [0, 0, 1, 1], [], []>} : vector<128x64xbf16>, vector<64x128xbf16>, vector<128x128xf32> -> vector<128x128xf32>
    %c0_83 = arith.constant 0 : index
    %c0_84 = arith.constant 0 : index
    %168 = vector.load %arg22[%c0_83, %c0_84] : memref<1x128xf32, #tpu.memory_space<vmem>>, vector<1x128xf32>
    %169 = vector.broadcast %168 : vector<1x128xf32> to vector<128x128xf32>
    %170 = arith.addf %167, %169 : vector<128x128xf32>
    %c0_85 = arith.constant 0 : index
    %c0_86 = arith.constant 0 : index
    %171 = vector.load %arg23[%c0_85, %c0_86] : memref<128x128xf32, #tpu.memory_space<vmem>>, vector<128x128xf32>
    tpu.vector_store %arg23[%c0_85, %c0_86], %170 {strides = array<i32>} : memref<128x128xf32, #tpu.memory_space<vmem>>, vector<128x128xf32>,
    return
  }
}

</mosaic_0001>

<bundles_post_ra>
// kernel: basic_nn_forward.1
= control target key start
LH: loop header
LB: loop body
LE: loop exit
PB: predicated region body
PF: predicated region fallthrough
CT: control target
= control target key end

     0   :  { %s12729_s0 = inlined_call_operand.vmem [shape: bf16[128,784], index: 0, kind: input, shape index: {}]   ;;  %s12730_s1 = inlined_call_operand.vmem [shape: bf16[784,512], index: 1, kind: input, shape index: {}]   ;;  %s12731_s2 = inlined_call_operand.vmem [shape: f32[1,512], index: 2, kind: input, shape index: {}]   ;;  %s12732_s3 = inlined_call_operand.hbm [shape: f32[1,512], index: 3, kind: input, shape index: {}]   ;;  %s12733_s4 = inlined_call_operand.hbm [shape: f32[1,512], index: 4, kind: input, shape index: {}]   ;;  %s12734_s5 = inlined_call_operand.hbm [shape: bf16[512,512], index: 5, kind: input, shape index: {}]   ;;  %s12735_s6 = inlined_call_operand.hbm [shape: f32[1,512], index: 6, kind: input, shape index: {}]   ;;  %s12736_s7 = inlined_call_operand.hbm [shape: f32[1,512], index: 7, kind: input, shape index: {}]   ;;  %s12737_s8 = inlined_call_operand.hbm [shape: f32[1,512], index: 8, kind: input, shape index: {}]   ;;  %s12738_s9 = inlined_call_operand.vmem [shape: bf16[512,256], index: 9, kind: input, shape index: {}]   ;;  %s12739_s10 = inlined_call_operand.hbm [shape: f32[1,256], index: 10, kind: input, shape index: {}]   ;;  %s12740_s11 = inlined_call_operand.hbm [shape: f32[1,256], index: 11, kind: input, shape index: {}]   ;;  %s12741_s12 = inlined_call_operand.hbm [shape: f32[1,256], index: 12, kind: input, shape index: {}]   ;;  %s12742_s13 = inlined_call_operand.hbm [shape: bf16[256,128], index: 13, kind: input, shape index: {}]   ;;  %s12743_s14 = inlined_call_operand.hbm [shape: f32[1,128], index: 14, kind: input, shape index: {}]   ;;  %s12744_s15 = inlined_call_operand.hbm [shape: f32[1,128], index: 15, kind: input, shape index: {}]   ;;  %s12745_s16 = inlined_call_operand.hbm [shape: f32[1,128], index: 16, kind: input, shape index: {}]   ;;  %s12746_s17 = inlined_call_operand.vmem [shape: bf16[128,64], index: 17, kind: input, shape index: {}]   ;;  %s12747_s18 = inlined_call_operand.hbm [shape: f32[1,64], index: 18, kind: input, shape index: {}]   ;;  %s12748_s19 = inlined_call_operand.hbm [shape: f32[1,64], index: 19, kind: input, shape index: {}]   ;;  %s12749_s20 = inlined_call_operand.hbm [shape: f32[1,64], index: 20, kind: input, shape index: {}]   ;;  %s12750_s21 = inlined_call_operand.vmem [shape: bf16[64,128], index: 21, kind: input, shape index: {}]   ;;  %s12751_s22 = inlined_call_operand.hbm [shape: f32[1,128], index: 22, kind: input, shape index: {}]   ;;  %s12752_s23 = inlined_call_operand.vmem [shape: f32[128,128], index: 23, kind: output, shape index: {}]  }
   0x1   :  { %12853 = sst [smem:[#allocation100_spill]] %s12729_s0 }
   0x2   :  { %12854 = sst [smem:[#allocation101_spill]] %s12730_s1 }
   0x3   :  { %12855 = sst [smem:[#allocation102_spill]] %s12731_s2 }
   0x4   :  { %12856 = sst [smem:[#allocation103_spill]] %s12732_s3 }
   0x5   :  { %12857 = sst [smem:[#allocation104_spill]] %s12733_s4 }
   0x6   :  { %12858 = sst [smem:[#allocation105_spill]] %s12734_s5 }
   0x7   :  { %12859 = sst [smem:[#allocation106_spill]] %s12735_s6 }
   0x8   :  { %12860 = sst [smem:[#allocation107_spill]] %s12736_s7 }
   0x9   :  { %28 = vsyncpa [#allocation3], 0 }
   0xa   :  { %29 = vsyncpa [#allocation5], 0 }
   0xb   :  { %30 = vsyncpa [#allocation8], 0 }
   0xc   :  { %31 = vsyncpa [#allocation11], 0 }
   0xd   :  { %32 = vsyncpa [#allocation14], 0 }
   0xe   :  { %33 = vsyncpa [#allocation17], 0 }
   0xf   :  { %34 = vsyncpa [#allocation20], 0 }
  0x10   :  { %35 = vsyncpa [#allocation23], 0 }
  0x11   :  { %36 = vsyncpa [#allocation26], 0  ;;  %s8793_s4 = smov [#allocation4]   ;;  %s8794_s24 = smov [#allocation7]  }
  0x12   :  { %s59_s30 = sshll.u32 %s8793_s4, 4  ;;  %s81_s25 = sshll.u32 %s8794_s24, 4  ;;  %s60_s30 = int_to_ptr.vmem [resolvable:$true] %s59_s30  ;;  %s82_s25 = int_to_ptr.vmem [resolvable:$true] %s81_s25 }
  0x13   :  { %s8443_s5 = scalar_lea.vmem %s60_s30, 64  ;;  %p8448_p1 = scmp.lt.s32.totalorder %s60_s30, %s60_s30 }
  0x14   :  { %p8444_p0 = scmp.ne.s32.totalorder %s60_s30, %s8443_s5  ;;  %p8449_p2 = scmp.lt.s32.totalorder %s8443_s5, %s8443_s5 }
  0x16   :  { %p8450_p3 = por %p8449_p2, %p8448_p1 }
  0x18   :  { %p8451_p4 = pnand %p8450_p3, %p8444_p0 }
  0x1a   :  { %8454 = shalt.err (!%p8451_p4)
}
  0x1b   :  { %s12861_s2 = sld [smem:[#allocation104_spill]]  ;;  %s8463_s6 = scalar_lea.vmem %s82_s25, 64 }
  0x1c   :  { %p8464_p5 = scmp.ne.s32.totalorder %s82_s25, %s8463_s6  ;;  %p8468_p6 = scmp.lt.s32.totalorder %s82_s25, %s82_s25 }
  0x1d   :  { %p8469_p7 = scmp.lt.s32.totalorder %s8463_s6, %s8463_s6 }
  0x1f   :  { %p8470_p8 = por %p8469_p7, %p8468_p6 }
  0x21   :  { %62 = dma.hbm_to_vmem [thread:$0]  %s12861_s2, 64, %s60_s30, [#allocation5]  }
  0x22   :  { %p8471_p9 = pnand %p8470_p8, %p8464_p5 }
  0x24   :  { %8474 = shalt.err (!%p8471_p9)
}
  0x25   :  { %s12862_s28 = sld [smem:[#allocation106_spill]]  ;;  %s8795_s29 = smov [#allocation10]  }
  0x26   :  { %s101_s3 = sshll.u32 %s8795_s29, 4  ;;  %s8796_s0 = smov [#allocation13]   ;;  %s102_s3 = int_to_ptr.vmem [resolvable:$true] %s101_s3 }
  0x27   :  { %s123_s4 = sshll.u32 %s8796_s0, 4  ;;  %s8483_s24 = scalar_lea.vmem %s102_s3, 64  ;;  %s124_s4 = int_to_ptr.vmem [resolvable:$true] %s123_s4 }
  0x28   :  { %p8484_p10 = scmp.ne.s32.totalorder %s102_s3, %s8483_s24  ;;  %p8488_p11 = scmp.lt.s32.totalorder %s102_s3, %s102_s3 }
  0x29   :  { %p8489_p12 = scmp.lt.s32.totalorder %s8483_s24, %s8483_s24 }
  0x2b   :  { %84 = dma.hbm_to_vmem [thread:$0]  %s12862_s28, 64, %s82_s25, [#allocation8]  }
  0x2c   :  { %p8490_p13 = por %p8489_p12, %p8488_p11 }
  0x2e   :  { %p8491_p0 = pnand %p8490_p13, %p8484_p10 }
  0x30   :  { %8494 = shalt.err (!%p8491_p0)
}
  0x31   :  { %104 = dma.hbm_to_vmem [thread:$0]  %s12737_s8, 64, %s102_s3, [#allocation11]  }
  0x32   :  { %s8503_s1 = scalar_lea.vmem %s124_s4, 32  ;;  %p8508_p2 = scmp.lt.s32.totalorder %s124_s4, %s124_s4 }
  0x33   :  { %p8504_p1 = scmp.ne.s32.totalorder %s124_s4, %s8503_s1  ;;  %p8509_p3 = scmp.lt.s32.totalorder %s8503_s1, %s8503_s1 }
  0x35   :  { %p8510_p4 = por %p8509_p3, %p8508_p2 }
  0x37   :  { %p8511_p5 = pnand %p8510_p4, %p8504_p1 }
  0x39   :  { %8514 = shalt.err (!%p8511_p5)
}
  0x3a   :  { %126 = dma.hbm_to_vmem [thread:$0]  %s12740_s11, 32, %s124_s4, [#allocation14]  }
  0x3b   :  { %s8797_s2 = smov [#allocation16]  }
  0x3c   :  { %s142_s6 = sshll.u32 %s8797_s2, 4  ;;  %s143_s6 = int_to_ptr.vmem [resolvable:$true] %s142_s6 }
  0x3d   :  { %s8523_s27 = scalar_lea.vmem %s143_s6, 2048  ;;  %p8528_p7 = scmp.lt.s32.totalorder %s143_s6, %s143_s6 }
  0x3e   :  { %p8524_p6 = scmp.ne.s32.totalorder %s143_s6, %s8523_s27  ;;  %p8529_p8 = scmp.lt.s32.totalorder %s8523_s27, %s8523_s27 }
  0x40   :  { %p8530_p9 = por %p8529_p8, %p8528_p7 }
  0x42   :  { %p8531_p10 = pnand %p8530_p9, %p8524_p6 }
  0x44   :  { %8534 = shalt.err (!%p8531_p10)
}
  0x45   :  { %s8798_s8 = smov 64   ;;  %s8799_s7 = smov 4  }
  0x46   :  { %148 = dma.hbm_to_vmem [thread:$0]  %s12742_s13, 2048, %s143_s6, [#allocation17], %s8798_s8, %s8798_s8, %s8799_s7  }
  0x47   :  { %s8800_s3 = smov [#allocation19]   ;;  %s8801_s11 = smov [#allocation22]  }
  0x48   :  { %s165_s0 = sshll.u32 %s8800_s3, 4  ;;  %s187_s4 = sshll.u32 %s8801_s11, 4  ;;  %s166_s0 = int_to_ptr.vmem [resolvable:$true] %s165_s0  ;;  %s188_s4 = int_to_ptr.vmem [resolvable:$true] %s187_s4 }
  0x49   :  { %s8543_s24 = scalar_lea.vmem %s166_s0, 16  ;;  %s8547_s30 = scalar_lea.vmem %s166_s0, 32 }
  0x4a   :  { %p8544_p11 = scmp.ne.s32.totalorder %s166_s0, %s8543_s24  ;;  %p8548_p12 = scmp.lt.s32.totalorder %s166_s0, %s166_s0 }
  0x4b   :  { %p8549_p13 = scmp.lt.s32.totalorder %s8547_s30, %s8543_s24 }
  0x4d   :  { %p8550_p0 = por %p8549_p13, %p8548_p12 }
  0x4f   :  { %p8551_p1 = pnand %p8550_p0, %p8544_p11 }
  0x51   :  { %8554 = shalt.err (!%p8551_p1)
}
  0x52   :  { %168 = dma.hbm_to_vmem [thread:$0]  %s12744_s15, 16, %s166_s0, [#allocation20]  }
  0x53   :  { %s8563_s25 = scalar_lea.vmem %s188_s4, 16  ;;  %s8567_s13 = scalar_lea.vmem %s188_s4, 32 }
  0x54   :  { %p8564_p2 = scmp.ne.s32.totalorder %s188_s4, %s8563_s25  ;;  %p8568_p3 = scmp.lt.s32.totalorder %s188_s4, %s188_s4 }
  0x55   :  { %p8569_p4 = scmp.lt.s32.totalorder %s8567_s13, %s8563_s25 }
  0x57   :  { %p8570_p5 = por %p8569_p4, %p8568_p3 }
  0x59   :  { %p8571_p6 = pnand %p8570_p5, %p8564_p2 }
  0x5b   :  { %8574 = shalt.err (!%p8571_p6)
}
  0x5c   :  { %190 = dma.hbm_to_vmem [thread:$0]  %s12747_s18, 16, %s188_s4, [#allocation23]  }
  0x5d   :  { %s8802_s6 = smov [#allocation25]   ;;  %s8803_s8 = smov [#allocation2]  }
  0x5e   :  { %s207_s27 = sshll.u32 %s8802_s6, 4  ;;  %s49_s7 = sshll.u32 %s8803_s8, 4  ;;  %s208_s27 = int_to_ptr.vmem [resolvable:$true] %s207_s27  ;;  %s50_s7 = int_to_ptr.vmem [resolvable:$true] %s49_s7 }
  0x5f   :  { %s8583_s28 = scalar_lea.vmem %s208_s27, 16  ;;  %s8587_s15 = scalar_lea.vmem %s208_s27, 32 }
  0x60   :  { %p8584_p7 = scmp.ne.s32.totalorder %s208_s27, %s8583_s28  ;;  %p8588_p8 = scmp.lt.s32.totalorder %s208_s27, %s208_s27 }
  0x61   :  { %p8589_p9 = scmp.lt.s32.totalorder %s8587_s15, %s8583_s28 }
  0x63   :  { %p8590_p10 = por %p8589_p9, %p8588_p8 }
  0x65   :  { %p8591_p11 = pnand %p8590_p10, %p8584_p7 }
  0x67   :  { %8594 = shalt.err (!%p8591_p11)
}
  0x68   :  { %210 = dma.hbm_to_vmem [thread:$0]  %s12749_s20, 16, %s208_s27, [#allocation26]  }
  0x69   :  { %s8603_s0 = scalar_lea.vmem %s50_s7, 64  ;;  %p8608_p13 = scmp.lt.s32.totalorder %s50_s7, %s50_s7 }
  0x6a   :  { %p8604_p12 = scmp.ne.s32.totalorder %s50_s7, %s8603_s0  ;;  %p8609_p0 = scmp.lt.s32.totalorder %s8603_s0, %s8603_s0 }
  0x6c   :  { %p8610_p1 = por %p8609_p0, %p8608_p13 }
  0x6e   :  { %p8611_p2 = pnand %p8610_p1, %p8604_p12 }
  0x70   :  { %8614 = shalt.err (!%p8611_p2)
}
  0x71   :  { %s12863_s4 = sld [smem:[#allocation103_spill]]  ;;  %s8804_s24 = smov [#allocation6]  }
  0x72   :  { %s68_s30 = sshll.u32 %s8804_s24, 4  ;;  %s69_s30 = int_to_ptr.vmem [resolvable:$true] %s68_s30 }
  0x73   :  { %s8623_s5 = scalar_lea.vmem %s69_s30, 16384  ;;  %p8628_p4 = scmp.lt.s32.totalorder %s69_s30, %s69_s30 }
  0x74   :  { %p8624_p3 = scmp.ne.s32.totalorder %s69_s30, %s8623_s5  ;;  %p8629_p5 = scmp.lt.s32.totalorder %s8623_s5, %s8623_s5 }
  0x76   :  { %p8630_p6 = por %p8629_p5, %p8628_p4 }
  0x77   :  { %52 = dma.hbm_to_vmem [thread:$0]  %s12863_s4, 64, %s50_s7, [#allocation3]  }
  0x78   :  { %p8631_p7 = pnand %p8630_p6, %p8624_p3 }
  0x7a   :  { %8634 = shalt.err (!%p8631_p7)
}
  0x7b   :  { %s8805_s20 = smov 256   ;;  %s8806_s1 = smov 16  }
  0x7c   :  { %s12864_s26 = sld [smem:[#allocation105_spill]]  ;;  %s8807_s2 = smov [#allocation9]  }
  0x7d   :  { %s91_s6 = sshll.u32 %s8807_s2, 4  ;;  %s8808_s27 = smov [#allocation12]   ;;  %s92_s6 = int_to_ptr.vmem [resolvable:$true] %s91_s6 }
  0x7e   :  { %s113_s8 = sshll.u32 %s8808_s27, 4  ;;  %s8643_s7 = scalar_lea.vmem %s92_s6, 64  ;;  %s114_s8 = int_to_ptr.vmem [resolvable:$true] %s113_s8 }
  0x7f   :  { %p8644_p8 = scmp.ne.s32.totalorder %s92_s6, %s8643_s7  ;;  %p8648_p9 = scmp.lt.s32.totalorder %s92_s6, %s92_s6 }
  0x80   :  { %p8649_p10 = scmp.lt.s32.totalorder %s8643_s7, %s8643_s7 }
  0x82   :  { %74 = dma.hbm_to_vmem [thread:$0]  %s12864_s26, 16384, %s69_s30, [#allocation5], %s8805_s20, %s8805_s20, %s8806_s1  }
  0x83   :  { %p8650_p11 = por %p8649_p10, %p8648_p9 }
  0x85   :  { %p8651_p12 = pnand %p8650_p11, %p8644_p8 }
  0x87   :  { %8654 = shalt.err (!%p8651_p12)
}
  0x88   :  { %s12865_s29 = sld [smem:[#allocation107_spill]]  ;;  %s8663_s3 = scalar_lea.vmem %s114_s8, 32 }
  0x89   :  { %p8664_p13 = scmp.ne.s32.totalorder %s114_s8, %s8663_s3  ;;  %p8668_p0 = scmp.lt.s32.totalorder %s114_s8, %s114_s8 }
  0x8a   :  { %p8669_p1 = scmp.lt.s32.totalorder %s8663_s3, %s8663_s3 }
  0x8c   :  { %p8670_p2 = por %p8669_p1, %p8668_p0 }
  0x8e   :  { %94 = dma.hbm_to_vmem [thread:$0]  %s12865_s29, 64, %s92_s6, [#allocation8]  }
  0x8f   :  { %p8671_p3 = pnand %p8670_p2, %p8664_p13 }
  0x91   :  { %8674 = shalt.err (!%p8671_p3)
}
  0x92   :  { %116 = dma.hbm_to_vmem [thread:$0]  %s12739_s10, 32, %s114_s8, [#allocation11]  }
  0x93   :  { %s8809_s11 = smov [#allocation15]   ;;  %s8810_s24 = smov [#allocation18]  }
  0x94   :  { %s133_s4 = sshll.u32 %s8809_s11, 4  ;;  %s155_s30 = sshll.u32 %s8810_s24, 4  ;;  %s134_s4 = int_to_ptr.vmem [resolvable:$true] %s133_s4  ;;  %s156_s30 = int_to_ptr.vmem [resolvable:$true] %s155_s30 }
  0x95   :  { %s8683_s5 = scalar_lea.vmem %s134_s4, 32  ;;  %p8688_p5 = scmp.lt.s32.totalorder %s134_s4, %s134_s4 }
  0x96   :  { %p8684_p4 = scmp.ne.s32.totalorder %s134_s4, %s8683_s5  ;;  %p8689_p6 = scmp.lt.s32.totalorder %s8683_s5, %s8683_s5 }
  0x98   :  { %p8690_p7 = por %p8689_p6, %p8688_p5 }
  0x9a   :  { %p8691_p8 = pnand %p8690_p7, %p8684_p4 }
  0x9c   :  { %8694 = shalt.err (!%p8691_p8)
}
  0x9d   :  { %136 = dma.hbm_to_vmem [thread:$0]  %s12741_s12, 32, %s134_s4, [#allocation14]  }
  0x9e   :  { %s8703_s25 = scalar_lea.vmem %s156_s30, 16  ;;  %s8707_s10 = scalar_lea.vmem %s156_s30, 32 }
  0x9f   :  { %p8704_p9 = scmp.ne.s32.totalorder %s156_s30, %s8703_s25  ;;  %p8708_p10 = scmp.lt.s32.totalorder %s156_s30, %s156_s30 }
  0xa0   :  { %p8709_p11 = scmp.lt.s32.totalorder %s8707_s10, %s8703_s25 }
  0xa2   :  { %p8710_p12 = por %p8709_p11, %p8708_p10 }
  0xa4   :  { %p8711_p13 = pnand %p8710_p12, %p8704_p9 }
  0xa6   :  { %8714 = shalt.err (!%p8711_p13)
}
  0xa7   :  { %158 = dma.hbm_to_vmem [thread:$0]  %s12743_s14, 16, %s156_s30, [#allocation17]  }
  0xa8   :  { %s8811_s2 = smov [#allocation21]   ;;  %s8812_s27 = smov [#allocation24]  }
  0xa9   :  { %s175_s6 = sshll.u32 %s8811_s2, 4  ;;  %s197_s8 = sshll.u32 %s8812_s27, 4  ;;  %s176_s6 = int_to_ptr.vmem [resolvable:$true] %s175_s6  ;;  %s198_s8 = int_to_ptr.vmem [resolvable:$true] %s197_s8 }
  0xaa   :  { %s8723_s7 = scalar_lea.vmem %s176_s6, 16  ;;  %s8727_s12 = scalar_lea.vmem %s176_s6, 32 }
  0xab   :  { %p8724_p0 = scmp.ne.s32.totalorder %s176_s6, %s8723_s7  ;;  %p8728_p1 = scmp.lt.s32.totalorder %s176_s6, %s176_s6 }
  0xac   :  { %p8729_p2 = scmp.lt.s32.totalorder %s8727_s12, %s8723_s7 }
  0xae   :  { %p8730_p3 = por %p8729_p2, %p8728_p1 }
  0xb0   :  { %p8731_p4 = pnand %p8730_p3, %p8724_p0 }
  0xb2   :  { %8734 = shalt.err (!%p8731_p4)
}
  0xb3   :  { %178 = dma.hbm_to_vmem [thread:$0]  %s12745_s16, 16, %s176_s6, [#allocation20]  }
  0xb4   :  { %s8743_s29 = scalar_lea.vmem %s198_s8, 16  ;;  %s8747_s14 = scalar_lea.vmem %s198_s8, 32 }
  0xb5   :  { %p8744_p5 = scmp.ne.s32.totalorder %s198_s8, %s8743_s29  ;;  %p8748_p6 = scmp.lt.s32.totalorder %s198_s8, %s198_s8 }
  0xb6   :  { %p8749_p7 = scmp.lt.s32.totalorder %s8747_s14, %s8743_s29 }
  0xb8   :  { %p8750_p8 = por %p8749_p7, %p8748_p6 }
  0xba   :  { %p8751_p9 = pnand %p8750_p8, %p8744_p5 }
  0xbc   :  { %8754 = shalt.err (!%p8751_p9)
}
  0xbd   :  { %200 = dma.hbm_to_vmem [thread:$0]  %s12748_s19, 16, %s198_s8, [#allocation23]  }
  0xbe   :  { %s8813_s18 = smov [#allocation27]  }
  0xbf   :  { %s219_s11 = sshll.u32 %s8813_s18, 4  ;;  %s220_s11 = int_to_ptr.vmem [resolvable:$true] %s219_s11 }
  0xc0   :  { %s8763_s4 = scalar_lea.vmem %s220_s11, 16  ;;  %s8767_s24 = scalar_lea.vmem %s220_s11, 32 }
  0xc1   :  { %p8764_p10 = scmp.ne.s32.totalorder %s220_s11, %s8763_s4  ;;  %p8768_p11 = scmp.lt.s32.totalorder %s220_s11, %s220_s11 }
  0xc2   :  { %p8769_p12 = scmp.lt.s32.totalorder %s8767_s24, %s8763_s4 }
  0xc4   :  { %p8770_p13 = por %p8769_p12, %p8768_p11 }
  0xc6   :  { %p8771_p0 = pnand %p8770_p13, %p8764_p10 }
  0xc8   :  { %8774 = shalt.err (!%p8771_p0)
}
  0xc9   :  { %222 = dma.hbm_to_vmem [thread:$0]  %s12751_s22, 16, %s220_s11, [#allocation26]  }
  0xca   :  { %8775 = dma.done.wait [#allocation3], 64  }
  0xcb   :  { %8776 = vsyncadd [#allocation3], 4294967232 }
  0xcc   :  { %8777 = dma.done.wait [#allocation5], 16448  }
  0xcd   :  { %8778 = vsyncadd [#allocation5], 4294950848 }
  0xce   :  { %8779 = dma.done.wait [#allocation8], 128  }
  0xcf   :  { %8780 = vsyncadd [#allocation8], 4294967168 }
  0xd0   :  { %8781 = dma.done.wait [#allocation11], 96  }
  0xd1   :  { %8782 = vsyncadd [#allocation11], 4294967200 }
  0xd2   :  { %8783 = dma.done.wait [#allocation14], 64  }
  0xd3   :  { %8784 = vsyncadd [#allocation14], 4294967232 }
  0xd4   :  { %8785 = dma.done.wait [#allocation17], 2064  }
  0xd5   :  { %8786 = vsyncadd [#allocation17], 4294965232 }
  0xd6   :  { %8787 = dma.done.wait [#allocation20], 32  }
  0xd7   :  { %8788 = vsyncadd [#allocation20], 4294967264 }
  0xd8   :  { %8789 = dma.done.wait [#allocation23], 32  }
  0xd9   :  { %8790 = vsyncadd [#allocation23], 4294967264 }
  0xda   :  { %8791 = dma.done.wait [#allocation26], 32  }
  0xdb   :  { %8792 = vsyncadd [#allocation26], 4294967264  ;;  %s12866_s5 = sld [smem:[#allocation101_spill]]  ;;  %vm1817_vm0 = vcmask 130048   ;;  %vm6638_vm1 = vcmask 523264  }
  0xdc   :  { %s12867_s4 = sld [smem:[#allocation100_spill]] }
  0xdd   :  { %s12870_s3 = sld [smem:[#allocation102_spill]] }
  0xe1   :  { %v7668_v0 = vld [vmem:[%s12866_s5 + $0xe4] ss:$16 sps:$4 sm:$0xff]   ;;  %v7672_v2 = vld [vmem:[%s12866_s5 + $0xe0] ss:$16 sps:$4 sm:$0xff]  }
  0xe2   :  { %v7670_v1 = vld [vmem:[%s12866_s5 + $0x2e4] ss:$16 sps:$4 sm:$0xff]   ;;  %1842 = vmatprep.subr.bf16.mxu0 %v7668_v0  ;;  %v7673_v3 = vld [vmem:[%s12866_s5 + $0x2e0] ss:$16 sps:$4 sm:$0xff]   ;;  %v7769_v51 = vld [vmem:[%s12867_s4 + $0xc] ss:$28 sps:$4 sm:$0xff]  }
  0xe3   :  { %1955 = vmatprep.subr.bf16.mxu1 %v7670_v1  ;;  %v7674_v4 = vld [vmem:[%s12866_s5 + $0xc4] ss:$16 sps:$4 sm:$0xff]   ;;  %1843 = vmatpush1.bf16.msra.mxu0 %v7672_v2  ;;  %v7678_v6 = vld [vmem:[%s12866_s5 + $0xc0] ss:$16 sps:$4 sm:$0xff]  }
  0xe4   :  { %1956 = vmatpush1.bf16.msra.mxu1 %v7673_v3  ;;  %v7676_v5 = vld [vmem:[%s12866_s5 + $0x2c4] ss:$16 sps:$4 sm:$0xff]   ;;  %1844 = vmatprep.subr.bf16.mxu0 %v7674_v4  ;;  %v7679_v7 = vld [vmem:[%s12866_s5 + $0x2c0] ss:$16 sps:$4 sm:$0xff]  }
  0xe5   :  { %1957 = vmatprep.subr.bf16.mxu1 %v7676_v5  ;;  %v7680_v8 = vld [vmem:[%s12866_s5 + $0xa4] ss:$16 sps:$4 sm:$0xff]   ;;  %v7684_v10 = vld [vmem:[%s12866_s5 + $0xa0] ss:$16 sps:$4 sm:$0xff]   ;;  %1987 = vmatprep.mubr.bf16.mxu1 %v7769_v51  ;;  %v7841_v51 = vld [vmem:[%s12867_s4 + $0x15c] ss:$28 sps:$4 sm:$0xff]  }
  0xe6   :  { %v7682_v9 = vld [vmem:[%s12866_s5 + $0x2a4] ss:$16 sps:$4 sm:$0xff]   ;;  %v7685_v11 = vld [vmem:[%s12866_s5 + $0x2a0] ss:$16 sps:$4 sm:$0xff]  }
  0xe7   :  { %1845 = vmatpush1.bf16.msra.mxu0 %v7678_v6  ;;  %v7686_v12 = vld [vmem:[%s12866_s5 + $0x84] ss:$16 sps:$4 sm:$0xff]   ;;  %v7690_v14 = vld [vmem:[%s12866_s5 + $0x80] ss:$16 sps:$4 sm:$0xff]  }
  0xe8   :  { %1958 = vmatpush1.bf16.msra.mxu1 %v7679_v7  ;;  %1846 = vmatprep.subr.bf16.mxu0 %v7680_v8  ;;  %v7688_v13 = vld [vmem:[%s12866_s5 + $0x284] ss:$16 sps:$4 sm:$0xff]   ;;  %v7691_v15 = vld [vmem:[%s12866_s5 + $0x280] ss:$16 sps:$4 sm:$0xff]  }
  0xe9   :  { %1959 = vmatprep.subr.bf16.mxu1 %v7682_v9  ;;  %v7692_v16 = vld [vmem:[%s12866_s5 + $0x64] ss:$16 sps:$4 sm:$0xff]   ;;  %v7696_v18 = vld [vmem:[%s12866_s5 + $0x60] ss:$16 sps:$4 sm:$0xff]   ;;  %v7779_v9 = vld [vmem:[%s12867_s4 + $0x3c] ss:$28 sps:$4 sm:$0xff]  }
  0xea   :  { %v7694_v17 = vld [vmem:[%s12866_s5 + $0x264] ss:$16 sps:$4 sm:$0xff]   ;;  %v7697_v19 = vld [vmem:[%s12866_s5 + $0x260] ss:$16 sps:$4 sm:$0xff]  }
  0xeb   :  { %1847 = vmatpush1.bf16.msra.mxu0 %v7684_v10  ;;  %v7698_v20 = vld [vmem:[%s12866_s5 + $0x44] ss:$16 sps:$4 sm:$0xff]   ;;  %v7702_v22 = vld [vmem:[%s12866_s5 + $0x40] ss:$16 sps:$4 sm:$0xff]  }
  0xec   :  { %1960 = vmatpush1.bf16.msra.mxu1 %v7685_v11  ;;  %1848 = vmatprep.subr.bf16.mxu0 %v7686_v12  ;;  %v7700_v21 = vld [vmem:[%s12866_s5 + $0x244] ss:$16 sps:$4 sm:$0xff]   ;;  %v7703_v23 = vld [vmem:[%s12866_s5 + $0x240] ss:$16 sps:$4 sm:$0xff]  }
  0xed   :  { %1961 = vmatprep.subr.bf16.mxu1 %v7688_v13  ;;  %v7704_v24 = vld [vmem:[%s12866_s5 + $0x24] ss:$16 sps:$4 sm:$0xff]   ;;  %v7708_v26 = vld [vmem:[%s12866_s5 + $0x20] ss:$16 sps:$4 sm:$0xff]  }
  0xee   :  { %v7706_v25 = vld [vmem:[%s12866_s5 + $0x224] ss:$16 sps:$4 sm:$0xff]   ;;  %v7709_v27 = vld [vmem:[%s12866_s5 + $0x220] ss:$16 sps:$4 sm:$0xff]  }
  0xef   :  { %1849 = vmatpush1.bf16.msra.mxu0 %v7690_v14  ;;  %v7710_v28 = vld [vmem:[%s12866_s5 + $0x4] ss:$16 sps:$4 sm:$0xff]   ;;  %v7714_v30 = vld [vmem:[%s12866_s5] ss:$16 sps:$4 sm:$0xff]  }
  0xf0   :  { %1962 = vmatpush1.bf16.msra.mxu1 %v7691_v15  ;;  %1850 = vmatprep.subr.bf16.mxu0 %v7692_v16  ;;  %v7712_v29 = vld [vmem:[%s12866_s5 + $0x204] ss:$16 sps:$4 sm:$0xff]   ;;  %v7715_v31 = vld [vmem:[%s12866_s5 + $0x200] ss:$16 sps:$4 sm:$0xff]  }
  0xf1   :  { %1963 = vmatprep.subr.bf16.mxu1 %v7694_v17  ;;  %v7716_v32 = vld [vmem:[%s12866_s5 + $0x1e4] ss:$16 sps:$4 sm:$0xff]   ;;  %v7720_v34 = vld [vmem:[%s12866_s5 + $0x1e0] ss:$16 sps:$4 sm:$0xff]  }
  0xf2   :  { %v7718_v33 = vld [vmem:[%s12866_s5 + $0x3e4] ss:$16 sps:$4 sm:$0xff]   ;;  %v7721_v35 = vld [vmem:[%s12866_s5 + $0x3e0] ss:$16 sps:$4 sm:$0xff]  }
  0xf3   :  { %1851 = vmatpush1.bf16.msra.mxu0 %v7696_v18  ;;  %v7722_v36 = vld [vmem:[%s12866_s5 + $0x1c4] ss:$16 sps:$4 sm:$0xff]   ;;  %v7726_v38 = vld [vmem:[%s12866_s5 + $0x1c0] ss:$16 sps:$4 sm:$0xff]   ;;  %v7793_v18 = vld [vmem:[%s12867_s4 + $0x7c] ss:$28 sps:$4 sm:$0xff]  }
  0xf4   :  { %1964 = vmatpush1.bf16.msra.mxu1 %v7697_v19  ;;  %1852 = vmatprep.subr.bf16.mxu0 %v7698_v20  ;;  %v7724_v37 = vld [vmem:[%s12866_s5 + $0x3c4] ss:$16 sps:$4 sm:$0xff]   ;;  %v7727_v39 = vld [vmem:[%s12866_s5 + $0x3c0] ss:$16 sps:$4 sm:$0xff]  }
  0xf5   :  { %1965 = vmatprep.subr.bf16.mxu1 %v7700_v21  ;;  %v7728_v40 = vld [vmem:[%s12866_s5 + $0x1a4] ss:$16 sps:$4 sm:$0xff]   ;;  %v7732_v42 = vld [vmem:[%s12866_s5 + $0x1a0] ss:$16 sps:$4 sm:$0xff]  }
  0xf6   :  { %v7730_v41 = vld [vmem:[%s12866_s5 + $0x3a4] ss:$16 sps:$4 sm:$0xff]   ;;  %v7733_v43 = vld [vmem:[%s12866_s5 + $0x3a0] ss:$16 sps:$4 sm:$0xff]  }
  0xf7   :  { %1853 = vmatpush1.bf16.msra.mxu0 %v7702_v22  ;;  %v7734_v44 = vld [vmem:[%s12866_s5 + $0x184] ss:$16 sps:$4 sm:$0xff]   ;;  %v7738_v46 = vld [vmem:[%s12866_s5 + $0x180] ss:$16 sps:$4 sm:$0xff]  }
  0xf8   :  { %1966 = vmatpush1.bf16.msra.mxu1 %v7703_v23  ;;  %1854 = vmatprep.subr.bf16.mxu0 %v7704_v24  ;;  %v7736_v45 = vld [vmem:[%s12866_s5 + $0x384] ss:$16 sps:$4 sm:$0xff]   ;;  %v7739_v47 = vld [vmem:[%s12866_s5 + $0x380] ss:$16 sps:$4 sm:$0xff]  }
  0xf9   :  { %1967 = vmatprep.subr.bf16.mxu1 %v7706_v25  ;;  %v7740_v48 = vld [vmem:[%s12866_s5 + $0x164] ss:$16 sps:$4 sm:$0xff]   ;;  %v7744_v52 = vld [vmem:[%s12866_s5 + $0x160] ss:$16 sps:$4 sm:$0xff]   ;;  %v7803_v25 = vld [vmem:[%s12867_s4 + $0xac] ss:$28 sps:$4 sm:$0xff]  }
  0xfa   :  { %v7766_v49 = vld [vmem:[%s12867_s4 + $0x4] ss:$28 sps:$4 sm:$0xff]   ;;  %v7783_v13 = vld [vmem:[%s12867_s4 + $0x38] ss:$28 sps:$4 sm:$0xff]   ;;  %v7795_v21 = vld [vmem:[%s12867_s4 + $0x70] ss:$28 sps:$4 sm:$0xff]  }
  0xfb   :  { %1855 = vmatpush1.bf16.msra.mxu0 %v7708_v26  ;;  %v7742_v50 = vld [vmem:[%s12866_s5 + $0x364] ss:$16 sps:$4 sm:$0xff]   ;;  %1874 = vmatprep.mubr.bf16.mxu0 %v7766_v49  ;;  %v7745_v53 = vld [vmem:[%s12866_s5 + $0x360] ss:$16 sps:$4 sm:$0xff]  }
  0xfc   :  { %1968 = vmatpush1.bf16.msra.mxu1 %v7709_v27  ;;  %1856 = vmatprep.subr.bf16.mxu0 %v7710_v28  ;;  %v7746_v54 = vld [vmem:[%s12866_s5 + $0x144] ss:$16 sps:$4 sm:$0xff]   ;;  %v7750_v56 = vld [vmem:[%s12866_s5 + $0x140] ss:$16 sps:$4 sm:$0xff]  }
  0xfd   :  { %1969 = vmatprep.subr.bf16.mxu1 %v7712_v29  ;;  %v7748_v55 = vld [vmem:[%s12866_s5 + $0x344] ss:$16 sps:$4 sm:$0xff]   ;;  %v7751_v57 = vld [vmem:[%s12866_s5 + $0x340] ss:$16 sps:$4 sm:$0xff]  }
  0xfe   :  { %v7752_v58 = vld [vmem:[%s12866_s5 + $0x124] ss:$16 sps:$4 sm:$0xff]   ;;  %v7756_v60 = vld [vmem:[%s12866_s5 + $0x120] ss:$16 sps:$4 sm:$0xff]  }
  0xff   :  { %1857 = vmatpush1.bf16.msra.mxu0 %v7714_v30  ;;  %v7754_v59 = vld [vmem:[%s12866_s5 + $0x324] ss:$16 sps:$4 sm:$0xff]   ;;  %v7757_v61 = vld [vmem:[%s12866_s5 + $0x320] ss:$16 sps:$4 sm:$0xff]  }
 0x100   :  { %1970 = vmatpush1.bf16.msra.mxu1 %v7715_v31  ;;  %1858 = vmatprep.subr.bf16.mxu0 %v7716_v32  ;;  %v7758_v62 = vld [vmem:[%s12866_s5 + $0x104] ss:$16 sps:$4 sm:$0xff]   ;;  %v7762_v0 = vld [vmem:[%s12866_s5 + $0x100] ss:$16 sps:$4 sm:$0xff]  }
 0x101   :  { %1971 = vmatprep.subr.bf16.mxu1 %v7718_v33  ;;  %v7760_v63 = vld [vmem:[%s12866_s5 + $0x304] ss:$16 sps:$4 sm:$0xff]   ;;  %v7763_v1 = vld [vmem:[%s12866_s5 + $0x300] ss:$16 sps:$4 sm:$0xff]  }
 0x102   :  { %v7772_v2 = vld [vmem:[%s12866_s5 + $0x4e4] ss:$16 sps:$4 sm:$0xff]   ;;  %v7764_v4 = vld [vmem:[%s12867_s4] ss:$28 sps:$4 sm:$0xff]   ;;  %v7808_v30 = vld [vmem:[%s12867_s4 + $0xb0] ss:$28 sps:$4 sm:$0xff]  }
 0x103   :  { %1859 = vmatpush2.bf16.msra.mxu0 %v7720_v34  ;;  %v7775_v3 = vld [vmem:[%s12866_s5 + $0x604] ss:$16 sps:$4 sm:$0xff]   ;;  %v7770_v6 = vld [vmem:[%s12866_s5 + $0x4e0] ss:$16 sps:$4 sm:$0xff]   ;;  %v7817_v34 = vld [vmem:[%s12867_s4 + $0xec] ss:$28 sps:$4 sm:$0xff]  }
 0x104   :  { %1972 = vmatpush2.bf16.msra.mxu1 %v7721_v35  ;;  %1860 = vmatprep.subr.bf16.mxu0 %v7722_v36  ;;  %v7767_v5 = vld [vmem:[%s12867_s4 + $0x8] ss:$28 sps:$4 sm:$0xff]   ;;  %v7773_v7 = vld [vmem:[%s12866_s5 + $0x600] ss:$16 sps:$4 sm:$0xff]   ;;  %v7796_v22 = vld [vmem:[%s12867_s4 + $0x78] ss:$28 sps:$4 sm:$0xff]  }
 0x105   :  { %1973 = vmatprep.subr.bf16.mxu1 %v7724_v37  ;;  %v7778_v8 = vld [vmem:[%s12866_s5 + $0x4c4] ss:$16 sps:$4 sm:$0xff]   ;;  %v7776_v11 = vld [vmem:[%s12866_s5 + $0x4c0] ss:$16 sps:$4 sm:$0xff]   ;;  %v7872_v35 = vld [vmem:[%s12866_s5 + $0x2ec] ss:$16 sps:$4 sm:$0xff]  }
 0x106   :  { %v7781_v10 = vld [vmem:[%s12867_s4 + $0x44] ss:$28 sps:$4 sm:$0xff]   ;;  %v7791_v17 = vld [vmem:[%s12867_s4 + $0x74] ss:$28 sps:$4 sm:$0xff]  }
 0x107   :  { %1861 = vmatpush2.bf16.msra.mxu0 %v7726_v38  ;;  %v7787_v12 = vld [vmem:[%s12866_s5 + $0x4a4] ss:$16 sps:$4 sm:$0xff]   ;;  %v7784_v14 = vld [vmem:[%s12867_s4 + $0x40] ss:$28 sps:$4 sm:$0xff]  }
 0x108   :  { %1974 = vmatpush2.bf16.msra.mxu1 %v7727_v39  ;;  %1862 = vmatprep.subr.bf16.mxu0 %v7728_v40  ;;  %v7785_v15 = vld [vmem:[%s12866_s5 + $0x4a0] ss:$16 sps:$4 sm:$0xff]   ;;  %v7790_v16 = vld [vmem:[%s12866_s5 + $0x484] ss:$16 sps:$4 sm:$0xff]  }
 0x109   :  { %1975 = vmatprep.subr.bf16.mxu1 %v7730_v41  ;;  %v7788_v19 = vld [vmem:[%s12866_s5 + $0x480] ss:$16 sps:$4 sm:$0xff]   ;;  %v7799_v20 = vld [vmem:[%s12866_s5 + $0x464] ss:$16 sps:$4 sm:$0xff]   ;;  %v7827_v41 = vld [vmem:[%s12867_s4 + $0x11c] ss:$28 sps:$4 sm:$0xff]  }
 0x10a   :  { %v7797_v23 = vld [vmem:[%s12866_s5 + $0x460] ss:$16 sps:$4 sm:$0xff]   ;;  %v7802_v24 = vld [vmem:[%s12866_s5 + $0x444] ss:$16 sps:$4 sm:$0xff]  }
 0x10b   :  { %1863 = vmatpush2.bf16.msra.mxu0 %v7732_v42  ;;  %v7805_v26 = vld [vmem:[%s12867_s4 + $0xb4] ss:$28 sps:$4 sm:$0xff]   ;;  %v7807_v29 = vld [vmem:[%s12867_s4 + $0xa8] ss:$28 sps:$4 sm:$0xff]   ;;  %v7819_v38 = vld [vmem:[%s12867_s4 + $0xe0] ss:$28 sps:$4 sm:$0xff]  }
 0x10c   :  { %1976 = vmatpush2.bf16.msra.mxu1 %v7733_v43  ;;  %1864 = vmatprep.subr.bf16.mxu0 %v7734_v44  ;;  %v7800_v27 = vld [vmem:[%s12866_s5 + $0x440] ss:$16 sps:$4 sm:$0xff]   ;;  %v7811_v28 = vld [vmem:[%s12866_s5 + $0x424] ss:$16 sps:$4 sm:$0xff]  }
 0x10d   :  { %1977 = vmatprep.subr.bf16.mxu1 %v7736_v45  ;;  %v7809_v31 = vld [vmem:[%s12866_s5 + $0x420] ss:$16 sps:$4 sm:$0xff]   ;;  %v7814_v32 = vld [vmem:[%s12866_s5 + $0x404] ss:$16 sps:$4 sm:$0xff]  }
 0x10e   :  { %v7815_v33 = vld [vmem:[%s12867_s4 + $0xe4] ss:$28 sps:$4 sm:$0xff]   ;;  %v7831_v45 = vld [vmem:[%s12867_s4 + $0x118] ss:$28 sps:$4 sm:$0xff]  }
 0x10f   :  { %1865 = vmatpush2.bf16.msra.mxu0 %v7738_v46  ;;  %v7812_v36 = vld [vmem:[%s12866_s5 + $0x400] ss:$16 sps:$4 sm:$0xff]   ;;  %v7823_v37 = vld [vmem:[%s12866_s5 + $0x5e4] ss:$16 sps:$4 sm:$0xff]  }
 0x110   :  { %1978 = vmatpush2.bf16.msra.mxu1 %v7739_v47  ;;  %1866 = vmatprep.subr.bf16.mxu0 %v7740_v48  ;;  %v7820_v39 = vld [vmem:[%s12867_s4 + $0xe8] ss:$28 sps:$4 sm:$0xff]   ;;  %v7821_v40 = vld [vmem:[%s12866_s5 + $0x5e0] ss:$16 sps:$4 sm:$0xff]  }
 0x111   :  { %1979 = vmatprep.subr.bf16.mxu1 %v7742_v50  ;;  %v7826_v42 = vld [vmem:[%s12866_s5 + $0x5c4] ss:$16 sps:$4 sm:$0xff]   ;;  %v7824_v44 = vld [vmem:[%s12866_s5 + $0x5c0] ss:$16 sps:$4 sm:$0xff]  }
 0x112   :  { %v7829_v43 = vld [vmem:[%s12867_s4 + $0x124] ss:$28 sps:$4 sm:$0xff]   ;;  %v7839_v49 = vld [vmem:[%s12867_s4 + $0x154] ss:$28 sps:$4 sm:$0xff]  }
 0x113   :  { %1867 = vmatpush2.bf16.msra.mxu0 %v7744_v52  ;;  %v7835_v46 = vld [vmem:[%s12866_s5 + $0x5a4] ss:$16 sps:$4 sm:$0xff]   ;;  %v7832_v47 = vld [vmem:[%s12867_s4 + $0x120] ss:$28 sps:$4 sm:$0xff]  }
 0x114   :  { %1980 = vmatpush2.bf16.msra.mxu1 %v7745_v53  ;;  %1868 = vmatprep.subr.bf16.mxu0 %v7746_v54  ;;  %v7833_v48 = vld [vmem:[%s12866_s5 + $0x5a0] ss:$16 sps:$4 sm:$0xff]   ;;  %v7838_v50 = vld [vmem:[%s12866_s5 + $0x584] ss:$16 sps:$4 sm:$0xff]  }
 0x115   :  { %1981 = vmatprep.subr.bf16.mxu1 %v7748_v55  ;;  %v7836_v52 = vld [vmem:[%s12866_s5 + $0x580] ss:$16 sps:$4 sm:$0xff]   ;;  %v7847_v54 = vld [vmem:[%s12866_s5 + $0x564] ss:$16 sps:$4 sm:$0xff]  }
 0x116   :  { %v7843_v53 = vld [vmem:[%s12867_s4 + $0x150] ss:$28 sps:$4 sm:$0xff]   ;;  %v7844_v55 = vld [vmem:[%s12867_s4 + $0x158] ss:$28 sps:$4 sm:$0xff]  }
 0x117   :  { %1869 = vmatpush2.bf16.msra.mxu0 %v7750_v56  ;;  %v7845_v56 = vld [vmem:[%s12866_s5 + $0x560] ss:$16 sps:$4 sm:$0xff]  }
 0x118   :  { %1982 = vmatpush2.bf16.msra.mxu1 %v7751_v57  ;;  %1870 = vmatprep.subr.bf16.mxu0 %v7752_v58  ;;  %v7850_v57 = vld [vmem:[%s12866_s5 + $0x544] ss:$16 sps:$4 sm:$0xff]   ;;  %v7851_v58 = vld [vmem:[%s12867_s4 + $0x18c] ss:$28 sps:$4 sm:$0xff]  }
 0x119   :  { %1983 = vmatprep.subr.bf16.mxu1 %v7754_v59  ;;  %v7853_v59 = vld [vmem:[%s12867_s4 + $0x194] ss:$28 sps:$4 sm:$0xff]  }
 0x11b   :  { %1871 = vmatpush2.bf16.msra.mxu0 %v7756_v60  ;;  %v7848_v60 = vld [vmem:[%s12866_s5 + $0x540] ss:$16 sps:$4 sm:$0xff]  }
 0x11c   :  { %1984 = vmatpush2.bf16.msra.mxu1 %v7757_v61  ;;  %1872 = vmatprep.subr.bf16.mxu0 %v7758_v62  ;;  %v7859_v61 = vld [vmem:[%s12866_s5 + $0x524] ss:$16 sps:$4 sm:$0xff]  }
 0x11d   :  { %1985 = vmatprep.subr.bf16.mxu1 %v7760_v63  ;;  %v7855_v62 = vld [vmem:[%s12867_s4 + $0x188] ss:$28 sps:$4 sm:$0xff]   ;;  %v7856_v63 = vld [vmem:[%s12867_s4 + $0x190] ss:$28 sps:$4 sm:$0xff]  }
 0x11f   :  { %1873 = vmatpush2.bf16.msra.mxu0 %v7762_v0  ;;  %v7857_v0 = vld [vmem:[%s12866_s5 + $0x520] ss:$16 sps:$4 sm:$0xff]  }
 0x120   :  { %1986 = vmatpush2.bf16.msra.mxu1 %v7763_v1  ;;  %2068 = vmatprep.subr.bf16.mxu0 %v7772_v2  ;;  %v7865_v1 = vld [vmem:[%s12867_s4 + $0x14] ss:$28 sps:$4 sm:$0xff]  }
 0x121   :  { %2195 = vmatprep.subr.bf16.mxu1 %v7775_v3  ;;  %v7862_v2 = vld [vmem:[%s12866_s5 + $0x504] ss:$16 sps:$4 sm:$0xff]   ;;  %v7860_v3 = vld [vmem:[%s12866_s5 + $0x500] ss:$16 sps:$4 sm:$0xff]  }
 0x122   :  { %1875 = vmatmul.mubr.bf16.vlgmr.msra.gmra.mxu0 %v7764_v4  ;;  %v8814_v4 = vmov 0  }
 0x123   :  { %1988 = vmatmul.mubr.bf16.vlgmr.msra.gmra.mxu1 %v7767_v5  ;;  %2069 = vmatpush1.bf16.msra.mxu0 %v7770_v6  ;;  %v7869_v5 = vld [vmem:[%s12866_s5 + $0xec] ss:$16 sps:$4 sm:$0xff]  }
 0x124   :  { %2196 = vmatpush1.bf16.msra.mxu1 %v7773_v7  ;;  %2070 = vmatprep.subr.bf16.mxu0 %v7778_v8  ;;  %v7863_v6 = vld [vmem:[%s12867_s4 + $0x10] ss:$28 sps:$4 sm:$0xff]   ;;  %v7866_v7 = vld [vmem:[%s12867_s4 + $0x18] ss:$28 sps:$4 sm:$0xff]  }
 0x125   :  { %1884 = vmatprep.mubr.bf16.mxu0 %v7779_v9  ;;  %1997 = vmatprep.mubr.bf16.mxu1 %v7781_v10  ;;  %v7867_v8 = vld [vmem:[%s12866_s5 + $0xe8] ss:$16 sps:$4 sm:$0xff]   ;;  %v7875_v10 = vld [vmem:[%s12866_s5 + $0xcc] ss:$16 sps:$4 sm:$0xff]  }
 0x126   :  { %2407 = vmatprep.subr.bf16.mxu1 %v7872_v35  ;;  %v7870_v9 = vld [vmem:[%s12866_s5 + $0x2e8] ss:$16 sps:$4 sm:$0xff]  }
 0x127   :  { %2071 = vmatpush1.bf16.msra.mxu0 %v7776_v11  ;;  %v7878_v11 = vld [vmem:[%s12866_s5 + $0x2cc] ss:$16 sps:$4 sm:$0xff]   ;;  %v7905_v35 = vld [vmem:[%s12866_s5 + $0x48] ss:$16 sps:$4 sm:$0xff]  }
 0x128   :  { %2072 = vmatprep.subr.bf16.mxu0 %v7787_v12  ;;  %v7879_v12 = vld [vmem:[%s12867_s4 + $0x4c] ss:$28 sps:$4 sm:$0xff]  }
 0x12a   :  { %1885 = vmatmul.mubr.bf16.gmra.mxu0 %v7783_v13  ;;  %v7873_v13 = vld [vmem:[%s12866_s5 + $0xc8] ss:$16 sps:$4 sm:$0xff]  }
 0x12b   :  { %1998 = vmatmul.mubr.bf16.gmra.mxu1 %v7784_v14  ;;  %2073 = vmatpush1.bf16.msra.mxu0 %v7785_v15  ;;  %v7876_v14 = vld [vmem:[%s12866_s5 + $0x2c8] ss:$16 sps:$4 sm:$0xff]  }
 0x12c   :  { %1894 = vmatprep.mubr.bf16.mxu0 %v7791_v17  ;;  %2074 = vmatprep.subr.bf16.mxu0 %v7790_v16  ;;  %v7881_v15 = vld [vmem:[%s12867_s4 + $0x48] ss:$28 sps:$4 sm:$0xff]   ;;  %v7885_v16 = vld [vmem:[%s12866_s5 + $0xac] ss:$16 sps:$4 sm:$0xff]  }
 0x12d   :  { %2007 = vmatprep.mubr.bf16.mxu1 %v7793_v18  ;;  %v7888_v17 = vld [vmem:[%s12866_s5 + $0x2ac] ss:$16 sps:$4 sm:$0xff]  }
 0x12e   :  { %v7882_v18 = vld [vmem:[%s12867_s4 + $0x50] ss:$28 sps:$4 sm:$0xff]  }
 0x12f   :  { %2075 = vmatpush1.bf16.msra.mxu0 %v7788_v19  ;;  %v7883_v19 = vld [vmem:[%s12866_s5 + $0xa8] ss:$16 sps:$4 sm:$0xff]  }
 0x130   :  { %2076 = vmatprep.subr.bf16.mxu0 %v7799_v20  ;;  %v7886_v20 = vld [vmem:[%s12866_s5 + $0x2a8] ss:$16 sps:$4 sm:$0xff]  }
 0x132   :  { %1895 = vmatmul.mubr.bf16.gmra.mxu0 %v7795_v21  ;;  %v7891_v21 = vld [vmem:[%s12866_s5 + $0x8c] ss:$16 sps:$4 sm:$0xff]  }
 0x133   :  { %2008 = vmatmul.mubr.bf16.gmra.mxu1 %v7796_v22  ;;  %2077 = vmatpush1.bf16.msra.mxu0 %v7797_v23  ;;  %v7894_v22 = vld [vmem:[%s12866_s5 + $0x28c] ss:$16 sps:$4 sm:$0xff]   ;;  %v7895_v23 = vld [vmem:[%s12867_s4 + $0x84] ss:$28 sps:$4 sm:$0xff]  }
 0x134   :  { %1904 = vmatprep.mubr.bf16.mxu0 %v7803_v25  ;;  %2078 = vmatprep.subr.bf16.mxu0 %v7802_v24  ;;  %v7889_v24 = vld [vmem:[%s12866_s5 + $0x88] ss:$16 sps:$4 sm:$0xff]  }
 0x135   :  { %2017 = vmatprep.mubr.bf16.mxu1 %v7805_v26  ;;  %v7892_v25 = vld [vmem:[%s12866_s5 + $0x288] ss:$16 sps:$4 sm:$0xff]   ;;  %v7897_v26 = vld [vmem:[%s12867_s4 + $0x80] ss:$28 sps:$4 sm:$0xff]  }
 0x137   :  { %2079 = vmatpush1.bf16.msra.mxu0 %v7800_v27  ;;  %v7901_v27 = vld [vmem:[%s12866_s5 + $0x6c] ss:$16 sps:$4 sm:$0xff]  }
 0x138   :  { %2080 = vmatprep.subr.bf16.mxu0 %v7811_v28  ;;  %v7904_v28 = vld [vmem:[%s12866_s5 + $0x26c] ss:$16 sps:$4 sm:$0xff]  }
 0x13a   :  { %1905 = vmatmul.mubr.bf16.gmra.mxu0 %v7807_v29  ;;  %v7898_v29 = vld [vmem:[%s12867_s4 + $0x88] ss:$28 sps:$4 sm:$0xff]  }
 0x13b   :  { %2018 = vmatmul.mubr.bf16.gmra.mxu1 %v7808_v30  ;;  %2081 = vmatpush1.bf16.msra.mxu0 %v7809_v31  ;;  %v7899_v30 = vld [vmem:[%s12866_s5 + $0x68] ss:$16 sps:$4 sm:$0xff]  }
 0x13c   :  { %1914 = vmatprep.mubr.bf16.mxu0 %v7815_v33  ;;  %2082 = vmatprep.subr.bf16.mxu0 %v7814_v32  ;;  %v7902_v31 = vld [vmem:[%s12866_s5 + $0x268] ss:$16 sps:$4 sm:$0xff]   ;;  %v7907_v32 = vld [vmem:[%s12866_s5 + $0x4c] ss:$16 sps:$4 sm:$0xff]  }
 0x13d   :  { %2027 = vmatprep.mubr.bf16.mxu1 %v7817_v34  ;;  %v7910_v33 = vld [vmem:[%s12866_s5 + $0x24c] ss:$16 sps:$4 sm:$0xff]  }
 0x13e   :  { %v7911_v34 = vld [vmem:[%s12867_s4 + $0xbc] ss:$28 sps:$4 sm:$0xff]  }
 0x13f   :  { %2083 = vmatpush1.bf16.msra.mxu0 %v7812_v36  ;;  %v7908_v36 = vld [vmem:[%s12866_s5 + $0x248] ss:$16 sps:$4 sm:$0xff]  }
 0x140   :  { %2084 = vmatprep.subr.bf16.mxu0 %v7823_v37  ;;  %v7917_v37 = vld [vmem:[%s12866_s5 + $0x2c] ss:$16 sps:$4 sm:$0xff]  }
 0x142   :  { %1915 = vmatmul.mubr.bf16.gmra.mxu0 %v7819_v38  ;;  %v7920_v38 = vld [vmem:[%s12866_s5 + $0x22c] ss:$16 sps:$4 sm:$0xff]  }
 0x143   :  { %2028 = vmatmul.mubr.bf16.gmra.mxu1 %v7820_v39  ;;  %2085 = vmatpush2.bf16.msra.mxu0 %v7821_v40  ;;  %v7913_v39 = vld [vmem:[%s12867_s4 + $0xb8] ss:$28 sps:$4 sm:$0xff]   ;;  %v7914_v40 = vld [vmem:[%s12867_s4 + $0xc0] ss:$28 sps:$4 sm:$0xff]  }
 0x144   :  { %1924 = vmatprep.mubr.bf16.mxu0 %v7827_v41  ;;  %2086 = vmatprep.subr.bf16.mxu0 %v7826_v42  ;;  %v7915_v41 = vld [vmem:[%s12866_s5 + $0x28] ss:$16 sps:$4 sm:$0xff]  }
 0x145   :  { %2037 = vmatprep.mubr.bf16.mxu1 %v7829_v43  ;;  %v7918_v42 = vld [vmem:[%s12866_s5 + $0x228] ss:$16 sps:$4 sm:$0xff]   ;;  %v7923_v43 = vld [vmem:[%s12866_s5 + $0xc] ss:$16 sps:$4 sm:$0xff]  }
 0x147   :  { %2087 = vmatpush2.bf16.msra.mxu0 %v7824_v44  ;;  %v7926_v44 = vld [vmem:[%s12866_s5 + $0x20c] ss:$16 sps:$4 sm:$0xff]  }
 0x148   :  { %2088 = vmatprep.subr.bf16.mxu0 %v7835_v46  ;;  %v7921_v46 = vld [vmem:[%s12866_s5 + $0x8] ss:$16 sps:$4 sm:$0xff]  }
 0x14a   :  { %1925 = vmatmul.mubr.bf16.gmra.mxu0 %v7831_v45  ;;  %v7927_v45 = vld [vmem:[%s12867_s4 + $0xf4] ss:$28 sps:$4 sm:$0xff]  }
 0x14b   :  { %2038 = vmatmul.mubr.bf16.gmra.mxu1 %v7832_v47  ;;  %2089 = vmatpush2.bf16.msra.mxu0 %v7833_v48  ;;  %v7924_v47 = vld [vmem:[%s12866_s5 + $0x208] ss:$16 sps:$4 sm:$0xff]   ;;  %v7933_v48 = vld [vmem:[%s12866_s5 + $0x1ec] ss:$16 sps:$4 sm:$0xff]  }
 0x14c   :  { %1934 = vmatprep.mubr.bf16.mxu0 %v7839_v49  ;;  %2090 = vmatprep.subr.bf16.mxu0 %v7838_v50  ;;  %v7936_v49 = vld [vmem:[%s12866_s5 + $0x3ec] ss:$16 sps:$4 sm:$0xff]  }
 0x14d   :  { %2047 = vmatprep.mubr.bf16.mxu1 %v7841_v51  ;;  %v7929_v50 = vld [vmem:[%s12867_s4 + $0xf0] ss:$28 sps:$4 sm:$0xff]   ;;  %v7930_v51 = vld [vmem:[%s12867_s4 + $0xf8] ss:$28 sps:$4 sm:$0xff]  }
 0x14f   :  { %2091 = vmatpush2.bf16.msra.mxu0 %v7836_v52  ;;  %v7931_v52 = vld [vmem:[%s12866_s5 + $0x1e8] ss:$16 sps:$4 sm:$0xff]  }
 0x150   :  { %2092 = vmatprep.subr.bf16.mxu0 %v7847_v54  ;;  %v7939_v54 = vld [vmem:[%s12866_s5 + $0x1cc] ss:$16 sps:$4 sm:$0xff]  }
 0x152   :  { %1935 = vmatmul.mubr.bf16.gmra.mxu0 %v7843_v53  ;;  %v7934_v53 = vld [vmem:[%s12866_s5 + $0x3e8] ss:$16 sps:$4 sm:$0xff]  }
 0x153   :  { %2048 = vmatmul.mubr.bf16.gmra.mxu1 %v7844_v55  ;;  %2093 = vmatpush2.bf16.msra.mxu0 %v7845_v56  ;;  %v7942_v55 = vld [vmem:[%s12866_s5 + $0x3cc] ss:$16 sps:$4 sm:$0xff]  }
 0x154   :  { %1944 = vmatprep.mubr.bf16.mxu0 %v7851_v58  ;;  %2094 = vmatprep.subr.bf16.mxu0 %v7850_v57  ;;  %v7943_v56 = vld [vmem:[%s12867_s4 + $0x12c] ss:$28 sps:$4 sm:$0xff]  }
 0x155   :  { %2057 = vmatprep.mubr.bf16.mxu1 %v7853_v59  ;;  %v7937_v57 = vld [vmem:[%s12866_s5 + $0x1c8] ss:$16 sps:$4 sm:$0xff]   ;;  %v7949_v59 = vld [vmem:[%s12866_s5 + $0x1ac] ss:$16 sps:$4 sm:$0xff]  }
 0x156   :  { %v7940_v58 = vld [vmem:[%s12866_s5 + $0x3c8] ss:$16 sps:$4 sm:$0xff]  }
 0x157   :  { %2095 = vmatpush2.bf16.msra.mxu0 %v7848_v60  ;;  %v7952_v60 = vld [vmem:[%s12866_s5 + $0x3ac] ss:$16 sps:$4 sm:$0xff]  }
 0x158   :  { %2096 = vmatprep.subr.bf16.mxu0 %v7859_v61  ;;  %v7945_v61 = vld [vmem:[%s12867_s4 + $0x128] ss:$28 sps:$4 sm:$0xff]  }
 0x15a   :  { %1945 = vmatmul.mubr.bf16.gmra.mxu0 %v7855_v62  ;;  %v7946_v62 = vld [vmem:[%s12867_s4 + $0x130] ss:$28 sps:$4 sm:$0xff]  }
 0x15b   :  { %2058 = vmatmul.mubr.bf16.gmra.mxu1 %v7856_v63  ;;  %2097 = vmatpush2.bf16.msra.mxu0 %v7857_v0  ;;  %v7947_v63 = vld [vmem:[%s12866_s5 + $0x1a8] ss:$16 sps:$4 sm:$0xff]  }
 0x15c   :  { %2100 = vmatprep.mubr.bf16.mxu0 %v7865_v1  ;;  %2098 = vmatprep.subr.bf16.mxu0 %v7862_v2  ;;  %v7950_v0 = vld [vmem:[%s12866_s5 + $0x3a8] ss:$16 sps:$4 sm:$0xff]   ;;  %v7955_v1 = vld [vmem:[%s12866_s5 + $0x18c] ss:$16 sps:$4 sm:$0xff]  }
 0x15d   :  { %2213 = vmatprep.mubr.bf16.mxu1 %v8814_v4  ;;  %v7958_v2 = vld [vmem:[%s12866_s5 + $0x38c] ss:$16 sps:$4 sm:$0xff]  }
 0x15f   :  { %2099 = vmatpush2.bf16.msra.mxu0 %v7860_v3  ;;  %v7953_v3 = vld [vmem:[%s12866_s5 + $0x188] ss:$16 sps:$4 sm:$0xff]  }
 0x160   :  { %2294 = vmatprep.subr.bf16.mxu0 %v7869_v5  ;;  %v7956_v5 = vld [vmem:[%s12866_s5 + $0x388] ss:$16 sps:$4 sm:$0xff]  }
 0x162   :  { %2101 = vmatmul.mubr.bf16.vlgmr.msra.gmra.mxu0 %v7863_v6  ;;  %v7959_v6 = vld [vmem:[%s12867_s4 + $0x164] ss:$28 sps:$4 sm:$0xff]  }
 0x163   :  { %7250 = vmatmul.mubr.msk.bf16.vlgmr.msra.gmra.mxu1 %vm1817_vm0, %v7866_v7  ;;  %2295 = vmatpush1.bf16.msra.mxu0 %v7867_v8  ;;  %v7965_v7 = vld [vmem:[%s12866_s5 + $0x16c] ss:$16 sps:$4 sm:$0xff]  }
 0x164   :  { %2408 = vmatpush1.bf16.msra.mxu1 %v7870_v9  ;;  %2296 = vmatprep.subr.bf16.mxu0 %v7875_v10  ;;  %v7968_v8 = vld [vmem:[%s12866_s5 + $0x36c] ss:$16 sps:$4 sm:$0xff]   ;;  %v7962_v10 = vld [vmem:[%s12867_s4 + $0x168] ss:$28 sps:$4 sm:$0xff]  }
 0x165   :  { %2409 = vmatprep.subr.bf16.mxu1 %v7878_v11  ;;  %2110 = vmatprep.mubr.bf16.mxu0 %v7879_v12  ;;  %v7961_v9 = vld [vmem:[%s12867_s4 + $0x160] ss:$28 sps:$4 sm:$0xff]   ;;  %v7963_v11 = vld [vmem:[%s12866_s5 + $0x168] ss:$16 sps:$4 sm:$0xff]  }
 0x166   :  { %2223 = vmatprep.mubr.bf16.mxu1 %v8814_v4  ;;  %v7966_v12 = vld [vmem:[%s12866_s5 + $0x368] ss:$16 sps:$4 sm:$0xff]  }
 0x167   :  { %2297 = vmatpush1.bf16.msra.mxu0 %v7873_v13  ;;  %v7971_v13 = vld [vmem:[%s12866_s5 + $0x14c] ss:$16 sps:$4 sm:$0xff]  }
 0x168   :  { %2410 = vmatpush1.bf16.msra.mxu1 %v7876_v14  ;;  %2298 = vmatprep.subr.bf16.mxu0 %v7885_v16  ;;  %v7974_v14 = vld [vmem:[%s12866_s5 + $0x34c] ss:$16 sps:$4 sm:$0xff]   ;;  %v7969_v16 = vld [vmem:[%s12866_s5 + $0x148] ss:$16 sps:$4 sm:$0xff]  }
 0x169   :  { %2411 = vmatprep.subr.bf16.mxu1 %v7888_v17  ;;  %v7972_v17 = vld [vmem:[%s12866_s5 + $0x348] ss:$16 sps:$4 sm:$0xff]  }
 0x16a   :  { %2111 = vmatmul.mubr.bf16.gmra.mxu0 %v7881_v15  ;;  %v9618_v15 = vld [vmem:[%s12867_s4 + $0x19c] ss:$28 sps:$4 sm:$0xff]  }
 0x16b   :  { %7251 = vmatmul.mubr.msk.bf16.gmra.mxu1 %vm1817_vm0, %v7882_v18  ;;  %2299 = vmatpush1.bf16.msra.mxu0 %v7883_v19  ;;  %v7981_v18 = vld [vmem:[%s12866_s5 + $0x12c] ss:$16 sps:$4 sm:$0xff]  }
 0x16c   :  { %2412 = vmatpush1.bf16.msra.mxu1 %v7886_v20  ;;  %2300 = vmatprep.subr.bf16.mxu0 %v7891_v21  ;;  %v7984_v19 = vld [vmem:[%s12866_s5 + $0x32c] ss:$16 sps:$4 sm:$0xff]   ;;  %v9636_v20 = vld [vmem:[%s12867_s4 + $0x198] ss:$28 sps:$4 sm:$0xff]  }
 0x16d   :  { %2413 = vmatprep.subr.bf16.mxu1 %v7894_v22  ;;  %2120 = vmatprep.mubr.bf16.mxu0 %v7895_v23  ;;  %v9641_v21 = vld [vmem:[%s12867_s4 + $0x1a0] ss:$28 sps:$4 sm:$0xff]   ;;  %v7979_v22 = vld [vmem:[%s12866_s5 + $0x128] ss:$16 sps:$4 sm:$0xff]  }
 0x16e   :  { %2233 = vmatprep.mubr.bf16.mxu1 %v8814_v4  ;;  %v7982_v23 = vld [vmem:[%s12866_s5 + $0x328] ss:$16 sps:$4 sm:$0xff]  }
 0x16f   :  { %2301 = vmatpush1.bf16.msra.mxu0 %v7889_v24  ;;  %v7987_v24 = vld [vmem:[%s12866_s5 + $0x10c] ss:$16 sps:$4 sm:$0xff]  }
 0x170   :  { %2414 = vmatpush1.bf16.msra.mxu1 %v7892_v25  ;;  %2302 = vmatprep.subr.bf16.mxu0 %v7901_v27  ;;  %v7990_v25 = vld [vmem:[%s12866_s5 + $0x30c] ss:$16 sps:$4 sm:$0xff]   ;;  %v7988_v27 = vld [vmem:[%s12866_s5 + $0x308] ss:$16 sps:$4 sm:$0xff]  }
 0x171   :  { %2415 = vmatprep.subr.bf16.mxu1 %v7904_v28  ;;  %v7993_v28 = vld [vmem:[%s12866_s5 + $0x4ec] ss:$16 sps:$4 sm:$0xff]  }
 0x172   :  { %2121 = vmatmul.mubr.bf16.gmra.mxu0 %v7897_v26  ;;  %v7985_v26 = vld [vmem:[%s12866_s5 + $0x108] ss:$16 sps:$4 sm:$0xff]  }
 0x173   :  { %7252 = vmatmul.mubr.msk.bf16.gmra.mxu1 %vm1817_vm0, %v7898_v29  ;;  %2303 = vmatpush1.bf16.msra.mxu0 %v7899_v30  ;;  %v7996_v29 = vld [vmem:[%s12866_s5 + $0x60c] ss:$16 sps:$4 sm:$0xff]   ;;  %v8382_v30 = vld [vmem:[%s12867_s4 + $0x4] ss:$28 sps:$4 sm:$0xff]  }
 0x174   :  { %2416 = vmatpush1.bf16.msra.mxu1 %v7902_v31  ;;  %2304 = vmatprep.subr.bf16.mxu0 %v7907_v32  ;;  %v8383_v31 = vld [vmem:[%s12867_s4 + $0xc] ss:$28 sps:$4 sm:$0xff]  }
 0x175   :  { %2417 = vmatprep.subr.bf16.mxu1 %v7910_v33  ;;  %2130 = vmatprep.mubr.bf16.mxu0 %v7911_v34  ;;  %v7991_v32 = vld [vmem:[%s12866_s5 + $0x4e8] ss:$16 sps:$4 sm:$0xff]   ;;  %v7999_v34 = vld [vmem:[%s12866_s5 + $0x4cc] ss:$16 sps:$4 sm:$0xff]  }
 0x176   :  { %2243 = vmatprep.mubr.bf16.mxu1 %v8814_v4  ;;  %v7994_v33 = vld [vmem:[%s12866_s5 + $0x608] ss:$16 sps:$4 sm:$0xff]  }
 0x177   :  { %2305 = vmatpush1.bf16.msra.mxu0 %v7905_v35  ;;  %v7997_v35 = vld [vmem:[%s12866_s5 + $0x4c8] ss:$16 sps:$4 sm:$0xff]  }
 0x178   :  { %2418 = vmatpush1.bf16.msra.mxu1 %v7908_v36  ;;  %2306 = vmatprep.subr.bf16.mxu0 %v7917_v37  ;;  %v8384_v36 = vld [vmem:[%s12867_s4] ss:$28 sps:$4 sm:$0xff]   ;;  %v8385_v37 = vld [vmem:[%s12867_s4 + $0x8] ss:$28 sps:$4 sm:$0xff]  }
 0x179   :  { %2419 = vmatprep.subr.bf16.mxu1 %v7920_v38  ;;  %v8002_v38 = vld [vmem:[%s12866_s5 + $0x4ac] ss:$16 sps:$4 sm:$0xff]  }
 0x17a   :  { %2131 = vmatmul.mubr.bf16.gmra.mxu0 %v7913_v39  ;;  %v8386_v39 = vld [vmem:[%s12867_s4 + $0x3c] ss:$28 sps:$4 sm:$0xff]  }
 0x17b   :  { %7253 = vmatmul.mubr.msk.bf16.gmra.mxu1 %vm1817_vm0, %v7914_v40  ;;  %2307 = vmatpush1.bf16.msra.mxu0 %v7915_v41  ;;  %v8387_v40 = vld [vmem:[%s12867_s4 + $0x44] ss:$28 sps:$4 sm:$0xff]   ;;  %v8000_v41 = vld [vmem:[%s12866_s5 + $0x4a8] ss:$16 sps:$4 sm:$0xff]  }
 0x17c   :  { %2420 = vmatpush1.bf16.msra.mxu1 %v7918_v42  ;;  %2308 = vmatprep.subr.bf16.mxu0 %v7923_v43  ;;  %v8005_v42 = vld [vmem:[%s12866_s5 + $0x48c] ss:$16 sps:$4 sm:$0xff]   ;;  %v8003_v43 = vld [vmem:[%s12866_s5 + $0x488] ss:$16 sps:$4 sm:$0xff]  }
 0x17d   :  { %2421 = vmatprep.subr.bf16.mxu1 %v7926_v44  ;;  %2140 = vmatprep.mubr.bf16.mxu0 %v7927_v45  ;;  %v8388_v44 = vld [vmem:[%s12867_s4 + $0x38] ss:$28 sps:$4 sm:$0xff]   ;;  %v8389_v45 = vld [vmem:[%s12867_s4 + $0x40] ss:$28 sps:$4 sm:$0xff]  }
 0x17e   :  { %2253 = vmatprep.mubr.bf16.mxu1 %v8814_v4 }
 0x17f   :  { %2309 = vmatpush1.bf16.msra.mxu0 %v7921_v46  ;;  %v8008_v46 = vld [vmem:[%s12866_s5 + $0x46c] ss:$16 sps:$4 sm:$0xff]  }
 0x180   :  { %2422 = vmatpush1.bf16.msra.mxu1 %v7924_v47  ;;  %2310 = vmatprep.subr.bf16.mxu0 %v7933_v48  ;;  %v8390_v47 = vld [vmem:[%s12867_s4 + $0x74] ss:$28 sps:$4 sm:$0xff]   ;;  %v8391_v48 = vld [vmem:[%s12867_s4 + $0x7c] ss:$28 sps:$4 sm:$0xff]  }
 0x181   :  { %2423 = vmatprep.subr.bf16.mxu1 %v7936_v49  ;;  %v8006_v49 = vld [vmem:[%s12866_s5 + $0x468] ss:$16 sps:$4 sm:$0xff]  }
 0x182   :  { %2141 = vmatmul.mubr.bf16.gmra.mxu0 %v7929_v50  ;;  %v8011_v50 = vld [vmem:[%s12866_s5 + $0x44c] ss:$16 sps:$4 sm:$0xff]  }
 0x183   :  { %7254 = vmatmul.mubr.msk.bf16.gmra.mxu1 %vm1817_vm0, %v7930_v51  ;;  %2311 = vmatpush2.bf16.msra.mxu0 %v7931_v52  ;;  %v8009_v51 = vld [vmem:[%s12866_s5 + $0x448] ss:$16 sps:$4 sm:$0xff]   ;;  %v8392_v52 = vld [vmem:[%s12867_s4 + $0x70] ss:$28 sps:$4 sm:$0xff]  }
 0x184   :  { %2424 = vmatpush2.bf16.msra.mxu1 %v7934_v53  ;;  %2312 = vmatprep.subr.bf16.mxu0 %v7939_v54  ;;  %v8393_v53 = vld [vmem:[%s12867_s4 + $0x78] ss:$28 sps:$4 sm:$0xff]   ;;  %v8014_v54 = vld [vmem:[%s12866_s5 + $0x42c] ss:$16 sps:$4 sm:$0xff]  }
 0x185   :  { %2425 = vmatprep.subr.bf16.mxu1 %v7942_v55  ;;  %2150 = vmatprep.mubr.bf16.mxu0 %v7943_v56  ;;  %v8394_v55 = vld [vmem:[%s12867_s4 + $0xac] ss:$28 sps:$4 sm:$0xff]   ;;  %v8395_v56 = vld [vmem:[%s12867_s4 + $0xb4] ss:$28 sps:$4 sm:$0xff]  }
 0x186   :  { %2263 = vmatprep.mubr.bf16.mxu1 %v8814_v4 }
 0x187   :  { %2313 = vmatpush2.bf16.msra.mxu0 %v7937_v57  ;;  %v8012_v57 = vld [vmem:[%s12866_s5 + $0x428] ss:$16 sps:$4 sm:$0xff]  }
 0x188   :  { %2426 = vmatpush2.bf16.msra.mxu1 %v7940_v58  ;;  %2314 = vmatprep.subr.bf16.mxu0 %v7949_v59  ;;  %v8017_v58 = vld [vmem:[%s12866_s5 + $0x40c] ss:$16 sps:$4 sm:$0xff]   ;;  %v8015_v59 = vld [vmem:[%s12866_s5 + $0x408] ss:$16 sps:$4 sm:$0xff]  }
 0x189   :  { %2427 = vmatprep.subr.bf16.mxu1 %v7952_v60  ;;  %v8396_v60 = vld [vmem:[%s12867_s4 + $0xa8] ss:$28 sps:$4 sm:$0xff]  }
 0x18a   :  { %2151 = vmatmul.mubr.bf16.gmra.mxu0 %v7945_v61  ;;  %v8397_v61 = vld [vmem:[%s12867_s4 + $0xb0] ss:$28 sps:$4 sm:$0xff]  }
 0x18b   :  { %7255 = vmatmul.mubr.msk.bf16.gmra.mxu1 %vm1817_vm0, %v7946_v62  ;;  %2315 = vmatpush2.bf16.msra.mxu0 %v7947_v63  ;;  %v8020_v62 = vld [vmem:[%s12866_s5 + $0x5ec] ss:$16 sps:$4 sm:$0xff]   ;;  %v8398_v63 = vld [vmem:[%s12867_s4 + $0xe4] ss:$28 sps:$4 sm:$0xff]  }
 0x18c   :  { %2428 = vmatpush2.bf16.msra.mxu1 %v7950_v0  ;;  %2316 = vmatprep.subr.bf16.mxu0 %v7955_v1  ;;  %v8399_v0 = vld [vmem:[%s12867_s4 + $0xec] ss:$28 sps:$4 sm:$0xff]  }
 0x18d   :  { %2429 = vmatprep.subr.bf16.mxu1 %v7958_v2  ;;  %2160 = vmatprep.mubr.bf16.mxu0 %v7959_v6  ;;  %v8018_v1 = vld [vmem:[%s12866_s5 + $0x5e8] ss:$16 sps:$4 sm:$0xff]   ;;  %v8023_v2 = vld [vmem:[%s12866_s5 + $0x5cc] ss:$16 sps:$4 sm:$0xff]  }
 0x18e   :  { %2273 = vmatprep.mubr.bf16.mxu1 %v8814_v4  ;;  %v8400_v6 = vld [vmem:[%s12867_s4 + $0xe0] ss:$28 sps:$4 sm:$0xff]  }
 0x18f   :  { %2317 = vmatpush2.bf16.msra.mxu0 %v7953_v3  ;;  %v8021_v3 = vld [vmem:[%s12866_s5 + $0x5c8] ss:$16 sps:$4 sm:$0xff]  }
 0x190   :  { %2430 = vmatpush2.bf16.msra.mxu1 %v7956_v5  ;;  %2318 = vmatprep.subr.bf16.mxu0 %v7965_v7  ;;  %v537_v5 = vlaneseq  ;;  %v8401_v7 = vld [vmem:[%s12867_s4 + $0xe8] ss:$28 sps:$4 sm:$0xff]  }
 0x191   :  { %2431 = vmatprep.subr.bf16.mxu1 %v7968_v8  ;;  %v8026_v8 = vld [vmem:[%s12866_s5 + $0x5ac] ss:$16 sps:$4 sm:$0xff]  }
 0x192   :  { %2161 = vmatmul.mubr.bf16.gmra.mxu0 %v7961_v9  ;;  %v8402_v9 = vld [vmem:[%s12867_s4 + $0x11c] ss:$28 sps:$4 sm:$0xff]  }
 0x193   :  { %7256 = vmatmul.mubr.msk.bf16.gmra.mxu1 %vm1817_vm0, %v7962_v10  ;;  %2319 = vmatpush2.bf16.msra.mxu0 %v7963_v11  ;;  %v8403_v10 = vld [vmem:[%s12867_s4 + $0x124] ss:$28 sps:$4 sm:$0xff]   ;;  %v8024_v11 = vld [vmem:[%s12866_s5 + $0x5a8] ss:$16 sps:$4 sm:$0xff]  }
 0x194   :  { %2432 = vmatpush2.bf16.msra.mxu1 %v7966_v12  ;;  %2320 = vmatprep.subr.bf16.mxu0 %v7971_v13  ;;  %v9804_v12 = vshrl.u32 %v537_v5, 7  ;;  %v8029_v13 = vld [vmem:[%s12866_s5 + $0x58c] ss:$16 sps:$4 sm:$0xff]  }
 0x195   :  { %2433 = vmatprep.subr.bf16.mxu1 %v7974_v14  ;;  %2170 = vmatprep.mubr.bf16.mxu0 %v9618_v15  ;;  %v8027_v14 = vld [vmem:[%s12866_s5 + $0x588] ss:$16 sps:$4 sm:$0xff]  }
 0x196   :  { %2283 = vmatprep.mubr.bf16.mxu1 %v8814_v4  ;;  %12868 = vst [vmem:[#allocation37_spill] sm:$0xff] %v9804_v12 }
 0x197   :  { %2321 = vmatpush2.bf16.msra.mxu0 %v7969_v16  ;;  %v9813_v16 = vsub.s32 0, %v9804_v12 }
 0x198   :  { %2434 = vmatpush2.bf16.msra.mxu1 %v7972_v17  ;;  %2322 = vmatprep.subr.bf16.mxu0 %v7981_v18  ;;  %v8404_v17 = vld [vmem:[%s12867_s4 + $0x118] ss:$28 sps:$4 sm:$0xff]   ;;  %v8405_v18 = vld [vmem:[%s12867_s4 + $0x120] ss:$28 sps:$4 sm:$0xff]  }
 0x199   :  { %2435 = vmatprep.subr.bf16.mxu1 %v7984_v19  ;;  %12869 = vst [vmem:[#allocation38_spill] sm:$0xff] %v9813_v16  ;;  %v8032_v19 = vld [vmem:[%s12866_s5 + $0x56c] ss:$16 sps:$4 sm:$0xff]  }
 0x19a   :  { %2171 = vmatmul.mubr.bf16.gmra.mxu0 %v9636_v20 }
 0x19b   :  { %7257 = vmatmul.mubr.msk.bf16.gmra.mxu1 %vm1817_vm0, %v9641_v21  ;;  %2323 = vmatpush2.bf16.msra.mxu0 %v7979_v22  ;;  %v8406_v22 = vld [vmem:[%s12867_s4 + $0x154] ss:$28 sps:$4 sm:$0xff]  }
 0x19c   :  { %2436 = vmatpush2.bf16.msra.mxu1 %v7982_v23  ;;  %2324 = vmatprep.subr.bf16.mxu0 %v7987_v24  ;;  %v8407_v23 = vld [vmem:[%s12867_s4 + $0x15c] ss:$28 sps:$4 sm:$0xff]  }
 0x19d   :  { %2437 = vmatprep.subr.bf16.mxu1 %v7990_v25  ;;  %2326 = vmatprep.mubr.bf16.mxu0 %v8382_v30  ;;  %v8030_v24 = vld [vmem:[%s12866_s5 + $0x568] ss:$16 sps:$4 sm:$0xff]   ;;  %v8035_v25 = vld [vmem:[%s12866_s5 + $0x54c] ss:$16 sps:$4 sm:$0xff]  }
 0x19e   :  { %2439 = vmatprep.mubr.bf16.mxu1 %v8383_v31  ;;  %v8410_v30 = vld [vmem:[%s12867_s4 + $0x18c] ss:$28 sps:$4 sm:$0xff]   ;;  %v8411_v31 = vld [vmem:[%s12867_s4 + $0x194] ss:$28 sps:$4 sm:$0xff]  }
 0x19f   :  { %2325 = vmatpush2.bf16.msra.mxu0 %v7985_v26  ;;  %v8033_v26 = vld [vmem:[%s12866_s5 + $0x548] ss:$16 sps:$4 sm:$0xff]  }
 0x1a0   :  { %2438 = vmatpush2.bf16.msra.mxu1 %v7988_v27  ;;  %2520 = vmatprep.subr.bf16.mxu0 %v7993_v28  ;;  %v8408_v27 = vld [vmem:[%s12867_s4 + $0x150] ss:$28 sps:$4 sm:$0xff]   ;;  %v8409_v28 = vld [vmem:[%s12867_s4 + $0x158] ss:$28 sps:$4 sm:$0xff]  }
 0x1a1   :  { %2647 = vmatprep.subr.bf16.mxu1 %v7996_v29  ;;  %v8038_v29 = vld [vmem:[%s12866_s5 + $0x52c] ss:$16 sps:$4 sm:$0xff]  }
 0x1a2   :  { %2327 = vmatmul.mubr.bf16.vlgmr.msra.gmra.mxu0 %v8384_v36  ;;  %v8413_v36 = vld [vmem:[%s12867_s4 + $0x190] ss:$28 sps:$4 sm:$0xff]  }
 0x1a3   :  { %2440 = vmatmul.mubr.bf16.vlgmr.msra.gmra.mxu1 %v8385_v37  ;;  %2521 = vmatpush1.bf16.msra.mxu0 %v7991_v32  ;;  %v8036_v32 = vld [vmem:[%s12866_s5 + $0x528] ss:$16 sps:$4 sm:$0xff]   ;;  %v8414_v37 = vld [vmem:[%s12867_s4 + $0x14] ss:$28 sps:$4 sm:$0xff]  }
 0x1a4   :  { %2648 = vmatpush1.bf16.msra.mxu1 %v7994_v33  ;;  %2522 = vmatprep.subr.bf16.mxu0 %v7999_v34  ;;  %v8041_v33 = vld [vmem:[%s12866_s5 + $0x50c] ss:$16 sps:$4 sm:$0xff]   ;;  %v8039_v34 = vld [vmem:[%s12866_s5 + $0x508] ss:$16 sps:$4 sm:$0xff]  }
 0x1a5   :  { %2336 = vmatprep.mubr.bf16.mxu0 %v8386_v39  ;;  %2449 = vmatprep.mubr.bf16.mxu1 %v8387_v40  ;;  %v9879_v39 = vsub.s32 1, %v9804_v12 }
 0x1a7   :  { %2523 = vmatpush1.bf16.msra.mxu0 %v7997_v35  ;;  %v8412_v35 = vld [vmem:[%s12867_s4 + $0x188] ss:$28 sps:$4 sm:$0xff]   ;;  %12871 = vst [vmem:[#allocation39_spill] sm:$0xff] %v9879_v39 }
 0x1a8   :  { %2524 = vmatprep.subr.bf16.mxu0 %v8002_v38  ;;  %v9876_v38 = vld [vmem:[%s12870_s3] sm:$0xf] }
 0x1a9   :  { %v9883_v40 = vrot.slane %v9876_v38, %v9813_v16 }
 0x1aa   :  { %2337 = vmatmul.mubr.bf16.gmra.mxu0 %v8388_v44  ;;  %v8415_v44 = vld [vmem:[%s12867_s4 + $0x10] ss:$28 sps:$4 sm:$0xff]  }
 0x1ab   :  { %2450 = vmatmul.mubr.bf16.gmra.mxu1 %v8389_v45  ;;  %2525 = vmatpush1.bf16.msra.mxu0 %v8000_v41  ;;  %v9887_v41 = vrot.slane %v9876_v38, %v9879_v39  ;;  %v8416_v45 = vld [vmem:[%s12867_s4 + $0x18] ss:$28 sps:$4 sm:$0xff]  }
 0x1ac   :  { %2346 = vmatprep.mubr.bf16.mxu0 %v8390_v47  ;;  %2526 = vmatprep.subr.bf16.mxu0 %v8005_v42  ;;  %v8417_v47 = vld [vmem:[%s12867_s4 + $0x4c] ss:$28 sps:$4 sm:$0xff]  }
 0x1ad   :  { %2459 = vmatprep.mubr.bf16.mxu1 %v8391_v48 }
 0x1af   :  { %2527 = vmatpush1.bf16.msra.mxu0 %v8003_v43 }
 0x1b0   :  { %2528 = vmatprep.subr.bf16.mxu0 %v8008_v46 }
 0x1b2   :  { %2347 = vmatmul.mubr.bf16.gmra.mxu0 %v8392_v52 }
 0x1b3   :  { %2460 = vmatmul.mubr.bf16.gmra.mxu1 %v8393_v53  ;;  %2529 = vmatpush1.bf16.msra.mxu0 %v8006_v49 }
 0x1b4   :  { %2356 = vmatprep.mubr.bf16.mxu0 %v8394_v55  ;;  %2530 = vmatprep.subr.bf16.mxu0 %v8011_v50 }
 0x1b5   :  { %2469 = vmatprep.mubr.bf16.mxu1 %v8395_v56 }
 0x1b7   :  { %2531 = vmatpush1.bf16.msra.mxu0 %v8009_v51 }
 0x1b8   :  { %2532 = vmatprep.subr.bf16.mxu0 %v8014_v54 }
 0x1ba   :  { %2357 = vmatmul.mubr.bf16.gmra.mxu0 %v8396_v60 }
 0x1bb   :  { %2470 = vmatmul.mubr.bf16.gmra.mxu1 %v8397_v61  ;;  %2533 = vmatpush1.bf16.msra.mxu0 %v8012_v57 }
 0x1bc   :  { %2366 = vmatprep.mubr.bf16.mxu0 %v8398_v63  ;;  %2534 = vmatprep.subr.bf16.mxu0 %v8017_v58  ;;  %v8419_v63 = vld [vmem:[%s12867_s4 + $0x50] ss:$28 sps:$4 sm:$0xff]  }
 0x1bd   :  { %2479 = vmatprep.mubr.bf16.mxu1 %v8399_v0 }
 0x1bf   :  { %2535 = vmatpush1.bf16.msra.mxu0 %v8015_v59 }
 0x1c0   :  { %2536 = vmatprep.subr.bf16.mxu0 %v8020_v62  ;;  %v8418_v62 = vld [vmem:[%s12867_s4 + $0x48] ss:$28 sps:$4 sm:$0xff]  }
 0x1c2   :  { %2367 = vmatmul.mubr.bf16.gmra.mxu0 %v8400_v6 }
 0x1c3   :  { %2480 = vmatmul.mubr.bf16.gmra.mxu1 %v8401_v7  ;;  %2537 = vmatpush2.bf16.msra.mxu0 %v8018_v1 }
 0x1c4   :  { %2376 = vmatprep.mubr.bf16.mxu0 %v8402_v9  ;;  %2538 = vmatprep.subr.bf16.mxu0 %v8023_v2  ;;  %v8420_v2 = vld [vmem:[%s12867_s4 + $0x84] ss:$28 sps:$4 sm:$0xff]  }
 0x1c5   :  { %2489 = vmatprep.mubr.bf16.mxu1 %v8403_v10 }
 0x1c7   :  { %2539 = vmatpush2.bf16.msra.mxu0 %v8021_v3 }
 0x1c8   :  { %2540 = vmatprep.subr.bf16.mxu0 %v8026_v8 }
 0x1ca   :  { %2377 = vmatmul.mubr.bf16.gmra.mxu0 %v8404_v17 }
 0x1cb   :  { %2490 = vmatmul.mubr.bf16.gmra.mxu1 %v8405_v18  ;;  %2541 = vmatpush2.bf16.msra.mxu0 %v8024_v11 }
 0x1cc   :  { %2386 = vmatprep.mubr.bf16.mxu0 %v8406_v22  ;;  %2542 = vmatprep.subr.bf16.mxu0 %v8029_v13 }
 0x1cd   :  { %2499 = vmatprep.mubr.bf16.mxu1 %v8407_v23  ;;  %v8421_v23 = vld [vmem:[%s12867_s4 + $0x80] ss:$28 sps:$4 sm:$0xff]  }
 0x1cf   :  { %2543 = vmatpush2.bf16.msra.mxu0 %v8027_v14 }
 0x1d0   :  { %2544 = vmatprep.subr.bf16.mxu0 %v8032_v19 }
 0x1d2   :  { %2387 = vmatmul.mubr.bf16.gmra.mxu0 %v8408_v27  ;;  %v8423_v27 = vld [vmem:[%s12867_s4 + $0xbc] ss:$28 sps:$4 sm:$0xff]  }
 0x1d3   :  { %2500 = vmatmul.mubr.bf16.gmra.mxu1 %v8409_v28  ;;  %2545 = vmatpush2.bf16.msra.mxu0 %v8030_v24  ;;  %v8422_v24 = vld [vmem:[%s12867_s4 + $0x88] ss:$28 sps:$4 sm:$0xff]  }
 0x1d4   :  { %2396 = vmatprep.mubr.bf16.mxu0 %v8410_v30  ;;  %2546 = vmatprep.subr.bf16.mxu0 %v8035_v25 }
 0x1d5   :  { %2509 = vmatprep.mubr.bf16.mxu1 %v8411_v31 }
 0x1d7   :  { %2547 = vmatpush2.bf16.msra.mxu0 %v8033_v26 }
 0x1d8   :  { %2548 = vmatprep.subr.bf16.mxu0 %v8038_v29 }
 0x1da   :  { %2397 = vmatmul.mubr.bf16.gmra.mxu0 %v8412_v35 }
 0x1db   :  { %2510 = vmatmul.mubr.bf16.gmra.mxu1 %v8413_v36  ;;  %2549 = vmatpush2.bf16.msra.mxu0 %v8036_v32 }
 0x1dc   :  { %2552 = vmatprep.mubr.bf16.mxu0 %v8414_v37  ;;  %2550 = vmatprep.subr.bf16.mxu0 %v8041_v33 }
 0x1dd   :  { %2665 = vmatprep.mubr.bf16.mxu1 %v8814_v4 }
 0x1df   :  { %2551 = vmatpush2.bf16.msra.mxu0 %v8039_v34 }
 0x1e2   :  { %v1876_v42 = vpop.f32.mrf.mxu0  ;;  %2553 = vmatmul.mubr.bf16.vlgmr.msra.gmra.mxu0 %v8415_v44 }
 0x1e3   :  { %v1989_v43 = vpop.f32.mrf.mxu1  ;;  %7258 = vmatmul.mubr.msk.bf16.vlgmr.msra.gmra.mxu1 %vm1817_vm0, %v8416_v45  ;;  %v1877_v46 = vadd.f32 %v1876_v42, %v9883_v40  ;;  %2562 = vmatprep.mubr.bf16.mxu0 %v8417_v47  ;;  %v8425_v47 = vld [vmem:[%s12867_s4 + $0xc0] ss:$28 sps:$4 sm:$0xff]  }
 0x1e4   :  { %2675 = vmatprep.mubr.bf16.mxu1 %v8814_v4  ;;  %v1878_v48 = vpop.f32.mrf.mxu0 }
 0x1e5   :  { %v1991_v49 = vpop.f32.mrf.mxu1  ;;  %v9901_v50 = vadd.f32 %v1989_v43, %v1877_v46  ;;  %v1879_v51 = vadd.f32 %v1878_v48, %v9887_v41  ;;  %v8424_v46 = vld [vmem:[%s12867_s4 + $0xb8] ss:$28 sps:$4 sm:$0xff]  }
 0x1e6   :  { %v1880_v52 = vpop.f32.mrf.mxu0 }
 0x1e7   :  { %v1993_v53 = vpop.f32.mrf.mxu1  ;;  %v9904_v54 = vadd.f32 %v1991_v49, %v1879_v51  ;;  %v1881_v55 = vadd.f32 %v1880_v52, %v9883_v40  ;;  %v8426_v51 = vld [vmem:[%s12867_s4 + $0xf4] ss:$28 sps:$4 sm:$0xff]  }
 0x1e8   :  { %v1882_v56 = vpop.f32.mrf.mxu0 }
 0x1e9   :  { %v1995_v57 = vpop.f32.mrf.mxu1  ;;  %v9907_v58 = vadd.f32 %v1993_v53, %v1881_v55  ;;  %v1883_v59 = vadd.f32 %v1882_v56, %v9887_v41 }
 0x1ea   :  { %v1886_v60 = vpop.f32.mrf.mxu0  ;;  %2563 = vmatmul.mubr.bf16.gmra.mxu0 %v8418_v62 }
 0x1eb   :  { %v1999_v61 = vpop.f32.mrf.mxu1  ;;  %7259 = vmatmul.mubr.msk.bf16.gmra.mxu1 %vm1817_vm0, %v8419_v63  ;;  %v9917_v0 = vadd.f32 %v1995_v57, %v1883_v59  ;;  %v1887_v1 = vadd.f32 %v1886_v60, %v9883_v40  ;;  %2572 = vmatprep.mubr.bf16.mxu0 %v8420_v2 }
 0x1ec   :  { %2685 = vmatprep.mubr.bf16.mxu1 %v8814_v4  ;;  %v1888_v3 = vpop.f32.mrf.mxu0 }
 0x1ed   :  { %v2001_v5 = vpop.f32.mrf.mxu1  ;;  %v9924_v6 = vadd.f32 %v1999_v61, %v1887_v1  ;;  %v1889_v7 = vadd.f32 %v1888_v3, %v9887_v41 }
 0x1ee   :  { %v1890_v8 = vpop.f32.mrf.mxu0 }
 0x1ef   :  { %v2003_v9 = vpop.f32.mrf.mxu1  ;;  %v9927_v10 = vadd.f32 %v2001_v5, %v1889_v7  ;;  %v1891_v11 = vadd.f32 %v1890_v8, %v9883_v40  ;;  %v8427_v7 = vld [vmem:[%s12867_s4 + $0xf0] ss:$28 sps:$4 sm:$0xff]   ;;  %v8428_v8 = vld [vmem:[%s12867_s4 + $0xf8] ss:$28 sps:$4 sm:$0xff]  }
 0x1f0   :  { %v1892_v13 = vpop.f32.mrf.mxu0 }
 0x1f1   :  { %v2005_v14 = vpop.f32.mrf.mxu1  ;;  %v9930_v17 = vadd.f32 %v2003_v9, %v1891_v11  ;;  %v1893_v18 = vadd.f32 %v1892_v13, %v9887_v41  ;;  %v8429_v13 = vld [vmem:[%s12867_s4 + $0x12c] ss:$28 sps:$4 sm:$0xff]  }
 0x1f2   :  { %v1896_v19 = vpop.f32.mrf.mxu0  ;;  %2573 = vmatmul.mubr.bf16.gmra.mxu0 %v8421_v23 }
 0x1f3   :  { %v2009_v22 = vpop.f32.mrf.mxu1  ;;  %7260 = vmatmul.mubr.msk.bf16.gmra.mxu1 %vm1817_vm0, %v8422_v24  ;;  %v9940_v25 = vadd.f32 %v2005_v14, %v1893_v18  ;;  %v1897_v26 = vadd.f32 %v1896_v19, %v9883_v40  ;;  %2582 = vmatprep.mubr.bf16.mxu0 %v8423_v27 }
 0x1f4   :  { %2695 = vmatprep.mubr.bf16.mxu1 %v8814_v4  ;;  %v1898_v28 = vpop.f32.mrf.mxu0 }
 0x1f5   :  { %v2011_v29 = vpop.f32.mrf.mxu1  ;;  %v9947_v30 = vadd.f32 %v2009_v22, %v1897_v26  ;;  %v1899_v31 = vadd.f32 %v1898_v28, %v9887_v41 }
 0x1f6   :  { %v1900_v32 = vpop.f32.mrf.mxu0 }
 0x1f7   :  { %v2013_v33 = vpop.f32.mrf.mxu1  ;;  %v9950_v34 = vadd.f32 %v2011_v29, %v1899_v31  ;;  %v1901_v35 = vadd.f32 %v1900_v32, %v9883_v40 }
 0x1f8   :  { %v1902_v36 = vpop.f32.mrf.mxu0 }
 0x1f9   :  { %v2015_v37 = vpop.f32.mrf.mxu1  ;;  %v9953_v42 = vadd.f32 %v2013_v33, %v1901_v35  ;;  %v1903_v43 = vadd.f32 %v1902_v36, %v9887_v41  ;;  %v8430_v35 = vld [vmem:[%s12867_s4 + $0x128] ss:$28 sps:$4 sm:$0xff]   ;;  %v8431_v36 = vld [vmem:[%s12867_s4 + $0x130] ss:$28 sps:$4 sm:$0xff]  }
 0x1fa   :  { %v1906_v44 = vpop.f32.mrf.mxu0  ;;  %2583 = vmatmul.mubr.bf16.gmra.mxu0 %v8424_v46 }
 0x1fb   :  { %v2019_v45 = vpop.f32.mrf.mxu1  ;;  %7261 = vmatmul.mubr.msk.bf16.gmra.mxu1 %vm1817_vm0, %v8425_v47  ;;  %v9963_v48 = vadd.f32 %v2015_v37, %v1903_v43  ;;  %v1907_v49 = vadd.f32 %v1906_v44, %v9883_v40  ;;  %2592 = vmatprep.mubr.bf16.mxu0 %v8426_v51  ;;  %v8432_v43 = vld [vmem:[%s12867_s4 + $0x164] ss:$28 sps:$4 sm:$0xff]  }
 0x1fc   :  { %2705 = vmatprep.mubr.bf16.mxu1 %v8814_v4  ;;  %v1908_v52 = vpop.f32.mrf.mxu0 }
 0x1fd   :  { %v2021_v53 = vpop.f32.mrf.mxu1  ;;  %v9970_v55 = vadd.f32 %v2019_v45, %v1907_v49  ;;  %v1909_v56 = vadd.f32 %v1908_v52, %v9887_v41 }
 0x1fe   :  { %v1910_v57 = vpop.f32.mrf.mxu0 }
 0x1ff   :  { %v2023_v59 = vpop.f32.mrf.mxu1  ;;  %v9973_v60 = vadd.f32 %v2021_v53, %v1909_v56  ;;  %v1911_v61 = vadd.f32 %v1910_v57, %v9883_v40 }
 0x200   :  { %v1912_v62 = vpop.f32.mrf.mxu0 }
 0x201   :  { %v2025_v63 = vpop.f32.mrf.mxu1  ;;  %v9976_v1 = vadd.f32 %v2023_v59, %v1911_v61  ;;  %v1913_v2 = vadd.f32 %v1912_v62, %v9887_v41 }
 0x202   :  { %v1916_v3 = vpop.f32.mrf.mxu0  ;;  %2593 = vmatmul.mubr.bf16.gmra.mxu0 %v8427_v7 }
 0x203   :  { %v2029_v5 = vpop.f32.mrf.mxu1  ;;  %7262 = vmatmul.mubr.msk.bf16.gmra.mxu1 %vm1817_vm0, %v8428_v8  ;;  %v9986_v9 = vadd.f32 %v2025_v63, %v1913_v2  ;;  %v1917_v11 = vadd.f32 %v1916_v3, %v9883_v40  ;;  %2602 = vmatprep.mubr.bf16.mxu0 %v8429_v13  ;;  %v8433_v63 = vld [vmem:[%s12867_s4 + $0x160] ss:$28 sps:$4 sm:$0xff]   ;;  %v8434_v2 = vld [vmem:[%s12867_s4 + $0x168] ss:$28 sps:$4 sm:$0xff]  }
 0x204   :  { %2715 = vmatprep.mubr.bf16.mxu1 %v8814_v4  ;;  %v1918_v14 = vpop.f32.mrf.mxu0 }
 0x205   :  { %v2031_v18 = vpop.f32.mrf.mxu1  ;;  %v9993_v19 = vadd.f32 %v2029_v5, %v1917_v11  ;;  %v1919_v22 = vadd.f32 %v1918_v14, %v9887_v41 }
 0x206   :  { %v1920_v23 = vpop.f32.mrf.mxu0 }
 0x207   :  { %v2033_v24 = vpop.f32.mrf.mxu1  ;;  %v9996_v26 = vadd.f32 %v2031_v18, %v1919_v22  ;;  %v1921_v27 = vadd.f32 %v1920_v23, %v9883_v40 }
 0x208   :  { %v9999_v28 = vpop.f32.mrf.mxu0 }
 0x209   :  { %v10001_v29 = vpop.f32.mrf.mxu1  ;;  %v10003_v31 = vadd.f32 %v2033_v24, %v1921_v27 }
 0x20a   :  { %v1926_v32 = vpop.f32.mrf.mxu0  ;;  %2603 = vmatmul.mubr.bf16.gmra.mxu0 %v8430_v35 }
 0x20b   :  { %v2039_v33 = vpop.f32.mrf.mxu1  ;;  %7263 = vmatmul.mubr.msk.bf16.gmra.mxu1 %vm1817_vm0, %v8431_v36  ;;  %v1927_v37 = vadd.f32 %v1926_v32, %v9883_v40  ;;  %2612 = vmatprep.mubr.bf16.mxu0 %v8432_v43 }
 0x20c   :  { %2725 = vmatprep.mubr.bf16.mxu1 %v8814_v4  ;;  %v1928_v44 = vpop.f32.mrf.mxu0 }
 0x20d   :  { %v2041_v45 = vpop.f32.mrf.mxu1  ;;  %v10017_v46 = vadd.f32 %v2039_v33, %v1927_v37  ;;  %v1929_v47 = vadd.f32 %v1928_v44, %v9887_v41 }
 0x20e   :  { %v1930_v49 = vpop.f32.mrf.mxu0 }
 0x20f   :  { %v2043_v51 = vpop.f32.mrf.mxu1  ;;  %v10020_v52 = vadd.f32 %v2041_v45, %v1929_v47  ;;  %v1931_v53 = vadd.f32 %v1930_v49, %v9883_v40 }
 0x210   :  { %v10023_v56 = vpop.f32.mrf.mxu0 }
 0x211   :  { %v10025_v57 = vpop.f32.mrf.mxu1  ;;  %v10027_v59 = vadd.f32 %v2043_v51, %v1931_v53 }
 0x212   :  { %v1936_v61 = vpop.f32.mrf.mxu0  ;;  %2613 = vmatmul.mubr.bf16.gmra.mxu0 %v8433_v63 }
 0x213   :  { %v2049_v62 = vpop.f32.mrf.mxu1  ;;  %7264 = vmatmul.mubr.msk.bf16.gmra.mxu1 %vm1817_vm0, %v8434_v2  ;;  %v1937_v3 = vadd.f32 %v1936_v61, %v9883_v40  ;;  %2622 = vmatprep.mubr.bf16.mxu0 %v9618_v15 }
 0x214   :  { %2735 = vmatprep.mubr.bf16.mxu1 %v8814_v4  ;;  %v1938_v5 = vpop.f32.mrf.mxu0 }
 0x215   :  { %v2051_v7 = vpop.f32.mrf.mxu1  ;;  %v10039_v8 = vadd.f32 %v2049_v62, %v1937_v3  ;;  %v1939_v11 = vadd.f32 %v1938_v5, %v9887_v41 }
 0x216   :  { %v1940_v13 = vpop.f32.mrf.mxu0 }
 0x217   :  { %v2053_v14 = vpop.f32.mrf.mxu1  ;;  %v10042_v18 = vadd.f32 %v2051_v7, %v1939_v11  ;;  %v1941_v22 = vadd.f32 %v1940_v13, %v9883_v40 }
 0x218   :  { %v10045_v23 = vpop.f32.mrf.mxu0 }
 0x219   :  { %v10047_v24 = vpop.f32.mrf.mxu1  ;;  %v10049_v27 = vadd.f32 %v2053_v14, %v1941_v22 }
 0x21a   :  { %v1946_v15 = vpop.f32.mrf.mxu0  ;;  %2623 = vmatmul.mubr.bf16.gmra.mxu0 %v9636_v20 }
 0x21b   :  { %v2059_v4 = vpop.f32.mrf.mxu1  ;;  %7265 = vmatmul.mubr.msk.bf16.gmra.mxu1 %vm1817_vm0, %v9641_v21  ;;  %v1947_v32 = vadd.f32 %v1946_v15, %v9883_v40 }
 0x21c   :  { %v1948_v33 = vpop.f32.mrf.mxu0 }
 0x21d   :  { %v2061_v35 = vpop.f32.mrf.mxu1  ;;  %v10055_v36 = vadd.f32 %v2059_v4, %v1947_v32  ;;  %v1949_v37 = vadd.f32 %v1948_v33, %v9887_v41 }
 0x21e   :  { %v1950_v43 = vpop.f32.mrf.mxu0 }
 0x21f   :  { %v2063_v44 = vpop.f32.mrf.mxu1  ;;  %v10058_v45 = vadd.f32 %v2061_v35, %v1949_v37  ;;  %v1951_v47 = vadd.f32 %v1950_v43, %v9883_v40 }
 0x220   :  { %v10061_v49 = vpop.f32.mrf.mxu0 }
 0x221   :  { %v10063_v20 = vpop.f32.mrf.mxu1  ;;  %v10065_v51 = vadd.f32 %v2063_v44, %v1951_v47 }
 0x222   :  { %v2102_v21 = vpop.f32.mrf.mxu0 }
 0x223   :  { %v2215_v53 = vpop.f32.mrf.mxu1  ;;  %v2103_v61 = vadd.f32 %v2102_v21, %v9901_v50 }
 0x224   :  { %v2104_v62 = vpop.f32.mrf.mxu0 }
 0x225   :  { %v2217_v63 = vpop.f32.mrf.mxu1  ;;  %v10068_v2 = vadd.f32 %v2215_v53, %v2103_v61  ;;  %v2105_v3 = vadd.f32 %v2104_v62, %v9904_v54 }
 0x226   :  { %v2106_v5 = vpop.f32.mrf.mxu0 }
 0x227   :  { %12872 = vst [vmem:[#allocation40_spill] sm:$0xff] %v10068_v2  ;;  %v2219_v7 = vpop.f32.mrf.mxu1  ;;  %v10071_v11 = vadd.f32 %v2217_v63, %v2105_v3  ;;  %v2107_v40 = vadd.f32 %v2106_v5, %v9907_v58 }
 0x228   :  { %v10074_v13 = vpop.f32.mrf.mxu0 }
 0x229   :  { %12873 = vst [vmem:[#allocation41_spill] sm:$0xff] %v10071_v11  ;;  %v10076_v14 = vpop.f32.mrf.mxu1  ;;  %v10078_v22 = vadd.f32 %v2219_v7, %v2107_v40 }
 0x22a   :  { %v2112_v15 = vpop.f32.mrf.mxu0 }
 0x22b   :  { %12874 = vst [vmem:[#allocation42_spill] sm:$0xff] %v10078_v22  ;;  %v2225_v50 = vpop.f32.mrf.mxu1  ;;  %v2113_v4 = vadd.f32 %v2112_v15, %v9924_v6 }
 0x22c   :  { %v2114_v32 = vpop.f32.mrf.mxu0 }
 0x22d   :  { %v2227_v33 = vpop.f32.mrf.mxu1  ;;  %v10081_v35 = vadd.f32 %v2225_v50, %v2113_v4  ;;  %v2115_v54 = vadd.f32 %v2114_v32, %v9927_v10 }
 0x22e   :  { %v2116_v37 = vpop.f32.mrf.mxu0 }
 0x22f   :  { %12875 = vst [vmem:[#allocation43_spill] sm:$0xff] %v10081_v35  ;;  %v2229_v43 = vpop.f32.mrf.mxu1  ;;  %v2117_v58 = vadd.f32 %v2116_v37, %v9930_v17  ;;  %v10085_v44 = vadd.f32 %v2227_v33, %v2115_v54 }
 0x230   :  { %v10087_v47 = vpop.f32.mrf.mxu0 }
 0x231   :  { %12876 = vst [vmem:[#allocation44_spill] sm:$0xff] %v10085_v44  ;;  %v10089_v21 = vpop.f32.mrf.mxu1  ;;  %v10091_v53 = vadd.f32 %v2229_v43, %v2117_v58 }
 0x232   :  { %v2122_v61 = vpop.f32.mrf.mxu0 }
 0x233   :  { %12877 = vst [vmem:[#allocation45_spill] sm:$0xff] %v10091_v53  ;;  %v2235_v6 = vpop.f32.mrf.mxu1  ;;  %v2123_v62 = vadd.f32 %v2122_v61, %v9947_v30 }
 0x234   :  { %v2124_v63 = vpop.f32.mrf.mxu0 }
 0x235   :  { %v2237_v3 = vpop.f32.mrf.mxu1  ;;  %v10094_v5 = vadd.f32 %v2235_v6, %v2123_v62  ;;  %v2125_v10 = vadd.f32 %v2124_v63, %v9950_v34 }
 0x236   :  { %v2126_v7 = vpop.f32.mrf.mxu0 }
 0x237   :  { %12878 = vst [vmem:[#allocation46_spill] sm:$0xff] %v10094_v5  ;;  %v2239_v17 = vpop.f32.mrf.mxu1  ;;  %v2127_v40 = vadd.f32 %v2126_v7, %v9953_v42  ;;  %v10098_v15 = vadd.f32 %v2237_v3, %v2125_v10 }
 0x238   :  { %v10100_v50 = vpop.f32.mrf.mxu0 }
 0x239   :  { %12879 = vst [vmem:[#allocation47_spill] sm:$0xff] %v10098_v15  ;;  %v10102_v4 = vpop.f32.mrf.mxu1  ;;  %v10104_v32 = vadd.f32 %v2239_v17, %v2127_v40 }
 0x23a   :  { %v2132_v33 = vpop.f32.mrf.mxu0 }
 0x23b   :  { %12880 = vst [vmem:[#allocation48_spill] sm:$0xff] %v10104_v32  ;;  %v2245_v30 = vpop.f32.mrf.mxu1  ;;  %v2133_v54 = vadd.f32 %v2132_v33, %v9970_v55 }
 0x23c   :  { %v2134_v37 = vpop.f32.mrf.mxu0 }
 0x23d   :  { %v2247_v43 = vpop.f32.mrf.mxu1  ;;  %v10107_v58 = vadd.f32 %v2245_v30, %v2133_v54  ;;  %v2135_v34 = vadd.f32 %v2134_v37, %v9973_v60 }
 0x23e   :  { %v2136_v61 = vpop.f32.mrf.mxu0 }
 0x23f   :  { %12881 = vst [vmem:[#allocation49_spill] sm:$0xff] %v10107_v58  ;;  %v2249_v42 = vpop.f32.mrf.mxu1  ;;  %v2137_v6 = vadd.f32 %v2136_v61, %v9976_v1  ;;  %v10111_v62 = vadd.f32 %v2247_v43, %v2135_v34 }
 0x240   :  { %v10113_v63 = vpop.f32.mrf.mxu0 }
 0x241   :  { %12882 = vst [vmem:[#allocation50_spill] sm:$0xff] %v10111_v62  ;;  %v10115_v3 = vpop.f32.mrf.mxu1  ;;  %v10117_v10 = vadd.f32 %v2249_v42, %v2137_v6 }
 0x242   :  { %v2142_v7 = vpop.f32.mrf.mxu0 }
 0x243   :  { %12883 = vst [vmem:[#allocation51_spill] sm:$0xff] %v10117_v10  ;;  %v2255_v55 = vpop.f32.mrf.mxu1  ;;  %v2143_v17 = vadd.f32 %v2142_v7, %v9993_v19 }
 0x244   :  { %v2144_v40 = vpop.f32.mrf.mxu0 }
 0x245   :  { %v2257_v33 = vpop.f32.mrf.mxu1  ;;  %v10120_v30 = vadd.f32 %v2255_v55, %v2143_v17  ;;  %v2145_v60 = vadd.f32 %v2144_v40, %v9996_v26 }
 0x246   :  { %v2146_v54 = vpop.f32.mrf.mxu0 }
 0x247   :  { %12884 = vst [vmem:[#allocation52_spill] sm:$0xff] %v10120_v30  ;;  %v2259_v1 = vpop.f32.mrf.mxu1  ;;  %v2147_v37 = vadd.f32 %v2146_v54, %v10003_v31  ;;  %v10124_v43 = vadd.f32 %v2257_v33, %v2145_v60 }
 0x248   :  { %v10126_v34 = vpop.f32.mrf.mxu0 }
 0x249   :  { %12885 = vst [vmem:[#allocation53_spill] sm:$0xff] %v10124_v43  ;;  %v10128_v61 = vpop.f32.mrf.mxu1  ;;  %v10130_v42 = vadd.f32 %v2259_v1, %v2147_v37 }
 0x24a   :  { %v2152_v6 = vpop.f32.mrf.mxu0 }
 0x24b   :  { %12886 = vst [vmem:[#allocation54_spill] sm:$0xff] %v10130_v42  ;;  %v2265_v19 = vpop.f32.mrf.mxu1  ;;  %v2153_v7 = vadd.f32 %v2152_v6, %v10017_v46 }
 0x24c   :  { %v2154_v55 = vpop.f32.mrf.mxu0 }
 0x24d   :  { %v2267_v17 = vpop.f32.mrf.mxu1  ;;  %v10133_v39 = vadd.f32 %v2265_v19, %v2153_v7  ;;  %v2155_v26 = vadd.f32 %v2154_v55, %v10020_v52 }
 0x24e   :  { %v2156_v40 = vpop.f32.mrf.mxu0 }
 0x24f   :  { %12887 = vst [vmem:[#allocation55_spill] sm:$0xff] %v10133_v39  ;;  %v2269_v31 = vpop.f32.mrf.mxu1  ;;  %v2157_v33 = vadd.f32 %v2156_v40, %v10027_v59  ;;  %v10137_v60 = vadd.f32 %v2267_v17, %v2155_v26 }
 0x250   :  { %v10139_v54 = vpop.f32.mrf.mxu0 }
 0x251   :  { %12888 = vst [vmem:[#allocation56_spill] sm:$0xff] %v10137_v60  ;;  %v10141_v1 = vpop.f32.mrf.mxu1  ;;  %v10143_v37 = vadd.f32 %v2269_v31, %v2157_v33 }
 0x252   :  { %v2162_v16 = vpop.f32.mrf.mxu0 }
 0x253   :  { %12889 = vst [vmem:[#allocation57_spill] sm:$0xff] %v10143_v37  ;;  %v2275_v46 = vpop.f32.mrf.mxu1  ;;  %v2163_v6 = vadd.f32 %v2162_v16, %v10039_v8 }
 0x254   :  { %v2164_v19 = vpop.f32.mrf.mxu0 }
 0x255   :  { %v2277_v7 = vpop.f32.mrf.mxu1  ;;  %v10146_v39 = vadd.f32 %v2275_v46, %v2163_v6  ;;  %v2165_v52 = vadd.f32 %v2164_v19, %v10042_v18  ;;  %v10160_v46 = vsub.s32 2, %v9804_v12 }
 0x256   :  { %v2166_v55 = vpop.f32.mrf.mxu0 }
 0x257   :  { %12890 = vst [vmem:[#allocation58_spill] sm:$0xff] %v10146_v39  ;;  %v2279_v59 = vpop.f32.mrf.mxu1  ;;  %v2167_v17 = vadd.f32 %v2166_v55, %v10049_v27  ;;  %v10150_v26 = vadd.f32 %v2277_v7, %v2165_v52  ;;  %12893 = vst [vmem:[#allocation61_spill] sm:$0xff] %v10160_v46  ;;  %v10166_v55 = vsub.s32 3, %v9804_v12  ;;  %v8045_v39 = vld [vmem:[#allocation6 + $0x2e0] ss:$16 sps:$4 sm:$0xff]  }
 0x258   :  { %v10152_v40 = vpop.f32.mrf.mxu0 }
 0x259   :  { %12891 = vst [vmem:[#allocation59_spill] sm:$0xff] %v10150_v26  ;;  %v10154_v31 = vpop.f32.mrf.mxu1  ;;  %v10156_v33 = vadd.f32 %v2279_v59, %v2167_v17  ;;  %12895 = vst [vmem:[#allocation63_spill] sm:$0xff] %v10166_v55  ;;  %v10171_v17 = vrot.slane %v9876_v38, %v10160_v46  ;;  %v8047_v26 = vld [vmem:[#allocation6 + $0x2e4] ss:$16 sps:$4 sm:$0xff]  }
 0x25a   :  { %v2172_v37 = vpop.f32.mrf.mxu0  ;;  %4241 = vmatprep.subr.bf16.mxu1 %v8047_v26  ;;  %v8051_v26 = vld [vmem:[#allocation6 + $0x2c0] ss:$16 sps:$4 sm:$0xff]  }
 0x25b   :  { %12892 = vst [vmem:[#allocation60_spill] sm:$0xff] %v10156_v33  ;;  %v2285_v16 = vpop.f32.mrf.mxu1  ;;  %v2173_v8 = vadd.f32 %v2172_v37, %v10055_v36  ;;  %4242 = vmatpush1.bf16.msra.mxu1 %v8045_v39  ;;  %v8056_v39 = vld [vmem:[#allocation6 + $0xa4] ss:$16 sps:$4 sm:$0xff]  }
 0x25c   :  { %v2174_v18 = vpop.f32.mrf.mxu0 }
 0x25d   :  { %v2287_v6 = vpop.f32.mrf.mxu1  ;;  %v10162_v19 = vadd.f32 %v2285_v16, %v2173_v8  ;;  %v2175_v27 = vadd.f32 %v2174_v18, %v10058_v45  ;;  %v10183_v18 = vrot.slane %v9876_v38, %v10166_v55 }
 0x25e   :  { %v2176_v7 = vpop.f32.mrf.mxu0 }
 0x25f   :  { %12894 = vst [vmem:[#allocation62_spill] sm:$0xff] %v10162_v19  ;;  %v2289_v52 = vpop.f32.mrf.mxu1  ;;  %v2177_v59 = vadd.f32 %v2176_v7, %v10065_v51  ;;  %v10173_v36 = vadd.f32 %v2287_v6, %v2175_v27 }
 0x260   :  { %v10175_v37 = vpop.f32.mrf.mxu0 }
 0x261   :  { %12896 = vst [vmem:[#allocation64_spill] sm:$0xff] %v10173_v36  ;;  %12897 = vst [vmem:[#allocation65_spill] sm:$0xff] %v10175_v37  ;;  %v10177_v33 = vpop.f32.mrf.mxu1  ;;  %v10179_v16 = vadd.f32 %v2289_v52, %v2177_v59  ;;  %v8060_v37 = vld [vmem:[#allocation6 + $0x80] ss:$16 sps:$4 sm:$0xff]  }
 0x262   :  { %12898 = vst [vmem:[#allocation66_spill] sm:$0xff] %v10177_v33  ;;  %v2328_v45 = vpop.f32.mrf.mxu0  ;;  %v8044_v33 = vld [vmem:[#allocation6 + $0xe4] ss:$16 sps:$4 sm:$0xff]  }
 0x263   :  { %12899 = vst [vmem:[#allocation67_spill] sm:$0xff] %v10179_v16  ;;  %v2441_v8 = vpop.f32.mrf.mxu1  ;;  %v2329_v51 = vadd.f32 %v2328_v45, %v10171_v17  ;;  %4128 = vmatprep.subr.bf16.mxu0 %v8044_v33  ;;  %v8048_v33 = vld [vmem:[#allocation6 + $0xc0] ss:$16 sps:$4 sm:$0xff]  }
 0x264   :  { %v2330_v7 = vpop.f32.mrf.mxu0 }
 0x265   :  { %v2443_v12 = vpop.f32.mrf.mxu1  ;;  %v10186_v46 = vadd.f32 %v2441_v8, %v2329_v51  ;;  %v2331_v6 = vadd.f32 %v2330_v7, %v10183_v18 }
 0x266   :  { %v2332_v27 = vpop.f32.mrf.mxu0 }
 0x267   :  { %12900 = vst [vmem:[#allocation68_spill] sm:$0xff] %v10186_v46  ;;  %v2445_v36 = vpop.f32.mrf.mxu1  ;;  %v10189_v19 = vadd.f32 %v2443_v12, %v2331_v6  ;;  %v2333_v52 = vadd.f32 %v2332_v27, %v10171_v17  ;;  %v8042_v46 = vld [vmem:[#allocation6 + $0xe0] ss:$16 sps:$4 sm:$0xff]  }
 0x268   :  { %v10192_v59 = vpop.f32.mrf.mxu0  ;;  %4129 = vmatpush1.bf16.msra.mxu0 %v8042_v46  ;;  %v8059_v46 = vld [vmem:[#allocation6 + $0x2a4] ss:$16 sps:$4 sm:$0xff]  }
 0x269   :  { %12901 = vst [vmem:[#allocation69_spill] sm:$0xff] %v10189_v19  ;;  %12902 = vst [vmem:[#allocation70_spill] sm:$0xff] %v10192_v59  ;;  %v10194_v16 = vpop.f32.mrf.mxu1  ;;  %v10196_v38 = vadd.f32 %v2445_v36, %v2333_v52  ;;  %v8050_v36 = vld [vmem:[#allocation6 + $0xc4] ss:$16 sps:$4 sm:$0xff]  }
 0x26a   :  { %12903 = vst [vmem:[#allocation71_spill] sm:$0xff] %v10194_v16  ;;  %v2338_v55 = vpop.f32.mrf.mxu0  ;;  %v8053_v52 = vld [vmem:[#allocation6 + $0x2c4] ss:$16 sps:$4 sm:$0xff]   ;;  %4130 = vmatprep.subr.bf16.mxu0 %v8050_v36 }
 0x26b   :  { %12904 = vst [vmem:[#allocation72_spill] sm:$0xff] %v10196_v38  ;;  %v2451_v45 = vpop.f32.mrf.mxu1  ;;  %v2339_v8 = vadd.f32 %v2338_v55, %v10171_v17  ;;  %4243 = vmatprep.subr.bf16.mxu1 %v8053_v52 }
 0x26c   :  { %v2340_v51 = vpop.f32.mrf.mxu0  ;;  %4131 = vmatpush1.bf16.msra.mxu0 %v8048_v33  ;;  %4244 = vmatpush1.bf16.msra.mxu1 %v8051_v26  ;;  %v8062_v26 = vld [vmem:[#allocation6 + $0x84] ss:$16 sps:$4 sm:$0xff]  }
 0x26d   :  { %v2453_v7 = vpop.f32.mrf.mxu1  ;;  %v10199_v12 = vadd.f32 %v2451_v45, %v2339_v8  ;;  %v2341_v6 = vadd.f32 %v2340_v51, %v10183_v18  ;;  %4132 = vmatprep.subr.bf16.mxu0 %v8056_v39  ;;  %4245 = vmatprep.subr.bf16.mxu1 %v8059_v46  ;;  %v8068_v46 = vld [vmem:[#allocation6 + $0x64] ss:$16 sps:$4 sm:$0xff]  }
 0x26e   :  { %v2342_v27 = vpop.f32.mrf.mxu0 }
 0x26f   :  { %12905 = vst [vmem:[#allocation73_spill] sm:$0xff] %v10199_v12  ;;  %v2455_v19 = vpop.f32.mrf.mxu1  ;;  %v10202_v38 = vadd.f32 %v2453_v7, %v2341_v6  ;;  %v2343_v55 = vadd.f32 %v2342_v27, %v10171_v17  ;;  %v8057_v12 = vld [vmem:[#allocation6 + $0x2a0] ss:$16 sps:$4 sm:$0xff]  }
 0x270   :  { %v10205_v16 = vpop.f32.mrf.mxu0  ;;  %4246 = vmatpush1.bf16.msra.mxu1 %v8057_v12 }
 0x271   :  { %12906 = vst [vmem:[#allocation74_spill] sm:$0xff] %v10202_v38  ;;  %12907 = vst [vmem:[#allocation75_spill] sm:$0xff] %v10205_v16  ;;  %v10207_v59 = vpop.f32.mrf.mxu1  ;;  %v10209_v45 = vadd.f32 %v2455_v19, %v2343_v55  ;;  %v8054_v38 = vld [vmem:[#allocation6 + $0xa0] ss:$16 sps:$4 sm:$0xff]  }
 0x272   :  { %12908 = vst [vmem:[#allocation76_spill] sm:$0xff] %v10207_v59  ;;  %v2348_v8 = vpop.f32.mrf.mxu0  ;;  %4133 = vmatpush1.bf16.msra.mxu0 %v8054_v38  ;;  %v2109_v38 = vadd.f32 %v10074_v13, %v9917_v0  ;;  %v1923_v0 = vadd.f32 %v9999_v28, %v9887_v41  ;;  %v1933_v13 = vadd.f32 %v10023_v56, %v9887_v41  ;;  %v8077_v28 = vld [vmem:[#allocation6 + $0x244] ss:$16 sps:$4 sm:$0xff]  }
 0x273   :  { %12909 = vst [vmem:[#allocation77_spill] sm:$0xff] %v10209_v45  ;;  %v2461_v51 = vpop.f32.mrf.mxu1  ;;  %v2349_v7 = vadd.f32 %v2348_v8, %v10171_v17  ;;  %v8065_v8 = vld [vmem:[#allocation6 + $0x284] ss:$16 sps:$4 sm:$0xff]   ;;  %4134 = vmatprep.subr.bf16.mxu0 %v8062_v26  ;;  %v2834_v56 = vmul.f32 %v10078_v22, %v10078_v22 }
 0x274   :  { %v2350_v6 = vpop.f32.mrf.mxu0  ;;  %4247 = vmatprep.subr.bf16.mxu1 %v8065_v8  ;;  %v2119_v8 = vadd.f32 %v10087_v47, %v9940_v25  ;;  %v10251_v25 = vadd.f32 %v10001_v29, %v1923_v0  ;;  %v10254_v47 = vadd.f32 %v10025_v57, %v1933_v13  ;;  %v8080_v0 = vld [vmem:[#allocation6 + $0x24] ss:$16 sps:$4 sm:$0xff]  }
 0x275   :  { %v2463_v27 = vpop.f32.mrf.mxu1  ;;  %v2351_v59 = vadd.f32 %v2350_v6, %v10183_v18  ;;  %v10213_v36 = vadd.f32 %v2461_v51, %v2349_v7  ;;  %v8063_v6 = vld [vmem:[#allocation6 + $0x280] ss:$16 sps:$4 sm:$0xff]   ;;  %v8083_v13 = vld [vmem:[#allocation6 + $0x224] ss:$16 sps:$4 sm:$0xff]  }
 0x276   :  { %v2352_v19 = vpop.f32.mrf.mxu0  ;;  %4135 = vmatpush1.bf16.msra.mxu0 %v8060_v37  ;;  %4248 = vmatpush1.bf16.msra.mxu1 %v8063_v6  ;;  %v10235_v37 = vadd.f32 %v10076_v14, %v2109_v38  ;;  %v8072_v38 = vld [vmem:[#allocation6 + $0x40] ss:$16 sps:$4 sm:$0xff]   ;;  %v10265_v29 = vadd.f32 %v10089_v21, %v2119_v8  ;;  %v2129_v8 = vadd.f32 %v10100_v50, %v9963_v48 }
 0x277   :  { %12910 = vst [vmem:[#allocation78_spill] sm:$0xff] %v10213_v36  ;;  %v2465_v52 = vpop.f32.mrf.mxu1  ;;  %v10215_v55 = vadd.f32 %v2463_v27, %v2351_v59  ;;  %v2353_v33 = vadd.f32 %v2352_v19, %v10171_v17  ;;  %v8066_v19 = vld [vmem:[#allocation6 + $0x60] ss:$16 sps:$4 sm:$0xff]   ;;  %v8071_v36 = vld [vmem:[#allocation6 + $0x264] ss:$16 sps:$4 sm:$0xff]   ;;  %4136 = vmatprep.subr.bf16.mxu0 %v8068_v46 }
 0x278   :  { %v10218_v45 = vpop.f32.mrf.mxu0  ;;  %12915 = vst [vmem:[#allocation83_spill] sm:$0xff] %v10235_v37  ;;  %4249 = vmatprep.subr.bf16.mxu1 %v8071_v36  ;;  %v8075_v36 = vld [vmem:[#allocation6 + $0x240] ss:$16 sps:$4 sm:$0xff]   ;;  %12919 = vst [vmem:[#allocation87_spill] sm:$0xff] %v10265_v29  ;;  %v2843_v48 = vmul.f32 %v10265_v29, %v10265_v29 }
 0x279   :  { %12911 = vst [vmem:[#allocation79_spill] sm:$0xff] %v10215_v55  ;;  %v10220_v16 = vpop.f32.mrf.mxu1  ;;  %v10222_v39 = vadd.f32 %v2465_v52, %v2353_v33  ;;  %v8069_v55 = vld [vmem:[#allocation6 + $0x260] ss:$16 sps:$4 sm:$0xff]  }
 0x27a   :  { %12912 = vst [vmem:[#allocation80_spill] sm:$0xff] %v10220_v16  ;;  %v2358_v12 = vpop.f32.mrf.mxu0  ;;  %4137 = vmatpush1.bf16.msra.mxu0 %v8066_v19  ;;  %4250 = vmatpush1.bf16.msra.mxu1 %v8069_v55  ;;  %v2830_v55 = vmul.f32 %v10068_v2, %v10068_v2  ;;  %v8081_v21 = vld [vmem:[#allocation6 + $0x220] ss:$16 sps:$4 sm:$0xff]  }
 0x27b   :  { %12913 = vst [vmem:[#allocation81_spill] sm:$0xff] %v10222_v39  ;;  %v2471_v59 = vpop.f32.mrf.mxu1  ;;  %v2359_v51 = vadd.f32 %v2358_v12, %v10171_v17  ;;  %4251 = vmatprep.subr.bf16.mxu1 %v8077_v28  ;;  %v2842_v28 = vmul.f32 %v10091_v53, %v10091_v53 }
 0x27c   :  { %v2360_v7 = vpop.f32.mrf.mxu0 }
 0x27d   :  { %v2473_v27 = vpop.f32.mrf.mxu1  ;;  %v10227_v16 = vadd.f32 %v2471_v59, %v2359_v51  ;;  %v2361_v52 = vadd.f32 %v2360_v7, %v10183_v18  ;;  %v8074_v59 = vld [vmem:[#allocation6 + $0x44] ss:$16 sps:$4 sm:$0xff]   ;;  %v2835_v7 = vmul.f32 %v10235_v37, %v10235_v37 }
 0x27e   :  { %v2362_v33 = vpop.f32.mrf.mxu0  ;;  %4138 = vmatprep.subr.bf16.mxu0 %v8074_v59  ;;  %4252 = vmatpush1.bf16.msra.mxu1 %v8075_v36  ;;  %v2839_v59 = vmul.f32 %v10085_v44, %v10085_v44 }
 0x27f   :  { %12914 = vst [vmem:[#allocation82_spill] sm:$0xff] %v10227_v16  ;;  %v2475_v26 = vpop.f32.mrf.mxu1  ;;  %v10239_v6 = vadd.f32 %v2473_v27, %v2361_v52  ;;  %v2363_v12 = vadd.f32 %v2362_v33, %v10171_v17  ;;  %4139 = vmatpush1.bf16.msra.mxu0 %v8072_v38  ;;  %v2831_v52 = vmul.f32 %v10071_v11, %v10071_v11 }
 0x280   :  { %v10244_v51 = vpop.f32.mrf.mxu0  ;;  %v2838_v33 = vmul.f32 %v10081_v35, %v10081_v35  ;;  %4140 = vmatprep.subr.bf16.mxu0 %v8080_v0  ;;  %4253 = vmatprep.subr.bf16.mxu1 %v8083_v13 }
 0x281   :  { %12916 = vst [vmem:[#allocation84_spill] sm:$0xff] %v10239_v6  ;;  %v10246_v14 = vpop.f32.mrf.mxu1  ;;  %v10248_v46 = vadd.f32 %v2475_v26, %v2363_v12  ;;  %v2746_v26 = vadd.f32 %v10078_v22, %v10068_v2  ;;  %v2894_v12 = vadd.f32 %v2834_v56, %v2830_v55  ;;  %v8078_v6 = vld [vmem:[#allocation6 + $0x20] ss:$16 sps:$4 sm:$0xff]   ;;  %v1943_v56 = vadd.f32 %v10045_v23, %v9887_v41  ;;  %v8089_v23 = vld [vmem:[#allocation6 + $0x204] ss:$16 sps:$4 sm:$0xff]  }
 0x282   :  { %12917 = vst [vmem:[#allocation85_spill] sm:$0xff] %v10246_v14  ;;  %v2368_v27 = vpop.f32.mrf.mxu0  ;;  %v2767_v55 = vadd.f32 %v10235_v37, %v10071_v11  ;;  %v2915_v22 = vadd.f32 %v2835_v7, %v2831_v52  ;;  %4254 = vmatpush1.bf16.msra.mxu1 %v8081_v21  ;;  %v2846_v52 = vmul.f32 %v10094_v5, %v10094_v5 }
 0x283   :  { %12918 = vst [vmem:[#allocation86_spill] sm:$0xff] %v10248_v46  ;;  %v2481_v19 = vpop.f32.mrf.mxu1  ;;  %v2369_v57 = vadd.f32 %v2368_v27, %v10171_v17  ;;  %v2747_v2 = vadd.f32 %v2746_v26, %v10081_v35  ;;  %4141 = vmatpush1.bf16.msra.mxu0 %v8078_v6  ;;  %v2895_v14 = vadd.f32 %v2894_v12, %v2838_v33  ;;  %v8084_v26 = vld [vmem:[#allocation6] ss:$16 sps:$4 sm:$0xff]  }
 0x284   :  { %v2370_v38 = vpop.f32.mrf.mxu0  ;;  %v2768_v0 = vadd.f32 %v2767_v55, %v10085_v44  ;;  %v2916_v13 = vadd.f32 %v2915_v22, %v2839_v59  ;;  %4255 = vmatprep.subr.bf16.mxu1 %v8089_v23  ;;  %v2847_v59 = vmul.f32 %v10098_v15, %v10098_v15  ;;  %v2139_v21 = vadd.f32 %v10113_v63, %v9986_v9 }
 0x285   :  { %v2483_v46 = vpop.f32.mrf.mxu1  ;;  %v10276_v36 = vadd.f32 %v2481_v19, %v2369_v57  ;;  %v2371_v27 = vadd.f32 %v2370_v38, %v10183_v18  ;;  %v8086_v57 = vld [vmem:[#allocation6 + $0x4] ss:$16 sps:$4 sm:$0xff]   ;;  %v2748_v7 = vadd.f32 %v2747_v2, %v10091_v53  ;;  %v2896_v12 = vadd.f32 %v2895_v14, %v2842_v28 }
 0x286   :  { %v2372_v16 = vpop.f32.mrf.mxu0  ;;  %4142 = vmatprep.subr.bf16.mxu0 %v8086_v57  ;;  %v2769_v22 = vadd.f32 %v2768_v0, %v10265_v29  ;;  %v2917_v14 = vadd.f32 %v2916_v13, %v2843_v48  ;;  %v2850_v63 = vmul.f32 %v10104_v32, %v10104_v32 }
 0x287   :  { %v2485_v39 = vpop.f32.mrf.mxu1  ;;  %v10286_v50 = vadd.f32 %v2483_v46, %v2371_v27  ;;  %v2373_v19 = vadd.f32 %v2372_v16, %v10171_v17  ;;  %v8087_v46 = vld [vmem:[#allocation6 + $0x200] ss:$16 sps:$4 sm:$0xff]   ;;  %v10298_v16 = vadd.f32 %v10102_v4, %v2129_v8  ;;  %v2749_v2 = vadd.f32 %v2748_v7, %v10094_v5  ;;  %4143 = vmatpush1.bf16.msra.mxu0 %v8084_v26  ;;  %v8092_v8 = vld [vmem:[#allocation6 + $0x1e4] ss:$16 sps:$4 sm:$0xff]  }
 0x288   :  { %v10293_v6 = vpop.f32.mrf.mxu0  ;;  %v10309_v4 = vadd.f32 %v10047_v24, %v1943_v56  ;;  %4256 = vmatpush1.bf16.msra.mxu1 %v8087_v46  ;;  %v2897_v57 = vadd.f32 %v2896_v12, %v2846_v52  ;;  %v2770_v23 = vadd.f32 %v2769_v22, %v10098_v15  ;;  %v8090_v56 = vld [vmem:[#allocation6 + $0x1e0] ss:$16 sps:$4 sm:$0xff]   ;;  %4144 = vmatprep.subr.bf16.mxu0 %v8092_v8 }
 0x289   :  { %v10295_v33 = vpop.f32.mrf.mxu1  ;;  %12920 = vst [vmem:[#allocation88_spill] sm:$0xff] %v10298_v16  ;;  %v10300_v38 = vadd.f32 %v2485_v39, %v2373_v19  ;;  %v1953_v39 = vadd.f32 %v10061_v49, %v9887_v41  ;;  %v8095_v19 = vld [vmem:[#allocation6 + $0x3e4] ss:$16 sps:$4 sm:$0xff]   ;;  %v2750_v9 = vadd.f32 %v2749_v2, %v10104_v32  ;;  %v8093_v7 = vld [vmem:[#allocation6 + $0x3e0] ss:$16 sps:$4 sm:$0xff]   ;;  %v2851_v41 = vmul.f32 %v10298_v16, %v10298_v16 }
 0x28a   :  { %v2378_v27 = vpop.f32.mrf.mxu0  ;;  %4257 = vmatprep.subr.bf16.mxu1 %v8095_v19  ;;  %v2918_v13 = vadd.f32 %v2917_v14, %v2847_v59  ;;  %v2771_v52 = vadd.f32 %v2770_v23, %v10298_v16  ;;  %v10325_v26 = vadd.f32 %v10115_v3, %v2139_v21  ;;  %v2149_v46 = vadd.f32 %v10126_v34, %v10251_v25  ;;  %v8098_v14 = vld [vmem:[#allocation6 + $0x1c4] ss:$16 sps:$4 sm:$0xff]   ;;  %v8096_v23 = vld [vmem:[#allocation6 + $0x1c0] ss:$16 sps:$4 sm:$0xff]  }
 0x28b   :  { %v2491_v55 = vpop.f32.mrf.mxu1  ;;  %v2379_v28 = vadd.f32 %v2378_v27, %v10171_v17  ;;  %4145 = vmatpush2.bf16.msra.mxu0 %v8090_v56  ;;  %v2751_v2 = vadd.f32 %v2750_v9, %v10107_v58  ;;  %v2854_v27 = vmul.f32 %v10107_v58, %v10107_v58  ;;  %v10336_v3 = vadd.f32 %v10063_v20, %v1953_v39  ;;  %v8099_v9 = vld [vmem:[#allocation6 + $0x3c0] ss:$16 sps:$4 sm:$0xff]  }
 0x28c   :  { %v2380_v0 = vpop.f32.mrf.mxu0  ;;  %12922 = vst [vmem:[#allocation90_spill] sm:$0xff] %v10325_v26  ;;  %4258 = vmatpush2.bf16.msra.mxu1 %v8093_v7  ;;  %v2898_v21 = vadd.f32 %v2897_v57, %v2850_v63  ;;  %v2772_v34 = vadd.f32 %v2771_v52, %v10111_v62  ;;  %v2855_v25 = vmul.f32 %v10111_v62, %v10111_v62 }
 0x28d   :  { %v2493_v24 = vpop.f32.mrf.mxu1  ;;  %v10320_v49 = vadd.f32 %v2491_v55, %v2379_v28  ;;  %v2381_v48 = vadd.f32 %v2380_v0, %v10183_v18  ;;  %v8101_v28 = vld [vmem:[#allocation6 + $0x3c4] ss:$16 sps:$4 sm:$0xff]   ;;  %v2919_v0 = vadd.f32 %v2918_v13, %v2851_v41  ;;  %4146 = vmatprep.subr.bf16.mxu0 %v8098_v14  ;;  %v2858_v20 = vmul.f32 %v10117_v10, %v10117_v10  ;;  %v8102_v14 = vld [vmem:[#allocation6 + $0x1a0] ss:$16 sps:$4 sm:$0xff]  }
 0x28e   :  { %v2382_v12 = vpop.f32.mrf.mxu0  ;;  %4259 = vmatprep.subr.bf16.mxu1 %v8101_v28  ;;  %v2773_v39 = vadd.f32 %v2772_v34, %v10325_v26  ;;  %v10352_v57 = vadd.f32 %v10128_v61, %v2149_v46  ;;  %v2159_v63 = vadd.f32 %v10139_v54, %v10254_v47  ;;  %v2899_v41 = vadd.f32 %v2898_v21, %v2854_v27  ;;  %v8105_v28 = vld [vmem:[#allocation6 + $0x3a0] ss:$16 sps:$4 sm:$0xff]  }
 0x28f   :  { %12921 = vst [vmem:[#allocation89_spill] sm:$0xff] %v10320_v49  ;;  %v2495_v22 = vpop.f32.mrf.mxu1  ;;  %v10332_v55 = vadd.f32 %v2493_v24, %v2381_v48  ;;  %v2383_v59 = vadd.f32 %v2382_v12, %v10171_v17  ;;  %v2752_v24 = vadd.f32 %v2751_v2, %v10117_v10  ;;  %4147 = vmatpush2.bf16.msra.mxu0 %v8096_v23  ;;  %v8107_v2 = vld [vmem:[#allocation6 + $0x3a4] ss:$16 sps:$4 sm:$0xff]  }
 0x290   :  { %v10341_v8 = vpop.f32.mrf.mxu0  ;;  %12925 = vst [vmem:[#allocation93_spill] sm:$0xff] %v10352_v57  ;;  %v2859_v13 = vmul.f32 %v10325_v26, %v10325_v26  ;;  %4260 = vmatpush2.bf16.msra.mxu1 %v8099_v9  ;;  %v2862_v61 = vmul.f32 %v10120_v30, %v10120_v30  ;;  %v2774_v54 = vadd.f32 %v2773_v39, %v10124_v43 }
 0x291   :  { %12923 = vst [vmem:[#allocation91_spill] sm:$0xff] %v10332_v55  ;;  %v10343_v19 = vpop.f32.mrf.mxu1  ;;  %v10346_v56 = vadd.f32 %v2495_v22, %v2383_v59  ;;  %v2753_v52 = vadd.f32 %v2752_v24, %v10120_v30  ;;  %v8104_v22 = vld [vmem:[#allocation6 + $0x1a4] ss:$16 sps:$4 sm:$0xff]   ;;  %v2920_v59 = vadd.f32 %v2919_v0, %v2855_v25  ;;  %v2863_v47 = vmul.f32 %v10124_v43, %v10124_v43 }
 0x292   :  { %v2388_v7 = vpop.f32.mrf.mxu0  ;;  %4148 = vmatprep.subr.bf16.mxu0 %v8104_v22  ;;  %4261 = vmatprep.subr.bf16.mxu1 %v8107_v2  ;;  %v2900_v25 = vadd.f32 %v2899_v41, %v2858_v20  ;;  %v2775_v9 = vadd.f32 %v2774_v54, %v10352_v57  ;;  %v10371_v0 = vadd.f32 %v10141_v1, %v2159_v63  ;;  %v8110_v20 = vld [vmem:[#allocation6 + $0x184] ss:$16 sps:$4 sm:$0xff]   ;;  %v8111_v54 = vld [vmem:[#allocation6 + $0x380] ss:$16 sps:$4 sm:$0xff]  }
 0x293   :  { %12924 = vst [vmem:[#allocation92_spill] sm:$0xff] %v10346_v56  ;;  %v2501_v48 = vpop.f32.mrf.mxu1  ;;  %v2389_v12 = vadd.f32 %v2388_v7, %v10171_v17  ;;  %v2754_v21 = vadd.f32 %v2753_v52, %v10130_v42  ;;  %v2169_v24 = vadd.f32 %v10152_v40, %v10309_v4  ;;  %4149 = vmatpush2.bf16.msra.mxu0 %v8102_v14  ;;  %v12928_v52 = vld [vmem:[#allocation55_spill] sm:$0xff] }
 0x294   :  { %v2390_v46 = vpop.f32.mrf.mxu0  ;;  %12927 = vst [vmem:[#allocation95_spill] sm:$0xff] %v10371_v0  ;;  %v2921_v30 = vadd.f32 %v2920_v59, %v2859_v13  ;;  %4262 = vmatpush2.bf16.msra.mxu1 %v8105_v28  ;;  %v8113_v41 = vld [vmem:[#allocation6 + $0x384] ss:$16 sps:$4 sm:$0xff]   ;;  %v2901_v2 = vadd.f32 %v2900_v25, %v2862_v61  ;;  %v2866_v1 = vmul.f32 %v10130_v42, %v10130_v42  ;;  %v8108_v59 = vld [vmem:[#allocation6 + $0x180] ss:$16 sps:$4 sm:$0xff]  }
 0x295   :  { %v2503_v27 = vpop.f32.mrf.mxu1  ;;  %v10366_v34 = vadd.f32 %v2501_v48, %v2389_v12  ;;  %v2391_v23 = vadd.f32 %v2390_v46, %v10183_v18  ;;  %v2755_v48 = vadd.f32 %v2754_v21, %v12928_v52  ;;  %v2867_v40 = vmul.f32 %v10352_v57, %v10352_v57  ;;  %4150 = vmatprep.subr.bf16.mxu0 %v8110_v20  ;;  %v12933_v25 = vld [vmem:[#allocation65_spill] sm:$0xff] }
 0x296   :  { %v2392_v39 = vpop.f32.mrf.mxu0  ;;  %v2776_v4 = vadd.f32 %v2775_v9, %v10137_v60  ;;  %v2922_v46 = vadd.f32 %v2921_v30, %v2863_v47  ;;  %4263 = vmatprep.subr.bf16.mxu1 %v8113_v41  ;;  %v2870_v61 = vmul.f32 %v12928_v52, %v12928_v52  ;;  %v2179_v9 = vadd.f32 %v12933_v25, %v10336_v3  ;;  %v12934_v47 = vld [vmem:[#allocation58_spill] sm:$0xff]  ;;  %v8119_v20 = vld [vmem:[#allocation6 + $0x364] ss:$16 sps:$4 sm:$0xff]   ;;  %v8114_v52 = vld [vmem:[#allocation6 + $0x160] ss:$16 sps:$4 sm:$0xff]  }
 0x297   :  { %12926 = vst [vmem:[#allocation94_spill] sm:$0xff] %v10366_v34  ;;  %v2505_v7 = vpop.f32.mrf.mxu1  ;;  %v10376_v12 = vadd.f32 %v2503_v27, %v2391_v23  ;;  %v2393_v22 = vadd.f32 %v2392_v39, %v10171_v17  ;;  %v12930_v27 = vld [vmem:[#allocation57_spill] sm:$0xff]  ;;  %v10395_v23 = vadd.f32 %v10154_v31, %v2169_v24  ;;  %4151 = vmatpush2.bf16.msra.mxu0 %v8108_v59  ;;  %v12935_v24 = vld [vmem:[#allocation59_spill] sm:$0xff] }
 0x298   :  { %v10384_v63 = vpop.f32.mrf.mxu0  ;;  %v2756_v14 = vadd.f32 %v2755_v48, %v12930_v27  ;;  %v2777_v21 = vadd.f32 %v2776_v4, %v10371_v0  ;;  %v2871_v30 = vmul.f32 %v10137_v60, %v10137_v60  ;;  %4264 = vmatpush2.bf16.msra.mxu1 %v8111_v54  ;;  %v2902_v41 = vadd.f32 %v2901_v2, %v2866_v1  ;;  %v8117_v60 = vld [vmem:[#allocation6 + $0x360] ss:$16 sps:$4 sm:$0xff]  }
 0x299   :  { %12929 = vst [vmem:[#allocation96_spill] sm:$0xff] %v10376_v12  ;;  %v10386_v13 = vpop.f32.mrf.mxu1  ;;  %v10389_v28 = vadd.f32 %v2505_v7, %v2393_v22  ;;  %12932 = vst [vmem:[#allocation98_spill] sm:$0xff] %v10395_v23  ;;  %v8116_v22 = vld [vmem:[#allocation6 + $0x164] ss:$16 sps:$4 sm:$0xff]   ;;  %v2923_v4 = vadd.f32 %v2922_v46, %v2867_v40  ;;  %v2874_v31 = vmul.f32 %v12930_v27, %v12930_v27  ;;  %4265 = vmatprep.subr.bf16.mxu1 %v8119_v20  ;;  %v12938_v46 = vld [vmem:[#allocation66_spill] sm:$0xff] }
 0x29a   :  { %v2398_v39 = vpop.f32.mrf.mxu0  ;;  %v2757_v7 = vadd.f32 %v2756_v14, %v12934_v47  ;;  %v2778_v3 = vadd.f32 %v2777_v21, %v12935_v24  ;;  %v2875_v14 = vmul.f32 %v10371_v0, %v10371_v0  ;;  %4152 = vmatprep.subr.bf16.mxu0 %v8116_v22  ;;  %v2903_v2 = vadd.f32 %v2902_v41, %v2870_v61  ;;  %v8122_v61 = vld [vmem:[#allocation6 + $0x144] ss:$16 sps:$4 sm:$0xff]  }
 0x29b   :  { %12931 = vst [vmem:[#allocation97_spill] sm:$0xff] %v10389_v28  ;;  %v2511_v42 = vpop.f32.mrf.mxu1  ;;  %v2399_v48 = vadd.f32 %v2398_v39, %v10171_v17  ;;  %v12936_v39 = vld [vmem:[#allocation60_spill] sm:$0xff]  ;;  %v2878_v1 = vmul.f32 %v12934_v47, %v12934_v47  ;;  %v10419_v21 = vadd.f32 %v12938_v46, %v2179_v9  ;;  %4153 = vmatpush2.bf16.msra.mxu0 %v8114_v52  ;;  %v8125_v22 = vld [vmem:[#allocation6 + $0x344] ss:$16 sps:$4 sm:$0xff]   ;;  %v8120_v52 = vld [vmem:[#allocation6 + $0x140] ss:$16 sps:$4 sm:$0xff]  }
 0x29c   :  { %v10406_v25 = vpop.f32.mrf.mxu0  ;;  %v2758_v54 = vadd.f32 %v2757_v7, %v12936_v39  ;;  %v2779_v40 = vadd.f32 %v2778_v3, %v10395_v23  ;;  %v2924_v0 = vadd.f32 %v2923_v4, %v2871_v30  ;;  %v12940_v7 = vld [vmem:[#allocation62_spill] sm:$0xff]  ;;  %4266 = vmatpush2.bf16.msra.mxu1 %v8117_v60  ;;  %v2904_v20 = vadd.f32 %v2903_v2, %v2874_v31  ;;  %v12941_v9 = vld [vmem:[#allocation64_spill] sm:$0xff]  ;;  %v8123_v30 = vld [vmem:[#allocation6 + $0x340] ss:$16 sps:$4 sm:$0xff]  }
 0x29d   :  { %v10408_v59 = vpop.f32.mrf.mxu1  ;;  %v10413_v57 = vadd.f32 %v2511_v42, %v2399_v48  ;;  %12939 = vst [vmem:[#allocation66_spill] sm:$0xff] %v10419_v21  ;;  %v2879_v42 = vmul.f32 %v12935_v24, %v12935_v24  ;;  %v2882_v41 = vmul.f32 %v12936_v39, %v12936_v39  ;;  %v2883_v24 = vmul.f32 %v10395_v23, %v10395_v23  ;;  %v8134_v23 = vld [vmem:[#allocation6 + $0x104] ss:$16 sps:$4 sm:$0xff]  }
 0x29e   :  { %v10421_v27 = vpop.f32.mrf.mxu0  ;;  %v2759_v48 = vadd.f32 %v2758_v54, %v12940_v7  ;;  %v2780_v3 = vadd.f32 %v2779_v40, %v12941_v9  ;;  %v2925_v4 = vadd.f32 %v2924_v0, %v2875_v14  ;;  %v12943_v54 = vld [vmem:[#allocation67_spill] sm:$0xff]  ;;  %4154 = vmatprep.subr.bf16.mxu0 %v8122_v61  ;;  %4267 = vmatprep.subr.bf16.mxu1 %v8125_v22 }
 0x29f   :  { %12937 = vst [vmem:[#allocation65_spill] sm:$0xff] %v10413_v57  ;;  %v10423_v43 = vpop.f32.mrf.mxu1  ;;  %v2905_v31 = vadd.f32 %v2904_v20, %v2878_v1  ;;  %4155 = vmatpush2.bf16.msra.mxu0 %v8120_v52  ;;  %v2886_v58 = vmul.f32 %v12940_v7, %v12940_v7  ;;  %v2887_v0 = vmul.f32 %v12941_v9, %v12941_v9  ;;  %v8126_v14 = vld [vmem:[#allocation6 + $0x120] ss:$16 sps:$4 sm:$0xff]  }
 0x2a0   :  { %v10431_v46 = vpop.f32.mrf.mxu0  ;;  %v2760_v60 = vadd.f32 %v2759_v48, %v12943_v54  ;;  %v2781_v2 = vadd.f32 %v2780_v3, %v10419_v21  ;;  %v2926_v10 = vadd.f32 %v2925_v4, %v2879_v42  ;;  %4268 = vmatpush2.bf16.msra.mxu1 %v8123_v30  ;;  %v8128_v48 = vld [vmem:[#allocation6 + $0x124] ss:$16 sps:$4 sm:$0xff]   ;;  %v8129_v61 = vld [vmem:[#allocation6 + $0x320] ss:$16 sps:$4 sm:$0xff]   ;;  %v2890_v42 = vmul.f32 %v12943_v54, %v12943_v54 }
 0x2a1   :  { %v10433_v47 = vpop.f32.mrf.mxu1  ;;  %v2906_v22 = vadd.f32 %v2905_v31, %v2882_v41  ;;  %v8131_v3 = vld [vmem:[#allocation6 + $0x324] ss:$16 sps:$4 sm:$0xff]   ;;  %v2891_v4 = vmul.f32 %v10419_v21, %v10419_v21  ;;  %4156 = vmatprep.subr.bf16.mxu0 %v8128_v48  ;;  %v8132_v41 = vld [vmem:[#allocation6 + $0x100] ss:$16 sps:$4 sm:$0xff]  }
 0x2a2   :  { %12942 = vst [vmem:[#allocation99_spill] sm:$0xff] %v10433_v47  ;;  %v10439_v39 = vpop.f32.mrf.mxu0  ;;  %v2927_v26 = vadd.f32 %v2926_v10, %v2883_v24  ;;  %v2761_v52 = vrot.slane %v2760_v60, 4  ;;  %v8137_v30 = vld [vmem:[#allocation6 + $0x304] ss:$16 sps:$4 sm:$0xff]   ;;  %v2782_v7 = vrot.slane %v2781_v2, 4  ;;  %4269 = vmatprep.subr.bf16.mxu1 %v8131_v3 }
 0x2a3   :  { %v10441_v40 = vpop.f32.mrf.mxu1  ;;  %4157 = vmatpush2.bf16.msra.mxu0 %v8126_v14  ;;  %v2907_v31 = vadd.f32 %v2906_v22, %v2886_v58  ;;  %v8135_v10 = vld [vmem:[#allocation6 + $0x300] ss:$16 sps:$4 sm:$0xff]   ;;  %v8140_v58 = vld [vmem:[#allocation6 + $0xec] ss:$16 sps:$4 sm:$0xff]  }
 0x2a4   :  { %v10447_v1 = vpop.f32.mrf.mxu0  ;;  %v2928_v32 = vadd.f32 %v2927_v26, %v2887_v0  ;;  %4270 = vmatpush2.bf16.msra.mxu1 %v8129_v61  ;;  %4158 = vmatprep.subr.bf16.mxu0 %v8134_v23  ;;  %v2762_v54 = vadd.f32 %v2761_v52, %v2760_v60  ;;  %v2783_v16 = vadd.f32 %v2782_v7, %v2781_v2  ;;  %v8143_v61 = vld [vmem:[#allocation6 + $0x2ec] ss:$16 sps:$4 sm:$0xff]  }
 0x2a5   :  { %v10449_v20 = vpop.f32.mrf.mxu1  ;;  %4271 = vmatprep.subr.bf16.mxu1 %v8137_v30  ;;  %v2908_v21 = vadd.f32 %v2907_v31, %v2890_v42  ;;  %v12944_v31 = vld [vmem:[#allocation70_spill] sm:$0xff] }
 0x2a6   :  { %v2558_v9 = vpop.f32.mrf.mxu0  ;;  %v2929_v48 = vadd.f32 %v2928_v32, %v2891_v4  ;;  %v2763_v26 = vrot.slane %v2762_v54, 2  ;;  %v2784_v22 = vrot.slane %v2783_v16, 2 }
 0x2a7   :  { %v10455_v62 = vpop.f32.mrf.mxu1  ;;  %4159 = vmatpush2.bf16.msra.mxu0 %v8132_v41  ;;  %v2909_v23 = vrot.slane %v2908_v21, 4 }
 0x2a8   :  { %v2560_v24 = vpop.f32.mrf.mxu0  ;;  %4272 = vmatpush2.bf16.msra.mxu1 %v8135_v10  ;;  %v2930_v0 = vrot.slane %v2929_v48, 4  ;;  %4354 = vmatprep.subr.bf16.mxu0 %v8140_v58  ;;  %v2764_v60 = vadd.f32 %v2763_v26, %v2762_v54  ;;  %v2785_v42 = vadd.f32 %v2784_v22, %v2783_v16  ;;  %v2335_v10 = vadd.f32 %v12944_v31, %v10183_v18  ;;  %v12945_v54 = vld [vmem:[#allocation71_spill] sm:$0xff] }
 0x2a9   :  { %v10457_v5 = vpop.f32.mrf.mxu1  ;;  %4467 = vmatprep.subr.bf16.mxu1 %v8143_v61  ;;  %v2910_v2 = vadd.f32 %v2909_v23, %v2908_v21  ;;  %v12946_v16 = vld [vmem:[#allocation75_spill] sm:$0xff]  ;;  %v2355_v26 = vadd.f32 %v10218_v45, %v10183_v18  ;;  %v12947_v23 = vld [vmem:[#allocation72_spill] sm:$0xff] }
 0x2aa   :  { %v2564_v15 = vpop.f32.mrf.mxu0  ;;  %v2931_v52 = vadd.f32 %v2930_v0, %v2929_v48  ;;  %v2765_v37 = vrot.slane %v2764_v60, 1  ;;  %v2786_v61 = vrot.slane %v2785_v42, 1  ;;  %v2448_v21 = vadd.f32 %v12945_v54, %v2335_v10  ;;  %v12948_v54 = vld [vmem:[#allocation68_spill] sm:$0xff] }
 0x2ab   :  { %v10459_v53 = vpop.f32.mrf.mxu1  ;;  %v2911_v11 = vrot.slane %v2910_v2, 2  ;;  %v2345_v48 = vadd.f32 %v12946_v16, %v10183_v18  ;;  %v2559_v0 = vadd.f32 %v2558_v9, %v12947_v23  ;;  %v2365_v10 = vadd.f32 %v10244_v51, %v10183_v18  ;;  %v12949_v16 = vld [vmem:[#allocation73_spill] sm:$0xff] }
 0x2ac   :  { %v2566_v14 = vpop.f32.mrf.mxu0  ;;  %v2932_v58 = vrot.slane %v2931_v52, 2  ;;  %v10483_v28 = vadd.f32 %v2765_v37, %v2764_v60  ;;  %v2561_v56 = vadd.f32 %v2560_v24, %v2448_v21  ;;  %v10489_v55 = vadd.f32 %v2786_v61, %v2785_v42  ;;  %v12950_v60 = vld [vmem:[#allocation69_spill] sm:$0xff] }
 0x2ad   :  { %v10461_v3 = vpop.f32.mrf.mxu1  ;;  %v10485_v12 = vadd.f32 %v2911_v11, %v2910_v2  ;;  %v2555_v45 = vadd.f32 %v10439_v39, %v12948_v54  ;;  %v2565_v9 = vadd.f32 %v2564_v15, %v12949_v16  ;;  %v2375_v11 = vadd.f32 %v10293_v6, %v10183_v18  ;;  %v12951_v2 = vld [vmem:[#allocation76_spill] sm:$0xff] }
 0x2ae   :  { %v2568_v35 = vpop.f32.mrf.mxu0  ;;  %v10487_v34 = vadd.f32 %v2932_v58, %v2931_v52  ;;  %v2385_v37 = vadd.f32 %v10341_v8, %v10183_v18  ;;  %v2395_v24 = vadd.f32 %v10384_v63, %v10183_v18  ;;  %v2557_v51 = vadd.f32 %v10447_v1, %v12950_v60  ;;  %v12952_v39 = vld [vmem:[#allocation80_spill] sm:$0xff]  ;;  %v12953_v58 = vld [vmem:[#allocation74_spill] sm:$0xff] }
 0x2af   :  { %v10463_v30 = vpop.f32.mrf.mxu1  ;;  %v2458_v52 = vadd.f32 %v12951_v2, %v2345_v48  ;;  %v2468_v42 = vadd.f32 %v12952_v39, %v2355_v26  ;;  %v10509_v15 = vadd.f32 %v10455_v62, %v2559_v0  ;;  %v2567_v61 = vadd.f32 %v2566_v14, %v12953_v58  ;;  %v12954_v48 = vld [vmem:[#allocation77_spill] sm:$0xff] }
 0x2b0   :  { %v2570_v32 = vpop.f32.mrf.mxu0  ;;  %v2401_v8 = vadd.f32 %v10406_v25, %v10183_v18  ;;  %v2403_v63 = vadd.f32 %v10421_v27, %v10171_v17  ;;  %v10519_v1 = vadd.f32 %v10457_v5, %v2561_v56  ;;  %v2569_v54 = vadd.f32 %v2568_v35, %v12954_v48  ;;  %v12955_v26 = vld [vmem:[#allocation85_spill] sm:$0xff]  ;;  %v12956_v27 = vld [vmem:[#allocation78_spill] sm:$0xff] }
 0x2b1   :  { %v10465_v7 = vpop.f32.mrf.mxu1  ;;  %v2478_v16 = vadd.f32 %v12955_v26, %v2365_v10  ;;  %v10524_v62 = vadd.f32 %v10441_v40, %v2555_v45  ;;  %v10527_v14 = vadd.f32 %v10459_v53, %v2565_v9  ;;  %v2571_v0 = vadd.f32 %v2570_v32, %v2458_v52  ;;  %v12957_v32 = vld [vmem:[#allocation79_spill] sm:$0xff] }
 0x2b2   :  { %v2574_v4 = vpop.f32.mrf.mxu0  ;;  %v10532_v25 = vadd.f32 %v10295_v33, %v2375_v11  ;;  %v10535_v5 = vadd.f32 %v10343_v19, %v2385_v37  ;;  %v10538_v35 = vadd.f32 %v10386_v13, %v2395_v24  ;;  %v10541_v17 = vadd.f32 %v10449_v20, %v2557_v51 }
 0x2b3   :  { %v10467_v41 = vpop.f32.mrf.mxu1  ;;  %v2836_v53 = vmul.f32 %v10509_v15, %v10509_v15  ;;  %v10546_v56 = vadd.f32 %v10461_v3, %v2567_v61  ;;  %v2575_v40 = vadd.f32 %v2574_v4, %v12956_v27  ;;  %v10551_v19 = vadd.f32 %v10408_v59, %v2401_v8  ;;  %v12958_v59 = vld [vmem:[#allocation81_spill] sm:$0xff] }
 0x2b4   :  { %v2576_v29 = vpop.f32.mrf.mxu0  ;;  %v10554_v13 = vadd.f32 %v10423_v43, %v2403_v63  ;;  %v2837_v20 = vmul.f32 %v10519_v1, %v10519_v1  ;;  %v10559_v9 = vadd.f32 %v10463_v30, %v2569_v54  ;;  %v2832_v3 = vmul.f32 %v10524_v62, %v10524_v62 }
 0x2b5   :  { %v10471_v44 = vpop.f32.mrf.mxu1  ;;  %v2577_v33 = vadd.f32 %v2576_v29, %v12957_v32  ;;  %v2840_v29 = vmul.f32 %v10527_v14, %v10527_v14  ;;  %v10566_v4 = vadd.f32 %v10465_v7, %v2571_v0  ;;  %v10571_v24 = vadd.f32 %v10431_v46, %v10183_v18 }
 0x2b6   :  { %v2578_v47 = vpop.f32.mrf.mxu0  ;;  %v2833_v30 = vmul.f32 %v10541_v17, %v10541_v17  ;;  %v2788_v51 = vadd.f32 %v10509_v15, %v10524_v62  ;;  %v2936_v39 = vadd.f32 %v2836_v53, %v2832_v3  ;;  %v2841_v7 = vmul.f32 %v10546_v56, %v10546_v56 }
 0x2b7   :  { %v10473_v57 = vpop.f32.mrf.mxu1  ;;  %v2579_v11 = vadd.f32 %v2578_v47, %v12958_v59  ;;  %v10580_v58 = vadd.f32 %v10467_v41, %v2575_v40  ;;  %v10583_v47 = vadd.f32 %v10471_v44, %v2577_v33  ;;  %v2809_v46 = vadd.f32 %v10519_v1, %v10541_v17  ;;  %v12960_v40 = vld [vmem:[#allocation84_spill] sm:$0xff]  ;;  %v12961_v33 = vld [vmem:[#allocation86_spill] sm:$0xff] }
 0x2b8   :  { %v2580_v22 = vpop.f32.mrf.mxu0  ;;  %v2957_v8 = vadd.f32 %v2837_v20, %v2833_v30  ;;  %v2844_v63 = vmul.f32 %v10559_v9, %v10559_v9  ;;  %v2789_v48 = vadd.f32 %v2788_v51, %v10527_v14  ;;  %v2937_v54 = vadd.f32 %v2936_v39, %v2840_v29 }
 0x2b9   :  { %v10481_v31 = vpop.f32.mrf.mxu1  ;;  %v2581_v52 = vadd.f32 %v2580_v22, %v2468_v42  ;;  %v12959_v22 = vld [vmem:[#allocation82_spill] sm:$0xff]  ;;  %v2845_v41 = vmul.f32 %v10566_v4, %v10566_v4  ;;  %v10594_v44 = vadd.f32 %v10473_v57, %v2579_v11  ;;  %v2810_v53 = vadd.f32 %v2809_v46, %v10546_v56 }
 0x2ba   :  { %v2584_v23 = vpop.f32.mrf.mxu0  ;;  %v2958_v20 = vadd.f32 %v2957_v8, %v2841_v7  ;;  %v2790_v3 = vadd.f32 %v2789_v48, %v10559_v9  ;;  %v2848_v29 = vmul.f32 %v10580_v58, %v10580_v58  ;;  %v2849_v57 = vmul.f32 %v10583_v47, %v10583_v47 }
 0x2bb   :  { %v10496_v49 = vpop.f32.mrf.mxu1  ;;  %v2585_v42 = vadd.f32 %v2584_v23, %v12959_v22  ;;  %v10598_v27 = vadd.f32 %v10481_v31, %v2581_v52  ;;  %v2938_v30 = vadd.f32 %v2937_v54, %v2844_v63  ;;  %v2852_v7 = vmul.f32 %v10594_v44, %v10594_v44 }
 0x2bc   :  { %v2586_v21 = vpop.f32.mrf.mxu0  ;;  %v2959_v52 = vadd.f32 %v2958_v20, %v2845_v41  ;;  %v2791_v39 = vadd.f32 %v2790_v3, %v10580_v58 }
 0x2bd   :  { %v10512_v6 = vpop.f32.mrf.mxu1  ;;  %v2587_v32 = vadd.f32 %v2586_v21, %v12960_v40  ;;  %v10608_v51 = vadd.f32 %v10496_v49, %v2585_v42  ;;  %v2853_v22 = vmul.f32 %v10598_v27, %v10598_v27 }
 0x2be   :  { %v2588_v60 = vpop.f32.mrf.mxu0  ;;  %v2792_v40 = vadd.f32 %v2791_v39, %v10594_v44 }
 0x2bf   :  { %v10529_v2 = vpop.f32.mrf.mxu1  ;;  %v2589_v23 = vadd.f32 %v2588_v60, %v12961_v33  ;;  %v2811_v60 = vadd.f32 %v2810_v53, %v10566_v4  ;;  %v10618_v63 = vadd.f32 %v10512_v6, %v2587_v32  ;;  %v2856_v41 = vmul.f32 %v10608_v51, %v10608_v51  ;;  %v12962_v32 = vld [vmem:[#allocation89_spill] sm:$0xff] }
 0x2c0   :  { %v2590_v10 = vpop.f32.mrf.mxu0 }
 0x2c1   :  { %v2703_v45 = vpop.f32.mrf.mxu1  ;;  %v2591_v31 = vadd.f32 %v2590_v10, %v2478_v16  ;;  %v10621_v49 = vadd.f32 %v10529_v2, %v2589_v23  ;;  %v2939_v16 = vadd.f32 %v2938_v30, %v2848_v29  ;;  %v2812_v10 = vadd.f32 %v2811_v60, %v10583_v47  ;;  %v12963_v29 = vld [vmem:[#allocation91_spill] sm:$0xff] }
 0x2c2   :  { %v2594_v37 = vpop.f32.mrf.mxu0  ;;  %v2857_v20 = vmul.f32 %v10618_v63, %v10618_v63 }
 0x2c3   :  { %v2707_v43 = vpop.f32.mrf.mxu1  ;;  %v2595_v21 = vadd.f32 %v2594_v37, %v10276_v36  ;;  %v2960_v37 = vadd.f32 %v2959_v52, %v2849_v57  ;;  %v10628_v53 = vadd.f32 %v2703_v45, %v2591_v31  ;;  %v2860_v45 = vmul.f32 %v10621_v49, %v10621_v49 }
 0x2c4   :  { %v2596_v61 = vpop.f32.mrf.mxu0 }
 0x2c5   :  { %v2709_v18 = vpop.f32.mrf.mxu1  ;;  %v2597_v36 = vadd.f32 %v2596_v61, %v10286_v50  ;;  %v10630_v6 = vadd.f32 %v2707_v43, %v2595_v21  ;;  %v2940_v50 = vadd.f32 %v2939_v16, %v2852_v7  ;;  %v2813_v61 = vadd.f32 %v2812_v10, %v10598_v27 }
 0x2c6   :  { %v2598_v26 = vpop.f32.mrf.mxu0  ;;  %v2861_v52 = vmul.f32 %v10628_v53, %v10628_v53 }
 0x2c7   :  { %v2711_v0 = vpop.f32.mrf.mxu1  ;;  %v2599_v42 = vadd.f32 %v2598_v26, %v10300_v38  ;;  %v2961_v26 = vadd.f32 %v2960_v37, %v2853_v22  ;;  %v10640_v43 = vadd.f32 %v2709_v18, %v2597_v36  ;;  %v2941_v60 = vadd.f32 %v2940_v50, %v2856_v41 }
 0x2c8   :  { %v2600_v59 = vpop.f32.mrf.mxu0  ;;  %v2864_v39 = vmul.f32 %v10630_v6, %v10630_v6  ;;  %v2814_v18 = vadd.f32 %v2813_v61, %v10618_v63 }
 0x2c9   :  { %v2713_v11 = vpop.f32.mrf.mxu1  ;;  %v2601_v2 = vadd.f32 %v2600_v59, %v10532_v25  ;;  %v2793_v25 = vadd.f32 %v2792_v40, %v10608_v51  ;;  %v10643_v3 = vadd.f32 %v2711_v0, %v2599_v42  ;;  %v12964_v59 = vld [vmem:[#allocation92_spill] sm:$0xff]  ;;  %v2962_v10 = vadd.f32 %v2961_v26, %v2857_v20 }
 0x2ca   :  { %v2604_v46 = vpop.f32.mrf.mxu0  ;;  %v2942_v37 = vadd.f32 %v2941_v60, %v2860_v45  ;;  %v2865_v42 = vmul.f32 %v10640_v43, %v10640_v43 }
 0x2cb   :  { %v2717_v8 = vpop.f32.mrf.mxu1  ;;  %v2605_v33 = vadd.f32 %v2604_v46, %v12962_v32  ;;  %v10651_v7 = vadd.f32 %v2713_v11, %v2601_v2  ;;  %v2794_v0 = vadd.f32 %v2793_v25, %v10621_v49  ;;  %v2815_v11 = vadd.f32 %v2814_v18, %v10628_v53 }
 0x2cc   :  { %v2606_v48 = vpop.f32.mrf.mxu0  ;;  %v2868_v2 = vmul.f32 %v10643_v3, %v10643_v3  ;;  %v2963_v61 = vadd.f32 %v2962_v10, %v2861_v52 }
 0x2cd   :  { %v2719_v54 = vpop.f32.mrf.mxu1  ;;  %v2607_v57 = vadd.f32 %v2606_v48, %v12963_v29  ;;  %v10655_v46 = vadd.f32 %v2717_v8, %v2605_v33  ;;  %v12965_v48 = vld [vmem:[#allocation94_spill] sm:$0xff]  ;;  %v2795_v32 = vadd.f32 %v2794_v0, %v10630_v6  ;;  %v2943_v33 = vadd.f32 %v2942_v37, %v2864_v39 }
 0x2ce   :  { %v2608_v23 = vpop.f32.mrf.mxu0 }
 0x2cf   :  { %v2721_v38 = vpop.f32.mrf.mxu1  ;;  %v2609_v30 = vadd.f32 %v2608_v23, %v12964_v59  ;;  %v10664_v40 = vadd.f32 %v2719_v54, %v2607_v57  ;;  %v2869_v23 = vmul.f32 %v10651_v7, %v10651_v7  ;;  %v2872_v26 = vmul.f32 %v10655_v46, %v10655_v46  ;;  %v12967_v54 = vld [vmem:[#allocation96_spill] sm:$0xff] }
 0x2d0   :  { %v2610_v31 = vpop.f32.mrf.mxu0  ;;  %v2816_v57 = vadd.f32 %v2815_v11, %v10640_v43  ;;  %v2964_v59 = vadd.f32 %v2963_v61, %v2865_v42  ;;  %v2944_v52 = vadd.f32 %v2943_v33, %v2868_v2  ;;  %v12970_v33 = vld [vmem:[#allocation65_spill] sm:$0xff] }
 0x2d1   :  { %v2723_v21 = vpop.f32.mrf.mxu1  ;;  %v2611_v22 = vadd.f32 %v2610_v31, %v10535_v5  ;;  %v10666_v8 = vadd.f32 %v2721_v38, %v2609_v30  ;;  %v2796_v30 = vadd.f32 %v2795_v32, %v10643_v3  ;;  %v12968_v31 = vld [vmem:[#allocation97_spill] sm:$0xff]  ;;  %v2873_v39 = vmul.f32 %v10664_v40, %v10664_v40 }
 0x2d2   :  { %v2614_v36 = vpop.f32.mrf.mxu0  ;;  %v2965_v42 = vadd.f32 %v2964_v59, %v2869_v23 }
 0x2d3   :  { %v2727_v16 = vpop.f32.mrf.mxu1  ;;  %v2615_v41 = vadd.f32 %v2614_v36, %v12965_v48  ;;  %v10673_v20 = vadd.f32 %v2723_v21, %v2611_v22  ;;  %v2876_v21 = vmul.f32 %v10666_v8, %v10666_v8  ;;  %v2817_v36 = vadd.f32 %v2816_v57, %v10651_v7  ;;  %v12971_v57 = vld [vmem:[#allocation99_spill] sm:$0xff] }
 0x2d4   :  { %v2616_v50 = vpop.f32.mrf.mxu0  ;;  %v2945_v48 = vadd.f32 %v2944_v52, %v2872_v26  ;;  %v2518_v59 = vadd.f32 %v12971_v57, %v10571_v24 }
 0x2d5   :  { %v2729_v5 = vpop.f32.mrf.mxu1  ;;  %v10675_v45 = vadd.f32 %v2727_v16, %v2615_v41  ;;  %v2617_v25 = vadd.f32 %v2616_v50, %v12967_v54  ;;  %v2797_v16 = vadd.f32 %v2796_v30, %v10655_v46  ;;  %v2877_v41 = vmul.f32 %v10673_v20, %v10673_v20 }
 0x2d6   :  { %v2618_v38 = vpop.f32.mrf.mxu0 }
 0x2d7   :  { %12966 = vst [vmem:[#allocation70_spill] sm:$0xff] %v10675_v45  ;;  %v2731_v29 = vpop.f32.mrf.mxu1  ;;  %v2619_v60 = vadd.f32 %v2618_v38, %v12968_v31  ;;  %v10685_v18 = vadd.f32 %v2729_v5, %v2617_v25  ;;  %v2880_v11 = vmul.f32 %v10675_v45, %v10675_v45  ;;  %v2818_v5 = vadd.f32 %v2817_v36, %v10664_v40 }
 0x2d8   :  { %v2620_v0 = vpop.f32.mrf.mxu0  ;;  %v2798_v61 = vadd.f32 %v2797_v16, %v10666_v8  ;;  %v2966_v25 = vadd.f32 %v2965_v42, %v2873_v39 }
 0x2d9   :  { %v2733_v22 = vpop.f32.mrf.mxu1  ;;  %v10689_v10 = vadd.f32 %v2731_v29, %v2619_v60  ;;  %v2621_v37 = vadd.f32 %v2620_v0, %v10538_v35  ;;  %v2946_v35 = vadd.f32 %v2945_v48, %v2876_v21  ;;  %v2881_v23 = vmul.f32 %v10685_v18, %v10685_v18 }
 0x2da   :  { %v2624_v2 = vpop.f32.mrf.mxu0  ;;  %v2819_v30 = vadd.f32 %v2818_v5, %v10673_v20  ;;  %v2799_v31 = vadd.f32 %v2798_v61, %v10675_v45  ;;  %v2967_v52 = vadd.f32 %v2966_v25, %v2877_v41  ;;  %v2934_v48 = vrot.slane %v10487_v34, 1 }
 0x2db   :  { %12969 = vst [vmem:[#allocation71_spill] sm:$0xff] %v10689_v10  ;;  %v2737_v50 = vpop.f32.mrf.mxu1  ;;  %v10698_v32 = vadd.f32 %v2733_v22, %v2621_v37  ;;  %v2625_v54 = vadd.f32 %v2624_v2, %v12970_v33  ;;  %v2884_v26 = vmul.f32 %v10689_v10, %v10689_v10  ;;  %v2947_v39 = vadd.f32 %v2946_v35, %v2880_v11 }
 0x2dc   :  { %v2626_v38 = vpop.f32.mrf.mxu0  ;;  %v2820_v16 = vadd.f32 %v2819_v30, %v10685_v18  ;;  %v2800_v37 = vadd.f32 %v2799_v31, %v10689_v10  ;;  %v2968_v41 = vadd.f32 %v2967_v52, %v2881_v23  ;;  %v2935_v30 = vadd.f32 %v2934_v48, %v10487_v34 }
 0x2dd   :  { %v2739_v29 = vpop.f32.mrf.mxu1  ;;  %v10709_v60 = vadd.f32 %v2737_v50, %v2625_v54  ;;  %v2885_v21 = vmul.f32 %v10698_v32, %v10698_v32  ;;  %v2627_v0 = vadd.f32 %v2626_v38, %v10551_v19  ;;  %v2948_v11 = vadd.f32 %v2947_v39, %v2884_v26 }
 0x2de   :  { %v2628_v22 = vpop.f32.mrf.mxu0  ;;  %v2821_v19 = vadd.f32 %v2820_v16, %v10698_v32  ;;  %v2913_v54 = vrot.slane %v10485_v12, 1 }
 0x2df   :  { %12972 = vst [vmem:[#allocation75_spill] sm:$0xff] %v10709_v60  ;;  %v2741_v36 = vpop.f32.mrf.mxu1  ;;  %v2888_v24 = vmul.f32 %v10709_v60, %v10709_v60  ;;  %v2629_v42 = vadd.f32 %v2628_v22, %v10554_v13  ;;  %v10720_v2 = vadd.f32 %v2739_v29, %v2627_v0  ;;  %v2801_v5 = vadd.f32 %v2800_v37, %v10709_v60 }
 0x2e0   :  { %v2630_v50 = vpop.f32.mrf.mxu0  ;;  %v2969_v25 = vadd.f32 %v2968_v41, %v2885_v21  ;;  %v2914_v22 = vadd.f32 %v2913_v54, %v10485_v12 }
 0x2e1   :  { %12973 = vst [vmem:[#allocation72_spill] sm:$0xff] %v10720_v2  ;;  %v10724_v61 = vadd.f32 %v2741_v36, %v2629_v42  ;;  %v2631_v33 = vadd.f32 %v2630_v50, %v2518_v59  ;;  %v2949_v35 = vadd.f32 %v2948_v11, %v2888_v24  ;;  %v2889_v13 = vmul.f32 %v10720_v2, %v10720_v2  ;;  %v2743_v38 = vpop.f32.mrf.mxu1 }
 0x2e2   :  { %v2822_v23 = vadd.f32 %v2821_v19, %v10720_v2  ;;  %v10737_v59 = vmul.f32 0.0078125, %v10489_v55  ;;  %v10744_v36 = vmul.f32 0.0078125, %v10483_v28  ;;  %v2983_v42 = vmul.f32 0.0078125, %v2935_v30 }
 0x2e3   :  { %12974 = vst [vmem:[#allocation68_spill] sm:$0xff] %v10724_v61  ;;  %v2802_v26 = vadd.f32 %v2801_v5, %v10724_v61  ;;  %v2892_v29 = vmul.f32 %v10724_v61, %v10724_v61  ;;  %v10733_v57 = vadd.f32 %v2743_v38, %v2631_v33  ;;  %v2970_v31 = vadd.f32 %v2969_v25, %v2889_v13 }
 0x2e4   :  { %v2987_v55 = vmul.f32 %v10737_v59, %v10737_v59  ;;  %v2982_v19 = vmul.f32 0.0078125, %v2914_v22  ;;  %v2986_v5 = vmul.f32 %v10744_v36, %v10744_v36 }
 0x2e5   :  { %12975 = vst [vmem:[#allocation73_spill] sm:$0xff] %v10733_v57  ;;  %v2803_v52 = vrot.slane %v2802_v26, 4  ;;  %v2950_v39 = vadd.f32 %v2949_v35, %v2892_v29  ;;  %v2823_v21 = vadd.f32 %v2822_v23, %v10733_v57  ;;  %v2893_v0 = vmul.f32 %v10733_v57, %v10733_v57 }
 0x2e6   :  { %v2991_v25 = vsub.f32 %v2983_v42, %v2987_v55 }
 0x2e7   :  { %v2804_v16 = vadd.f32 %v2803_v52, %v2802_v26  ;;  %v2951_v37 = vrot.slane %v2950_v39, 4  ;;  %v2824_v24 = vrot.slane %v2823_v21, 4  ;;  %v2971_v34 = vadd.f32 %v2970_v31, %v2893_v0 }
 0x2e8   :  { %v2990_v26 = vsub.f32 %v2982_v19, %v2986_v5 }
 0x2e9   :  { %v2805_v48 = vrot.slane %v2804_v16, 2  ;;  %v2952_v41 = vadd.f32 %v2951_v37, %v2950_v39  ;;  %v2825_v11 = vadd.f32 %v2824_v24, %v2823_v21  ;;  %v2972_v50 = vrot.slane %v2971_v34, 4 }
 0x2ea   :  { %v2995_v39 = vmax.f32 %v2991_v25, 0.0  ;;  %v2994_v24 = vmax.f32 %v2990_v26, 0.0 }
 0x2eb   :  { %v2806_v12 = vadd.f32 %v2805_v48, %v2804_v16  ;;  %v2953_v33 = vrot.slane %v2952_v41, 2  ;;  %v2826_v28 = vrot.slane %v2825_v11, 2  ;;  %v2973_v54 = vadd.f32 %v2972_v50, %v2971_v34 }
 0x2ec   :  { %v3000_v42 = vadd.f32 1e-05, %v2995_v39  ;;  %v2999_v50 = vadd.f32 1e-05, %v2994_v24 }
 0x2ed   :  { %v2807_v35 = vrot.slane %v2806_v12, 1  ;;  %v2954_v13 = vadd.f32 %v2953_v33, %v2952_v41  ;;  %v2827_v38 = vadd.f32 %v2826_v28, %v2825_v11  ;;  %v2974_v23 = vrot.slane %v2973_v54, 2 }
 0x2ee   :  { %8358 = vrsqrt.f32 %v3000_v42  ;;  %v12979_v42 = vld [vmem:[#allocation39_spill] sm:$0xff] }
 0x2ef   :  { %v2808_v29 = vadd.f32 %v2807_v35, %v2806_v12  ;;  %v2955_v30 = vrot.slane %v2954_v13, 1  ;;  %v2828_v31 = vrot.slane %v2827_v38, 1  ;;  %v2975_v52 = vadd.f32 %v2974_v23, %v2973_v54 }
 0x2f0   :  { %8360 = vrsqrt.f32 %v2999_v50  ;;  %v8815_v54 = vmov 1966171168   ;;  %v12981_v50 = vld [vmem:[#allocation63_spill] sm:$0xff] }
 0x2f1   :  { %v2956_v21 = vadd.f32 %v2955_v30, %v2954_v13  ;;  %v2980_v0 = vmul.f32 0.0078125, %v2808_v29  ;;  %v2829_v22 = vadd.f32 %v2828_v31, %v2827_v38  ;;  %v2976_v37 = vrot.slane %v2975_v52, 1  ;;  %v12976_v29 = vld [vmem:[#allocation37_spill] sm:$0xff] }
 0x2f2   :  { %v3014_v25 = vunpack.c.l.s4 %v8815_v54 }
 0x2f3   :  { %v2984_v16 = vmul.f32 0.0078125, %v2956_v21  ;;  %v2988_v48 = vmul.f32 %v2980_v0, %v2980_v0  ;;  %v2977_v61 = vadd.f32 %v2976_v37, %v2975_v52  ;;  %v2981_v34 = vmul.f32 0.0078125, %v2829_v22  ;;  %v2998_v22 = vld [vmem:[#allocation2] sm:$0xf] }
 0x2f4   :  { %v3015_v35 = vunpack.c.0.s8 %v3014_v25 }
 0x2f5   :  { %v2992_v55 = vsub.f32 %v2984_v16, %v2988_v48  ;;  %v2985_v41 = vmul.f32 0.0078125, %v2977_v61  ;;  %v2989_v11 = vmul.f32 %v2981_v34, %v2981_v34  ;;  %v12978_v16 = vld [vmem:[#allocation38_spill] sm:$0xff] }
 0x2f6   :  { %v10751_v61 = vsub.s32 %v3015_v35, %v12976_v29 }
 0x2f7   :  { %v2996_v19 = vmax.f32 %v2992_v55, 0.0  ;;  %v2993_v5 = vsub.f32 %v2985_v41, %v2989_v11  ;;  %v12980_v41 = vld [vmem:[#allocation61_spill] sm:$0xff] }
 0x2f8   :  { %12977 = vst [vmem:[#allocation69_spill] sm:$0xff] %v10751_v61 }
 0x2f9   :  { %v3001_v12 = vadd.f32 1e-05, %v2996_v19  ;;  %v2997_v33 = vmax.f32 %v2993_v5, 0.0 }
 0x2fb   :  { %v3002_v28 = vadd.f32 1e-05, %v2997_v33  ;;  %8362 = vrsqrt.f32 %v3001_v12  ;;  %v8359_v13 = vpop.eup %8358 }
 0x2fd   :  { %8364 = vrsqrt.f32 %v3002_v28  ;;  %v8361_v38 = vpop.eup %8360 }
 0x2fe   :  { %v3011_v26 = vcombine.low %v8361_v38, %v8359_v13  ;;  %v12982_v38 = vld [vmem:[#allocation41_spill] sm:$0xff] }
 0x300   :  { %v3019_v52 = vrot.slane %v3011_v26, %v10751_v61  ;;  %v12983_v26 = vld [vmem:[#allocation83_spill] sm:$0xff] }
 0x308   :  { %v8363_v23 = vpop.eup %8362 }
 0x30a   :  { %v8365_v30 = vpop.eup %8364 }
 0x30b   :  { %v3012_v31 = vcombine.low %v8363_v23, %v8365_v30 }
 0x30d   :  { %v3026_v39 = vrot.slane %v3012_v31, %v10751_v61  ;;  %v3037_v31 = vld [vmem:[#allocation4] sm:$0xf] }
 0x30f   :  { %v3027_v21 = vcombine.low %v3019_v52, %v3026_v39  ;;  %v12985_v52 = vld [vmem:[#allocation42_spill] sm:$0xff] }
 0x311   :  { %v3034_v37 = vrot.slane %v3027_v21, %v10751_v61 }
 0x313   :  { %v3036_v24 = vmul.f32 %v3034_v37, %v2998_v22  ;;  %v12986_v37 = vld [vmem:[#allocation44_spill] sm:$0xff] }
 0x315   :  { %v10757_v48 = vrot.slane %v3036_v24, %v12978_v16  ;;  %v10760_v55 = vrot.slane %v3036_v24, %v12979_v42  ;;  %v10763_v11 = vrot.slane %v3036_v24, %v12980_v41  ;;  %v10766_v19 = vrot.slane %v3036_v24, %v12981_v50 }
 0x317   :  { %v3059_v5 = vmul.f32 %v10757_v48, %v10744_v36  ;;  %v3060_v12 = vmul.f32 %v10760_v55, %v10737_v59  ;;  %v3061_v33 = vmul.f32 %v10763_v11, %v2980_v0  ;;  %v3062_v28 = vmul.f32 %v10766_v19, %v2981_v34  ;;  %v12984_v34 = vld [vmem:[#allocation40_spill] sm:$0xff] }
 0x318   :  { %v3094_v23 = vmul.f32 %v10760_v55, %v12982_v38  ;;  %v3098_v29 = vmul.f32 %v10760_v55, %v12983_v26  ;;  %v3096_v59 = vmul.f32 %v10766_v19, %v10541_v17  ;;  %v3100_v0 = vmul.f32 %v10766_v19, %v10519_v1  ;;  %v12990_v38 = vld [vmem:[#allocation47_spill] sm:$0xff] }
 0x319   :  { %v3067_v54 = vcombine.low %v3059_v5, %v3060_v12  ;;  %v3068_v25 = vcombine.low %v3061_v33, %v3062_v28  ;;  %v3093_v30 = vmul.f32 %v10757_v48, %v12984_v34  ;;  %v3097_v39 = vmul.f32 %v10757_v48, %v12985_v52  ;;  %v12987_v5 = vld [vmem:[#allocation87_spill] sm:$0xff] }
 0x31a   :  { %v3095_v21 = vmul.f32 %v10763_v11, %v10524_v62  ;;  %v3099_v22 = vmul.f32 %v10763_v11, %v10509_v15  ;;  %v3102_v24 = vmul.f32 %v10760_v55, %v12986_v37  ;;  %v3106_v1 = vmul.f32 %v10760_v55, %v12987_v5  ;;  %v12988_v28 = vld [vmem:[#allocation43_spill] sm:$0xff] }
 0x31b   :  { %v3075_v35 = vrot.slane %v3067_v54, %v10751_v61  ;;  %v3082_v13 = vrot.slane %v3068_v25, %v10751_v61  ;;  %v3104_v12 = vmul.f32 %v10766_v19, %v10546_v56  ;;  %v3108_v33 = vmul.f32 %v10766_v19, %v10566_v4  ;;  %v12989_v54 = vld [vmem:[#allocation45_spill] sm:$0xff]  ;;  %v12991_v56 = vld [vmem:[#allocation88_spill] sm:$0xff] }
 0x31c   :  { %v3101_v62 = vmul.f32 %v10757_v48, %v12988_v28  ;;  %v3105_v15 = vmul.f32 %v10757_v48, %v12989_v54  ;;  %v3103_v25 = vmul.f32 %v10763_v11, %v10527_v14  ;;  %v3110_v26 = vmul.f32 %v10760_v55, %v12990_v38  ;;  %v12992_v14 = vld [vmem:[#allocation46_spill] sm:$0xff] }
 0x31d   :  { %v3083_v36 = vcombine.low %v3075_v35, %v3082_v13  ;;  %v3107_v35 = vmul.f32 %v10763_v11, %v10559_v9  ;;  %v10817_v4 = vmul.f32 %v10766_v19, %v10583_v47  ;;  %v10821_v34 = vmul.f32 %v10766_v19, %v10598_v27  ;;  %v12993_v9 = vld [vmem:[#allocation48_spill] sm:$0xff]  ;;  %v12994_v54 = vld [vmem:[#allocation50_spill] sm:$0xff] }
 0x31e   :  { %v10825_v52 = vmul.f32 %v10757_v48, %v12992_v14  ;;  %v10833_v37 = vmul.f32 %v10763_v11, %v10580_v58  ;;  %v10849_v28 = vmul.f32 %v10763_v11, %v10594_v44  ;;  %v10853_v58 = vmul.f32 %v10760_v55, %v12994_v54  ;;  %v12995_v38 = vld [vmem:[#allocation90_spill] sm:$0xff] }
 0x31f   :  { %v3090_v17 = vrot.slane %v3083_v36, %v10751_v61  ;;  %v10813_v36 = vmul.f32 %v10760_v55, %v12991_v56  ;;  %v10857_v56 = vmul.f32 %v10760_v55, %v12995_v38  ;;  %v10861_v14 = vmul.f32 %v10766_v19, %v10618_v63 }
 0x321   :  { %v3092_v13 = vsub.f32 %v3037_v31, %v3090_v17  ;;  %v10829_v31 = vmul.f32 %v10757_v48, %v12993_v9 }
 0x323   :  { %v10836_v17 = vrot.slane %v3092_v13, %v12978_v16  ;;  %v10839_v47 = vrot.slane %v3092_v13, %v12979_v42  ;;  %v10842_v27 = vrot.slane %v3092_v13, %v12980_v41  ;;  %v10845_v5 = vrot.slane %v3092_v13, %v12981_v50 }
 0x325   :  { %v3179_v9 = vadd.f32 %v10839_v47, %v3094_v23  ;;  %v3183_v13 = vadd.f32 %v10839_v47, %v3098_v29  ;;  %v3181_v61 = vadd.f32 %v10845_v5, %v3096_v59  ;;  %v3185_v44 = vadd.f32 %v10845_v5, %v3100_v0  ;;  %v8138_v0 = vld [vmem:[#allocation6 + $0xe8] ss:$16 sps:$4 sm:$0xff]  }
 0x326   :  { %v3178_v50 = vadd.f32 %v10836_v17, %v3093_v30  ;;  %v3182_v54 = vadd.f32 %v10836_v17, %v3097_v39  ;;  %v3180_v41 = vadd.f32 %v10842_v27, %v3095_v21  ;;  %v3184_v38 = vadd.f32 %v10842_v27, %v3099_v22  ;;  %v8141_v30 = vld [vmem:[#allocation6 + $0x2e8] ss:$16 sps:$4 sm:$0xff]  }
 0x327   :  { %v3243_v42 = vmax.f32 %v3179_v9, 0.0  ;;  %v3247_v16 = vmax.f32 %v3183_v13, 0.0  ;;  %v3245_v63 = vmax.f32 %v3181_v61, 0.0  ;;  %v3249_v60 = vmax.f32 %v3185_v44, 0.0  ;;  %v8149_v9 = vld [vmem:[#allocation6 + $0x2cc] ss:$16 sps:$4 sm:$0xff]  }
 0x328   :  { %v3242_v2 = vmax.f32 %v3178_v50, 0.0  ;;  %v3246_v23 = vmax.f32 %v3182_v54, 0.0  ;;  %v3244_v10 = vmax.f32 %v3180_v41, 0.0  ;;  %v3248_v29 = vmax.f32 %v3184_v38, 0.0  ;;  %v8146_v41 = vld [vmem:[#allocation6 + $0xcc] ss:$16 sps:$4 sm:$0xff]  }
 0x329   :  { %v10871_v45 = vpack.c.bf16 %v3247_v16, %v3243_v42  ;;  %v10873_v59 = vpack.c.bf16 %v3249_v60, %v3245_v63  ;;  %v3187_v39 = vadd.f32 %v10839_v47, %v3102_v24  ;;  %v3191_v21 = vadd.f32 %v10839_v47, %v3106_v1  ;;  %v8144_v13 = vld [vmem:[#allocation6 + $0xc8] ss:$16 sps:$4 sm:$0xff]  }
 0x32a   :  { %v10877_v57 = vpack.c.bf16 %v3246_v23, %v3242_v2  ;;  %v10879_v22 = vpack.c.bf16 %v3248_v29, %v3244_v10  ;;  %v3189_v61 = vadd.f32 %v10845_v5, %v3104_v12  ;;  %v3193_v50 = vadd.f32 %v10845_v5, %v3108_v33  ;;  %v8147_v44 = vld [vmem:[#allocation6 + $0x2c8] ss:$16 sps:$4 sm:$0xff]   ;;  %v8152_v29 = vld [vmem:[#allocation6 + $0xac] ss:$16 sps:$4 sm:$0xff]  }
 0x32b   :  { %4160 = vmatprep.mubr.bf16.mxu0 %v10871_v45  ;;  %4273 = vmatprep.mubr.bf16.mxu1 %v10873_v59  ;;  %v3251_v60 = vmax.f32 %v3187_v39, 0.0  ;;  %v3255_v16 = vmax.f32 %v3191_v21, 0.0  ;;  %v3186_v42 = vadd.f32 %v10836_v17, %v3101_v62  ;;  %v3190_v24 = vadd.f32 %v10836_v17, %v3105_v15 }
 0x32c   :  { %4161 = vmatmul.mubr.bf16.vlgmr.msra.gmra.mxu0 %v10877_v57  ;;  %4274 = vmatmul.mubr.bf16.vlgmr.msra.gmra.mxu1 %v10879_v22  ;;  %v3253_v10 = vmax.f32 %v3189_v61, 0.0  ;;  %v3257_v2 = vmax.f32 %v3193_v50, 0.0  ;;  %v3188_v1 = vadd.f32 %v10842_v27, %v3103_v25  ;;  %v3192_v12 = vadd.f32 %v10842_v27, %v3107_v35  ;;  %v8155_v25 = vld [vmem:[#allocation6 + $0x2ac] ss:$16 sps:$4 sm:$0xff]  }
 0x32d   :  { %v10891_v33 = vpack.c.bf16 %v3255_v16, %v3251_v60  ;;  %4355 = vmatpush1.bf16.msra.mxu0 %v8138_v0  ;;  %4468 = vmatpush1.bf16.msra.mxu1 %v8141_v30  ;;  %v3250_v54 = vmax.f32 %v3186_v42, 0.0  ;;  %v3254_v62 = vmax.f32 %v3190_v24, 0.0  ;;  %v3195_v15 = vadd.f32 %v10839_v47, %v3110_v26  ;;  %v8150_v60 = vld [vmem:[#allocation6 + $0xa8] ss:$16 sps:$4 sm:$0xff]   ;;  %v8158_v24 = vld [vmem:[#allocation6 + $0x8c] ss:$16 sps:$4 sm:$0xff]  }
 0x32e   :  { %v10894_v38 = vpack.c.bf16 %v3257_v2, %v3253_v10  ;;  %4356 = vmatprep.subr.bf16.mxu0 %v8146_v41  ;;  %4469 = vmatprep.subr.bf16.mxu1 %v8149_v9  ;;  %v3252_v63 = vmax.f32 %v3188_v1, 0.0  ;;  %v3256_v23 = vmax.f32 %v3192_v12, 0.0  ;;  %v3199_v35 = vadd.f32 %v10839_v47, %v10813_v36  ;;  %v8153_v16 = vld [vmem:[#allocation6 + $0x2a8] ss:$16 sps:$4 sm:$0xff]   ;;  %v8161_v10 = vld [vmem:[#allocation6 + $0x28c] ss:$16 sps:$4 sm:$0xff]  }
 0x32f   :  { %4170 = vmatprep.mubr.bf16.mxu0 %v10891_v33  ;;  %v3259_v0 = vmax.f32 %v3195_v15, 0.0  ;;  %v3197_v30 = vadd.f32 %v10845_v5, %v10817_v4  ;;  %v3201_v26 = vadd.f32 %v10845_v5, %v10821_v34  ;;  %v3124_v39 = vmul.f32 %v10766_v19, %v10628_v53  ;;  %v8156_v15 = vld [vmem:[#allocation6 + $0x88] ss:$16 sps:$4 sm:$0xff]  }
 0x330   :  { %4283 = vmatprep.mubr.bf16.mxu1 %v10894_v38  ;;  %v10906_v21 = vpack.c.bf16 %v3254_v62, %v3250_v54  ;;  %v3263_v61 = vmax.f32 %v3199_v35, 0.0  ;;  %v3194_v36 = vadd.f32 %v10836_v17, %v10825_v52  ;;  %v3198_v50 = vadd.f32 %v10836_v17, %v10829_v31  ;;  %v12997_v62 = vld [vmem:[#allocation51_spill] sm:$0xff]  ;;  %v8164_v35 = vld [vmem:[#allocation6 + $0x6c] ss:$16 sps:$4 sm:$0xff]  }
 0x331   :  { %4357 = vmatpush1.bf16.msra.mxu0 %v8144_v13  ;;  %4470 = vmatpush1.bf16.msra.mxu1 %v8147_v44  ;;  %v3261_v4 = vmax.f32 %v3197_v30, 0.0  ;;  %v3265_v41 = vmax.f32 %v3201_v26, 0.0  ;;  %v3196_v34 = vadd.f32 %v10842_v27, %v10833_v37  ;;  %v3200_v53 = vadd.f32 %v10842_v27, %v10849_v28  ;;  %v12996_v44 = vld [vmem:[#allocation49_spill] sm:$0xff] }
 0x332   :  { %v10916_v9 = vpack.c.bf16 %v3256_v23, %v3252_v63  ;;  %4358 = vmatprep.subr.bf16.mxu0 %v8152_v29  ;;  %4471 = vmatprep.subr.bf16.mxu1 %v8155_v25  ;;  %v10918_v52 = vpack.c.bf16 %v3263_v61, %v3259_v0  ;;  %v3203_v31 = vadd.f32 %v10839_v47, %v10853_v58  ;;  %v3258_v2 = vmax.f32 %v3194_v36, 0.0  ;;  %v8159_v63 = vld [vmem:[#allocation6 + $0x288] ss:$16 sps:$4 sm:$0xff]   ;;  %v8167_v0 = vld [vmem:[#allocation6 + $0x26c] ss:$16 sps:$4 sm:$0xff]   ;;  %v12999_v36 = vld [vmem:[#allocation93_spill] sm:$0xff] }
 0x333   :  { %v10922_v42 = vpack.c.bf16 %v3265_v41, %v3261_v4  ;;  %v3262_v37 = vmax.f32 %v3198_v50, 0.0  ;;  %v3207_v28 = vadd.f32 %v10839_v47, %v10857_v56  ;;  %v3260_v1 = vmax.f32 %v3196_v34, 0.0 }
 0x334   :  { %4171 = vmatmul.mubr.bf16.gmra.mxu0 %v10906_v21  ;;  %4284 = vmatmul.mubr.bf16.gmra.mxu1 %v10916_v9  ;;  %v3264_v12 = vmax.f32 %v3200_v53, 0.0  ;;  %v3205_v13 = vadd.f32 %v10845_v5, %v10861_v14  ;;  %v3209_v58 = vadd.f32 %v10845_v5, %v3124_v39  ;;  %v3117_v54 = vmul.f32 %v10757_v48, %v12996_v44  ;;  %v12998_v39 = vld [vmem:[#allocation53_spill] sm:$0xff]  ;;  %v13001_v44 = vld [vmem:[#allocation54_spill] sm:$0xff] }
 0x335   :  { %4180 = vmatprep.mubr.bf16.mxu0 %v10918_v52  ;;  %4293 = vmatprep.mubr.bf16.mxu1 %v10922_v42  ;;  %v3121_v56 = vmul.f32 %v10757_v48, %v12997_v62  ;;  %v3267_v23 = vmax.f32 %v3203_v31, 0.0  ;;  %v3271_v29 = vmax.f32 %v3207_v28, 0.0  ;;  %v3119_v14 = vmul.f32 %v10763_v11, %v10608_v51  ;;  %v8162_v31 = vld [vmem:[#allocation6 + $0x68] ss:$16 sps:$4 sm:$0xff]   ;;  %v8173_v28 = vld [vmem:[#allocation6 + $0x24c] ss:$16 sps:$4 sm:$0xff]  }
 0x336   :  { %4359 = vmatpush1.bf16.msra.mxu0 %v8150_v60  ;;  %4472 = vmatpush1.bf16.msra.mxu1 %v8153_v16  ;;  %v3123_v25 = vmul.f32 %v10763_v11, %v10621_v49  ;;  %v3269_v30 = vmax.f32 %v3205_v13, 0.0  ;;  %v3273_v26 = vmax.f32 %v3209_v58, 0.0  ;;  %v3126_v61 = vmul.f32 %v10760_v55, %v12998_v39  ;;  %v13000_v13 = vld [vmem:[#allocation52_spill] sm:$0xff] }
 0x337   :  { %4360 = vmatprep.subr.bf16.mxu0 %v8158_v24  ;;  %4473 = vmatprep.subr.bf16.mxu1 %v8161_v10  ;;  %v3130_v50 = vmul.f32 %v10760_v55, %v12999_v36  ;;  %v10945_v4 = vpack.c.bf16 %v3262_v37, %v3258_v2  ;;  %v10947_v41 = vpack.c.bf16 %v3264_v12, %v3260_v1  ;;  %v8165_v24 = vld [vmem:[#allocation6 + $0x268] ss:$16 sps:$4 sm:$0xff]   ;;  %v8170_v37 = vld [vmem:[#allocation6 + $0x4c] ss:$16 sps:$4 sm:$0xff]  }
 0x338   :  { %v3128_v51 = vmul.f32 %v10766_v19, %v10640_v43  ;;  %v3132_v49 = vmul.f32 %v10766_v19, %v10651_v7  ;;  %v3202_v34 = vadd.f32 %v10836_v17, %v3117_v54  ;;  %v3206_v53 = vadd.f32 %v10836_v17, %v3121_v56  ;;  %v8168_v62 = vld [vmem:[#allocation6 + $0x48] ss:$16 sps:$4 sm:$0xff]  }
 0x339   :  { %v3204_v60 = vadd.f32 %v10842_v27, %v3119_v14  ;;  %v3208_v16 = vadd.f32 %v10842_v27, %v3123_v25  ;;  %v10957_v10 = vpack.c.bf16 %v3271_v29, %v3267_v23  ;;  %v3211_v2 = vadd.f32 %v10839_v47, %v3126_v61  ;;  %v8171_v29 = vld [vmem:[#allocation6 + $0x248] ss:$16 sps:$4 sm:$0xff]  }
 0x33a   :  { %4361 = vmatpush1.bf16.msra.mxu0 %v8156_v15  ;;  %4474 = vmatpush1.bf16.msra.mxu1 %v8159_v63  ;;  %v3215_v43 = vadd.f32 %v10839_v47, %v3130_v50  ;;  %v10961_v7 = vpack.c.bf16 %v3273_v26, %v3269_v30  ;;  %v3213_v1 = vadd.f32 %v10845_v5, %v3128_v51  ;;  %v3266_v56 = vmax.f32 %v3202_v34, 0.0  ;;  %v8176_v30 = vld [vmem:[#allocation6 + $0x2c] ss:$16 sps:$4 sm:$0xff]  }
 0x33b   :  { %4362 = vmatprep.subr.bf16.mxu0 %v8164_v35  ;;  %4475 = vmatprep.subr.bf16.mxu1 %v8167_v0  ;;  %v3217_v12 = vadd.f32 %v10845_v5, %v3132_v49  ;;  %v3125_v58 = vmul.f32 %v10757_v48, %v13000_v13  ;;  %v3129_v54 = vmul.f32 %v10757_v48, %v13001_v44  ;;  %v3270_v15 = vmax.f32 %v3206_v53, 0.0  ;;  %v8179_v26 = vld [vmem:[#allocation6 + $0x22c] ss:$16 sps:$4 sm:$0xff]   ;;  %v13003_v49 = vld [vmem:[#allocation95_spill] sm:$0xff] }
 0x33c   :  { %4181 = vmatmul.mubr.bf16.gmra.mxu0 %v10945_v4  ;;  %4294 = vmatmul.mubr.bf16.gmra.mxu1 %v10947_v41  ;;  %v3127_v63 = vmul.f32 %v10763_v11, %v10630_v6  ;;  %v3131_v23 = vmul.f32 %v10763_v11, %v10643_v3  ;;  %v3268_v14 = vmax.f32 %v3204_v60, 0.0  ;;  %v3272_v25 = vmax.f32 %v3208_v16, 0.0  ;;  %v13002_v50 = vld [vmem:[#allocation56_spill] sm:$0xff] }
 0x33d   :  { %4190 = vmatprep.mubr.bf16.mxu0 %v10957_v10  ;;  %4303 = vmatprep.mubr.bf16.mxu1 %v10961_v7  ;;  %v3275_v35 = vmax.f32 %v3211_v2, 0.0  ;;  %v3279_v0 = vmax.f32 %v3215_v43, 0.0  ;;  %v3277_v39 = vmax.f32 %v3213_v1, 0.0  ;;  %v3281_v61 = vmax.f32 %v3217_v12, 0.0  ;;  %v8174_v43 = vld [vmem:[#allocation6 + $0x28] ss:$16 sps:$4 sm:$0xff]  }
 0x33e   :  { %4363 = vmatpush1.bf16.msra.mxu0 %v8162_v31  ;;  %4476 = vmatpush1.bf16.msra.mxu1 %v8165_v24  ;;  %v3210_v36 = vadd.f32 %v10836_v17, %v3125_v58  ;;  %v3134_v6 = vmul.f32 %v10760_v55, %v13002_v50  ;;  %v3214_v3 = vadd.f32 %v10836_v17, %v3129_v54  ;;  %v8182_v13 = vld [vmem:[#allocation6 + $0xc] ss:$16 sps:$4 sm:$0xff]  }
 0x33f   :  { %4364 = vmatprep.subr.bf16.mxu0 %v8170_v37  ;;  %4477 = vmatprep.subr.bf16.mxu1 %v8173_v28  ;;  %v3212_v51 = vadd.f32 %v10842_v27, %v3127_v63  ;;  %v3138_v34 = vmul.f32 %v10760_v55, %v13003_v49  ;;  %v3136_v53 = vmul.f32 %v10766_v19, %v10664_v40  ;;  %v8177_v37 = vld [vmem:[#allocation6 + $0x228] ss:$16 sps:$4 sm:$0xff]   ;;  %v8185_v58 = vld [vmem:[#allocation6 + $0x20c] ss:$16 sps:$4 sm:$0xff]  }
 0x340   :  { %v10986_v60 = vpack.c.bf16 %v3270_v15, %v3266_v56  ;;  %v3216_v16 = vadd.f32 %v10842_v27, %v3131_v23  ;;  %v3219_v31 = vadd.f32 %v10839_v47, %v3134_v6  ;;  %v3140_v24 = vmul.f32 %v10766_v19, %v10673_v20  ;;  %v13004_v56 = vld [vmem:[#allocation55_spill] sm:$0xff]  ;;  %v8191_v50 = vld [vmem:[#allocation6 + $0x3ec] ss:$16 sps:$4 sm:$0xff]  }
 0x341   :  { %v10992_v2 = vpack.c.bf16 %v3272_v25, %v3268_v14  ;;  %v3223_v28 = vadd.f32 %v10839_v47, %v3138_v34  ;;  %v3221_v1 = vadd.f32 %v10845_v5, %v3136_v53  ;;  %v10996_v40 = vpack.c.bf16 %v3279_v0, %v3275_v35  ;;  %v8180_v35 = vld [vmem:[#allocation6 + $0x8] ss:$16 sps:$4 sm:$0xff]  }
 0x342   :  { %4365 = vmatpush1.bf16.msra.mxu0 %v8168_v62  ;;  %4478 = vmatpush1.bf16.msra.mxu1 %v8171_v29  ;;  %v10998_v12 = vpack.c.bf16 %v3281_v61, %v3277_v39  ;;  %v3225_v20 = vadd.f32 %v10845_v5, %v3140_v24  ;;  %v3274_v44 = vmax.f32 %v3210_v36, 0.0  ;;  %v3278_v54 = vmax.f32 %v3214_v3, 0.0  ;;  %v13005_v29 = vld [vmem:[#allocation57_spill] sm:$0xff]  ;;  %v8183_v0 = vld [vmem:[#allocation6 + $0x208] ss:$16 sps:$4 sm:$0xff]  }
 0x343   :  { %4366 = vmatprep.subr.bf16.mxu0 %v8176_v30  ;;  %4479 = vmatprep.subr.bf16.mxu1 %v8179_v26  ;;  %v3276_v62 = vmax.f32 %v3212_v51, 0.0  ;;  %v3133_v15 = vmul.f32 %v10757_v48, %v13004_v56  ;;  %v3280_v63 = vmax.f32 %v3216_v16, 0.0  ;;  %v3283_v23 = vmax.f32 %v3219_v31, 0.0  ;;  %v8188_v36 = vld [vmem:[#allocation6 + $0x1ec] ss:$16 sps:$4 sm:$0xff]   ;;  %v13006_v51 = vld [vmem:[#allocation59_spill] sm:$0xff] }
 0x344   :  { %4191 = vmatmul.mubr.bf16.gmra.mxu0 %v10986_v60  ;;  %4304 = vmatmul.mubr.bf16.gmra.mxu1 %v10992_v2  ;;  %v3137_v14 = vmul.f32 %v10757_v48, %v13005_v29  ;;  %v3135_v25 = vmul.f32 %v10763_v11, %v10655_v46  ;;  %v3287_v30 = vmax.f32 %v3223_v28, 0.0  ;;  %v3285_v26 = vmax.f32 %v3221_v1, 0.0  ;;  %v13007_v53 = vld [vmem:[#allocation98_spill] sm:$0xff]  ;;  %v13008_v29 = vld [vmem:[#allocation73_spill] sm:$0xff] }
 0x345   :  { %4200 = vmatprep.mubr.bf16.mxu0 %v10996_v40  ;;  %4313 = vmatprep.mubr.bf16.mxu1 %v10998_v12  ;;  %v3218_v39 = vadd.f32 %v10836_v17, %v3133_v15  ;;  %v3139_v61 = vmul.f32 %v10763_v11, %v10666_v8  ;;  %v3289_v6 = vmax.f32 %v3225_v20, 0.0  ;;  %v3142_v49 = vmul.f32 %v10760_v55, %v13006_v51  ;;  %v8186_v28 = vld [vmem:[#allocation6 + $0x1e8] ss:$16 sps:$4 sm:$0xff]  }
 0x346   :  { %4367 = vmatpush1.bf16.msra.mxu0 %v8174_v43  ;;  %4480 = vmatpush1.bf16.msra.mxu1 %v8177_v37  ;;  %v3222_v3 = vadd.f32 %v10836_v17, %v3137_v14  ;;  %v3220_v46 = vadd.f32 %v10842_v27, %v3135_v25  ;;  %v3146_v16 = vmul.f32 %v10760_v55, %v13007_v53  ;;  %v8189_v1 = vld [vmem:[#allocation6 + $0x3e8] ss:$16 sps:$4 sm:$0xff]  }
 0x347   :  { %4368 = vmatprep.subr.bf16.mxu0 %v8182_v13  ;;  %4481 = vmatprep.subr.bf16.mxu1 %v8185_v58  ;;  %v3224_v34 = vadd.f32 %v10842_v27, %v3139_v61  ;;  %v3144_v8 = vmul.f32 %v10766_v19, %v10685_v18  ;;  %v3148_v31 = vmul.f32 %v10766_v19, %v10698_v32  ;;  %v13011_v51 = vld [vmem:[#allocation70_spill] sm:$0xff] }
 0x348   :  { %v11025_v24 = vpack.c.bf16 %v3278_v54, %v3274_v44  ;;  %v11027_v43 = vpack.c.bf16 %v3280_v63, %v3276_v62  ;;  %v3227_v37 = vadd.f32 %v10839_v47, %v3142_v49  ;;  %v3231_v13 = vadd.f32 %v10839_v47, %v3146_v16  ;;  %v8194_v44 = vld [vmem:[#allocation6 + $0x1cc] ss:$16 sps:$4 sm:$0xff]  }
 0x349   :  { %v3229_v58 = vadd.f32 %v10845_v5, %v3144_v8  ;;  %v3233_v20 = vadd.f32 %v10845_v5, %v3148_v31  ;;  %v11033_v18 = vpack.c.bf16 %v3287_v30, %v3283_v23  ;;  %v11035_v32 = vpack.c.bf16 %v3289_v6, %v3285_v26  ;;  %v8197_v54 = vld [vmem:[#allocation6 + $0x3cc] ss:$16 sps:$4 sm:$0xff]   ;;  %v8192_v23 = vld [vmem:[#allocation6 + $0x1c8] ss:$16 sps:$4 sm:$0xff]  }
 0x34a   :  { %4369 = vmatpush1.bf16.msra.mxu0 %v8180_v35  ;;  %4482 = vmatpush1.bf16.msra.mxu1 %v8183_v0  ;;  %v3282_v62 = vmax.f32 %v3218_v39, 0.0  ;;  %v3286_v56 = vmax.f32 %v3222_v3, 0.0  ;;  %v3284_v15 = vmax.f32 %v3220_v46, 0.0  ;;  %v3288_v63 = vmax.f32 %v3224_v34, 0.0  ;;  %v13009_v35 = vld [vmem:[#allocation58_spill] sm:$0xff]  ;;  %v13012_v34 = vld [vmem:[#allocation71_spill] sm:$0xff] }
 0x34b   :  { %4370 = vmatprep.subr.bf16.mxu0 %v8188_v36  ;;  %4483 = vmatprep.subr.bf16.mxu1 %v8191_v50  ;;  %v3156_v14 = vmul.f32 %v10766_v19, %v13008_v29  ;;  %v3291_v25 = vmax.f32 %v3227_v37, 0.0  ;;  %v3141_v0 = vmul.f32 %v10757_v48, %v13009_v35  ;;  %v8195_v30 = vld [vmem:[#allocation6 + $0x3c8] ss:$16 sps:$4 sm:$0xff]   ;;  %v3295_v26 = vmax.f32 %v3231_v13, 0.0  ;;  %v8200_v3 = vld [vmem:[#allocation6 + $0x1ac] ss:$16 sps:$4 sm:$0xff]  }
 0x34c   :  { %4201 = vmatmul.mubr.bf16.gmra.mxu0 %v11025_v24  ;;  %4314 = vmatmul.mubr.bf16.gmra.mxu1 %v11027_v43  ;;  %v3293_v39 = vmax.f32 %v3229_v58, 0.0  ;;  %v3297_v61 = vmax.f32 %v3233_v20, 0.0  ;;  %v13010_v36 = vld [vmem:[#allocation60_spill] sm:$0xff]  ;;  %v11047_v6 = vpack.c.bf16 %v3286_v56, %v3282_v62  ;;  %v3143_v49 = vmul.f32 %v10763_v11, %v13011_v51  ;;  %v13014_v58 = vld [vmem:[#allocation66_spill] sm:$0xff] }
 0x34d   :  { %4210 = vmatprep.mubr.bf16.mxu0 %v11033_v18  ;;  %4323 = vmatprep.mubr.bf16.mxu1 %v11035_v32  ;;  %v3145_v50 = vmul.f32 %v10757_v48, %v13010_v36  ;;  %v8203_v46 = vld [vmem:[#allocation6 + $0x3ac] ss:$16 sps:$4 sm:$0xff]   ;;  %v3147_v53 = vmul.f32 %v10763_v11, %v13012_v34  ;;  %v11053_v16 = vpack.c.bf16 %v3288_v63, %v3284_v15  ;;  %v8198_v62 = vld [vmem:[#allocation6 + $0x1a8] ss:$16 sps:$4 sm:$0xff]   ;;  %v13017_v34 = vld [vmem:[#allocation67_spill] sm:$0xff] }
 0x34e   :  { %4371 = vmatpush2.bf16.msra.mxu0 %v8186_v28  ;;  %4484 = vmatpush2.bf16.msra.mxu1 %v8189_v1  ;;  %v3226_v8 = vadd.f32 %v10836_v17, %v3141_v0  ;;  %v13013_v37 = vld [vmem:[#allocation64_spill] sm:$0xff]  ;;  %v3228_v1 = vadd.f32 %v10842_v27, %v3143_v49  ;;  %v3154_v20 = vmul.f32 %v10760_v55, %v13014_v58  ;;  %v13016_v51 = vld [vmem:[#allocation62_spill] sm:$0xff] }
 0x34f   :  { %4372 = vmatprep.subr.bf16.mxu0 %v8194_v44  ;;  %4485 = vmatprep.subr.bf16.mxu1 %v8197_v54  ;;  %v3230_v31 = vadd.f32 %v10836_v17, %v3145_v50  ;;  %v3150_v28 = vmul.f32 %v10760_v55, %v13013_v37  ;;  %v3232_v13 = vadd.f32 %v10842_v27, %v3147_v53  ;;  %v13015_v44 = vld [vmem:[#allocation72_spill] sm:$0xff] }
 0x350   :  { %v3152_v54 = vmul.f32 %v10766_v19, %v13015_v44  ;;  %v8201_v56 = vld [vmem:[#allocation6 + $0x3a8] ss:$16 sps:$4 sm:$0xff]   ;;  %v11065_v15 = vpack.c.bf16 %v3295_v26, %v3291_v25  ;;  %v11067_v63 = vpack.c.bf16 %v3297_v61, %v3293_v39  ;;  %v8206_v35 = vld [vmem:[#allocation6 + $0x18c] ss:$16 sps:$4 sm:$0xff]   ;;  %v3239_v36 = vadd.f32 %v10839_v47, %v3154_v20 }
 0x351   :  { %v3235_v29 = vadd.f32 %v10839_v47, %v3150_v28  ;;  %v8209_v0 = vld [vmem:[#allocation6 + $0x38c] ss:$16 sps:$4 sm:$0xff]   ;;  %v3241_v19 = vadd.f32 %v10845_v5, %v3156_v14  ;;  %v3290_v25 = vmax.f32 %v3226_v8, 0.0  ;;  %v3292_v26 = vmax.f32 %v3228_v1, 0.0  ;;  %v8207_v47 = vld [vmem:[#allocation6 + $0x388] ss:$16 sps:$4 sm:$0xff]  }
 0x352   :  { %4373 = vmatpush2.bf16.msra.mxu0 %v8192_v23  ;;  %4486 = vmatpush2.bf16.msra.mxu1 %v8195_v30  ;;  %v3237_v55 = vadd.f32 %v10845_v5, %v3152_v54  ;;  %v8204_v23 = vld [vmem:[#allocation6 + $0x188] ss:$16 sps:$4 sm:$0xff]   ;;  %v3294_v30 = vmax.f32 %v3230_v31, 0.0  ;;  %v3296_v39 = vmax.f32 %v3232_v13, 0.0  ;;  %v8212_v61 = vld [vmem:[#allocation6 + $0x16c] ss:$16 sps:$4 sm:$0xff]   ;;  %v3149_v49 = vmul.f32 %v10757_v48, %v13016_v51 }
 0x353   :  { %4374 = vmatprep.subr.bf16.mxu0 %v8200_v3  ;;  %4487 = vmatprep.subr.bf16.mxu1 %v8203_v46  ;;  %v3299_v50 = vmax.f32 %v3235_v29, 0.0  ;;  %v8215_v5 = vld [vmem:[#allocation6 + $0x36c] ss:$16 sps:$4 sm:$0xff]   ;;  %v3303_v14 = vmax.f32 %v3239_v36, 0.0  ;;  %v3305_v46 = vmax.f32 %v3241_v19, 0.0  ;;  %v3153_v53 = vmul.f32 %v10757_v48, %v13017_v34  ;;  %v13018_v8 = vld [vmem:[#allocation75_spill] sm:$0xff] }
 0x354   :  { %4211 = vmatmul.mubr.bf16.gmra.mxu0 %v11047_v6  ;;  %4324 = vmatmul.mubr.bf16.gmra.mxu1 %v11053_v16  ;;  %v3301_v3 = vmax.f32 %v3237_v55, 0.0  ;;  %v3151_v31 = vmul.f32 %v10763_v11, %v13018_v8  ;;  %v13019_v37 = vld [vmem:[#allocation68_spill] sm:$0xff]  ;;  %v11085_v1 = vpack.c.bf16 %v3294_v30, %v3290_v25  ;;  %v11087_v13 = vpack.c.bf16 %v3296_v39, %v3292_v26 }
 0x355   :  { %4220 = vmatprep.mubr.bf16.mxu0 %v11065_v15  ;;  %4333 = vmatprep.mubr.bf16.mxu1 %v11067_v63  ;;  %v3155_v28 = vmul.f32 %v10763_v11, %v13019_v37  ;;  %v3234_v58 = vadd.f32 %v10836_v17, %v3149_v49  ;;  %v8210_v20 = vld [vmem:[#allocation6 + $0x168] ss:$16 sps:$4 sm:$0xff]   ;;  %v3238_v54 = vadd.f32 %v10836_v17, %v3153_v53  ;;  %v8218_v29 = vld [vmem:[#allocation6 + $0x14c] ss:$16 sps:$4 sm:$0xff]  }
 0x356   :  { %4375 = vmatpush2.bf16.msra.mxu0 %v8198_v62  ;;  %4488 = vmatpush2.bf16.msra.mxu1 %v8201_v56  ;;  %v8213_v44 = vld [vmem:[#allocation6 + $0x368] ss:$16 sps:$4 sm:$0xff]   ;;  %v3236_v48 = vadd.f32 %v10842_v27, %v3151_v31  ;;  %v11093_v56 = vpack.c.bf16 %v3303_v14, %v3299_v50  ;;  %v11095_v11 = vpack.c.bf16 %v3305_v46, %v3301_v3  ;;  %v8227_v25 = vld [vmem:[#allocation6 + $0x32c] ss:$16 sps:$4 sm:$0xff]  }
 0x357   :  { %4376 = vmatprep.subr.bf16.mxu0 %v8206_v35  ;;  %4489 = vmatprep.subr.bf16.mxu1 %v8209_v0  ;;  %v3240_v62 = vadd.f32 %v10842_v27, %v3155_v28  ;;  %v8221_v35 = vld [vmem:[#allocation6 + $0x34c] ss:$16 sps:$4 sm:$0xff]   ;;  %v8216_v17 = vld [vmem:[#allocation6 + $0x148] ss:$16 sps:$4 sm:$0xff]   ;;  %v3298_v0 = vmax.f32 %v3234_v58, 0.0  ;;  %v3302_v36 = vmax.f32 %v3238_v54, 0.0 }
 0x358   :  { %v8219_v27 = vld [vmem:[#allocation6 + $0x348] ss:$16 sps:$4 sm:$0xff]   ;;  %v3300_v55 = vmax.f32 %v3236_v48, 0.0  ;;  %v8233_v50 = vld [vmem:[#allocation6 + $0x30c] ss:$16 sps:$4 sm:$0xff]  }
 0x359   :  { %v3304_v19 = vmax.f32 %v3240_v62, 0.0  ;;  %v3334_v30 = vpack.c.bf16 %v3302_v36, %v3298_v0  ;;  %v8222_v39 = vld [vmem:[#allocation6 + $0x128] ss:$16 sps:$4 sm:$0xff]  }
 0x35a   :  { %4377 = vmatpush2.bf16.msra.mxu0 %v8204_v23  ;;  %4490 = vmatpush2.bf16.msra.mxu1 %v8207_v47  ;;  %v8224_v23 = vld [vmem:[#allocation6 + $0x12c] ss:$16 sps:$4 sm:$0xff]   ;;  %v8225_v47 = vld [vmem:[#allocation6 + $0x328] ss:$16 sps:$4 sm:$0xff]  }
 0x35b   :  { %4378 = vmatprep.subr.bf16.mxu0 %v8212_v61  ;;  %4491 = vmatprep.subr.bf16.mxu1 %v8215_v5  ;;  %v3336_v26 = vpack.c.bf16 %v3304_v19, %v3300_v55  ;;  %v8230_v61 = vld [vmem:[#allocation6 + $0x10c] ss:$16 sps:$4 sm:$0xff]   ;;  %v8228_v5 = vld [vmem:[#allocation6 + $0x108] ss:$16 sps:$4 sm:$0xff]  }
 0x35c   :  { %4221 = vmatmul.mubr.bf16.gmra.mxu0 %v11085_v1  ;;  %4334 = vmatmul.mubr.bf16.gmra.mxu1 %v11087_v13  ;;  %v8231_v14 = vld [vmem:[#allocation6 + $0x308] ss:$16 sps:$4 sm:$0xff]  }
 0x35d   :  { %4230 = vmatprep.mubr.bf16.mxu0 %v11093_v56  ;;  %4343 = vmatprep.mubr.bf16.mxu1 %v11095_v11 }
 0x35e   :  { %4379 = vmatpush2.bf16.msra.mxu0 %v8210_v20  ;;  %4492 = vmatpush2.bf16.msra.mxu1 %v8213_v44 }
 0x35f   :  { %4380 = vmatprep.subr.bf16.mxu0 %v8218_v29  ;;  %4493 = vmatprep.subr.bf16.mxu1 %v8221_v35 }
 0x362   :  { %4381 = vmatpush2.bf16.msra.mxu0 %v8216_v17  ;;  %4494 = vmatpush2.bf16.msra.mxu1 %v8219_v27 }
 0x363   :  { %4382 = vmatprep.subr.bf16.mxu0 %v8224_v23  ;;  %4495 = vmatprep.subr.bf16.mxu1 %v8227_v25 }
 0x364   :  { %4231 = vmatmul.mubr.bf16.gmra.mxu0 %v3334_v30  ;;  %4344 = vmatmul.mubr.bf16.gmra.mxu1 %v3336_v26 }
 0x365   :  { %4386 = vmatprep.mubr.bf16.mxu0 %v10871_v45  ;;  %4499 = vmatprep.mubr.bf16.mxu1 %v10873_v59  ;;  %v11131_v45 = vld [vmem:[#allocation7] sm:$0xf] }
 0x366   :  { %4383 = vmatpush2.bf16.msra.mxu0 %v8222_v39  ;;  %4496 = vmatpush2.bf16.msra.mxu1 %v8225_v47 }
 0x367   :  { %4384 = vmatprep.subr.bf16.mxu0 %v8230_v61  ;;  %4497 = vmatprep.subr.bf16.mxu1 %v8233_v50 }
 0x36a   :  { %4385 = vmatpush2.bf16.msra.mxu0 %v8228_v5  ;;  %4498 = vmatpush2.bf16.msra.mxu1 %v8231_v14 }
 0x36d   :  { %4387 = vmatmul.mubr.bf16.vlgmr.msra.gmra.mxu0 %v10877_v57  ;;  %4500 = vmatmul.mubr.bf16.vlgmr.msra.gmra.mxu1 %v10879_v22  ;;  %v13020_v57 = vld [vmem:[#allocation38_spill] sm:$0xff]  ;;  %v13021_v22 = vld [vmem:[#allocation39_spill] sm:$0xff] }
 0x36e   :  { %4396 = vmatprep.mubr.bf16.mxu0 %v10891_v33  ;;  %4509 = vmatprep.mubr.bf16.mxu1 %v10894_v38  ;;  %v11135_v59 = vrot.slane %v11131_v45, %v13020_v57  ;;  %v11139_v33 = vrot.slane %v11131_v45, %v13021_v22 }
 0x375   :  { %4397 = vmatmul.mubr.bf16.gmra.mxu0 %v10906_v21  ;;  %4510 = vmatmul.mubr.bf16.gmra.mxu1 %v10916_v9 }
 0x376   :  { %4406 = vmatprep.mubr.bf16.mxu0 %v10918_v52  ;;  %4519 = vmatprep.mubr.bf16.mxu1 %v10922_v42 }
 0x37d   :  { %4407 = vmatmul.mubr.bf16.gmra.mxu0 %v10945_v4  ;;  %4520 = vmatmul.mubr.bf16.gmra.mxu1 %v10947_v41 }
 0x37e   :  { %4416 = vmatprep.mubr.bf16.mxu0 %v10957_v10  ;;  %4529 = vmatprep.mubr.bf16.mxu1 %v10961_v7 }
 0x385   :  { %4417 = vmatmul.mubr.bf16.gmra.mxu0 %v10986_v60  ;;  %4530 = vmatmul.mubr.bf16.gmra.mxu1 %v10992_v2 }
 0x386   :  { %4426 = vmatprep.mubr.bf16.mxu0 %v10996_v40  ;;  %4539 = vmatprep.mubr.bf16.mxu1 %v10998_v12 }
 0x38d   :  { %4427 = vmatmul.mubr.bf16.gmra.mxu0 %v11025_v24  ;;  %4540 = vmatmul.mubr.bf16.gmra.mxu1 %v11027_v43 }
 0x38e   :  { %4436 = vmatprep.mubr.bf16.mxu0 %v11033_v18  ;;  %4549 = vmatprep.mubr.bf16.mxu1 %v11035_v32 }
 0x395   :  { %4437 = vmatmul.mubr.bf16.gmra.mxu0 %v11047_v6  ;;  %4550 = vmatmul.mubr.bf16.gmra.mxu1 %v11053_v16 }
 0x396   :  { %4446 = vmatprep.mubr.bf16.mxu0 %v11065_v15  ;;  %4559 = vmatprep.mubr.bf16.mxu1 %v11067_v63 }
 0x39d   :  { %4447 = vmatmul.mubr.bf16.gmra.mxu0 %v11085_v1  ;;  %4560 = vmatmul.mubr.bf16.gmra.mxu1 %v11087_v13 }
 0x39e   :  { %4456 = vmatprep.mubr.bf16.mxu0 %v11093_v56  ;;  %4569 = vmatprep.mubr.bf16.mxu1 %v11095_v11 }
 0x3a5   :  { %4457 = vmatmul.mubr.bf16.gmra.mxu0 %v3334_v30  ;;  %4570 = vmatmul.mubr.bf16.gmra.mxu1 %v3336_v26 }
 0x3ec   :  { %v4162_v38 = vpop.f32.mrf.mxu0  ;;  %v4275_v21 = vpop.f32.mrf.mxu1 }
 0x3ed   :  { %v4163_v9 = vadd.f32 %v4162_v38, %v11135_v59 }
 0x3ee   :  { %v4164_v52 = vpop.f32.mrf.mxu0  ;;  %v4277_v42 = vpop.f32.mrf.mxu1 }
 0x3ef   :  { %v11142_v4 = vadd.f32 %v4275_v21, %v4163_v9  ;;  %v4165_v41 = vadd.f32 %v4164_v52, %v11139_v33 }
 0x3f0   :  { %v4166_v10 = vpop.f32.mrf.mxu0  ;;  %v4279_v7 = vpop.f32.mrf.mxu1 }
 0x3f1   :  { %v11145_v60 = vadd.f32 %v4277_v42, %v4165_v41  ;;  %v4167_v2 = vadd.f32 %v4166_v10, %v11135_v59 }
 0x3f2   :  { %v4168_v40 = vpop.f32.mrf.mxu0  ;;  %v4281_v12 = vpop.f32.mrf.mxu1 }
 0x3f3   :  { %v11148_v24 = vadd.f32 %v4279_v7, %v4167_v2  ;;  %v4169_v10 = vadd.f32 %v4168_v40, %v11139_v33 }
 0x3f4   :  { %v4172_v43 = vpop.f32.mrf.mxu0  ;;  %v4285_v18 = vpop.f32.mrf.mxu1 }
 0x3f5   :  { %v4173_v32 = vadd.f32 %v4172_v43, %v11135_v59 }
 0x3f6   :  { %v4174_v6 = vpop.f32.mrf.mxu0  ;;  %v4287_v16 = vpop.f32.mrf.mxu1 }
 0x3f7   :  { %v11151_v15 = vadd.f32 %v4285_v18, %v4173_v32  ;;  %v4175_v63 = vadd.f32 %v4174_v6, %v11139_v33 }
 0x3f8   :  { %v4176_v3 = vpop.f32.mrf.mxu0  ;;  %v4289_v46 = vpop.f32.mrf.mxu1 }
 0x3f9   :  { %v4177_v51 = vadd.f32 %v4176_v3, %v11135_v59  ;;  %v11155_v49 = vadd.f32 %v4287_v16, %v4175_v63  ;;  %v11192_v3 = vadd.f32 %v4281_v12, %v4169_v10 }
 0x3fa   :  { %v4178_v34 = vpop.f32.mrf.mxu0  ;;  %v4291_v53 = vpop.f32.mrf.mxu1 }
 0x3fb   :  { %v11157_v8 = vadd.f32 %v4289_v46, %v4177_v51  ;;  %v4179_v46 = vadd.f32 %v4178_v34, %v11139_v33  ;;  %v4669_v12 = vmul.f32 %v11192_v3, %v11192_v3 }
 0x3fc   :  { %v4182_v31 = vpop.f32.mrf.mxu0  ;;  %v4295_v37 = vpop.f32.mrf.mxu1 }
 0x3fd   :  { %v4183_v28 = vadd.f32 %v4182_v31, %v11135_v59 }
 0x3fe   :  { %v4184_v1 = vpop.f32.mrf.mxu0  ;;  %v4297_v13 = vpop.f32.mrf.mxu1 }
 0x3ff   :  { %v11160_v58 = vadd.f32 %v4295_v37, %v4183_v28  ;;  %v4185_v20 = vadd.f32 %v4184_v1, %v11139_v33  ;;  %v4668_v1 = vmul.f32 %v11148_v24, %v11148_v24 }
 0x400   :  { %v4186_v44 = vpop.f32.mrf.mxu0  ;;  %v4299_v54 = vpop.f32.mrf.mxu1 }
 0x401   :  { %13022 = vst [vmem:[#allocation76_spill] sm:$0xff] %v11160_v58  ;;  %v4187_v48 = vadd.f32 %v4186_v44, %v11135_v59  ;;  %v11164_v62 = vadd.f32 %v4297_v13, %v4185_v20 }
 0x402   :  { %v4188_v56 = vpop.f32.mrf.mxu0  ;;  %v11166_v11 = vpop.f32.mrf.mxu1 }
 0x403   :  { %13023 = vst [vmem:[#allocation80_spill] sm:$0xff] %v11164_v62  ;;  %v11168_v29 = vadd.f32 %v4299_v54, %v4187_v48  ;;  %v11205_v54 = vadd.f32 %v4291_v53, %v4179_v46  ;;  %v4664_v48 = vmul.f32 %v11142_v4, %v11142_v4  ;;  %v4673_v53 = vmul.f32 %v11155_v49, %v11155_v49 }
 0x404   :  { %v4192_v35 = vpop.f32.mrf.mxu0  ;;  %v4305_v17 = vpop.f32.mrf.mxu1 }
 0x405   :  { %13024 = vst [vmem:[#allocation74_spill] sm:$0xff] %v11168_v29  ;;  %v4193_v27 = vadd.f32 %v4192_v35, %v11135_v59  ;;  %v4672_v35 = vmul.f32 %v11151_v15, %v11151_v15 }
 0x406   :  { %v4194_v0 = vpop.f32.mrf.mxu0  ;;  %v4307_v36 = vpop.f32.mrf.mxu1 }
 0x407   :  { %v11171_v55 = vadd.f32 %v4305_v17, %v4193_v27  ;;  %v4195_v19 = vadd.f32 %v4194_v0, %v11139_v33  ;;  %v4189_v17 = vadd.f32 %v4188_v56, %v11139_v33  ;;  %v4601_v56 = vadd.f32 %v11192_v3, %v11145_v60 }
 0x408   :  { %v4196_v23 = vpop.f32.mrf.mxu0  ;;  %v4309_v25 = vpop.f32.mrf.mxu1 }
 0x409   :  { %13025 = vst [vmem:[#allocation77_spill] sm:$0xff] %v11171_v55  ;;  %v4197_v30 = vadd.f32 %v4196_v23, %v11135_v59  ;;  %v11175_v26 = vadd.f32 %v4307_v36, %v4195_v19  ;;  %v4665_v19 = vmul.f32 %v11145_v60, %v11145_v60 }
 0x40a   :  { %v4198_v39 = vpop.f32.mrf.mxu0  ;;  %v11177_v47 = vpop.f32.mrf.mxu1 }
 0x40b   :  { %13026 = vst [vmem:[#allocation85_spill] sm:$0xff] %v11175_v26  ;;  %v11179_v61 = vadd.f32 %v4309_v25, %v4197_v30  ;;  %v4580_v30 = vadd.f32 %v11148_v24, %v11142_v4 }
 0x40c   :  { %v4202_v50 = vpop.f32.mrf.mxu0  ;;  %v4315_v5 = vpop.f32.mrf.mxu1 }
 0x40d   :  { %13027 = vst [vmem:[#allocation78_spill] sm:$0xff] %v11179_v61  ;;  %v4203_v14 = vadd.f32 %v4202_v50, %v11135_v59  ;;  %v4728_v50 = vadd.f32 %v4668_v1, %v4664_v48  ;;  %v4581_v10 = vadd.f32 %v4580_v30, %v11151_v15  ;;  %v4688_v30 = vmul.f32 %v11171_v55, %v11171_v55 }
 0x40e   :  { %v4204_v38 = vpop.f32.mrf.mxu0  ;;  %v4317_v21 = vpop.f32.mrf.mxu1 }
 0x40f   :  { %v11182_v9 = vadd.f32 %v4315_v5, %v4203_v14  ;;  %v4205_v52 = vadd.f32 %v4204_v38, %v11139_v33  ;;  %v4676_v5 = vmul.f32 %v11157_v8, %v11157_v8 }
 0x410   :  { %v4206_v42 = vpop.f32.mrf.mxu0  ;;  %v4319_v41 = vpop.f32.mrf.mxu1 }
 0x411   :  { %13028 = vst [vmem:[#allocation79_spill] sm:$0xff] %v11182_v9  ;;  %v4207_v7 = vadd.f32 %v4206_v42, %v11135_v59  ;;  %v11187_v2 = vadd.f32 %v4317_v21, %v4205_v52  ;;  %v4749_v21 = vadd.f32 %v4669_v12, %v4665_v19  ;;  %v4677_v52 = vmul.f32 %v11205_v54, %v11205_v54 }
 0x412   :  { %v4208_v43 = vpop.f32.mrf.mxu0  ;;  %v4321_v18 = vpop.f32.mrf.mxu1 }
 0x413   :  { %13029 = vst [vmem:[#allocation81_spill] sm:$0xff] %v11187_v2  ;;  %v11189_v32 = vadd.f32 %v4319_v41, %v4207_v7  ;;  %v4209_v6 = vadd.f32 %v4208_v43, %v11139_v33  ;;  %v4729_v7 = vadd.f32 %v4728_v50, %v4672_v35  ;;  %v11235_v43 = vadd.f32 %v11166_v11, %v4189_v17 }
 0x414   :  { %v4212_v16 = vpop.f32.mrf.mxu0  ;;  %v4325_v63 = vpop.f32.mrf.mxu1  ;;  %v4750_v46 = vadd.f32 %v4749_v21, %v4673_v53 }
 0x415   :  { %13030 = vst [vmem:[#allocation82_spill] sm:$0xff] %v11189_v32  ;;  %v11195_v51 = vadd.f32 %v4321_v18, %v4209_v6  ;;  %v4213_v40 = vadd.f32 %v4212_v16, %v11135_v59  ;;  %13036 = vst [vmem:[#allocation94_spill] sm:$0xff] %v11235_v43  ;;  %v4199_v18 = vadd.f32 %v4198_v39, %v11139_v33 }
 0x416   :  { %v4214_v31 = vpop.f32.mrf.mxu0  ;;  %v4327_v37 = vpop.f32.mrf.mxu1  ;;  %v4730_v1 = vadd.f32 %v4729_v7, %v4676_v5  ;;  %v4751_v12 = vadd.f32 %v4750_v46, %v4677_v52  ;;  %v4685_v17 = vmul.f32 %v11235_v43, %v11235_v43 }
 0x417   :  { %13031 = vst [vmem:[#allocation84_spill] sm:$0xff] %v11195_v51  ;;  %v11198_v28 = vadd.f32 %v4325_v63, %v4213_v40  ;;  %v4215_v13 = vadd.f32 %v4214_v31, %v11139_v33  ;;  %v4602_v63 = vadd.f32 %v4601_v56, %v11155_v49  ;;  %v4680_v40 = vmul.f32 %v11160_v58, %v11160_v58 }
 0x418   :  { %v4216_v20 = vpop.f32.mrf.mxu0  ;;  %v4329_v44 = vpop.f32.mrf.mxu1 }
 0x419   :  { %13032 = vst [vmem:[#allocation86_spill] sm:$0xff] %v11198_v28  ;;  %v4217_v34 = vadd.f32 %v4216_v20, %v11135_v59  ;;  %v11213_v27 = vadd.f32 %v4327_v37, %v4215_v13  ;;  %v4582_v37 = vadd.f32 %v4581_v10, %v11157_v8  ;;  %v4681_v13 = vmul.f32 %v11164_v62, %v11164_v62 }
 0x41a   :  { %v4218_v0 = vpop.f32.mrf.mxu0  ;;  %v4331_v36 = vpop.f32.mrf.mxu1  ;;  %v4692_v10 = vmul.f32 %v11179_v61, %v11179_v61 }
 0x41b   :  { %13033 = vst [vmem:[#allocation89_spill] sm:$0xff] %v11213_v27  ;;  %v11219_v23 = vadd.f32 %v4329_v44, %v4217_v34  ;;  %v4219_v25 = vadd.f32 %v4218_v0, %v11139_v33  ;;  %v4603_v44 = vadd.f32 %v4602_v63, %v11205_v54  ;;  %v4684_v34 = vmul.f32 %v11168_v29, %v11168_v29 }
 0x41c   :  { %v4222_v14 = vpop.f32.mrf.mxu0  ;;  %v4335_v38 = vpop.f32.mrf.mxu1  ;;  %v4583_v35 = vadd.f32 %v4582_v37, %v11160_v58  ;;  %v11255_v0 = vadd.f32 %v11177_v47, %v4199_v18  ;;  %v4689_v47 = vmul.f32 %v11175_v26, %v11175_v26 }
 0x41d   :  { %13034 = vst [vmem:[#allocation91_spill] sm:$0xff] %v11219_v23  ;;  %v11230_v42 = vadd.f32 %v4331_v36, %v4219_v25  ;;  %v4223_v41 = vadd.f32 %v4222_v14, %v11135_v59  ;;  %v4731_v25 = vadd.f32 %v4730_v1, %v4680_v40  ;;  %v4604_v5 = vadd.f32 %v4603_v44, %v11164_v62 }
 0x41e   :  { %v4224_v6 = vpop.f32.mrf.mxu0  ;;  %v4337_v16 = vpop.f32.mrf.mxu1  ;;  %13038 = vst [vmem:[#allocation97_spill] sm:$0xff] %v11255_v0  ;;  %v4752_v14 = vadd.f32 %v4751_v12, %v4681_v13  ;;  %v4693_v63 = vmul.f32 %v11255_v0, %v11255_v0 }
 0x41f   :  { %13035 = vst [vmem:[#allocation92_spill] sm:$0xff] %v11230_v42  ;;  %v11241_v31 = vadd.f32 %v4335_v38, %v4223_v41  ;;  %v4225_v11 = vadd.f32 %v4224_v6, %v11139_v33  ;;  %v4584_v38 = vadd.f32 %v4583_v35, %v11168_v29  ;;  %v4732_v41 = vadd.f32 %v4731_v25, %v4684_v34 }
 0x420   :  { %v4226_v20 = vpop.f32.mrf.mxu0  ;;  %v4339_v39 = vpop.f32.mrf.mxu1  ;;  %v4605_v6 = vadd.f32 %v4604_v5, %v11235_v43 }
 0x421   :  { %13037 = vst [vmem:[#allocation96_spill] sm:$0xff] %v11241_v31  ;;  %v4227_v48 = vadd.f32 %v4226_v20, %v11135_v59  ;;  %v11257_v36 = vadd.f32 %v4337_v16, %v4225_v11  ;;  %v4753_v16 = vadd.f32 %v4752_v14, %v4685_v17  ;;  %v4585_v37 = vadd.f32 %v4584_v38, %v11171_v55 }
 0x422   :  { %v4228_v19 = vpop.f32.mrf.mxu0  ;;  %v4341_v53 = vpop.f32.mrf.mxu1  ;;  %v4733_v1 = vadd.f32 %v4732_v41, %v4688_v30  ;;  %v4606_v11 = vadd.f32 %v4605_v6, %v11175_v26  ;;  %v4697_v17 = vmul.f32 %v11187_v2, %v11187_v2  ;;  %v4700_v30 = vmul.f32 %v11189_v32, %v11189_v32 }
 0x423   :  { %13039 = vst [vmem:[#allocation65_spill] sm:$0xff] %v11257_v36  ;;  %v11261_v50 = vadd.f32 %v4339_v39, %v4227_v48  ;;  %v4229_v56 = vadd.f32 %v4228_v19, %v11139_v33  ;;  %v4754_v20 = vadd.f32 %v4753_v16, %v4689_v47  ;;  %v4696_v39 = vmul.f32 %v11182_v9, %v11182_v9 }
 0x424   :  { %v4232_v21 = vpop.f32.mrf.mxu0  ;;  %v4345_v52 = vpop.f32.mrf.mxu1  ;;  %v4586_v48 = vadd.f32 %v4585_v37, %v11179_v61  ;;  %v4734_v35 = vadd.f32 %v4733_v1, %v4692_v10  ;;  %v4701_v47 = vmul.f32 %v11195_v51, %v11195_v51  ;;  %v4704_v10 = vmul.f32 %v11198_v28, %v11198_v28  ;;  %v8239_v37 = vld [vmem:[%s12738_s9 + $0x174] ss:$8 sps:$4 sm:$0xff]  }
 0x425   :  { %13040 = vst [vmem:[#allocation99_spill] sm:$0xff] %v11261_v50  ;;  %v11270_v7 = vadd.f32 %v4341_v53, %v4229_v56  ;;  %v4233_v18 = vadd.f32 %v4232_v21, %v11135_v59  ;;  %v4607_v53 = vadd.f32 %v4606_v11, %v11255_v0  ;;  %v4755_v25 = vadd.f32 %v4754_v20, %v4693_v63 }
 0x426   :  { %v4234_v46 = vpop.f32.mrf.mxu0  ;;  %v4347_v40 = vpop.f32.mrf.mxu1  ;;  %v4587_v38 = vadd.f32 %v4586_v48, %v11182_v9  ;;  %v4705_v16 = vmul.f32 %v11213_v27, %v11213_v27  ;;  %v4708_v20 = vmul.f32 %v11219_v23, %v11219_v23  ;;  %v4709_v48 = vmul.f32 %v11230_v42, %v11230_v42  ;;  %5681 = vmatprep.subr.bf16.mxu1 %v8239_v37 }
 0x427   :  { %13041 = vst [vmem:[#allocation37_spill] sm:$0xff] %v11270_v7  ;;  %v11277_v13 = vadd.f32 %v4345_v52, %v4233_v18  ;;  %v4235_v44 = vadd.f32 %v4234_v46, %v11139_v33  ;;  %v4608_v41 = vadd.f32 %v4607_v53, %v11187_v2  ;;  %v4756_v18 = vadd.f32 %v4755_v25, %v4697_v17 }
 0x428   :  { %v4236_v12 = vpop.f32.mrf.mxu0  ;;  %v4349_v34 = vpop.f32.mrf.mxu1  ;;  %v4588_v6 = vadd.f32 %v4587_v38, %v11189_v32  ;;  %v4712_v25 = vmul.f32 %v11241_v31, %v11241_v31 }
 0x429   :  { %13042 = vst [vmem:[#allocation41_spill] sm:$0xff] %v11277_v13  ;;  %v4237_v19 = vadd.f32 %v4236_v12, %v11135_v59  ;;  %v11290_v56 = vadd.f32 %v4347_v40, %v4235_v44  ;;  %v4735_v59 = vadd.f32 %v4734_v35, %v4696_v39  ;;  %v4609_v11 = vadd.f32 %v4608_v41, %v11195_v51  ;;  %v8234_v39 = vld [vmem:[%s12738_s9 + $0x70] ss:$8 sps:$4 sm:$0xff]  }
 0x42a   :  { %v4238_v5 = vpop.f32.mrf.mxu0  ;;  %v4351_v14 = vpop.f32.mrf.mxu1  ;;  %v8237_v44 = vld [vmem:[%s12738_s9 + $0x170] ss:$8 sps:$4 sm:$0xff]   ;;  %v4757_v12 = vadd.f32 %v4756_v18, %v4701_v47  ;;  %v8251_v18 = vld [vmem:[%s12738_s9 + $0x154] ss:$8 sps:$4 sm:$0xff]  }
 0x42b   :  { %13043 = vst [vmem:[#allocation83_spill] sm:$0xff] %v11290_v56  ;;  %v11295_v21 = vadd.f32 %v4349_v34, %v4237_v19  ;;  %v4239_v52 = vadd.f32 %v4238_v5, %v11139_v33  ;;  %v8236_v33 = vld [vmem:[%s12738_s9 + $0x74] ss:$8 sps:$4 sm:$0xff]   ;;  %v4736_v1 = vadd.f32 %v4735_v59, %v4700_v30  ;;  %v4589_v34 = vadd.f32 %v4588_v6, %v11198_v28  ;;  %v8242_v19 = vld [vmem:[%s12738_s9 + $0x64] ss:$8 sps:$4 sm:$0xff]  }
 0x42c   :  { %5568 = vmatprep.subr.bf16.mxu0 %v8236_v33  ;;  %5682 = vmatpush1.bf16.msra.mxu1 %v8237_v44  ;;  %v8240_v30 = vld [vmem:[%s12738_s9 + $0x60] ss:$8 sps:$4 sm:$0xff]   ;;  %v4610_v38 = vadd.f32 %v4609_v11, %v11213_v27  ;;  %v4758_v47 = vadd.f32 %v4757_v12, %v4705_v16  ;;  %v4713_v33 = vmul.f32 %v11257_v36, %v11257_v36 }
 0x42d   :  { %13044 = vst [vmem:[#allocation40_spill] sm:$0xff] %v11295_v21  ;;  %v11304_v63 = vadd.f32 %v4351_v14, %v4239_v52  ;;  %v11306_v46 = vpop.f32.mrf.mxu0  ;;  %v11308_v40 = vpop.f32.mrf.mxu1  ;;  %v4737_v53 = vadd.f32 %v4736_v1, %v4704_v10  ;;  %5569 = vmatpush1.bf16.msra.mxu0 %v8234_v39  ;;  %v8243_v5 = vld [vmem:[%s12738_s9 + $0x160] ss:$8 sps:$4 sm:$0xff]   ;;  %v8245_v14 = vld [vmem:[%s12738_s9 + $0x164] ss:$8 sps:$4 sm:$0xff]   ;;  %v4590_v52 = vadd.f32 %v4589_v34, %v11219_v23 }
 0x42e   :  { %5570 = vmatprep.subr.bf16.mxu0 %v8242_v19  ;;  %v8248_v10 = vld [vmem:[%s12738_s9 + $0x54] ss:$8 sps:$4 sm:$0xff]   ;;  %v4716_v16 = vmul.f32 %v11261_v50, %v11261_v50  ;;  %5683 = vmatprep.subr.bf16.mxu1 %v8245_v14  ;;  %v4611_v37 = vadd.f32 %v4610_v38, %v11230_v42  ;;  %v4759_v1 = vadd.f32 %v4758_v47, %v4709_v48  ;;  %v8246_v19 = vld [vmem:[%s12738_s9 + $0x50] ss:$8 sps:$4 sm:$0xff]  }
 0x42f   :  { %13045 = vst [vmem:[#allocation42_spill] sm:$0xff] %v11304_v63  ;;  %v11328_v35 = vpop.f32.mrf.mxu0  ;;  %v11330_v17 = vpop.f32.mrf.mxu1  ;;  %v4738_v6 = vadd.f32 %v4737_v53, %v4708_v20  ;;  %v4591_v11 = vadd.f32 %v4590_v52, %v11241_v31  ;;  %v4717_v20 = vmul.f32 %v11270_v7, %v11270_v7  ;;  %v4720_v34 = vmul.f32 %v11277_v13, %v11277_v13  ;;  %v8257_v52 = vld [vmem:[%s12738_s9 + $0x144] ss:$8 sps:$4 sm:$0xff]  }
 0x430   :  { %5684 = vmatpush1.bf16.msra.mxu1 %v8243_v5  ;;  %v4612_v48 = vadd.f32 %v4611_v37, %v11257_v36  ;;  %v4760_v5 = vadd.f32 %v4759_v1, %v4713_v33  ;;  %v8252_v1 = vld [vmem:[%s12738_s9 + $0x40] ss:$8 sps:$4 sm:$0xff]  }
 0x431   :  { %v11348_v59 = vpop.f32.mrf.mxu0  ;;  %v11350_v41 = vpop.f32.mrf.mxu1  ;;  %v4739_v12 = vadd.f32 %v4738_v6, %v4712_v25  ;;  %5571 = vmatpush1.bf16.msra.mxu0 %v8240_v30  ;;  %v4592_v53 = vadd.f32 %v4591_v11, %v11261_v50  ;;  %v8249_v25 = vld [vmem:[%s12738_s9 + $0x150] ss:$8 sps:$4 sm:$0xff]   ;;  %5685 = vmatprep.subr.bf16.mxu1 %v8251_v18  ;;  %v8254_v30 = vld [vmem:[%s12738_s9 + $0x44] ss:$8 sps:$4 sm:$0xff]   ;;  %v4724_v18 = vmul.f32 %v11295_v21, %v11295_v21 }
 0x432   :  { %5572 = vmatprep.subr.bf16.mxu0 %v8248_v10  ;;  %v4613_v6 = vadd.f32 %v4612_v48, %v11270_v7  ;;  %v4721_v10 = vmul.f32 %v11290_v56, %v11290_v56  ;;  %v4761_v33 = vadd.f32 %v4760_v5, %v4717_v20  ;;  %v8255_v20 = vld [vmem:[%s12738_s9 + $0x140] ss:$8 sps:$4 sm:$0xff]  }
 0x433   :  { %v11364_v39 = vpop.f32.mrf.mxu0  ;;  %v11366_v44 = vpop.f32.mrf.mxu1  ;;  %v4740_v47 = vadd.f32 %v4739_v12, %v4716_v16  ;;  %v4593_v37 = vadd.f32 %v4592_v53, %v11277_v13  ;;  %v4725_v53 = vmul.f32 %v11304_v63, %v11304_v63 }
 0x434   :  { %v4614_v12 = vadd.f32 %v4613_v6, %v11290_v56  ;;  %5686 = vmatpush1.bf16.msra.mxu1 %v8249_v25  ;;  %v4762_v5 = vadd.f32 %v4761_v33, %v4721_v10  ;;  %v13047_v56 = vld [vmem:[#allocation63_spill] sm:$0xff] }
 0x435   :  { %v11377_v14 = vpop.f32.mrf.mxu0  ;;  %v11379_v38 = vpop.f32.mrf.mxu1  ;;  %v4741_v16 = vadd.f32 %v4740_v47, %v4720_v34  ;;  %5573 = vmatpush1.bf16.msra.mxu0 %v8246_v19  ;;  %v4594_v48 = vadd.f32 %v4593_v37, %v11295_v21  ;;  %v8260_v34 = vld [vmem:[%s12738_s9 + $0x34] ss:$8 sps:$4 sm:$0xff]   ;;  %5687 = vmatprep.subr.bf16.mxu1 %v8257_v52  ;;  %v13046_v37 = vld [vmem:[#allocation61_spill] sm:$0xff]  ;;  %v11429_v7 = vrot.slane %v11131_v45, %v13047_v56  ;;  %v8258_v52 = vld [vmem:[%s12738_s9 + $0x30] ss:$8 sps:$4 sm:$0xff]  }
 0x436   :  { %5574 = vmatprep.subr.bf16.mxu0 %v8254_v30  ;;  %v8263_v19 = vld [vmem:[%s12738_s9 + $0x134] ss:$8 sps:$4 sm:$0xff]   ;;  %v4615_v6 = vadd.f32 %v4614_v12, %v11304_v63  ;;  %v11423_v25 = vrot.slane %v11131_v45, %v13046_v37  ;;  %v8261_v12 = vld [vmem:[%s12738_s9 + $0x130] ss:$8 sps:$4 sm:$0xff]   ;;  %v8266_v45 = vld [vmem:[%s12738_s9 + $0x24] ss:$8 sps:$4 sm:$0xff]  }
 0x437   :  { %v11396_v11 = vpop.f32.mrf.mxu0  ;;  %v11398_v50 = vpop.f32.mrf.mxu1  ;;  %v4742_v47 = vadd.f32 %v4741_v16, %v4724_v18  ;;  %v4595_v10 = vrot.slane %v4594_v48, 4  ;;  %v4763_v18 = vadd.f32 %v4762_v5, %v4725_v53  ;;  %v4391_v36 = vadd.f32 %v11328_v35, %v11429_v7  ;;  %v8272_v35 = vld [vmem:[%s12738_s9 + $0x14] ss:$8 sps:$4 sm:$0xff]  }
 0x438   :  { %5688 = vmatpush1.bf16.msra.mxu1 %v8255_v20  ;;  %v4616_v5 = vrot.slane %v4615_v6, 4  ;;  %v4389_v63 = vadd.f32 %v11306_v46, %v11423_v25  ;;  %v4393_v23 = vadd.f32 %v11348_v59, %v11423_v25  ;;  %v8267_v46 = vld [vmem:[%s12738_s9 + $0x120] ss:$8 sps:$4 sm:$0xff]   ;;  %v4395_v59 = vadd.f32 %v11364_v39, %v11429_v7 }
 0x439   :  { %v11407_v13 = vpop.f32.mrf.mxu0  ;;  %v11409_v31 = vpop.f32.mrf.mxu1  ;;  %5575 = vmatpush1.bf16.msra.mxu0 %v8252_v1  ;;  %5689 = vmatprep.subr.bf16.mxu1 %v8263_v19  ;;  %v8269_v1 = vld [vmem:[%s12738_s9 + $0x124] ss:$8 sps:$4 sm:$0xff]   ;;  %v4743_v53 = vrot.slane %v4742_v47, 4  ;;  %v8264_v19 = vld [vmem:[%s12738_s9 + $0x20] ss:$8 sps:$4 sm:$0xff]   ;;  %v4596_v28 = vadd.f32 %v4595_v10, %v4594_v48  ;;  %v4764_v42 = vrot.slane %v4763_v18, 4  ;;  %v11479_v51 = vadd.f32 %v11330_v17, %v4391_v36 }
 0x43a   :  { %5576 = vmatprep.subr.bf16.mxu0 %v8260_v34  ;;  %v8275_v48 = vld [vmem:[%s12738_s9 + $0x114] ss:$8 sps:$4 sm:$0xff]   ;;  %v4617_v10 = vadd.f32 %v4616_v5, %v4615_v6  ;;  %v11482_v2 = vadd.f32 %v11350_v41, %v4393_v23  ;;  %v4399_v39 = vadd.f32 %v11377_v14, %v11423_v25  ;;  %v8273_v23 = vld [vmem:[%s12738_s9 + $0x110] ss:$8 sps:$4 sm:$0xff]   ;;  %v11499_v17 = vadd.f32 %v11366_v44, %v4395_v59  ;;  %v8281_v14 = vld [vmem:[%s12738_s9 + $0x104] ss:$8 sps:$4 sm:$0xff]  }
 0x43b   :  { %v4404_v30 = vpop.f32.mrf.mxu0  ;;  %v11425_v21 = vpop.f32.mrf.mxu1  ;;  %v4403_v41 = vadd.f32 %v11407_v13, %v11423_v25  ;;  %v4667_v13 = vmul.f32 %v11479_v51, %v11479_v51 }
 0x43c   :  { %5690 = vmatpush1.bf16.msra.mxu1 %v8261_v12  ;;  %v11474_v12 = vadd.f32 %v11308_v40, %v4389_v63  ;;  %v8270_v63 = vld [vmem:[%s12738_s9 + $0x10] ss:$8 sps:$4 sm:$0xff]   ;;  %v4597_v40 = vrot.slane %v4596_v28, 2  ;;  %v4405_v44 = vadd.f32 %v4404_v30, %v11429_v7  ;;  %v8276_v30 = vld [vmem:[%s12738_s9] ss:$8 sps:$4 sm:$0xff]  }
 0x43d   :  { %v11434_v33 = vpop.f32.mrf.mxu0  ;;  %v11436_v16 = vpop.f32.mrf.mxu1  ;;  %5577 = vmatpush1.bf16.msra.mxu0 %v8258_v52  ;;  %5691 = vmatprep.subr.bf16.mxu1 %v8269_v1  ;;  %v4744_v52 = vadd.f32 %v4743_v53, %v4742_v47  ;;  %v4401_v1 = vadd.f32 %v11396_v11, %v11429_v7  ;;  %v4765_v47 = vadd.f32 %v4764_v42, %v4763_v18  ;;  %v8278_v42 = vld [vmem:[%s12738_s9 + $0x4] ss:$8 sps:$4 sm:$0xff]   ;;  %v4618_v18 = vrot.slane %v4617_v10, 2 }
 0x43e   :  { %5578 = vmatprep.subr.bf16.mxu0 %v8266_v45  ;;  %v4666_v53 = vmul.f32 %v11474_v12, %v11474_v12  ;;  %v4622_v55 = vadd.f32 %v11482_v2, %v11474_v12  ;;  %v4409_v0 = vadd.f32 %v11434_v33, %v11423_v25  ;;  %v11556_v29 = vadd.f32 %v11425_v21, %v4405_v44  ;;  %v8282_v21 = vld [vmem:[%s12738_s9 + $0xf0] ss:$8 sps:$4 sm:$0xff]   ;;  %v8293_v44 = vld [vmem:[%s12738_s9 + $0x1e4] ss:$8 sps:$4 sm:$0xff]  }
 0x43f   :  { %v11449_v20 = vpop.f32.mrf.mxu0  ;;  %v11451_v34 = vpop.f32.mrf.mxu1  ;;  %v4745_v11 = vrot.slane %v4744_v52, 2  ;;  %v11522_v59 = vadd.f32 %v11398_v50, %v4401_v1  ;;  %v4766_v61 = vrot.slane %v4765_v47, 2  ;;  %v8279_v50 = vld [vmem:[%s12738_s9 + $0x100] ss:$8 sps:$4 sm:$0xff]   ;;  %v11544_v1 = vadd.f32 %v11409_v31, %v4403_v41 }
 0x440   :  { %5692 = vmatpush1.bf16.msra.mxu1 %v8267_v46  ;;  %v4670_v46 = vmul.f32 %v11482_v2, %v11482_v2  ;;  %v4411_v33 = vadd.f32 %v11449_v20, %v11429_v7 }
 0x441   :  { %v4412_v27 = vpop.f32.mrf.mxu0  ;;  %v11460_v32 = vpop.f32.mrf.mxu1  ;;  %5579 = vmatpush1.bf16.msra.mxu0 %v8264_v19  ;;  %5693 = vmatprep.subr.bf16.mxu1 %v8275_v48  ;;  %v11527_v48 = vadd.f32 %v4597_v40, %v4596_v28  ;;  %v8284_v28 = vld [vmem:[%s12738_s9 + $0xf4] ss:$8 sps:$4 sm:$0xff]   ;;  %v11551_v40 = vadd.f32 %v4745_v11, %v4744_v52 }
 0x442   :  { %5580 = vmatprep.subr.bf16.mxu0 %v8272_v35  ;;  %v11519_v35 = vadd.f32 %v11379_v38, %v4399_v39  ;;  %v4671_v39 = vmul.f32 %v11499_v17, %v11499_v17  ;;  %v4413_v58 = vadd.f32 %v4412_v27, %v11423_v25  ;;  %v4770_v43 = vadd.f32 %v4670_v46, %v4666_v53 }
 0x443   :  { %v4414_v45 = vpop.f32.mrf.mxu0  ;;  %v11476_v9 = vpop.f32.mrf.mxu1  ;;  %v4643_v27 = vadd.f32 %v11499_v17, %v11479_v51  ;;  %v4679_v46 = vmul.f32 %v11556_v29, %v11556_v29 }
 0x444   :  { %5694 = vmatpush1.bf16.msra.mxu1 %v8273_v23  ;;  %v11553_v23 = vadd.f32 %v4618_v18, %v4617_v10  ;;  %v4674_v20 = vmul.f32 %v11519_v35, %v11519_v35  ;;  %v4415_v52 = vadd.f32 %v4414_v45, %v11429_v7  ;;  %v11569_v10 = vadd.f32 %v4766_v61, %v4765_v47  ;;  %v8285_v45 = vld [vmem:[%s12738_s9 + $0x1f0] ss:$8 sps:$4 sm:$0xff]   ;;  %v8290_v61 = vld [vmem:[%s12738_s9 + $0xe4] ss:$8 sps:$4 sm:$0xff]  }
 0x445   :  { %v11491_v6 = vpop.f32.mrf.mxu0  ;;  %v11493_v36 = vpop.f32.mrf.mxu1  ;;  %5581 = vmatpush1.bf16.msra.mxu0 %v8270_v63  ;;  %5695 = vmatprep.subr.bf16.mxu1 %v8281_v14  ;;  %v8287_v63 = vld [vmem:[%s12738_s9 + $0x1f4] ss:$8 sps:$4 sm:$0xff]   ;;  %v11574_v14 = vadd.f32 %v11436_v16, %v4409_v0  ;;  %v4791_v47 = vadd.f32 %v4671_v39, %v4667_v13  ;;  %v4623_v53 = vadd.f32 %v4622_v55, %v11519_v35 }
 0x446   :  { %5582 = vmatprep.subr.bf16.mxu0 %v8278_v42  ;;  %v4675_v42 = vmul.f32 %v11522_v59, %v11522_v59  ;;  %v4678_v0 = vmul.f32 %v11544_v1, %v11544_v1  ;;  %v11588_v16 = vadd.f32 %v11451_v34, %v4411_v33  ;;  %v4419_v55 = vadd.f32 %v11491_v6, %v11423_v25 }
 0x447   :  { %v4420_v5 = vpop.f32.mrf.mxu0  ;;  %v11512_v19 = vpop.f32.mrf.mxu1  ;;  %13048 = vst [vmem:[#allocation44_spill] sm:$0xff] %v11574_v14  ;;  %v4771_v34 = vadd.f32 %v4770_v43, %v4674_v20  ;;  %v4644_v39 = vadd.f32 %v4643_v27, %v11522_v59  ;;  %v4682_v6 = vmul.f32 %v11574_v14, %v11574_v14  ;;  %v8296_v20 = vld [vmem:[%s12738_s9 + $0xd4] ss:$8 sps:$4 sm:$0xff]  }
 0x448   :  { %5696 = vmatpush1.bf16.msra.mxu1 %v8279_v50  ;;  %v4421_v13 = vadd.f32 %v4420_v5, %v11429_v7  ;;  %v4792_v33 = vadd.f32 %v4791_v47, %v4675_v42  ;;  %v8299_v27 = vld [vmem:[%s12738_s9 + $0x1d4] ss:$8 sps:$4 sm:$0xff]   ;;  %v11628_v47 = vadd.f32 %v11493_v36, %v4419_v55  ;;  %v8294_v36 = vld [vmem:[%s12738_s9 + $0xd0] ss:$8 sps:$4 sm:$0xff]  }
 0x449   :  { %v4422_v26 = vpop.f32.mrf.mxu0  ;;  %v11533_v38 = vpop.f32.mrf.mxu1  ;;  %5583 = vmatpush1.bf16.msra.mxu0 %v8276_v30  ;;  %5697 = vmatprep.subr.bf16.mxu1 %v8287_v63  ;;  %v11596_v30 = vadd.f32 %v11460_v32, %v4413_v58  ;;  %v11603_v63 = vadd.f32 %v11476_v9, %v4415_v52  ;;  %v8288_v58 = vld [vmem:[%s12738_s9 + $0xe0] ss:$8 sps:$4 sm:$0xff]   ;;  %v4624_v32 = vadd.f32 %v4623_v53, %v11544_v1 }
 0x44a   :  { %5584 = vmatprep.subr.bf16.mxu0 %v8284_v28  ;;  %v4423_v5 = vadd.f32 %v4422_v26, %v11423_v25  ;;  %v8291_v9 = vld [vmem:[%s12738_s9 + $0x1e0] ss:$8 sps:$4 sm:$0xff]   ;;  %v4772_v42 = vadd.f32 %v4771_v34, %v4678_v0  ;;  %v4645_v52 = vadd.f32 %v4644_v39, %v11556_v29  ;;  %13050 = vst [vmem:[#allocation43_spill] sm:$0xff] %v11628_v47 }
 0x44b   :  { %v4424_v31 = vpop.f32.mrf.mxu0  ;;  %v11559_v41 = vpop.f32.mrf.mxu1  ;;  %13049 = vst [vmem:[#allocation87_spill] sm:$0xff] %v11596_v30  ;;  %v11631_v53 = vadd.f32 %v11512_v19, %v4421_v13  ;;  %v4625_v39 = vadd.f32 %v4624_v32, %v11574_v14 }
 0x44c   :  { %5698 = vmatpush2.bf16.msra.mxu1 %v8285_v45  ;;  %v4425_v26 = vadd.f32 %v4424_v31, %v11429_v7  ;;  %v4793_v45 = vadd.f32 %v4792_v33, %v4679_v46  ;;  %v4687_v31 = vmul.f32 %v11603_v63, %v11603_v63  ;;  %v4773_v55 = vadd.f32 %v4772_v42, %v4682_v6 }
 0x44d   :  { %v4428_v11 = vpop.f32.mrf.mxu0  ;;  %v11576_v18 = vpop.f32.mrf.mxu1  ;;  %5585 = vmatpush2.bf16.msra.mxu0 %v8282_v21  ;;  %v4683_v21 = vmul.f32 %v11588_v16, %v11588_v16  ;;  %5699 = vmatprep.subr.bf16.mxu1 %v8293_v44  ;;  %13051 = vst [vmem:[#allocation45_spill] sm:$0xff] %v11631_v53  ;;  %v4646_v19 = vadd.f32 %v4645_v52, %v11588_v16 }
 0x44e   :  { %5586 = vmatprep.subr.bf16.mxu0 %v8290_v61  ;;  %v4686_v61 = vmul.f32 %v11596_v30, %v11596_v30  ;;  %v4429_v44 = vadd.f32 %v4428_v11, %v11423_v25  ;;  %v11643_v13 = vadd.f32 %v11533_v38, %v4423_v5  ;;  %v8297_v11 = vld [vmem:[%s12738_s9 + $0x1d0] ss:$8 sps:$4 sm:$0xff]   ;;  %v4626_v6 = vadd.f32 %v4625_v39, %v11596_v30  ;;  %v8305_v5 = vld [vmem:[%s12738_s9 + $0x1c4] ss:$8 sps:$4 sm:$0xff]  }
 0x44f   :  { %v4430_v50 = vpop.f32.mrf.mxu0  ;;  %v4543_v28 = vpop.f32.mrf.mxu1  ;;  %v11653_v42 = vadd.f32 %v11559_v41, %v4425_v26  ;;  %v4691_v52 = vmul.f32 %v11631_v53, %v11631_v53  ;;  %v4647_v41 = vadd.f32 %v4646_v19, %v11603_v63 }
 0x450   :  { %v4431_v46 = vadd.f32 %v4430_v50, %v11429_v7  ;;  %5700 = vmatpush2.bf16.msra.mxu1 %v8291_v9  ;;  %v8302_v50 = vld [vmem:[%s12738_s9 + $0xc4] ss:$8 sps:$4 sm:$0xff]   ;;  %v4774_v9 = vadd.f32 %v4773_v55, %v4686_v61  ;;  %v8300_v61 = vld [vmem:[%s12738_s9 + $0xc0] ss:$8 sps:$4 sm:$0xff]   ;;  %v4627_v55 = vadd.f32 %v4626_v6, %v11628_v47 }
 0x451   :  { %v4432_v62 = vpop.f32.mrf.mxu0  ;;  %v4545_v43 = vpop.f32.mrf.mxu1  ;;  %5587 = vmatpush2.bf16.msra.mxu0 %v8288_v58  ;;  %v4794_v58 = vadd.f32 %v4793_v45, %v4683_v21  ;;  %5701 = vmatprep.subr.bf16.mxu1 %v8299_v27 }
 0x452   :  { %5588 = vmatprep.subr.bf16.mxu0 %v8296_v20  ;;  %v4433_v38 = vadd.f32 %v4432_v62, %v11423_v25  ;;  %v4690_v20 = vmul.f32 %v11628_v47, %v11628_v47  ;;  %v11666_v62 = vadd.f32 %v11576_v18, %v4429_v44  ;;  %v11668_v27 = vadd.f32 %v4543_v28, %v4431_v46  ;;  %v8303_v18 = vld [vmem:[%s12738_s9 + $0x1c0] ss:$8 sps:$4 sm:$0xff]   ;;  %v8308_v28 = vld [vmem:[%s12738_s9 + $0xb4] ss:$8 sps:$4 sm:$0xff]  }
 0x453   :  { %v4434_v0 = vpop.f32.mrf.mxu0  ;;  %v4547_v34 = vpop.f32.mrf.mxu1  ;;  %v4795_v26 = vadd.f32 %v4794_v58, %v4687_v31  ;;  %v4648_v31 = vadd.f32 %v4647_v41, %v11631_v53  ;;  %v4695_v44 = vmul.f32 %v11653_v42, %v11653_v42  ;;  %v4628_v53 = vadd.f32 %v4627_v55, %v11643_v13 }
 0x454   :  { %v4435_v21 = vadd.f32 %v4434_v0, %v11429_v7  ;;  %v4694_v0 = vmul.f32 %v11643_v13, %v11643_v13  ;;  %5702 = vmatpush2.bf16.msra.mxu1 %v8297_v11  ;;  %v11686_v46 = vadd.f32 %v4545_v43, %v4433_v38  ;;  %v4775_v11 = vadd.f32 %v4774_v9, %v4690_v20 }
 0x455   :  { %v4438_v33 = vpop.f32.mrf.mxu0  ;;  %v4551_v32 = vpop.f32.mrf.mxu1  ;;  %5589 = vmatpush2.bf16.msra.mxu0 %v8294_v36  ;;  %5703 = vmatprep.subr.bf16.mxu1 %v8305_v5  ;;  %v4698_v43 = vmul.f32 %v11666_v62, %v11666_v62  ;;  %v4699_v38 = vmul.f32 %v11668_v27, %v11668_v27 }
 0x456   :  { %v4439_v30 = vadd.f32 %v4438_v33, %v11423_v25  ;;  %5590 = vmatprep.subr.bf16.mxu0 %v8302_v50  ;;  %13052 = vst [vmem:[#allocation47_spill] sm:$0xff] %v11686_v46  ;;  %v8311_v33 = vld [vmem:[%s12738_s9 + $0x1b4] ss:$8 sps:$4 sm:$0xff]   ;;  %v4796_v50 = vadd.f32 %v4795_v26, %v4691_v52  ;;  %v11692_v58 = vadd.f32 %v4547_v34, %v4435_v21  ;;  %v8306_v34 = vld [vmem:[%s12738_s9 + $0xb0] ss:$8 sps:$4 sm:$0xff]  }
 0x457   :  { %v4440_v45 = vpop.f32.mrf.mxu0  ;;  %v4553_v39 = vpop.f32.mrf.mxu1  ;;  %v4776_v9 = vadd.f32 %v4775_v11, %v4694_v0  ;;  %v4702_v55 = vmul.f32 %v11686_v46, %v11686_v46 }
 0x458   :  { %v4441_v36 = vadd.f32 %v4440_v45, %v11429_v7  ;;  %v11705_v20 = vadd.f32 %v4551_v32, %v4439_v30  ;;  %5704 = vmatpush2.bf16.msra.mxu1 %v8303_v18  ;;  %v8309_v45 = vld [vmem:[%s12738_s9 + $0x1b0] ss:$8 sps:$4 sm:$0xff]   ;;  %v4797_v26 = vadd.f32 %v4796_v50, %v4695_v44  ;;  %v8317_v32 = vld [vmem:[%s12738_s9 + $0x1a4] ss:$8 sps:$4 sm:$0xff]   ;;  %v4703_v18 = vmul.f32 %v11692_v58, %v11692_v58 }
 0x459   :  { %v4442_v14 = vpop.f32.mrf.mxu0  ;;  %v4555_v19 = vpop.f32.mrf.mxu1  ;;  %5591 = vmatpush2.bf16.msra.mxu0 %v8300_v61  ;;  %v4629_v61 = vadd.f32 %v4628_v53, %v11666_v62  ;;  %5705 = vmatprep.subr.bf16.mxu1 %v8311_v33  ;;  %v4777_v11 = vadd.f32 %v4776_v9, %v4698_v43  ;;  %v8312_v33 = vld [vmem:[%s12738_s9 + $0xa0] ss:$8 sps:$4 sm:$0xff]  }
 0x45a   :  { %v4443_v6 = vadd.f32 %v4442_v14, %v11423_v25  ;;  %v4649_v14 = vadd.f32 %v4648_v31, %v11653_v42  ;;  %13053 = vst [vmem:[#allocation88_spill] sm:$0xff] %v11705_v20  ;;  %5592 = vmatprep.subr.bf16.mxu0 %v8308_v28  ;;  %v11716_v30 = vadd.f32 %v4553_v39, %v4441_v36 }
 0x45b   :  { %v4444_v47 = vpop.f32.mrf.mxu0  ;;  %v4557_v41 = vpop.f32.mrf.mxu1  ;;  %v4798_v50 = vadd.f32 %v4797_v26, %v4699_v38 }
 0x45c   :  { %v4445_v5 = vadd.f32 %v4444_v47, %v11429_v7  ;;  %v8314_v47 = vld [vmem:[%s12738_s9 + $0xa4] ss:$8 sps:$4 sm:$0xff]   ;;  %v4650_v0 = vadd.f32 %v4649_v14, %v11668_v27  ;;  %v11724_v28 = vadd.f32 %v4555_v19, %v4443_v6  ;;  %v4620_v14 = vrot.slane %v11553_v23, 1  ;;  %5706 = vmatpush2.bf16.msra.mxu1 %v8309_v45  ;;  %v8323_v45 = vld [vmem:[%s12738_s9 + $0x194] ss:$8 sps:$4 sm:$0xff]  }
 0x45d   :  { %v4448_v52 = vpop.f32.mrf.mxu0  ;;  %v4561_v21 = vpop.f32.mrf.mxu1  ;;  %5593 = vmatpush2.bf16.msra.mxu0 %v8306_v34  ;;  %v4630_v19 = vadd.f32 %v4629_v61, %v11686_v46  ;;  %v4706_v6 = vmul.f32 %v11705_v20, %v11705_v20  ;;  %v4778_v34 = vadd.f32 %v4777_v11, %v4702_v55  ;;  %v4707_v26 = vmul.f32 %v11716_v30, %v11716_v30 }
 0x45e   :  { %13054 = vst [vmem:[#allocation46_spill] sm:$0xff] %v11724_v28  ;;  %v4449_v31 = vadd.f32 %v4448_v52, %v11423_v25  ;;  %v11727_v39 = vadd.f32 %v4557_v41, %v4445_v5  ;;  %5594 = vmatprep.subr.bf16.mxu0 %v8314_v47  ;;  %v8315_v41 = vld [vmem:[%s12738_s9 + $0x1a0] ss:$8 sps:$4 sm:$0xff]   ;;  %v8320_v5 = vld [vmem:[%s12738_s9 + $0x94] ss:$8 sps:$4 sm:$0xff]   ;;  %v4651_v9 = vadd.f32 %v4650_v0, %v11692_v58 }
 0x45f   :  { %v4450_v53 = vpop.f32.mrf.mxu0  ;;  %v4563_v44 = vpop.f32.mrf.mxu1  ;;  %5707 = vmatprep.subr.bf16.mxu1 %v8317_v32  ;;  %v4799_v47 = vadd.f32 %v4798_v50, %v4703_v18  ;;  %v4631_v61 = vadd.f32 %v4630_v19, %v11705_v20  ;;  %v8318_v18 = vld [vmem:[%s12738_s9 + $0x90] ss:$8 sps:$4 sm:$0xff]   ;;  %v4621_v50 = vadd.f32 %v4620_v14, %v11553_v23 }
 0x460   :  { %13055 = vst [vmem:[#allocation48_spill] sm:$0xff] %v11727_v39  ;;  %v4451_v36 = vadd.f32 %v4450_v53, %v11429_v7  ;;  %v11737_v52 = vadd.f32 %v4561_v21, %v4449_v31  ;;  %v4710_v31 = vmul.f32 %v11724_v28, %v11724_v28  ;;  %v4652_v11 = vadd.f32 %v4651_v9, %v11716_v30 }
 0x461   :  { %v4452_v43 = vpop.f32.mrf.mxu0  ;;  %v4565_v38 = vpop.f32.mrf.mxu1  ;;  %5595 = vmatpush2.bf16.msra.mxu0 %v8312_v33  ;;  %5708 = vmatpush2.bf16.msra.mxu1 %v8315_v41  ;;  %v8326_v33 = vld [vmem:[%s12738_s9 + $0x84] ss:$8 sps:$4 sm:$0xff]  }
 0x462   :  { %13056 = vst [vmem:[#allocation50_spill] sm:$0xff] %v11737_v52  ;;  %v4453_v21 = vadd.f32 %v4452_v43, %v11423_v25  ;;  %v11755_v53 = vadd.f32 %v4563_v44, %v4451_v36  ;;  %v4711_v43 = vmul.f32 %v11727_v39, %v11727_v39  ;;  %v4779_v44 = vadd.f32 %v4778_v34, %v4706_v6  ;;  %v8329_v6 = vld [vmem:[%s12738_s9 + $0x184] ss:$8 sps:$4 sm:$0xff]  }
 0x463   :  { %v4454_v55 = vpop.f32.mrf.mxu0  ;;  %v4567_v0 = vpop.f32.mrf.mxu1  ;;  %v4714_v36 = vmul.f32 %v11737_v52, %v11737_v52  ;;  %5596 = vmatprep.subr.bf16.mxu0 %v8320_v5  ;;  %v4653_v23 = vadd.f32 %v4652_v11, %v11727_v39  ;;  %5709 = vmatprep.subr.bf16.mxu1 %v8323_v45  ;;  %v4599_v11 = vrot.slane %v11527_v48, 1 }
 0x464   :  { %13057 = vst [vmem:[#allocation90_spill] sm:$0xff] %v11755_v53  ;;  %v11760_v32 = vadd.f32 %v4565_v38, %v4453_v21  ;;  %v4455_v46 = vadd.f32 %v4454_v55, %v11429_v7  ;;  %v8321_v38 = vld [vmem:[%s12738_s9 + $0x190] ss:$8 sps:$4 sm:$0xff]   ;;  %v4800_v21 = vadd.f32 %v4799_v47, %v4707_v26  ;;  %v4632_v55 = vadd.f32 %v4631_v61, %v11724_v28 }
 0x465   :  { %v4458_v19 = vpop.f32.mrf.mxu0  ;;  %v4571_v9 = vpop.f32.mrf.mxu1  ;;  %v4780_v41 = vadd.f32 %v4779_v44, %v4710_v31  ;;  %v4715_v5 = vmul.f32 %v11755_v53, %v11755_v53  ;;  %v4654_v45 = vadd.f32 %v4653_v23, %v11755_v53  ;;  %5597 = vmatpush2.bf16.msra.mxu0 %v8318_v18  ;;  %v8324_v31 = vld [vmem:[%s12738_s9 + $0x80] ss:$8 sps:$4 sm:$0xff]   ;;  %5710 = vmatpush2.bf16.msra.mxu1 %v8321_v38 }
 0x466   :  { %v11777_v14 = vadd.f32 %v4567_v0, %v4455_v46  ;;  %v4718_v34 = vmul.f32 %v11760_v32, %v11760_v32  ;;  %v4459_v26 = vadd.f32 %v4458_v19, %v11423_v25  ;;  %v4801_v28 = vadd.f32 %v4800_v21, %v4711_v43  ;;  %5598 = vmatprep.subr.bf16.mxu0 %v8326_v33  ;;  %v8327_v18 = vld [vmem:[%s12738_s9 + $0x180] ss:$8 sps:$4 sm:$0xff]  }
 0x467   :  { %v4460_v47 = vpop.f32.mrf.mxu0  ;;  %v4573_v61 = vpop.f32.mrf.mxu1  ;;  %v4633_v46 = vadd.f32 %v4632_v55, %v11737_v52  ;;  %v4781_v44 = vadd.f32 %v4780_v41, %v4714_v36  ;;  %v4768_v55 = vrot.slane %v11569_v10, 1  ;;  %5711 = vmatprep.subr.bf16.mxu1 %v8329_v6 }
 0x468   :  { %v4461_v0 = vadd.f32 %v4460_v47, %v11429_v7  ;;  %v4719_v19 = vmul.f32 %v11777_v14, %v11777_v14  ;;  %v11796_v20 = vadd.f32 %v4571_v9, %v4459_v26  ;;  %v4802_v41 = vadd.f32 %v4801_v28, %v4715_v5 }
 0x469   :  { %v4462_v43 = vpop.f32.mrf.mxu0  ;;  %v4575_v21 = vpop.f32.mrf.mxu1  ;;  %v4634_v23 = vadd.f32 %v4633_v46, %v11760_v32  ;;  %v4782_v9 = vadd.f32 %v4781_v44, %v4718_v34  ;;  %v4655_v26 = vadd.f32 %v4654_v45, %v11777_v14  ;;  %5599 = vmatpush2.bf16.msra.mxu0 %v8324_v31  ;;  %v4747_v28 = vrot.slane %v11551_v40, 1  ;;  %5712 = vmatpush2.bf16.msra.mxu1 %v8327_v18 }
 0x46a   :  { %13058 = vst [vmem:[#allocation49_spill] sm:$0xff] %v11796_v20  ;;  %v11803_v47 = vadd.f32 %v4573_v61, %v4461_v0  ;;  %v4463_v36 = vadd.f32 %v4462_v43, %v11423_v25  ;;  %v4722_v38 = vmul.f32 %v11796_v20, %v11796_v20  ;;  %v4600_v25 = vadd.f32 %v4599_v11, %v11527_v48 }
 0x46b   :  { %v4464_v33 = vpop.f32.mrf.mxu0  ;;  %v4635_v52 = vadd.f32 %v4634_v23, %v11796_v20  ;;  %v4803_v6 = vadd.f32 %v4802_v41, %v4719_v19  ;;  %v4577_v34 = vpop.f32.mrf.mxu1  ;;  %v11824_v31 = vmul.f32 0.0078125, %v4621_v50  ;;  %v4748_v18 = vadd.f32 %v4747_v28, %v11551_v40 }
 0x46c   :  { %13059 = vst [vmem:[#allocation51_spill] sm:$0xff] %v11803_v47  ;;  %v4723_v53 = vmul.f32 %v11803_v47, %v11803_v47  ;;  %v11812_v39 = vadd.f32 %v4575_v21, %v4463_v36  ;;  %v4465_v61 = vadd.f32 %v4464_v33, %v11429_v7  ;;  %v4656_v5 = vadd.f32 %v4655_v26, %v11803_v47 }
 0x46d   :  { %v4783_v46 = vadd.f32 %v4782_v9, %v4722_v38  ;;  %v4769_v7 = vadd.f32 %v4768_v55, %v11569_v10  ;;  %v4821_v10 = vmul.f32 %v11824_v31, %v11824_v31  ;;  %v4816_v33 = vmul.f32 0.0078125, %v4748_v18 }
 0x46e   :  { %13060 = vst [vmem:[#allocation53_spill] sm:$0xff] %v11812_v39  ;;  %v4636_v45 = vadd.f32 %v4635_v52, %v11812_v39  ;;  %v4726_v0 = vmul.f32 %v11812_v39, %v11812_v39  ;;  %v11821_v44 = vadd.f32 %v4577_v34, %v4465_v61  ;;  %v4804_v48 = vadd.f32 %v4803_v6, %v4723_v53 }
 0x46f   :  { %v11830_v52 = vmul.f32 0.0078125, %v4600_v25  ;;  %v4817_v26 = vmul.f32 0.0078125, %v4769_v7 }
 0x470   :  { %v4637_v11 = vrot.slane %v4636_v45, 4  ;;  %v4784_v43 = vadd.f32 %v4783_v46, %v4726_v0  ;;  %v4657_v19 = vadd.f32 %v4656_v5, %v11821_v44  ;;  %v4727_v21 = vmul.f32 %v11821_v44, %v11821_v44 }
 0x471   :  { %v4820_v61 = vmul.f32 %v11830_v52, %v11830_v52  ;;  %v4825_v5 = vsub.f32 %v4817_v26, %v4821_v10 }
 0x472   :  { %v4638_v23 = vadd.f32 %v4637_v11, %v4636_v45  ;;  %v4785_v36 = vrot.slane %v4784_v43, 4  ;;  %v4658_v41 = vrot.slane %v4657_v19, 4  ;;  %v4805_v9 = vadd.f32 %v4804_v48, %v4727_v21 }
 0x473   :  { %v4824_v7 = vsub.f32 %v4816_v33, %v4820_v61 }
 0x474   :  { %v4639_v53 = vrot.slane %v4638_v23, 2  ;;  %v4786_v50 = vadd.f32 %v4785_v36, %v4784_v43  ;;  %v4659_v55 = vadd.f32 %v4658_v41, %v4657_v19  ;;  %v4806_v38 = vrot.slane %v4805_v9, 4 }
 0x475   :  { %v4829_v19 = vmax.f32 %v4825_v5, 0.0  ;;  %v4828_v20 = vmax.f32 %v4824_v7, 0.0 }
 0x476   :  { %v4640_v6 = vadd.f32 %v4639_v53, %v4638_v23  ;;  %v4787_v40 = vrot.slane %v4786_v50, 2  ;;  %v4660_v25 = vrot.slane %v4659_v55, 2  ;;  %v4807_v28 = vadd.f32 %v4806_v38, %v4805_v9 }
 0x477   :  { %v4834_v26 = vadd.f32 1e-05, %v4829_v19  ;;  %v4833_v38 = vadd.f32 1e-05, %v4828_v20 }
 0x478   :  { %v4641_v34 = vrot.slane %v4640_v6, 1  ;;  %v4788_v46 = vadd.f32 %v4787_v40, %v4786_v50  ;;  %v4661_v45 = vadd.f32 %v4660_v25, %v4659_v55  ;;  %v4808_v0 = vrot.slane %v4807_v28, 2 }
 0x479   :  { %8366 = vrsqrt.f32 %v4834_v26 }
 0x47a   :  { %v4642_v48 = vadd.f32 %v4641_v34, %v4640_v6  ;;  %v4789_v11 = vrot.slane %v4788_v46, 1  ;;  %v4662_v21 = vrot.slane %v4661_v45, 1  ;;  %v4809_v43 = vadd.f32 %v4808_v0, %v4807_v28  ;;  %v13061_v0 = vld [vmem:[#allocation69_spill] sm:$0xff] }
 0x47b   :  { %8368 = vrsqrt.f32 %v4833_v38 }
 0x47c   :  { %v4790_v36 = vadd.f32 %v4789_v11, %v4788_v46  ;;  %v4814_v18 = vmul.f32 0.0078125, %v4642_v48  ;;  %v4663_v41 = vadd.f32 %v4662_v21, %v4661_v45  ;;  %v4810_v39 = vrot.slane %v4809_v43, 1  ;;  %v4832_v48 = vld [vmem:[#allocation9] sm:$0xf] }
 0x47e   :  { %v4818_v23 = vmul.f32 0.0078125, %v4790_v36  ;;  %v4822_v53 = vmul.f32 %v4814_v18, %v4814_v18  ;;  %v4811_v47 = vadd.f32 %v4810_v39, %v4809_v43  ;;  %v4815_v9 = vmul.f32 0.0078125, %v4663_v41 }
 0x480   :  { %v4826_v10 = vsub.f32 %v4818_v23, %v4822_v53  ;;  %v4819_v50 = vmul.f32 0.0078125, %v4811_v47  ;;  %v4823_v55 = vmul.f32 %v4815_v9, %v4815_v9 }
 0x482   :  { %v4830_v33 = vmax.f32 %v4826_v10, 0.0  ;;  %v4827_v61 = vsub.f32 %v4819_v50, %v4823_v55 }
 0x484   :  { %v4835_v6 = vadd.f32 1e-05, %v4830_v33  ;;  %v4831_v40 = vmax.f32 %v4827_v61, 0.0 }
 0x486   :  { %v4836_v25 = vadd.f32 1e-05, %v4831_v40  ;;  %8370 = vrsqrt.f32 %v4835_v6  ;;  %v8367_v28 = vpop.eup %8366  ;;  %v4871_v40 = vld [vmem:[#allocation10] sm:$0xf] }
 0x488   :  { %8372 = vrsqrt.f32 %v4836_v25  ;;  %v8369_v5 = vpop.eup %8368 }
 0x489   :  { %v4845_v46 = vcombine.low %v8369_v5, %v8367_v28 }
 0x48b   :  { %v4853_v7 = vrot.slane %v4845_v46, %v13061_v0 }
 0x493   :  { %v8371_v34 = vpop.eup %8370 }
 0x495   :  { %v8373_v39 = vpop.eup %8372 }
 0x496   :  { %v4846_v45 = vcombine.low %v8371_v34, %v8373_v39 }
 0x498   :  { %v4860_v47 = vrot.slane %v4846_v45, %v13061_v0 }
 0x49a   :  { %v4861_v20 = vcombine.low %v4853_v7, %v4860_v47 }
 0x49c   :  { %v4868_v11 = vrot.slane %v4861_v20, %v13061_v0  ;;  %v13065_v20 = vld [vmem:[#allocation74_spill] sm:$0xff] }
 0x49e   :  { %v4870_v21 = vmul.f32 %v4868_v11, %v4832_v48  ;;  %v13066_v48 = vld [vmem:[#allocation44_spill] sm:$0xff]  ;;  %v13067_v11 = vld [vmem:[#allocation87_spill] sm:$0xff] }
 0x4a0   :  { %v11840_v43 = vrot.slane %v4870_v21, %v13020_v57  ;;  %v11843_v19 = vrot.slane %v4870_v21, %v13021_v22  ;;  %v11846_v36 = vrot.slane %v4870_v21, %v13046_v37  ;;  %v11849_v41 = vrot.slane %v4870_v21, %v13047_v56 }
 0x4a2   :  { %v4893_v23 = vmul.f32 %v11840_v43, %v11830_v52  ;;  %v4894_v53 = vmul.f32 %v11843_v19, %v11824_v31  ;;  %v4895_v26 = vmul.f32 %v11846_v36, %v4814_v18  ;;  %v4896_v10 = vmul.f32 %v11849_v41, %v4815_v9 }
 0x4a3   :  { %v4928_v6 = vmul.f32 %v11843_v19, %v11145_v60  ;;  %v4932_v52 = vmul.f32 %v11843_v19, %v11192_v3  ;;  %v4930_v31 = vmul.f32 %v11849_v41, %v11479_v51  ;;  %v4934_v18 = vmul.f32 %v11849_v41, %v11499_v17 }
 0x4a4   :  { %v4901_v50 = vcombine.low %v4893_v23, %v4894_v53  ;;  %v4902_v55 = vcombine.low %v4895_v26, %v4896_v10  ;;  %v4927_v9 = vmul.f32 %v11840_v43, %v11142_v4  ;;  %v4931_v25 = vmul.f32 %v11840_v43, %v11148_v24  ;;  %v13068_v23 = vld [vmem:[#allocation85_spill] sm:$0xff] }
 0x4a5   :  { %v4929_v28 = vmul.f32 %v11846_v36, %v11474_v12  ;;  %v4933_v3 = vmul.f32 %v11846_v36, %v11482_v2  ;;  %v4936_v51 = vmul.f32 %v11843_v19, %v11155_v49  ;;  %v4940_v17 = vmul.f32 %v11843_v19, %v11205_v54  ;;  %v13062_v54 = vld [vmem:[#allocation80_spill] sm:$0xff] }
 0x4a6   :  { %v4909_v38 = vrot.slane %v4901_v50, %v13061_v0  ;;  %v4916_v33 = vrot.slane %v4902_v55, %v13061_v0  ;;  %v4938_v4 = vmul.f32 %v11849_v41, %v11522_v59  ;;  %v4942_v24 = vmul.f32 %v11849_v41, %v11556_v29  ;;  %v13063_v59 = vld [vmem:[#allocation94_spill] sm:$0xff] }
 0x4a7   :  { %v4935_v12 = vmul.f32 %v11840_v43, %v11151_v15  ;;  %v4939_v5 = vmul.f32 %v11840_v43, %v11157_v8  ;;  %v4937_v2 = vmul.f32 %v11846_v36, %v11519_v35  ;;  %v4941_v49 = vmul.f32 %v11846_v36, %v11544_v1  ;;  %v13064_v8 = vld [vmem:[#allocation76_spill] sm:$0xff] }
 0x4a8   :  { %v4917_v61 = vcombine.low %v4909_v38, %v4916_v33  ;;  %v4944_v46 = vmul.f32 %v11843_v19, %v13062_v54  ;;  %v4948_v39 = vmul.f32 %v11843_v19, %v13063_v59  ;;  %v4946_v29 = vmul.f32 %v11849_v41, %v11588_v16 }
 0x4a9   :  { %v4950_v15 = vmul.f32 %v11849_v41, %v11603_v63  ;;  %v4943_v45 = vmul.f32 %v11840_v43, %v13064_v8  ;;  %v4947_v16 = vmul.f32 %v11840_v43, %v13065_v20  ;;  %v4945_v63 = vmul.f32 %v11846_v36, %v13066_v48 }
 0x4aa   :  { %v4924_v60 = vrot.slane %v4917_v61, %v13061_v0  ;;  %v4949_v21 = vmul.f32 %v11846_v36, %v13067_v11  ;;  %v4952_v53 = vmul.f32 %v11843_v19, %v13068_v23 }
 0x4ac   :  { %v4926_v34 = vsub.f32 %v4871_v40, %v4924_v60 }
 0x4ae   :  { %v11903_v35 = vrot.slane %v4926_v34, %v13020_v57  ;;  %v11906_v1 = vrot.slane %v4926_v34, %v13021_v22  ;;  %v11909_v7 = vrot.slane %v4926_v34, %v13046_v37  ;;  %v11912_v47 = vrot.slane %v4926_v34, %v13047_v56 }
 0x4b0   :  { %v5013_v26 = vadd.f32 %v11906_v1, %v4928_v6  ;;  %v5017_v37 = vadd.f32 %v11906_v1, %v4932_v52  ;;  %v5015_v10 = vadd.f32 %v11912_v47, %v4930_v31  ;;  %v5019_v56 = vadd.f32 %v11912_v47, %v4934_v18 }
 0x4b1   :  { %v5012_v50 = vadd.f32 %v11903_v35, %v4927_v9  ;;  %v5016_v55 = vadd.f32 %v11903_v35, %v4931_v25  ;;  %v5014_v38 = vadd.f32 %v11909_v7, %v4929_v28  ;;  %v5018_v33 = vadd.f32 %v11909_v7, %v4933_v3 }
 0x4b2   :  { %v5077_v61 = vmax.f32 %v5013_v26, 0.0  ;;  %v5081_v40 = vmax.f32 %v5017_v37, 0.0  ;;  %v5079_v60 = vmax.f32 %v5015_v10, 0.0  ;;  %v5083_v34 = vmax.f32 %v5019_v56, 0.0 }
 0x4b3   :  { %v5076_v54 = vmax.f32 %v5012_v50, 0.0  ;;  %v5080_v6 = vmax.f32 %v5016_v55, 0.0  ;;  %v5078_v59 = vmax.f32 %v5014_v38, 0.0  ;;  %v5082_v52 = vmax.f32 %v5018_v33, 0.0 }
 0x4b4   :  { %v5141_v8 = vpack.c.bf16 %v5081_v40, %v5077_v61  ;;  %v5143_v31 = vpack.c.bf16 %v5083_v34, %v5079_v60  ;;  %v5021_v18 = vadd.f32 %v11906_v1, %v4936_v51  ;;  %v5025_v9 = vadd.f32 %v11906_v1, %v4940_v17  ;;  %v13069_v60 = vld [vmem:[#allocation97_spill] sm:$0xff] }
 0x4b5   :  { %v5140_v20 = vpack.c.bf16 %v5080_v6, %v5076_v54  ;;  %v5142_v25 = vpack.c.bf16 %v5082_v52, %v5078_v59  ;;  %v5023_v28 = vadd.f32 %v11912_v47, %v4938_v4  ;;  %v5027_v3 = vadd.f32 %v11912_v47, %v4942_v24  ;;  %v13070_v54 = vld [vmem:[#allocation45_spill] sm:$0xff] }
 0x4b6   :  { %5600 = vmatprep.mubr.bf16.mxu0 %v5141_v8  ;;  %5713 = vmatprep.mubr.bf16.mxu1 %v5143_v31  ;;  %v5085_v48 = vmax.f32 %v5021_v18, 0.0  ;;  %v5089_v11 = vmax.f32 %v5025_v9, 0.0  ;;  %v5020_v23 = vadd.f32 %v11903_v35, %v4935_v12  ;;  %v5024_v26 = vadd.f32 %v11903_v35, %v4939_v5 }
 0x4b7   :  { %5601 = vmatmul.mubr.bf16.vlgmr.msra.gmra.mxu0 %v5140_v20  ;;  %5714 = vmatmul.mubr.bf16.vlgmr.msra.gmra.mxu1 %v5142_v25  ;;  %v5087_v37 = vmax.f32 %v5023_v28, 0.0  ;;  %v5091_v51 = vmax.f32 %v5027_v3, 0.0  ;;  %v5022_v17 = vadd.f32 %v11909_v7, %v4937_v2  ;;  %v5026_v10 = vadd.f32 %v11909_v7, %v4941_v49 }
 0x4b8   :  { %v5145_v56 = vpack.c.bf16 %v5089_v11, %v5085_v48  ;;  %v5084_v4 = vmax.f32 %v5020_v23, 0.0  ;;  %v5088_v50 = vmax.f32 %v5024_v26, 0.0  ;;  %v5029_v24 = vadd.f32 %v11906_v1, %v4944_v46  ;;  %v13071_v11 = vld [vmem:[#allocation77_spill] sm:$0xff]  ;;  %v13072_v23 = vld [vmem:[#allocation78_spill] sm:$0xff] }
 0x4b9   :  { %v5147_v55 = vpack.c.bf16 %v5091_v51, %v5087_v37  ;;  %v5086_v38 = vmax.f32 %v5022_v17, 0.0  ;;  %v5090_v33 = vmax.f32 %v5026_v10, 0.0  ;;  %v5033_v12 = vadd.f32 %v11906_v1, %v4948_v39  ;;  %v13073_v17 = vld [vmem:[#allocation43_spill] sm:$0xff] }
 0x4ba   :  { %5610 = vmatprep.mubr.bf16.mxu0 %v5145_v56  ;;  %v5093_v5 = vmax.f32 %v5029_v24, 0.0  ;;  %v5031_v61 = vadd.f32 %v11912_v47, %v4946_v29  ;;  %v5035_v40 = vadd.f32 %v11912_v47, %v4950_v15  ;;  %v4956_v2 = vmul.f32 %v11843_v19, %v13069_v60  ;;  %v13075_v24 = vld [vmem:[#allocation84_spill] sm:$0xff] }
 0x4bb   :  { %5723 = vmatprep.mubr.bf16.mxu1 %v5147_v55  ;;  %v5097_v49 = vmax.f32 %v5033_v12, 0.0  ;;  %v5028_v34 = vadd.f32 %v11903_v35, %v4943_v45  ;;  %v5032_v46 = vadd.f32 %v11903_v35, %v4947_v16  ;;  %v4954_v6 = vmul.f32 %v11849_v41, %v13070_v54  ;;  %v13076_v54 = vld [vmem:[#allocation79_spill] sm:$0xff] }
 0x4bc   :  { %v5095_v59 = vmax.f32 %v5031_v61, 0.0  ;;  %v5099_v39 = vmax.f32 %v5035_v40, 0.0  ;;  %v5030_v52 = vadd.f32 %v11909_v7, %v4945_v63  ;;  %v5034_v29 = vadd.f32 %v11909_v7, %v4949_v21 }
 0x4bd   :  { %v5144_v8 = vpack.c.bf16 %v5088_v50, %v5084_v4  ;;  %v5146_v15 = vpack.c.bf16 %v5090_v33, %v5086_v38  ;;  %v5037_v31 = vadd.f32 %v11906_v1, %v4952_v53  ;;  %v4958_v18 = vmul.f32 %v11849_v41, %v11653_v42  ;;  %v13074_v4 = vld [vmem:[#allocation81_spill] sm:$0xff] }
 0x4be   :  { %v5149_v9 = vpack.c.bf16 %v5097_v49, %v5093_v5  ;;  %v5151_v45 = vpack.c.bf16 %v5099_v39, %v5095_v59  ;;  %v5041_v16 = vadd.f32 %v11906_v1, %v4956_v2  ;;  %v5039_v20 = vadd.f32 %v11912_v47, %v4954_v6  ;;  %v13077_v39 = vld [vmem:[#allocation82_spill] sm:$0xff] }
 0x4bf   :  { %5611 = vmatmul.mubr.bf16.gmra.mxu0 %v5144_v8  ;;  %5724 = vmatmul.mubr.bf16.gmra.mxu1 %v5146_v15  ;;  %v5043_v25 = vadd.f32 %v11912_v47, %v4958_v18  ;;  %v5092_v63 = vmax.f32 %v5028_v34, 0.0  ;;  %v5096_v21 = vmax.f32 %v5032_v46, 0.0  ;;  %v5094_v28 = vmax.f32 %v5030_v52, 0.0  ;;  %v13078_v8 = vld [vmem:[#allocation47_spill] sm:$0xff] }
 0x4c0   :  { %5620 = vmatprep.mubr.bf16.mxu0 %v5149_v9  ;;  %5733 = vmatprep.mubr.bf16.mxu1 %v5151_v45  ;;  %v5098_v3 = vmax.f32 %v5034_v29, 0.0  ;;  %v5101_v53 = vmax.f32 %v5037_v31, 0.0  ;;  %v5105_v48 = vmax.f32 %v5041_v16, 0.0  ;;  %v4951_v42 = vmul.f32 %v11840_v43, %v13071_v11 }
 0x4c1   :  { %v4955_v26 = vmul.f32 %v11840_v43, %v13072_v23  ;;  %v5103_v37 = vmax.f32 %v5039_v20, 0.0  ;;  %v5107_v51 = vmax.f32 %v5043_v25, 0.0  ;;  %v4953_v10 = vmul.f32 %v11846_v36, %v13073_v17 }
 0x4c2   :  { %v4957_v56 = vmul.f32 %v11846_v36, %v11643_v13  ;;  %v4960_v50 = vmul.f32 %v11843_v19, %v13074_v4  ;;  %v4964_v55 = vmul.f32 %v11843_v19, %v13075_v24  ;;  %v4962_v38 = vmul.f32 %v11849_v41, %v11668_v27 }
 0x4c3   :  { %v4966_v33 = vmul.f32 %v11849_v41, %v11692_v58  ;;  %v5148_v12 = vpack.c.bf16 %v5096_v21, %v5092_v63  ;;  %v5150_v5 = vpack.c.bf16 %v5098_v3, %v5094_v28  ;;  %v5036_v61 = vadd.f32 %v11903_v35, %v4951_v42  ;;  %v13079_v63 = vld [vmem:[#allocation89_spill] sm:$0xff] }
 0x4c4   :  { %v5040_v40 = vadd.f32 %v11903_v35, %v4955_v26  ;;  %v5153_v60 = vpack.c.bf16 %v5105_v48, %v5101_v53  ;;  %v5038_v13 = vadd.f32 %v11909_v7, %v4953_v10  ;;  %v5042_v2 = vadd.f32 %v11909_v7, %v4957_v56  ;;  %v13081_v26 = vld [vmem:[#allocation48_spill] sm:$0xff] }
 0x4c5   :  { %v5045_v49 = vadd.f32 %v11906_v1, %v4960_v50  ;;  %v5155_v34 = vpack.c.bf16 %v5107_v51, %v5103_v37  ;;  %v5049_v46 = vadd.f32 %v11906_v1, %v4964_v55  ;;  %v5047_v27 = vadd.f32 %v11912_v47, %v4962_v38  ;;  %v13082_v38 = vld [vmem:[#allocation86_spill] sm:$0xff] }
 0x4c6   :  { %v5051_v58 = vadd.f32 %v11912_v47, %v4966_v33  ;;  %v4959_v6 = vmul.f32 %v11840_v43, %v13076_v54  ;;  %v5100_v59 = vmax.f32 %v5036_v61, 0.0  ;;  %v4963_v52 = vmul.f32 %v11840_v43, %v13077_v39  ;;  %v13085_v54 = vld [vmem:[#allocation46_spill] sm:$0xff] }
 0x4c7   :  { %5621 = vmatmul.mubr.bf16.gmra.mxu0 %v5148_v12  ;;  %5734 = vmatmul.mubr.bf16.gmra.mxu1 %v5150_v5  ;;  %v4961_v29 = vmul.f32 %v11846_v36, %v11666_v62  ;;  %v4965_v15 = vmul.f32 %v11846_v36, %v13078_v8  ;;  %v5104_v31 = vmax.f32 %v5040_v40, 0.0  ;;  %v5102_v18 = vmax.f32 %v5038_v13, 0.0  ;;  %v13080_v62 = vld [vmem:[#allocation92_spill] sm:$0xff] }
 0x4c8   :  { %5630 = vmatprep.mubr.bf16.mxu0 %v5153_v60  ;;  %5743 = vmatprep.mubr.bf16.mxu1 %v5155_v34  ;;  %v5106_v9 = vmax.f32 %v5042_v2, 0.0  ;;  %v5109_v45 = vmax.f32 %v5045_v49, 0.0  ;;  %v5113_v16 = vmax.f32 %v5049_v46, 0.0  ;;  %v5111_v20 = vmax.f32 %v5047_v27, 0.0  ;;  %v13084_v34 = vld [vmem:[#allocation88_spill] sm:$0xff] }
 0x4c9   :  { %v5115_v25 = vmax.f32 %v5051_v58, 0.0  ;;  %v4968_v21 = vmul.f32 %v11843_v19, %v13079_v63  ;;  %v5044_v28 = vadd.f32 %v11903_v35, %v4959_v6  ;;  %v5048_v3 = vadd.f32 %v11903_v35, %v4963_v52 }
 0x4ca   :  { %v5046_v53 = vadd.f32 %v11909_v7, %v4961_v29  ;;  %v4972_v48 = vmul.f32 %v11843_v19, %v13080_v62  ;;  %v5050_v11 = vadd.f32 %v11909_v7, %v4965_v15  ;;  %v4970_v23 = vmul.f32 %v11849_v41, %v11716_v30  ;;  %v13083_v30 = vld [vmem:[#allocation91_spill] sm:$0xff]  ;;  %v13087_v29 = vld [vmem:[#allocation37_spill] sm:$0xff]  ;;  %v13088_v15 = vld [vmem:[#allocation90_spill] sm:$0xff] }
 0x4cb   :  { %v5053_v42 = vadd.f32 %v11906_v1, %v4968_v21  ;;  %v4974_v37 = vmul.f32 %v11849_v41, %v13081_v26  ;;  %v5152_v51 = vpack.c.bf16 %v5104_v31, %v5100_v59  ;;  %v5154_v17 = vpack.c.bf16 %v5106_v9, %v5102_v18  ;;  %v13086_v59 = vld [vmem:[#allocation65_spill] sm:$0xff]  ;;  %v13090_v26 = vld [vmem:[#allocation99_spill] sm:$0xff] }
 0x4cc   :  { %v5057_v10 = vadd.f32 %v11906_v1, %v4972_v48  ;;  %v5157_v56 = vpack.c.bf16 %v5113_v16, %v5109_v45  ;;  %v5159_v4 = vpack.c.bf16 %v5115_v25, %v5111_v20  ;;  %v5055_v50 = vadd.f32 %v11912_v47, %v4970_v23 }
 0x4cd   :  { %v5059_v24 = vadd.f32 %v11912_v47, %v4974_v37  ;;  %v5108_v55 = vmax.f32 %v5044_v28, 0.0  ;;  %v4967_v33 = vmul.f32 %v11840_v43, %v13082_v38  ;;  %v4971_v12 = vmul.f32 %v11840_v43, %v13083_v30 }
 0x4ce   :  { %v5112_v5 = vmax.f32 %v5048_v3, 0.0  ;;  %v5110_v61 = vmax.f32 %v5046_v53, 0.0  ;;  %v5114_v40 = vmax.f32 %v5050_v11, 0.0  ;;  %v5117_v60 = vmax.f32 %v5053_v42, 0.0  ;;  %v13089_v42 = vld [vmem:[#allocation96_spill] sm:$0xff] }
 0x4cf   :  { %5631 = vmatmul.mubr.bf16.gmra.mxu0 %v5152_v51  ;;  %5744 = vmatmul.mubr.bf16.gmra.mxu1 %v5154_v17  ;;  %v5121_v13 = vmax.f32 %v5057_v10, 0.0  ;;  %v5052_v2 = vadd.f32 %v11903_v35, %v4967_v33  ;;  %v5056_v49 = vadd.f32 %v11903_v35, %v4971_v12  ;;  %v4969_v46 = vmul.f32 %v11846_v36, %v13084_v34  ;;  %v13092_v12 = vld [vmem:[#allocation83_spill] sm:$0xff] }
 0x4d0   :  { %5640 = vmatprep.mubr.bf16.mxu0 %v5157_v56  ;;  %5753 = vmatprep.mubr.bf16.mxu1 %v5159_v4  ;;  %v5119_v27 = vmax.f32 %v5055_v50, 0.0  ;;  %v5123_v58 = vmax.f32 %v5059_v24, 0.0  ;;  %v4973_v6 = vmul.f32 %v11846_v36, %v13085_v54  ;;  %v4976_v39 = vmul.f32 %v11843_v19, %v13086_v59  ;;  %v13091_v56 = vld [vmem:[#allocation50_spill] sm:$0xff] }
 0x4d1   :  { %v5054_v52 = vadd.f32 %v11909_v7, %v4969_v46  ;;  %v4980_v8 = vmul.f32 %v11843_v19, %v13087_v29  ;;  %v4978_v31 = vmul.f32 %v11849_v41, %v13088_v15  ;;  %v4982_v18 = vmul.f32 %v11849_v41, %v11777_v14 }
 0x4d2   :  { %v5156_v9 = vpack.c.bf16 %v5112_v5, %v5108_v55  ;;  %v5058_v45 = vadd.f32 %v11909_v7, %v4973_v6  ;;  %v5061_v16 = vadd.f32 %v11906_v1, %v4976_v39  ;;  %v5158_v20 = vpack.c.bf16 %v5114_v40, %v5110_v61  ;;  %v13093_v61 = vld [vmem:[#allocation42_spill] sm:$0xff] }
 0x4d3   :  { %v5065_v25 = vadd.f32 %v11906_v1, %v4980_v8  ;;  %v5063_v63 = vadd.f32 %v11912_v47, %v4978_v31  ;;  %v5067_v21 = vadd.f32 %v11912_v47, %v4982_v18  ;;  %v5161_v28 = vpack.c.bf16 %v5121_v13, %v5117_v60  ;;  %v13094_v60 = vld [vmem:[#allocation51_spill] sm:$0xff]  ;;  %v13095_v8 = vld [vmem:[#allocation41_spill] sm:$0xff] }
 0x4d4   :  { %v5163_v3 = vpack.c.bf16 %v5123_v58, %v5119_v27  ;;  %v5116_v53 = vmax.f32 %v5052_v2, 0.0  ;;  %v5120_v62 = vmax.f32 %v5056_v49, 0.0  ;;  %v5118_v48 = vmax.f32 %v5054_v52, 0.0  ;;  %v13097_v18 = vld [vmem:[#allocation49_spill] sm:$0xff] }
 0x4d5   :  { %v5122_v14 = vmax.f32 %v5058_v45, 0.0  ;;  %v5125_v11 = vmax.f32 %v5061_v16, 0.0  ;;  %v4975_v23 = vmul.f32 %v11840_v43, %v13089_v42  ;;  %v4979_v37 = vmul.f32 %v11840_v43, %v13090_v26  ;;  %v8330_v42 = vld [vmem:[#allocation16 + $0x78] sm:$0xff]  }
 0x4d6   :  { %v5129_v51 = vmax.f32 %v5065_v25, 0.0  ;;  %v5127_v17 = vmax.f32 %v5063_v63, 0.0  ;;  %v5131_v10 = vmax.f32 %v5067_v21, 0.0  ;;  %v4977_v4 = vmul.f32 %v11846_v36, %v13091_v56  ;;  %7497 = vmatprep.subr.bf16.mxu0 %v8330_v42 }
 0x4d7   :  { %5641 = vmatmul.mubr.bf16.gmra.mxu0 %v5156_v9  ;;  %5754 = vmatmul.mubr.bf16.gmra.mxu1 %v5158_v20  ;;  %v4981_v50 = vmul.f32 %v11846_v36, %v11760_v32  ;;  %v4990_v24 = vmul.f32 %v11849_v41, %v11821_v44  ;;  %v5060_v55 = vadd.f32 %v11903_v35, %v4975_v23  ;;  %v13098_v9 = vld [vmem:[#allocation53_spill] sm:$0xff] }
 0x4d8   :  { %5650 = vmatprep.mubr.bf16.mxu0 %v5161_v28  ;;  %5763 = vmatprep.mubr.bf16.mxu1 %v5163_v3  ;;  %v5064_v38 = vadd.f32 %v11903_v35, %v4979_v37  ;;  %v5062_v33 = vadd.f32 %v11909_v7, %v4977_v4  ;;  %v4984_v5 = vmul.f32 %v11843_v19, %v13092_v12  ;;  %v8332_v23 = vld [vmem:[#allocation16 + $0x70] sm:$0xff]   ;;  %v8337_v12 = vld [vmem:[#allocation16 + $0x20] sm:$0xff]  }
 0x4d9   :  { %v5066_v30 = vadd.f32 %v11909_v7, %v4981_v50  ;;  %v4988_v40 = vmul.f32 %v11843_v19, %v13093_v61  ;;  %v4986_v32 = vmul.f32 %v11849_v41, %v13094_v60  ;;  %v5160_v13 = vpack.c.bf16 %v5120_v62, %v5116_v53  ;;  %v8333_v37 = vld [vmem:[#allocation16 + $0x30] sm:$0xff]   ;;  %v8335_v50 = vld [vmem:[#allocation16 + $0x28] sm:$0xff]  }
 0x4da   :  { %v5162_v2 = vpack.c.bf16 %v5122_v14, %v5118_v48  ;;  %v5165_v44 = vpack.c.bf16 %v5129_v51, %v5125_v11  ;;  %v5167_v49 = vpack.c.bf16 %v5131_v10, %v5127_v17  ;;  %v5069_v34 = vadd.f32 %v11906_v1, %v4984_v5  ;;  %v8334_v51 = vld [vmem:[#allocation16 + $0x68] sm:$0xff]   ;;  %v8338_v5 = vld [vmem:[#allocation16 + $0x58] sm:$0xff]  }
 0x4db   :  { %v5073_v46 = vadd.f32 %v11906_v1, %v4988_v40  ;;  %v5071_v27 = vadd.f32 %v11912_v47, %v4986_v32  ;;  %v5075_v58 = vadd.f32 %v11912_v47, %v4990_v24  ;;  %v5124_v19 = vmax.f32 %v5060_v55, 0.0  ;;  %v13096_v1 = vld [vmem:[#allocation40_spill] sm:$0xff] }
 0x4dc   :  { %v5128_v54 = vmax.f32 %v5064_v38, 0.0  ;;  %v5126_v6 = vmax.f32 %v5062_v33, 0.0  ;;  %v5130_v41 = vmax.f32 %v5066_v30, 0.0  ;;  %v5133_v59 = vmax.f32 %v5069_v34, 0.0  ;;  %v8336_v24 = vld [vmem:[#allocation16 + $0x60] sm:$0xff]  }
 0x4dd   :  { %v5137_v39 = vmax.f32 %v5073_v46, 0.0  ;;  %v5135_v52 = vmax.f32 %v5071_v27, 0.0  ;;  %v5139_v29 = vmax.f32 %v5075_v58, 0.0  ;;  %v4983_v15 = vmul.f32 %v11840_v43, %v13095_v8  ;;  %v8341_v27 = vld [vmem:[#allocation16 + $0x10] sm:$0xff]   ;;  %v5236_v58 = vld [vmem:[#allocation12] sm:$0x3] }
 0x4de   :  { %v4987_v31 = vmul.f32 %v11840_v43, %v13096_v1  ;;  %v4985_v47 = vmul.f32 %v11846_v36, %v13097_v18  ;;  %v4989_v45 = vmul.f32 %v11846_v36, %v13098_v9  ;;  %v5164_v16 = vpack.c.bf16 %v5128_v54, %v5124_v19  ;;  %v8342_v19 = vld [vmem:[#allocation16 + $0x48] sm:$0xff]   ;;  %v8344_v8 = vld [vmem:[#allocation16 + $0x40] sm:$0xff]  }
 0x4df   :  { %5651 = vmatmul.mubr.bf16.gmra.mxu0 %v5160_v13  ;;  %5764 = vmatmul.mubr.bf16.gmra.mxu1 %v5162_v2  ;;  %v5166_v20 = vpack.c.bf16 %v5130_v41, %v5126_v6  ;;  %v5068_v25 = vadd.f32 %v11903_v35, %v4983_v15  ;;  %v5169_v3 = vpack.c.bf16 %v5137_v39, %v5133_v59  ;;  %v8339_v13 = vld [vmem:[#allocation16 + $0x18] sm:$0xff]   ;;  %v8340_v2 = vld [vmem:[#allocation16 + $0x50] sm:$0xff]  }
 0x4e0   :  { %5660 = vmatprep.mubr.bf16.mxu0 %v5165_v44  ;;  %5773 = vmatprep.mubr.bf16.mxu1 %v5167_v49  ;;  %v5072_v63 = vadd.f32 %v11903_v35, %v4987_v31  ;;  %v5070_v21 = vadd.f32 %v11909_v7, %v4985_v47  ;;  %v5074_v28 = vadd.f32 %v11909_v7, %v4989_v45  ;;  %v8331_v35 = vld [vmem:[#allocation16 + $0x38] sm:$0xff]  }
 0x4e1   :  { %v5171_v53 = vpack.c.bf16 %v5139_v29, %v5135_v52  ;;  %v5132_v43 = vmax.f32 %v5068_v25, 0.0  ;;  %7498 = vmatpush3.bf16.msra.mxu0 %v8331_v35  ;;  %v12069_v41 = vrot.slane %v5236_v58, %v13020_v57  ;;  %v8343_v52 = vld [vmem:[#allocation16 + $0x8] sm:$0xff]   ;;  %v12072_v29 = vrot.slane %v5236_v58, %v13021_v22 }
 0x4e2   :  { %v5136_v62 = vmax.f32 %v5072_v63, 0.0  ;;  %v5134_v48 = vmax.f32 %v5070_v21, 0.0  ;;  %v5138_v36 = vmax.f32 %v5074_v28, 0.0  ;;  %7499 = vmatprep.subr.bf16.mxu0 %v8332_v23 }
 0x4e4   :  { %v5168_v14 = vpack.c.bf16 %v5136_v62, %v5132_v43  ;;  %v5170_v11 = vpack.c.bf16 %v5138_v36, %v5134_v48 }
 0x4e5   :  { %7500 = vmatpush3.bf16.msra.mxu0 %v8333_v37 }
 0x4e6   :  { %7501 = vmatprep.subr.bf16.mxu0 %v8334_v51 }
 0x4e7   :  { %5661 = vmatmul.mubr.bf16.gmra.mxu0 %v5164_v16  ;;  %5774 = vmatmul.mubr.bf16.gmra.mxu1 %v5166_v20  ;;  %v8345_v20 = vld [vmem:[#allocation16] sm:$0xff]  }
 0x4e8   :  { %5670 = vmatprep.mubr.bf16.mxu0 %v5169_v3  ;;  %5783 = vmatprep.mubr.bf16.mxu1 %v5171_v53 }
 0x4e9   :  { %7502 = vmatpush3.bf16.msra.mxu0 %v8335_v50 }
 0x4ea   :  { %7503 = vmatprep.subr.bf16.mxu0 %v8336_v24 }
 0x4ed   :  { %7504 = vmatpush3.bf16.msra.mxu0 %v8337_v12 }
 0x4ee   :  { %7505 = vmatprep.subr.bf16.mxu0 %v8338_v5 }
 0x4ef   :  { %5671 = vmatmul.mubr.bf16.gmra.mxu0 %v5168_v14  ;;  %5784 = vmatmul.mubr.bf16.gmra.mxu1 %v5170_v11 }
 0x4f1   :  { %7506 = vmatpush3.bf16.msra.mxu0 %v8339_v13 }
 0x4f2   :  { %7507 = vmatprep.subr.bf16.mxu0 %v8340_v2 }
 0x4f5   :  { %7508 = vmatpush3.bf16.msra.mxu0 %v8341_v27 }
 0x4f6   :  { %7509 = vmatprep.subr.bf16.mxu0 %v8342_v19 }
 0x4f9   :  { %7510 = vmatpush3.bf16.msra.mxu0 %v8343_v52 }
 0x4fa   :  { %7511 = vmatprep.subr.bf16.mxu0 %v8344_v8 }
 0x4fd   :  { %7512 = vmatpush3.bf16.msra.mxu0 %v8345_v20 }
 0x577   :  { %v5602_v26 = vpop.f32.mrf.mxu0  ;;  %v12064_v7 = vpop.f32.mrf.mxu1 }
 0x578   :  { %v5603_v47 = vadd.f32 %v5602_v26, %v12069_v41 }
 0x579   :  { %v5604_v17 = vpop.f32.mrf.mxu0  ;;  %v12066_v10 = vpop.f32.mrf.mxu1 }
 0x57a   :  { %v5605_v25 = vadd.f32 %v5604_v17, %v12072_v29  ;;  %v12088_v62 = vadd.f32 %v12064_v7, %v5603_v47 }
 0x57b   :  { %v5606_v56 = vpop.f32.mrf.mxu0  ;;  %v5719_v4 = vpop.f32.mrf.mxu1 }
 0x57c   :  { %v5607_v15 = vadd.f32 %v5606_v56, %v12069_v41  ;;  %v12094_v42 = vadd.f32 %v12066_v10, %v5605_v25  ;;  %v5836_v10 = vmul.f32 %v12088_v62, %v12088_v62 }
 0x57d   :  { %v5608_v55 = vpop.f32.mrf.mxu0  ;;  %v5721_v38 = vpop.f32.mrf.mxu1 }
 0x57e   :  { %v5609_v18 = vadd.f32 %v5608_v55, %v12072_v29  ;;  %v12079_v63 = vadd.f32 %v5719_v4, %v5607_v15 }
 0x57f   :  { %v5612_v33 = vpop.f32.mrf.mxu0  ;;  %v5725_v30 = vpop.f32.mrf.mxu1 }
 0x580   :  { %v5613_v9 = vadd.f32 %v5612_v33, %v12069_v41  ;;  %v12084_v53 = vadd.f32 %v5721_v38, %v5609_v18  ;;  %v5838_v35 = vmul.f32 %v12079_v63, %v12079_v63  ;;  %v5837_v33 = vmul.f32 %v12094_v42, %v12094_v42 }
 0x581   :  { %v5614_v61 = vpop.f32.mrf.mxu0  ;;  %v5727_v40 = vpop.f32.mrf.mxu1 }
 0x582   :  { %v5615_v21 = vadd.f32 %v5614_v61, %v12072_v29  ;;  %v12090_v48 = vadd.f32 %v5725_v30, %v5613_v9  ;;  %v5839_v17 = vmul.f32 %v12084_v53, %v12084_v53  ;;  %v5794_v30 = vadd.f32 %v12079_v63, %v12088_v62 }
 0x583   :  { %v5616_v60 = vpop.f32.mrf.mxu0  ;;  %v5729_v32 = vpop.f32.mrf.mxu1  ;;  %v5868_v5 = vadd.f32 %v5838_v35, %v5836_v10  ;;  %v5815_v2 = vadd.f32 %v12084_v53, %v12094_v42 }
 0x584   :  { %v5617_v43 = vadd.f32 %v5616_v60, %v12069_v41  ;;  %v12098_v23 = vadd.f32 %v5727_v40, %v5615_v21  ;;  %v5840_v4 = vmul.f32 %v12090_v48, %v12090_v48  ;;  %v5795_v27 = vadd.f32 %v5794_v30, %v12090_v48 }
 0x585   :  { %v5618_v44 = vpop.f32.mrf.mxu0  ;;  %v5731_v49 = vpop.f32.mrf.mxu1 }
 0x586   :  { %v5619_v36 = vadd.f32 %v5618_v44, %v12072_v29  ;;  %v12104_v56 = vadd.f32 %v5729_v32, %v5617_v43  ;;  %v5841_v61 = vmul.f32 %v12098_v23, %v12098_v23  ;;  %v5889_v44 = vadd.f32 %v5839_v17, %v5837_v33 }
 0x587   :  { %v5622_v34 = vpop.f32.mrf.mxu0  ;;  %v5735_v46 = vpop.f32.mrf.mxu1  ;;  %v5869_v58 = vadd.f32 %v5868_v5, %v5840_v4 }
 0x588   :  { %v5623_v26 = vadd.f32 %v5622_v34, %v12069_v41  ;;  %v12110_v50 = vadd.f32 %v5731_v49, %v5619_v36  ;;  %v5842_v49 = vmul.f32 %v12104_v56, %v12104_v56  ;;  %v5796_v18 = vadd.f32 %v5795_v27, %v12104_v56 }
 0x589   :  { %v5624_v54 = vpop.f32.mrf.mxu0  ;;  %v5737_v6 = vpop.f32.mrf.mxu1 }
 0x58a   :  { %v5625_v7 = vadd.f32 %v5624_v54, %v12072_v29  ;;  %v12120_v40 = vadd.f32 %v5735_v46, %v5623_v26  ;;  %v5843_v46 = vmul.f32 %v12110_v50, %v12110_v50  ;;  %v5870_v20 = vadd.f32 %v5869_v58, %v5842_v49 }
 0x58b   :  { %v5626_v59 = vpop.f32.mrf.mxu0  ;;  %v5739_v39 = vpop.f32.mrf.mxu1 }
 0x58c   :  { %v5627_v24 = vadd.f32 %v5626_v59, %v12069_v41  ;;  %v12122_v60 = vadd.f32 %v5737_v6, %v5625_v7  ;;  %v5816_v59 = vadd.f32 %v5815_v2, %v12098_v23  ;;  %v5844_v47 = vmul.f32 %v12120_v40, %v12120_v40 }
 0x58d   :  { %v5628_v1 = vpop.f32.mrf.mxu0  ;;  %v5741_v31 = vpop.f32.mrf.mxu1  ;;  %v5797_v36 = vadd.f32 %v5796_v18, %v12120_v40 }
 0x58e   :  { %v5629_v12 = vadd.f32 %v5628_v1, %v12072_v29  ;;  %v12132_v19 = vadd.f32 %v5739_v39, %v5627_v24  ;;  %v5890_v1 = vadd.f32 %v5889_v44, %v5841_v61  ;;  %v5845_v39 = vmul.f32 %v12122_v60, %v12122_v60 }
 0x58f   :  { %v5632_v45 = vpop.f32.mrf.mxu0  ;;  %v5745_v16 = vpop.f32.mrf.mxu1  ;;  %v5871_v10 = vadd.f32 %v5870_v20, %v5844_v47 }
 0x590   :  { %v5633_v34 = vadd.f32 %v5632_v45, %v12069_v41  ;;  %v12135_v52 = vadd.f32 %v5741_v31, %v5629_v12  ;;  %v5891_v43 = vadd.f32 %v5890_v1, %v5843_v46 }
 0x591   :  { %v5634_v28 = vpop.f32.mrf.mxu0  ;;  %v12082_v3 = vpop.f32.mrf.mxu1 }
 0x592   :  { %v5635_v8 = vadd.f32 %v5634_v28, %v12072_v29  ;;  %v12144_v25 = vadd.f32 %v5745_v16, %v5633_v34  ;;  %v5817_v28 = vadd.f32 %v5816_v59, %v12110_v50  ;;  %v5847_v7 = vmul.f32 %v12135_v52, %v12135_v52 }
 0x593   :  { %v5636_v14 = vpop.f32.mrf.mxu0  ;;  %v5749_v11 = vpop.f32.mrf.mxu1  ;;  %v5892_v24 = vadd.f32 %v5891_v43, %v5845_v39 }
 0x594   :  { %v5637_v15 = vadd.f32 %v5636_v14, %v12069_v41  ;;  %v5846_v14 = vmul.f32 %v12132_v19, %v12132_v19  ;;  %v12155_v16 = vadd.f32 %v12082_v3, %v5635_v8  ;;  %v5818_v4 = vadd.f32 %v5817_v28, %v12122_v60 }
 0x595   :  { %v5638_v37 = vpop.f32.mrf.mxu0  ;;  %v5751_v51 = vpop.f32.mrf.mxu1  ;;  %v5848_v12 = vmul.f32 %v12144_v25, %v12144_v25  ;;  %v5893_v27 = vadd.f32 %v5892_v24, %v5847_v7 }
 0x596   :  { %v5639_v31 = vadd.f32 %v5638_v37, %v12072_v29  ;;  %v12157_v17 = vadd.f32 %v5749_v11, %v5637_v15  ;;  %v5798_v11 = vadd.f32 %v5797_v36, %v12132_v19  ;;  %v5819_v2 = vadd.f32 %v5818_v4, %v12135_v52 }
 0x597   :  { %v5642_v55 = vpop.f32.mrf.mxu0  ;;  %v5755_v38 = vpop.f32.mrf.mxu1  ;;  %v5849_v58 = vmul.f32 %v12155_v16, %v12155_v16 }
 0x598   :  { %v5643_v21 = vadd.f32 %v5642_v55, %v12069_v41  ;;  %v12164_v5 = vadd.f32 %v5751_v51, %v5639_v31  ;;  %v5850_v51 = vmul.f32 %v12157_v17, %v12157_v17  ;;  %v5799_v46 = vadd.f32 %v5798_v11, %v12144_v25 }
 0x599   :  { %v5644_v32 = vpop.f32.mrf.mxu0  ;;  %v5757_v13 = vpop.f32.mrf.mxu1  ;;  %v5894_v43 = vadd.f32 %v5893_v27, %v5849_v58 }
 0x59a   :  { %v5645_v37 = vadd.f32 %v5644_v32, %v12072_v29  ;;  %v12166_v61 = vadd.f32 %v5755_v38, %v5643_v21  ;;  %v5872_v32 = vadd.f32 %v5871_v10, %v5846_v14  ;;  %v5851_v47 = vmul.f32 %v12164_v5, %v12164_v5 }
 0x59b   :  { %v5646_v54 = vpop.f32.mrf.mxu0  ;;  %v5759_v6 = vpop.f32.mrf.mxu1 }
 0x59c   :  { %v5647_v55 = vadd.f32 %v5646_v54, %v12069_v41  ;;  %v12176_v38 = vadd.f32 %v5757_v13, %v5645_v37  ;;  %v5873_v18 = vadd.f32 %v5872_v32, %v5848_v12  ;;  %v5852_v39 = vmul.f32 %v12166_v61, %v12166_v61 }
 0x59d   :  { %v5648_v9 = vpop.f32.mrf.mxu0  ;;  %v5761_v45 = vpop.f32.mrf.mxu1  ;;  %v5820_v13 = vadd.f32 %v5819_v2, %v12155_v16  ;;  %v5895_v24 = vadd.f32 %v5894_v43, %v5851_v47 }
 0x59e   :  { %v5649_v3 = vadd.f32 %v5648_v9, %v12072_v29  ;;  %v12179_v54 = vadd.f32 %v5759_v6, %v5647_v55  ;;  %v5800_v6 = vadd.f32 %v5799_v46, %v12157_v17  ;;  %v5874_v36 = vadd.f32 %v5873_v18, %v5850_v51 }
 0x59f   :  { %v5652_v35 = vpop.f32.mrf.mxu0  ;;  %v5765_v26 = vpop.f32.mrf.mxu1  ;;  %v5853_v14 = vmul.f32 %v12176_v38, %v12176_v38 }
 0x5a0   :  { %v5653_v44 = vadd.f32 %v5652_v35, %v12069_v41  ;;  %v12187_v9 = vadd.f32 %v5761_v45, %v5649_v3  ;;  %v5821_v45 = vadd.f32 %v5820_v13, %v12164_v5  ;;  %v5854_v7 = vmul.f32 %v12179_v54, %v12179_v54 }
 0x5a1   :  { %v5654_v33 = vpop.f32.mrf.mxu0  ;;  %v5767_v30 = vpop.f32.mrf.mxu1  ;;  %v5801_v55 = vadd.f32 %v5800_v6, %v12166_v61 }
 0x5a2   :  { %v5655_v59 = vadd.f32 %v5654_v33, %v12072_v29  ;;  %v12191_v20 = vadd.f32 %v5765_v26, %v5653_v44  ;;  %v5875_v33 = vadd.f32 %v5874_v36, %v5852_v39  ;;  %v5855_v12 = vmul.f32 %v12187_v9, %v12187_v9 }
 0x5a3   :  { %v5656_v49 = vpop.f32.mrf.mxu0  ;;  %v5769_v34 = vpop.f32.mrf.mxu1  ;;  %v5802_v27 = vadd.f32 %v5801_v55, %v12179_v54 }
 0x5a4   :  { %v5657_v8 = vadd.f32 %v5656_v49, %v12069_v41  ;;  %v12200_v37 = vadd.f32 %v5767_v30, %v5655_v59  ;;  %v5856_v3 = vmul.f32 %v12191_v20, %v12191_v20  ;;  %v5822_v49 = vadd.f32 %v5821_v45, %v12176_v38 }
 0x5a5   :  { %v5658_v15 = vpop.f32.mrf.mxu0  ;;  %v5771_v1 = vpop.f32.mrf.mxu1  ;;  %v5876_v51 = vadd.f32 %v5875_v33, %v5854_v7  ;;  %v5803_v47 = vadd.f32 %v5802_v27, %v12191_v20 }
 0x5a6   :  { %v5659_v31 = vadd.f32 %v5658_v15, %v12072_v29  ;;  %v12202_v26 = vadd.f32 %v5769_v34, %v5657_v8  ;;  %v5896_v34 = vadd.f32 %v5895_v24, %v5853_v14  ;;  %v5857_v46 = vmul.f32 %v12200_v37, %v12200_v37 }
 0x5a7   :  { %v5662_v21 = vpop.f32.mrf.mxu0  ;;  %v5775_v28 = vpop.f32.mrf.mxu1  ;;  %v5823_v18 = vadd.f32 %v5822_v49, %v12187_v9 }
 0x5a8   :  { %v5663_v35 = vadd.f32 %v5662_v21, %v12069_v41  ;;  %v12209_v11 = vadd.f32 %v5771_v1, %v5659_v31  ;;  %v5858_v59 = vmul.f32 %v12202_v26, %v12202_v26  ;;  %v5897_v6 = vadd.f32 %v5896_v34, %v5855_v12 }
 0x5a9   :  { %v5664_v10 = vpop.f32.mrf.mxu0  ;;  %v5777_v4 = vpop.f32.mrf.mxu1  ;;  %v5877_v31 = vadd.f32 %v5876_v51, %v5856_v3  ;;  %v5824_v14 = vadd.f32 %v5823_v18, %v12200_v37 }
 0x5aa   :  { %v12211_v32 = vadd.f32 %v5775_v28, %v5663_v35  ;;  %v5665_v30 = vadd.f32 %v5664_v10, %v12072_v29  ;;  %v5859_v21 = vmul.f32 %v12209_v11, %v12209_v11  ;;  %v5804_v35 = vadd.f32 %v5803_v47, %v12202_v26 }
 0x5ab   :  { %v5666_v2 = vpop.f32.mrf.mxu0  ;;  %v5779_v44 = vpop.f32.mrf.mxu1  ;;  %v5898_v10 = vadd.f32 %v5897_v6, %v5857_v46  ;;  %v5825_v3 = vadd.f32 %v5824_v14, %v12209_v11 }
 0x5ac   :  { %v5667_v58 = vadd.f32 %v5666_v2, %v12069_v41  ;;  %v12221_v8 = vadd.f32 %v5777_v4, %v5665_v30  ;;  %v5860_v28 = vmul.f32 %v12211_v32, %v12211_v32  ;;  %v5878_v4 = vadd.f32 %v5877_v31, %v5858_v59 }
 0x5ad   :  { %v5668_v15 = vpop.f32.mrf.mxu0  ;;  %v5781_v1 = vpop.f32.mrf.mxu1  ;;  %v5805_v30 = vadd.f32 %v5804_v35, %v12211_v32 }
 0x5ae   :  { %v12225_v39 = vadd.f32 %v5779_v44, %v5667_v58  ;;  %v5669_v13 = vadd.f32 %v5668_v15, %v12072_v29  ;;  %v5861_v24 = vmul.f32 %v12221_v8, %v12221_v8  ;;  %v5899_v44 = vadd.f32 %v5898_v10, %v5859_v21 }
 0x5af   :  { %v5672_v43 = vpop.f32.mrf.mxu0  ;;  %v5785_v36 = vpop.f32.mrf.mxu1  ;;  %v5879_v49 = vadd.f32 %v5878_v4, %v5860_v28  ;;  %v5826_v46 = vadd.f32 %v5825_v3, %v12221_v8 }
 0x5b0   :  { %v12234_v45 = vadd.f32 %v5781_v1, %v5669_v13  ;;  %v5673_v7 = vadd.f32 %v5672_v43, %v12069_v41  ;;  %v5862_v55 = vmul.f32 %v12225_v39, %v12225_v39  ;;  %v5806_v59 = vadd.f32 %v5805_v30, %v12225_v39 }
 0x5b1   :  { %v5674_v33 = vpop.f32.mrf.mxu0  ;;  %v5787_v12 = vpop.f32.mrf.mxu1  ;;  %v5900_v18 = vadd.f32 %v5899_v44, %v5861_v24 }
 0x5b2   :  { %v12243_v2 = vadd.f32 %v5785_v36, %v5673_v7  ;;  %v5863_v34 = vmul.f32 %v12234_v45, %v12234_v45  ;;  %v5675_v27 = vadd.f32 %v5674_v33, %v12072_v29  ;;  %v5880_v47 = vadd.f32 %v5879_v49, %v5862_v55 }
 0x5b3   :  { %v5676_v58 = vpop.f32.mrf.mxu0  ;;  %v5789_v51 = vpop.f32.mrf.mxu1  ;;  %v5827_v31 = vadd.f32 %v5826_v46, %v12234_v45 }
 0x5b4   :  { %v5864_v15 = vmul.f32 %v12243_v2, %v12243_v2  ;;  %v5677_v1 = vadd.f32 %v5676_v58, %v12069_v41  ;;  %v12253_v13 = vadd.f32 %v5787_v12, %v5675_v27  ;;  %v5807_v21 = vadd.f32 %v5806_v59, %v12243_v2 }
 0x5b5   :  { %v5678_v6 = vpop.f32.mrf.mxu0  ;;  %v5901_v36 = vadd.f32 %v5900_v18, %v5863_v34  ;;  %v5791_v7 = vpop.f32.mrf.mxu1 }
 0x5b6   :  { %v12257_v28 = vadd.f32 %v5789_v51, %v5677_v1  ;;  %v5679_v43 = vadd.f32 %v5678_v6, %v12072_v29  ;;  %v5881_v14 = vadd.f32 %v5880_v47, %v5864_v15  ;;  %v5865_v35 = vmul.f32 %v12253_v13, %v12253_v13 }
 0x5b7   :  { %v5828_v41 = vadd.f32 %v5827_v31, %v12253_v13 }
 0x5b8   :  { %v5808_v10 = vadd.f32 %v5807_v21, %v12257_v28  ;;  %v5866_v4 = vmul.f32 %v12257_v28, %v12257_v28  ;;  %v12266_v24 = vadd.f32 %v5791_v7, %v5679_v43  ;;  %v5902_v55 = vadd.f32 %v5901_v36, %v5865_v35 }
 0x5ba   :  { %v5809_v33 = vrot.slane %v5808_v10, 4  ;;  %v5882_v12 = vadd.f32 %v5881_v14, %v5866_v4  ;;  %v5829_v29 = vadd.f32 %v5828_v41, %v12266_v24  ;;  %v5867_v3 = vmul.f32 %v12266_v24, %v12266_v24 }
 0x5bc   :  { %v5810_v30 = vadd.f32 %v5809_v33, %v5808_v10  ;;  %v5883_v44 = vrot.slane %v5882_v12, 4  ;;  %v5830_v49 = vrot.slane %v5829_v29, 4  ;;  %v5903_v34 = vadd.f32 %v5902_v55, %v5867_v3 }
 0x5be   :  { %v5811_v27 = vrot.slane %v5810_v30, 2  ;;  %v5884_v58 = vadd.f32 %v5883_v44, %v5882_v12  ;;  %v5831_v51 = vadd.f32 %v5830_v49, %v5829_v29  ;;  %v5904_v46 = vrot.slane %v5903_v34, 4 }
 0x5c0   :  { %v5812_v59 = vadd.f32 %v5811_v27, %v5810_v30  ;;  %v5885_v15 = vrot.slane %v5884_v58, 2  ;;  %v5832_v1 = vrot.slane %v5831_v51, 2  ;;  %v5905_v18 = vadd.f32 %v5904_v46, %v5903_v34 }
 0x5c2   :  { %v5813_v47 = vrot.slane %v5812_v59, 1  ;;  %v5886_v6 = vadd.f32 %v5885_v15, %v5884_v58  ;;  %v5833_v31 = vadd.f32 %v5832_v1, %v5831_v51  ;;  %v5906_v21 = vrot.slane %v5905_v18, 2 }
 0x5c4   :  { %v5814_v43 = vadd.f32 %v5813_v47, %v5812_v59  ;;  %v5887_v36 = vrot.slane %v5886_v6, 1  ;;  %v5834_v14 = vrot.slane %v5833_v31, 1  ;;  %v5907_v35 = vadd.f32 %v5906_v21, %v5905_v18  ;;  %v5920_v18 = vld [vmem:[#allocation13] sm:$0x3] }
 0x5c6   :  { %v5888_v7 = vadd.f32 %v5887_v36, %v5886_v6  ;;  %v5910_v41 = vmul.f32 0.0078125, %v5814_v43  ;;  %v5835_v10 = vadd.f32 %v5834_v14, %v5833_v31  ;;  %v5908_v4 = vrot.slane %v5907_v35, 1 }
 0x5c8   :  { %v5912_v55 = vmul.f32 0.0078125, %v5888_v7  ;;  %v5914_v33 = vmul.f32 %v5910_v41, %v5910_v41  ;;  %v5909_v12 = vadd.f32 %v5908_v4, %v5907_v35  ;;  %v5911_v29 = vmul.f32 0.0078125, %v5835_v10  ;;  %v5944_v7 = vld [vmem:[#allocation15] sm:$0x3] }
 0x5ca   :  { %v5916_v3 = vsub.f32 %v5912_v55, %v5914_v33  ;;  %v5913_v30 = vmul.f32 0.0078125, %v5909_v12  ;;  %v5915_v44 = vmul.f32 %v5911_v29, %v5911_v29 }
 0x5cc   :  { %v5918_v49 = vmax.f32 %v5916_v3, 0.0  ;;  %v5917_v34 = vsub.f32 %v5913_v30, %v5915_v44 }
 0x5ce   :  { %v5921_v27 = vadd.f32 1e-05, %v5918_v49  ;;  %v5919_v58 = vmax.f32 %v5917_v34, 0.0 }
 0x5d0   :  { %v5922_v51 = vadd.f32 1e-05, %v5919_v58  ;;  %8374 = vrsqrt.f32 %v5921_v27 }
 0x5d2   :  { %8376 = vrsqrt.f32 %v5922_v51 }
 0x5dd   :  { %v8375_v46 = vpop.eup %8374 }
 0x5df   :  { %v8377_v59 = vpop.eup %8376 }
 0x5e0   :  { %v5927_v15 = vcombine.low %v8375_v46, %v8377_v59 }
 0x5e2   :  { %v5934_v1 = vrot.slane %v5927_v15, %v13061_v0 }
 0x5e4   :  { %v5941_v47 = vrot.slane %v5934_v1, %v13061_v0 }
 0x5e6   :  { %v5943_v6 = vmul.f32 %v5941_v47, %v5920_v18 }
 0x5e8   :  { %v12274_v31 = vrot.slane %v5943_v6, %v13020_v57  ;;  %v12277_v21 = vrot.slane %v5943_v6, %v13021_v22 }
 0x5ea   :  { %v5956_v43 = vmul.f32 %v12274_v31, %v5910_v41  ;;  %v5957_v36 = vmul.f32 %v12277_v21, %v5911_v29  ;;  %v5978_v55 = vmul.f32 %v12277_v21, %v12094_v42  ;;  %v5980_v33 = vmul.f32 %v12277_v21, %v12084_v53 }
 0x5eb   :  { %v6005_v12 = vmul.f32 %v12274_v31, %v12243_v2  ;;  %v6007_v41 = vmul.f32 %v12274_v31, %v12257_v28  ;;  %v5979_v42 = vmul.f32 %v12274_v31, %v12079_v63  ;;  %v5982_v53 = vmul.f32 %v12277_v21, %v12098_v23 }
 0x5ec   :  { %v5960_v14 = vcombine.low %v5956_v43, %v5957_v36  ;;  %v5984_v2 = vmul.f32 %v12277_v21, %v12110_v50  ;;  %v5981_v50 = vmul.f32 %v12274_v31, %v12090_v48  ;;  %v5983_v46 = vmul.f32 %v12274_v31, %v12104_v56 }
 0x5ed   :  { %v5986_v1 = vmul.f32 %v12277_v21, %v12122_v60  ;;  %v5988_v18 = vmul.f32 %v12277_v21, %v12135_v52  ;;  %v5985_v60 = vmul.f32 %v12274_v31, %v12120_v40  ;;  %v5987_v52 = vmul.f32 %v12274_v31, %v12132_v19 }
 0x5ee   :  { %v5967_v35 = vrot.slane %v5960_v14, %v13061_v0  ;;  %v6006_v19 = vmul.f32 %v12277_v21, %v12253_v13  ;;  %v5991_v13 = vmul.f32 %v12274_v31, %v12157_v17 }
 0x5f0   :  { %v5974_v10 = vrot.slane %v5967_v35, %v13061_v0  ;;  %v5977_v0 = vmul.f32 %v12274_v31, %v12088_v62 }
 0x5f2   :  { %v5976_v4 = vsub.f32 %v5944_v7, %v5974_v10  ;;  %v5990_v10 = vmul.f32 %v12277_v21, %v12155_v16 }
 0x5f4   :  { %v12292_v29 = vrot.slane %v5976_v4, %v13020_v57  ;;  %v12295_v3 = vrot.slane %v5976_v4, %v13021_v22  ;;  %v5992_v4 = vmul.f32 %v12277_v21, %v12164_v5 }
 0x5f6   :  { %v6021_v28 = vadd.f32 %v12295_v3, %v5978_v55  ;;  %v6023_v30 = vadd.f32 %v12295_v3, %v5980_v33  ;;  %v6020_v44 = vadd.f32 %v12292_v29, %v5977_v0  ;;  %v6022_v22 = vadd.f32 %v12292_v29, %v5979_v42 }
 0x5f7   :  { %v6025_v49 = vadd.f32 %v12295_v3, %v5982_v53  ;;  %v6027_v62 = vadd.f32 %v12295_v3, %v5984_v2  ;;  %v6024_v47 = vadd.f32 %v12292_v29, %v5981_v50  ;;  %v6026_v6 = vadd.f32 %v12292_v29, %v5983_v46 }
 0x5f8   :  { %v6053_v34 = vmax.f32 %v6021_v28, 0.0  ;;  %v6055_v63 = vmax.f32 %v6023_v30, 0.0  ;;  %v6052_v27 = vmax.f32 %v6020_v44, 0.0  ;;  %v6054_v58 = vmax.f32 %v6022_v22, 0.0 }
 0x5f9   :  { %v6057_v23 = vmax.f32 %v6025_v49, 0.0  ;;  %v6059_v51 = vmax.f32 %v6027_v62, 0.0  ;;  %v6029_v36 = vadd.f32 %v12295_v3, %v5986_v1  ;;  %v6031_v48 = vadd.f32 %v12295_v3, %v5988_v18 }
 0x5fa   :  { %v6085_v59 = vpack.c.bf16 %v6055_v63, %v6053_v34  ;;  %v6084_v15 = vpack.c.bf16 %v6054_v58, %v6052_v27  ;;  %v6056_v56 = vmax.f32 %v6024_v47, 0.0  ;;  %v6058_v14 = vmax.f32 %v6026_v6, 0.0 }
 0x5fb   :  { %v6087_v43 = vpack.c.bf16 %v6059_v51, %v6057_v23  ;;  %v6061_v35 = vmax.f32 %v6029_v36, 0.0  ;;  %v6063_v7 = vmax.f32 %v6031_v48, 0.0  ;;  %v6008_v55 = vmul.f32 %v12277_v21, %v12266_v24 }
 0x5fc   :  { %6267 = vmatprep.mubr.bf16.mxu0 %v6085_v59  ;;  %v6086_v33 = vpack.c.bf16 %v6058_v14, %v6056_v56  ;;  %v6028_v0 = vadd.f32 %v12292_v29, %v5985_v60  ;;  %v6030_v42 = vadd.f32 %v12292_v29, %v5987_v52  ;;  %v6033_v40 = vadd.f32 %v12295_v3, %v5990_v10 }
 0x5fd   :  { %6268 = vmatmul.mubr.bf16.vlgmr.msra.gmra.mxu0 %v6084_v15  ;;  %v6089_v53 = vpack.c.bf16 %v6063_v7, %v6061_v35  ;;  %v6035_v2 = vadd.f32 %v12295_v3, %v5992_v4  ;;  %v6049_v16 = vadd.f32 %v12295_v3, %v6006_v19  ;;  %v6051_v5 = vadd.f32 %v12295_v3, %v6008_v55 }
 0x5fe   :  { %6275 = vmatprep.mubr.bf16.mxu0 %v6087_v43  ;;  %v6060_v24 = vmax.f32 %v6028_v0, 0.0  ;;  %v6062_v28 = vmax.f32 %v6030_v42, 0.0  ;;  %v6048_v30 = vadd.f32 %v12292_v29, %v6005_v12  ;;  %v6050_v44 = vadd.f32 %v12292_v29, %v6007_v41 }
 0x5ff   :  { %v6065_v22 = vmax.f32 %v6033_v40, 0.0  ;;  %v6067_v49 = vmax.f32 %v6035_v2, 0.0  ;;  %v6081_v62 = vmax.f32 %v6049_v16, 0.0  ;;  %v6083_v34 = vmax.f32 %v6051_v5, 0.0 }
 0x600   :  { %v5989_v63 = vmul.f32 %v12274_v31, %v12144_v25  ;;  %v6080_v27 = vmax.f32 %v6048_v30, 0.0  ;;  %v6082_v58 = vmax.f32 %v6050_v44, 0.0  ;;  %v5994_v23 = vmul.f32 %v12277_v21, %v12176_v38 }
 0x601   :  { %v5996_v12 = vmul.f32 %v12277_v21, %v12187_v9  ;;  %v6099_v51 = vpack.c.bf16 %v6083_v34, %v6081_v62  ;;  %v6088_v41 = vpack.c.bf16 %v6062_v28, %v6060_v24  ;;  %v6034_v46 = vadd.f32 %v12292_v29, %v5991_v13  ;;  %v8352_v34 = vld [vmem:[%s12746_s17 + $0x8] sm:$0xff]  }
 0x602   :  { %v6032_v50 = vadd.f32 %v12292_v29, %v5989_v63  ;;  %v6098_v59 = vpack.c.bf16 %v6082_v58, %v6080_v27  ;;  %v6091_v15 = vpack.c.bf16 %v6067_v49, %v6065_v22  ;;  %v6037_v25 = vadd.f32 %v12295_v3, %v5994_v23  ;;  %v8350_v22 = vld [vmem:[%s12746_s17 + $0x18] sm:$0xff]   ;;  %v8351_v49 = vld [vmem:[%s12746_s17 + $0x10] sm:$0xff]   ;;  %v8353_v27 = vld [vmem:[%s12746_s17] sm:$0xff]  }
 0x603   :  { %v6039_v17 = vadd.f32 %v12295_v3, %v5996_v12  ;;  %v6066_v18 = vmax.f32 %v6034_v46, 0.0  ;;  %v5993_v9 = vmul.f32 %v12274_v31, %v12166_v61  ;;  %v5995_v6 = vmul.f32 %v12274_v31, %v12179_v54 }
 0x604   :  { %v6064_v1 = vmax.f32 %v6032_v50, 0.0  ;;  %v6069_v38 = vmax.f32 %v6037_v25, 0.0  ;;  %v5998_v43 = vmul.f32 %v12277_v21, %v12200_v37  ;;  %v6000_v36 = vmul.f32 %v12277_v21, %v12209_v11 }
 0x605   :  { %6276 = vmatmul.mubr.bf16.gmra.mxu0 %v6086_v33  ;;  %v6071_v47 = vmax.f32 %v6039_v17, 0.0  ;;  %v6036_v56 = vadd.f32 %v12292_v29, %v5993_v9  ;;  %v6038_v14 = vadd.f32 %v12292_v29, %v5995_v6  ;;  %v5997_v37 = vmul.f32 %v12274_v31, %v12191_v20  ;;  %v12409_v6 = vld [vmem:[#allocation18] ss:$0 sm:$0xff] }
 0x606   :  { %6283 = vmatprep.mubr.bf16.mxu0 %v6089_v53  ;;  %v6090_v48 = vpack.c.bf16 %v6066_v18, %v6064_v1  ;;  %v6041_v7 = vadd.f32 %v12295_v3, %v5998_v43  ;;  %v6043_v60 = vadd.f32 %v12295_v3, %v6000_v36  ;;  %v5999_v11 = vmul.f32 %v12274_v31, %v12202_v26 }
 0x607   :  { %v6093_v35 = vpack.c.bf16 %v6071_v47, %v6069_v38  ;;  %v6068_v61 = vmax.f32 %v6036_v56, 0.0  ;;  %v6070_v54 = vmax.f32 %v6038_v14, 0.0  ;;  %v6002_v4 = vmul.f32 %v12277_v21, %v12221_v8 }
 0x608   :  { %v6073_v52 = vmax.f32 %v6041_v7, 0.0  ;;  %v6075_v10 = vmax.f32 %v6043_v60, 0.0  ;;  %v6004_v55 = vmul.f32 %v12277_v21, %v12234_v45  ;;  %v6040_v0 = vadd.f32 %v12292_v29, %v5997_v37 }
 0x609   :  { %v6092_v33 = vpack.c.bf16 %v6070_v54, %v6068_v61  ;;  %v6042_v42 = vadd.f32 %v12292_v29, %v5999_v11  ;;  %v6045_v40 = vadd.f32 %v12295_v3, %v6002_v4  ;;  %v6001_v8 = vmul.f32 %v12274_v31, %v12211_v32  ;;  %v8346_v32 = vld [vmem:[%s12746_s17 + $0x38] sm:$0xff]  }
 0x60a   :  { %v6095_v53 = vpack.c.bf16 %v6075_v10, %v6073_v52  ;;  %v6047_v2 = vadd.f32 %v12295_v3, %v6004_v55  ;;  %v6072_v20 = vmax.f32 %v6040_v0, 0.0  ;;  %v6003_v45 = vmul.f32 %v12274_v31, %v12225_v39  ;;  %7589 = vmatprep.subr.bf16.mxu1 %v8346_v32  ;;  %v8347_v39 = vld [vmem:[%s12746_s17 + $0x30] sm:$0xff]   ;;  %v8348_v31 = vld [vmem:[%s12746_s17 + $0x28] sm:$0xff]  }
 0x60b   :  { %v6074_v26 = vmax.f32 %v6042_v42, 0.0  ;;  %v6077_v19 = vmax.f32 %v6045_v40, 0.0  ;;  %v6044_v5 = vadd.f32 %v12292_v29, %v6001_v8  ;;  %7590 = vmatpush3.bf16.msra.mxu1 %v8346_v32 }
 0x60c   :  { %v6079_v16 = vmax.f32 %v6047_v2, 0.0  ;;  %v6046_v24 = vadd.f32 %v12292_v29, %v6003_v45  ;;  %7591 = vmatprep.subr.bf16.mxu1 %v8347_v39  ;;  %v8349_v29 = vld [vmem:[%s12746_s17 + $0x20] sm:$0xff]  }
 0x60d   :  { %6284 = vmatmul.mubr.bf16.gmra.mxu0 %v6088_v41  ;;  %v6094_v21 = vpack.c.bf16 %v6074_v26, %v6072_v20  ;;  %v6076_v3 = vmax.f32 %v6044_v5, 0.0 }
 0x60e   :  { %6291 = vmatprep.mubr.bf16.mxu0 %v6091_v15  ;;  %v6097_v28 = vpack.c.bf16 %v6079_v16, %v6077_v19  ;;  %v6078_v30 = vmax.f32 %v6046_v24, 0.0 }
 0x60f   :  { %7592 = vmatpush3.bf16.msra.mxu1 %v8347_v39 }
 0x610   :  { %v6096_v44 = vpack.c.bf16 %v6078_v30, %v6076_v3  ;;  %7593 = vmatprep.subr.bf16.mxu1 %v8348_v31 }
 0x613   :  { %7594 = vmatpush3.bf16.msra.mxu1 %v8348_v31 }
 0x614   :  { %7595 = vmatprep.subr.bf16.mxu1 %v8349_v29 }
 0x615   :  { %6292 = vmatmul.mubr.bf16.gmra.mxu0 %v6090_v48 }
 0x616   :  { %6299 = vmatprep.mubr.bf16.mxu0 %v6093_v35 }
 0x617   :  { %7596 = vmatpush3.bf16.msra.mxu1 %v8349_v29 }
 0x618   :  { %7597 = vmatprep.subr.bf16.mxu1 %v8350_v22 }
 0x61b   :  { %7598 = vmatpush3.bf16.msra.mxu1 %v8350_v22 }
 0x61c   :  { %7599 = vmatprep.subr.bf16.mxu1 %v8351_v49 }
 0x61d   :  { %6300 = vmatmul.mubr.bf16.gmra.mxu0 %v6092_v33 }
 0x61e   :  { %6307 = vmatprep.mubr.bf16.mxu0 %v6095_v53 }
 0x61f   :  { %7600 = vmatpush3.bf16.msra.mxu1 %v8351_v49 }
 0x620   :  { %7601 = vmatprep.subr.bf16.mxu1 %v8352_v34 }
 0x623   :  { %7602 = vmatpush3.bf16.msra.mxu1 %v8352_v34 }
 0x624   :  { %7603 = vmatprep.subr.bf16.mxu1 %v8353_v27 }
 0x625   :  { %6308 = vmatmul.mubr.bf16.gmra.mxu0 %v6094_v21 }
 0x626   :  { %6315 = vmatprep.mubr.bf16.mxu0 %v6097_v28 }
 0x627   :  { %7604 = vmatpush3.bf16.msra.mxu1 %v8353_v27 }
 0x62d   :  { %6316 = vmatmul.mubr.bf16.gmra.mxu0 %v6096_v44 }
 0x62e   :  { %6323 = vmatprep.mubr.bf16.mxu0 %v6099_v51 }
 0x635   :  { %6324 = vmatmul.mubr.bf16.gmra.mxu0 %v6098_v59 }
 0x6bd   :  { %v7513_v62 = vpop.f32.mrf.mxu0 }
 0x6bf   :  { %v7514_v63 = vpop.f32.mrf.mxu0 }
 0x6c0   :  { %v7515_v38 = vadd.f32 %v7514_v63, %v7513_v62 }
 0x6c1   :  { %v7516_v13 = vpop.f32.mrf.mxu0 }
 0x6c2   :  { %v12415_v56 = vadd.f32 %v7515_v38, %v12409_v6 }
 0x6c3   :  { %v7517_v58 = vpop.f32.mrf.mxu0 }
 0x6c4   :  { %v7518_v1 = vadd.f32 %v7517_v58, %v7516_v13  ;;  %v6353_v10 = vmul.f32 %v12415_v56, %v12415_v56 }
 0x6c5   :  { %v7519_v23 = vpop.f32.mrf.mxu0 }
 0x6c6   :  { %v12412_v43 = vadd.f32 %v7518_v1, %v12409_v6 }
 0x6c7   :  { %v7520_v12 = vpop.f32.mrf.mxu0 }
 0x6c8   :  { %v7521_v47 = vadd.f32 %v7520_v12, %v7519_v23  ;;  %v6354_v60 = vmul.f32 %v12412_v43, %v12412_v43  ;;  %v6332_v33 = vadd.f32 %v12412_v43, %v12415_v56 }
 0x6c9   :  { %v7522_v51 = vpop.f32.mrf.mxu0 }
 0x6ca   :  { %v12418_v14 = vadd.f32 %v7521_v47, %v12409_v6  ;;  %v6369_v0 = vadd.f32 %v6354_v60, %v6353_v10 }
 0x6cb   :  { %v7523_v41 = vpop.f32.mrf.mxu0 }
 0x6cc   :  { %v7524_v36 = vadd.f32 %v7523_v41, %v7522_v51  ;;  %v6355_v37 = vmul.f32 %v12418_v14, %v12418_v14  ;;  %v6333_v20 = vadd.f32 %v6332_v33, %v12418_v14 }
 0x6cd   :  { %v7525_v50 = vpop.f32.mrf.mxu0 }
 0x6ce   :  { %v12423_v61 = vadd.f32 %v7524_v36, %v12409_v6  ;;  %v6370_v26 = vadd.f32 %v6369_v0, %v6355_v37 }
 0x6cf   :  { %v7526_v46 = vpop.f32.mrf.mxu0 }
 0x6d0   :  { %v7527_v35 = vadd.f32 %v7526_v46, %v7525_v50  ;;  %v6356_v42 = vmul.f32 %v12423_v61, %v12423_v61  ;;  %v6334_v21 = vadd.f32 %v6333_v20, %v12423_v61 }
 0x6d1   :  { %v7528_v59 = vpop.f32.mrf.mxu0 }
 0x6d2   :  { %v12430_v11 = vadd.f32 %v7527_v35, %v12409_v6  ;;  %v6371_v5 = vadd.f32 %v6370_v26, %v6356_v42 }
 0x6d3   :  { %v7529_v15 = vpop.f32.mrf.mxu0 }
 0x6d4   :  { %v7530_v54 = vadd.f32 %v7529_v15, %v7528_v59  ;;  %v6357_v19 = vmul.f32 %v12430_v11, %v12430_v11  ;;  %v6335_v30 = vadd.f32 %v6334_v21, %v12430_v11 }
 0x6d5   :  { %v7531_v25 = vpop.f32.mrf.mxu0 }
 0x6d6   :  { %v12437_v53 = vadd.f32 %v7530_v54, %v12409_v6  ;;  %v6372_v32 = vadd.f32 %v6371_v5, %v6357_v19 }
 0x6d7   :  { %v7532_v17 = vpop.f32.mrf.mxu0 }
 0x6d8   :  { %v7533_v4 = vadd.f32 %v7532_v17, %v7531_v25  ;;  %v6358_v24 = vmul.f32 %v12437_v53, %v12437_v53  ;;  %v6336_v22 = vadd.f32 %v6335_v30, %v12437_v53 }
 0x6d9   :  { %v7534_v18 = vpop.f32.mrf.mxu0 }
 0x6da   :  { %v12443_v16 = vadd.f32 %v7533_v4, %v12409_v6  ;;  %v6373_v62 = vadd.f32 %v6372_v32, %v6358_v24 }
 0x6db   :  { %v7535_v9 = vpop.f32.mrf.mxu0 }
 0x6dc   :  { %v7536_v40 = vadd.f32 %v7535_v9, %v7534_v18  ;;  %v6359_v39 = vmul.f32 %v12443_v16, %v12443_v16  ;;  %v6337_v13 = vadd.f32 %v6336_v22, %v12443_v16 }
 0x6dd   :  { %v7537_v48 = vpop.f32.mrf.mxu0 }
 0x6de   :  { %v12449_v28 = vadd.f32 %v7536_v40, %v12409_v6  ;;  %v6374_v23 = vadd.f32 %v6373_v62, %v6359_v39 }
 0x6df   :  { %v7538_v7 = vpop.f32.mrf.mxu0 }
 0x6e0   :  { %v7539_v8 = vadd.f32 %v7538_v7, %v7537_v48  ;;  %v6360_v34 = vmul.f32 %v12449_v28, %v12449_v28  ;;  %v6338_v41 = vadd.f32 %v6337_v13, %v12449_v28 }
 0x6e1   :  { %v7540_v52 = vpop.f32.mrf.mxu0 }
 0x6e2   :  { %v12455_v31 = vadd.f32 %v7539_v8, %v12409_v6  ;;  %v6375_v59 = vadd.f32 %v6374_v23, %v6360_v34 }
 0x6e3   :  { %v7541_v55 = vpop.f32.mrf.mxu0 }
 0x6e4   :  { %v7542_v44 = vadd.f32 %v7541_v55, %v7540_v52  ;;  %v6361_v12 = vmul.f32 %v12455_v31, %v12455_v31  ;;  %v6339_v25 = vadd.f32 %v6338_v41, %v12455_v31 }
 0x6e5   :  { %v7543_v2 = vpop.f32.mrf.mxu0 }
 0x6e6   :  { %v12462_v27 = vadd.f32 %v7542_v44, %v12409_v6  ;;  %v6376_v18 = vadd.f32 %v6375_v59, %v6361_v12 }
 0x6e7   :  { %v7544_v45 = vpop.f32.mrf.mxu0 }
 0x6e8   :  { %v7545_v49 = vadd.f32 %v7544_v45, %v7543_v2  ;;  %v6362_v17 = vmul.f32 %v12462_v27, %v12462_v27  ;;  %v6340_v47 = vadd.f32 %v6339_v25, %v12462_v27 }
 0x6e9   :  { %v7546_v3 = vpop.f32.mrf.mxu0 }
 0x6ea   :  { %v12468_v50 = vadd.f32 %v7545_v49, %v12409_v6  ;;  %v6377_v7 = vadd.f32 %v6376_v18, %v6362_v17  ;;  %v6395_v18 = vld [vmem:[#allocation19] sm:$0x1] }
 0x6eb   :  { %v7547_v29 = vpop.f32.mrf.mxu0 }
 0x6ec   :  { %v7548_v58 = vadd.f32 %v7547_v29, %v7546_v3  ;;  %v6363_v9 = vmul.f32 %v12468_v50, %v12468_v50  ;;  %v6341_v60 = vadd.f32 %v6340_v47, %v12468_v50 }
 0x6ed   :  { %v7549_v63 = vpop.f32.mrf.mxu0 }
 0x6ee   :  { %v12474_v1 = vadd.f32 %v7548_v58, %v12409_v6  ;;  %v6378_v37 = vadd.f32 %v6377_v7, %v6363_v9  ;;  %v6399_v9 = vld [vmem:[#allocation21] sm:$0x1] }
 0x6ef   :  { %v7550_v51 = vpop.f32.mrf.mxu0 }
 0x6f0   :  { %v7551_v46 = vadd.f32 %v7550_v51, %v7549_v63  ;;  %v6364_v54 = vmul.f32 %v12474_v1, %v12474_v1  ;;  %v6342_v4 = vadd.f32 %v6341_v60, %v12474_v1 }
 0x6f1   :  { %v7552_v15 = vpop.f32.mrf.mxu0 }
 0x6f2   :  { %v12480_v36 = vadd.f32 %v7551_v46, %v12409_v6  ;;  %v6379_v42 = vadd.f32 %v6378_v37, %v6364_v54 }
 0x6f3   :  { %v7553_v38 = vpop.f32.mrf.mxu0 }
 0x6f4   :  { %v7554_v48 = vadd.f32 %v7553_v38, %v7552_v15  ;;  %v6365_v55 = vmul.f32 %v12480_v36, %v12480_v36  ;;  %v6343_v40 = vadd.f32 %v6342_v4, %v12480_v36 }
 0x6f5   :  { %v7555_v35 = vpop.f32.mrf.mxu0 }
 0x6f6   :  { %v12486_v52 = vadd.f32 %v7554_v48, %v12409_v6  ;;  %v6380_v19 = vadd.f32 %v6379_v42, %v6365_v55 }
 0x6f7   :  { %v7556_v10 = vpop.f32.mrf.mxu0 }
 0x6f8   :  { %v7557_v33 = vadd.f32 %v7556_v10, %v7555_v35  ;;  %v6366_v2 = vmul.f32 %v12486_v52, %v12486_v52  ;;  %v6344_v8 = vadd.f32 %v6343_v40, %v12486_v52 }
 0x6f9   :  { %v7558_v0 = vpop.f32.mrf.mxu0 }
 0x6fa   :  { %v12495_v20 = vadd.f32 %v7557_v33, %v12409_v6  ;;  %v6381_v5 = vadd.f32 %v6380_v19, %v6366_v2 }
 0x6fb   :  { %v7559_v26 = vpop.f32.mrf.mxu0 }
 0x6fc   :  { %v6367_v45 = vmul.f32 %v12495_v20, %v12495_v20  ;;  %v7560_v21 = vadd.f32 %v7559_v26, %v7558_v0  ;;  %v6345_v24 = vadd.f32 %v6344_v8, %v12495_v20 }
 0x6fe   :  { %v6329_v3 = vadd.f32 %v7560_v21, %v12409_v6  ;;  %v6382_v30 = vadd.f32 %v6381_v5, %v6367_v45 }
 0x700   :  { %v6346_v44 = vadd.f32 %v6345_v24, %v6329_v3  ;;  %v6368_v32 = vmul.f32 %v6329_v3, %v6329_v3 }
 0x702   :  { %v6347_v39 = vrot.slane %v6346_v44, 4  ;;  %v6383_v29 = vadd.f32 %v6382_v30, %v6368_v32 }
 0x704   :  { %v6348_v22 = vadd.f32 %v6347_v39, %v6346_v44  ;;  %v6384_v49 = vrot.slane %v6383_v29, 4 }
 0x706   :  { %v6349_v62 = vrot.slane %v6348_v22, 2  ;;  %v6385_v34 = vadd.f32 %v6384_v49, %v6383_v29 }
 0x708   :  { %v6350_v63 = vadd.f32 %v6349_v62, %v6348_v22  ;;  %v6386_v13 = vrot.slane %v6385_v34, 2 }
 0x70a   :  { %v6351_v58 = vrot.slane %v6350_v63, 1  ;;  %v6387_v23 = vadd.f32 %v6386_v13, %v6385_v34 }
 0x70c   :  { %v6352_v12 = vadd.f32 %v6351_v58, %v6350_v63  ;;  %v6388_v51 = vrot.slane %v6387_v23, 1 }
 0x70e   :  { %v6389_v41 = vadd.f32 %v6388_v51, %v6387_v23  ;;  %v6390_v46 = vmul.f32 0.0078125, %v6352_v12 }
 0x710   :  { %v6391_v59 = vmul.f32 0.0078125, %v6389_v41  ;;  %v6392_v15 = vmul.f32 %v6390_v46, %v6390_v46 }
 0x712   :  { %v6393_v6 = vsub.f32 %v6391_v59, %v6392_v15 }
 0x714   :  { %v6394_v25 = vmax.f32 %v6393_v6, 0.0 }
 0x716   :  { %v6396_v17 = vadd.f32 1e-05, %v6394_v25 }
 0x718   :  { %8378 = vrsqrt.f32 %v6396_v17 }
 0x725   :  { %v8379_v38 = vpop.eup %8378 }
 0x726   :  { %v6398_v47 = vmul.f32 %v8379_v38, %v6395_v18 }
 0x728   :  { %v6400_v48 = vmul.f32 %v6398_v47, %v6390_v46  ;;  %v6406_v35 = vrot.slane %v6398_v47, %v13020_v57 }
 0x72a   :  { %v6401_v7 = vsub.f32 %v6399_v9, %v6400_v48  ;;  %v6408_v54 = vmul.f32 %v6406_v35, %v12415_v56  ;;  %v6409_v10 = vmul.f32 %v6406_v35, %v12412_v43  ;;  %v6410_v37 = vmul.f32 %v6406_v35, %v12418_v14  ;;  %v8356_v9 = vld [vmem:[%s12750_s21 + $0x8] sm:$0xff]   ;;  %v8357_v48 = vld [vmem:[%s12750_s21] sm:$0xff]  }
 0x72b   :  { %v6411_v4 = vmul.f32 %v6406_v35, %v12423_v61  ;;  %v6412_v55 = vmul.f32 %v6406_v35, %v12430_v11  ;;  %v6413_v33 = vmul.f32 %v6406_v35, %v12437_v53  ;;  %v6423_v2 = vmul.f32 %v6406_v35, %v6329_v3 }
 0x72c   :  { %v6428_v60 = vrot.slane %v6401_v7, %v13020_v57  ;;  %v6414_v43 = vmul.f32 %v6406_v35, %v12443_v16  ;;  %v6415_v61 = vmul.f32 %v6406_v35, %v12449_v28  ;;  %v6416_v53 = vmul.f32 %v6406_v35, %v12455_v31  ;;  %v12531_v7 = vld [vmem:[#allocation22] ss:$0 sm:$0xff] }
 0x72d   :  { %v6417_v44 = vmul.f32 %v6406_v35, %v12462_v27  ;;  %v6420_v29 = vmul.f32 %v6406_v35, %v12480_v36  ;;  %v6421_v62 = vmul.f32 %v6406_v35, %v12486_v52  ;;  %v6422_v28 = vmul.f32 %v6406_v35, %v12495_v20 }
 0x72e   :  { %v6430_v0 = vadd.f32 %v6428_v60, %v6408_v54  ;;  %v6431_v42 = vadd.f32 %v6428_v60, %v6409_v10  ;;  %v6432_v40 = vadd.f32 %v6428_v60, %v6410_v37  ;;  %v6433_v26 = vadd.f32 %v6428_v60, %v6411_v4 }
 0x72f   :  { %v6434_v19 = vadd.f32 %v6428_v60, %v6412_v55  ;;  %v6435_v8 = vadd.f32 %v6428_v60, %v6413_v33  ;;  %v6436_v30 = vadd.f32 %v6428_v60, %v6414_v43  ;;  %v6445_v3 = vadd.f32 %v6428_v60, %v6423_v2 }
 0x730   :  { %v6446_v45 = vmax.f32 %v6430_v0, 0.0  ;;  %v6447_v21 = vmax.f32 %v6431_v42, 0.0  ;;  %v6448_v56 = vmax.f32 %v6432_v40, 0.0  ;;  %v6449_v5 = vmax.f32 %v6433_v26, 0.0 }
 0x731   :  { %v6450_v14 = vmax.f32 %v6434_v19, 0.0  ;;  %v6451_v24 = vmax.f32 %v6435_v8, 0.0  ;;  %v6437_v39 = vadd.f32 %v6428_v60, %v6415_v61  ;;  %v6438_v49 = vadd.f32 %v6428_v60, %v6416_v53 }
 0x732   :  { %v6462_v11 = vpack.c.bf16 %v6447_v21, %v6446_v45  ;;  %v6463_v32 = vpack.c.bf16 %v6449_v5, %v6448_v56  ;;  %v6439_v16 = vadd.f32 %v6428_v60, %v6417_v44  ;;  %v6442_v34 = vadd.f32 %v6428_v60, %v6420_v29 }
 0x733   :  { %v6464_v22 = vpack.c.bf16 %v6451_v24, %v6450_v14  ;;  %v6452_v63 = vmax.f32 %v6436_v30, 0.0  ;;  %v6443_v31 = vadd.f32 %v6428_v60, %v6421_v62  ;;  %v6453_v13 = vmax.f32 %v6437_v39, 0.0 }
 0x734   :  { %7605 = vmatprep.mubr.bf16.mxu1 %v6462_v11  ;;  %v6458_v27 = vmax.f32 %v6442_v34, 0.0  ;;  %v6444_v58 = vadd.f32 %v6428_v60, %v6422_v28  ;;  %v6461_v23 = vmax.f32 %v6445_v3, 0.0  ;;  %v6454_v12 = vmax.f32 %v6438_v49, 0.0 }
 0x735   :  { %7606 = vmatmul.mubr.bf16.vlgmr.msra.gmra.mxu1 %v6463_v32  ;;  %v6455_v51 = vmax.f32 %v6439_v16, 0.0  ;;  %v6459_v36 = vmax.f32 %v6443_v31, 0.0  ;;  %v6418_v41 = vmul.f32 %v6406_v35, %v12468_v50  ;;  %v6419_v46 = vmul.f32 %v6406_v35, %v12474_v1  ;;  %v8354_v50 = vld [vmem:[%s12750_s21 + $0x18] sm:$0xff]   ;;  %v8355_v1 = vld [vmem:[%s12750_s21 + $0x10] sm:$0xff]  }
 0x736   :  { %7609 = vmatprep.mubr.bf16.mxu1 %v6464_v22  ;;  %v6460_v59 = vmax.f32 %v6444_v58, 0.0  ;;  %v6465_v15 = vpack.c.bf16 %v6453_v13, %v6452_v63  ;;  %7621 = vmatprep.subr.bf16.mxu1 %v8354_v50 }
 0x737   :  { %v6468_v52 = vpack.c.bf16 %v6459_v36, %v6458_v27  ;;  %v6440_v6 = vadd.f32 %v6428_v60, %v6418_v41  ;;  %v6441_v25 = vadd.f32 %v6428_v60, %v6419_v46  ;;  %v6466_v17 = vpack.c.bf16 %v6455_v51, %v6454_v12  ;;  %7622 = vmatpush3.bf16.msra.mxu1 %v8354_v50 }
 0x738   :  { %v6469_v20 = vpack.c.bf16 %v6461_v23, %v6460_v59  ;;  %7623 = vmatprep.subr.bf16.mxu1 %v8355_v1 }
 0x739   :  { %v6456_v18 = vmax.f32 %v6440_v6, 0.0  ;;  %v6457_v38 = vmax.f32 %v6441_v25, 0.0 }
 0x73b   :  { %v6467_v47 = vpack.c.bf16 %v6457_v38, %v6456_v18  ;;  %7624 = vmatpush3.bf16.msra.mxu1 %v8355_v1 }
 0x73c   :  { %7625 = vmatprep.subr.bf16.mxu1 %v8356_v9 }
 0x73d   :  { %7610 = vmatmul.mubr.bf16.gmra.mxu1 %v6465_v15 }
 0x73e   :  { %7613 = vmatprep.mubr.bf16.mxu1 %v6466_v17 }
 0x73f   :  { %7626 = vmatpush3.bf16.msra.mxu1 %v8356_v9 }
 0x740   :  { %7627 = vmatprep.subr.bf16.mxu1 %v8357_v48 }
 0x743   :  { %7628 = vmatpush3.bf16.msra.mxu1 %v8357_v48 }
 0x745   :  { %7614 = vmatmul.mubr.bf16.gmra.mxu1 %v6467_v47 }
 0x746   :  { %7617 = vmatprep.mubr.bf16.mxu1 %v6468_v52 }
 0x74d   :  { %7618 = vmatmul.mubr.bf16.gmra.mxu1 %v6469_v20 }
 0x7f5   :  { %v7607_v35 = vpop.f32.mrf.mxu1 }
 0x7f6   :  { %v12537_v37 = vadd.f32 %v7607_v35, %v12531_v7 }
 0x7f7   :  { %v6575_v60 = vpop.f32.mrf.mxu1 }
 0x7f8   :  { %v12534_v54 = vadd.f32 %v12531_v7, %v6575_v60  ;;  %v6678_v40 = vmul.f32 %v12537_v37, %v12537_v37  ;;  %v6642_v8 = vsel %vm6638_vm1, %v12537_v37, 0.0 }
 0x7f9   :  { %v7608_v10 = vpop.f32.mrf.mxu1 }
 0x7fa   :  { %v6676_v55 = vmul.f32 %v12534_v54, %v12534_v54  ;;  %v12542_v33 = vadd.f32 %v7608_v10, %v12531_v7  ;;  %v6639_v2 = vsel %vm6638_vm1, %v12534_v54, 0.0  ;;  %v6695_v30 = vsel %vm6638_vm1, %v6678_v40, 0.0 }
 0x7fb   :  { %v6578_v4 = vpop.f32.mrf.mxu1 }
 0x7fc   :  { %v12545_v0 = vadd.f32 %v12531_v7, %v6578_v4  ;;  %v6692_v56 = vsel %vm6638_vm1, %v6676_v55, 0.0  ;;  %v6679_v43 = vmul.f32 %v12542_v33, %v12542_v33  ;;  %v6644_v53 = vsel %vm6638_vm1, %v12542_v33, 0.0 }
 0x7fd   :  { %v7611_v42 = vpop.f32.mrf.mxu1 }
 0x7fe   :  { %v6640_v26 = vsel %vm6638_vm1, %v12545_v0, 0.0  ;;  %v6677_v19 = vmul.f32 %v12545_v0, %v12545_v0  ;;  %v12568_v44 = vadd.f32 %v7611_v42, %v12531_v7  ;;  %v6697_v22 = vsel %vm6638_vm1, %v6679_v43, 0.0 }
 0x7ff   :  { %v6641_v45 = vadd.f32 %v6640_v26, %v6639_v2  ;;  %v6591_v21 = vpop.f32.mrf.mxu1 }
 0x800   :  { %v6693_v5 = vsel %vm6638_vm1, %v6677_v19, 0.0  ;;  %v12562_v14 = vadd.f32 %v12531_v7, %v6591_v21  ;;  %v6682_v31 = vmul.f32 %v12568_v44, %v12568_v44  ;;  %v6650_v36 = vsel %vm6638_vm1, %v12568_v44, 0.0 }
 0x801   :  { %v6643_v24 = vadd.f32 %v6642_v8, %v6641_v45  ;;  %v6694_v61 = vadd.f32 %v6693_v5, %v6692_v56  ;;  %v7612_v11 = vpop.f32.mrf.mxu1 }
 0x802   :  { %v6680_v3 = vmul.f32 %v12562_v14, %v12562_v14  ;;  %v6646_v49 = vsel %vm6638_vm1, %v12562_v14, 0.0  ;;  %v12576_v16 = vadd.f32 %v7612_v11, %v12531_v7  ;;  %v6703_v25 = vsel %vm6638_vm1, %v6682_v31, 0.0 }
 0x803   :  { %v6696_v32 = vadd.f32 %v6695_v30, %v6694_v61  ;;  %v6645_v39 = vadd.f32 %v6644_v53, %v6643_v24  ;;  %v6594_v29 = vpop.f32.mrf.mxu1 }
 0x804   :  { %v12579_v62 = vadd.f32 %v12531_v7, %v6594_v29  ;;  %v6699_v13 = vsel %vm6638_vm1, %v6680_v3, 0.0  ;;  %v6683_v41 = vmul.f32 %v12576_v16, %v12576_v16  ;;  %v6652_v20 = vsel %vm6638_vm1, %v12576_v16, 0.0 }
 0x805   :  { %v6647_v34 = vadd.f32 %v6646_v49, %v6645_v39  ;;  %v6698_v28 = vadd.f32 %v6697_v22, %v6696_v32  ;;  %v7615_v63 = vpop.f32.mrf.mxu1 }
 0x806   :  { %v6648_v27 = vsel %vm6638_vm1, %v12579_v62, 0.0  ;;  %v6681_v58 = vmul.f32 %v12579_v62, %v12579_v62  ;;  %v12600_v17 = vadd.f32 %v7615_v63, %v12531_v7  ;;  %v6705_v1 = vsel %vm6638_vm1, %v6683_v41, 0.0 }
 0x807   :  { %v6700_v23 = vadd.f32 %v6699_v13, %v6698_v28  ;;  %v6649_v12 = vadd.f32 %v6648_v27, %v6647_v34  ;;  %v6607_v51 = vpop.f32.mrf.mxu1 }
 0x808   :  { %v6701_v46 = vsel %vm6638_vm1, %v6681_v58, 0.0  ;;  %v12594_v59 = vadd.f32 %v12531_v7, %v6607_v51  ;;  %v6686_v55 = vmul.f32 %v12600_v17, %v12600_v17  ;;  %v6658_v45 = vsel %vm6638_vm1, %v12600_v17, 0.0 }
 0x809   :  { %v6651_v52 = vadd.f32 %v6650_v36, %v6649_v12  ;;  %v6702_v15 = vadd.f32 %v6701_v46, %v6700_v23  ;;  %v7616_v6 = vpop.f32.mrf.mxu1 }
 0x80a   :  { %v6684_v18 = vmul.f32 %v12594_v59, %v12594_v59  ;;  %v6654_v9 = vsel %vm6638_vm1, %v12594_v59, 0.0  ;;  %v12608_v48 = vadd.f32 %v7616_v6, %v12531_v7  ;;  %v6711_v11 = vsel %vm6638_vm1, %v6686_v55, 0.0 }
 0x80b   :  { %v6704_v38 = vadd.f32 %v6703_v25, %v6702_v15  ;;  %v6653_v47 = vadd.f32 %v6652_v20, %v6651_v52  ;;  %v6610_v50 = vpop.f32.mrf.mxu1 }
 0x80c   :  { %v12611_v35 = vadd.f32 %v12531_v7, %v6610_v50  ;;  %v6707_v42 = vsel %vm6638_vm1, %v6684_v18, 0.0  ;;  %v6687_v21 = vmul.f32 %v12608_v48, %v12608_v48  ;;  %v6660_v30 = vsel %vm6638_vm1, %v12608_v48, 0.0 }
 0x80d   :  { %v6655_v60 = vadd.f32 %v6654_v9, %v6653_v47  ;;  %v6706_v10 = vadd.f32 %v6705_v1, %v6704_v38  ;;  %v7619_v4 = vpop.f32.mrf.mxu1 }
 0x80e   :  { %v6656_v40 = vsel %vm6638_vm1, %v12611_v35, 0.0  ;;  %v6685_v2 = vmul.f32 %v12611_v35, %v12611_v35  ;;  %v12632_v53 = vadd.f32 %v7619_v4, %v12531_v7  ;;  %v6713_v22 = vsel %vm6638_vm1, %v6687_v21, 0.0 }
 0x80f   :  { %v6708_v26 = vadd.f32 %v6707_v42, %v6706_v10  ;;  %v6657_v19 = vadd.f32 %v6656_v40, %v6655_v60  ;;  %v6623_v8 = vpop.f32.mrf.mxu1 }
 0x810   :  { %v6709_v56 = vsel %vm6638_vm1, %v6685_v2, 0.0  ;;  %v12626_v43 = vadd.f32 %v12531_v7, %v6623_v8  ;;  %v6690_v13 = vmul.f32 %v12632_v53, %v12632_v53  ;;  %v6666_v36 = vsel %vm6638_vm1, %v12632_v53, 0.0 }
 0x811   :  { %v6659_v5 = vadd.f32 %v6658_v45, %v6657_v19  ;;  %v6710_v24 = vadd.f32 %v6709_v56, %v6708_v26  ;;  %v7620_v61 = vpop.f32.mrf.mxu1 }
 0x812   :  { %v6688_v3 = vmul.f32 %v12626_v43, %v12626_v43  ;;  %v6662_v49 = vsel %vm6638_vm1, %v12626_v43, 0.0  ;;  %v12640_v34 = vadd.f32 %v7620_v61, %v12531_v7  ;;  %v6719_v15 = vsel %vm6638_vm1, %v6690_v13, 0.0 }
 0x813   :  { %v6712_v32 = vadd.f32 %v6711_v11, %v6710_v24  ;;  %v6661_v39 = vadd.f32 %v6660_v30, %v6659_v5  ;;  %v6626_v29 = vpop.f32.mrf.mxu1  ;;  %v6734_v24 = vld [vmem:[#allocation24] sm:$0x1]  ;;  %v6738_v30 = vld [vmem:[#allocation25] sm:$0x1] }
 0x814   :  { %v6627_v28 = vadd.f32 %v12531_v7, %v6626_v29  ;;  %v6715_v27 = vsel %vm6638_vm1, %v6688_v3, 0.0  ;;  %v6691_v41 = vmul.f32 %v12640_v34, %v12640_v34  ;;  %v6668_v6 = vsel %vm6638_vm1, %v12640_v34, 0.0 }
 0x815   :  { %v6663_v63 = vadd.f32 %v6662_v49, %v6661_v39  ;;  %v6714_v31 = vadd.f32 %v6713_v22, %v6712_v32 }
 0x816   :  { %v6664_v58 = vsel %vm6638_vm1, %v6627_v28, 0.0  ;;  %v6689_v23 = vmul.f32 %v6627_v28, %v6627_v28  ;;  %v6721_v18 = vsel %vm6638_vm1, %v6691_v41, 0.0 }
 0x817   :  { %v6716_v12 = vadd.f32 %v6715_v27, %v6714_v31  ;;  %v6665_v51 = vadd.f32 %v6664_v58, %v6663_v63 }
 0x818   :  { %v6717_v7 = vsel %vm6638_vm1, %v6689_v23, 0.0 }
 0x819   :  { %v6667_v46 = vadd.f32 %v6666_v36, %v6665_v51  ;;  %v6718_v52 = vadd.f32 %v6717_v7, %v6716_v12 }
 0x81b   :  { %v6669_v25 = vadd.f32 %v6668_v6, %v6667_v46  ;;  %v6720_v20 = vadd.f32 %v6719_v15, %v6718_v52 }
 0x81d   :  { %v6670_v38 = vrot.slane %v6669_v25, 4  ;;  %v6722_v47 = vadd.f32 %v6721_v18, %v6720_v20 }
 0x81f   :  { %v6671_v50 = vadd.f32 %v6670_v38, %v6669_v25  ;;  %v6723_v1 = vrot.slane %v6722_v47, 4 }
 0x821   :  { %v6672_v9 = vrot.slane %v6671_v50, 2  ;;  %v6724_v60 = vadd.f32 %v6723_v1, %v6722_v47 }
 0x823   :  { %v6673_v10 = vadd.f32 %v6672_v9, %v6671_v50  ;;  %v6725_v4 = vrot.slane %v6724_v60, 2 }
 0x825   :  { %v6674_v55 = vrot.slane %v6673_v10, 1  ;;  %v6726_v42 = vadd.f32 %v6725_v4, %v6724_v60 }
 0x827   :  { %v6675_v40 = vadd.f32 %v6674_v55, %v6673_v10  ;;  %v6727_v2 = vrot.slane %v6726_v42, 1 }
 0x829   :  { %v6728_v26 = vadd.f32 %v6727_v2, %v6726_v42  ;;  %v6729_v19 = vmul.f32 0.0078125, %v6675_v40 }
 0x82b   :  { %v6730_v8 = vmul.f32 0.0078125, %v6728_v26  ;;  %v6731_v45 = vmul.f32 %v6729_v19, %v6729_v19 }
 0x82d   :  { %v6732_v21 = vsub.f32 %v6730_v8, %v6731_v45 }
 0x82f   :  { %v6733_v56 = vmax.f32 %v6732_v21, 0.0 }
 0x831   :  { %v6735_v5 = vadd.f32 1e-05, %v6733_v56 }
 0x833   :  { %8380 = vrsqrt.f32 %v6735_v5 }
 0x840   :  { %v8381_v61 = vpop.eup %8380 }
 0x841   :  { %v6737_v11 = vmul.f32 %v8381_v61, %v6734_v24 }
 0x843   :  { %v6739_v3 = vmul.f32 %v6737_v11, %v6729_v19  ;;  %v6745_v32 = vrot.slane %v6737_v11, %v13020_v57 }
 0x845   :  { %v6740_v39 = vsub.f32 %v6738_v30, %v6739_v3  ;;  %v6760_v29 = vmul.f32 %v6745_v32, %v6627_v28  ;;  %v6747_v22 = vmul.f32 %v6745_v32, %v12534_v54  ;;  %v6748_v49 = vmul.f32 %v6745_v32, %v12545_v0 }
 0x846   :  { %v6749_v63 = vmul.f32 %v6745_v32, %v12537_v37  ;;  %v6750_v31 = vmul.f32 %v6745_v32, %v12542_v33  ;;  %v6751_v27 = vmul.f32 %v6745_v32, %v12562_v14  ;;  %v6752_v58 = vmul.f32 %v6745_v32, %v12579_v62 }
 0x847   :  { %v6767_v13 = vrot.slane %v6740_v39, %v13020_v57  ;;  %v6753_v23 = vmul.f32 %v6745_v32, %v12568_v44  ;;  %v6754_v12 = vmul.f32 %v6745_v32, %v12576_v16  ;;  %v6755_v28 = vmul.f32 %v6745_v32, %v12594_v59 }
 0x848   :  { %v6756_v54 = vmul.f32 %v6745_v32, %v12611_v35  ;;  %v6757_v0 = vmul.f32 %v6745_v32, %v12600_v17  ;;  %v6758_v14 = vmul.f32 %v6745_v32, %v12608_v48  ;;  %v6759_v16 = vmul.f32 %v6745_v32, %v12626_v43 }
 0x849   :  { %v6782_v51 = vadd.f32 %v6767_v13, %v6760_v29  ;;  %v6769_v37 = vadd.f32 %v6767_v13, %v6747_v22  ;;  %v6770_v36 = vadd.f32 %v6767_v13, %v6748_v49  ;;  %v6771_v33 = vadd.f32 %v6767_v13, %v6749_v63 }
 0x84a   :  { %v6772_v41 = vadd.f32 %v6767_v13, %v6750_v31  ;;  %v6773_v57 = vadd.f32 %v6767_v13, %v6751_v27  ;;  %v6774_v7 = vadd.f32 %v6767_v13, %v6752_v58  ;;  %v6775_v35 = vadd.f32 %v6767_v13, %v6753_v23 }
 0x84b   :  { %v6785_v62 = vmax.f32 %v6769_v37, 0.0  ;;  %v6786_v46 = vmax.f32 %v6770_v36, 0.0  ;;  %v6787_v44 = vmax.f32 %v6771_v33, 0.0  ;;  %v6798_v6 = vmax.f32 %v6782_v51, 0.0 }
 0x84c   :  { %v6788_v52 = vmax.f32 %v6772_v41, 0.0  ;;  %v6789_v59 = vmax.f32 %v6773_v57, 0.0  ;;  %v6790_v15 = vmax.f32 %v6774_v7, 0.0  ;;  %v6777_v25 = vadd.f32 %v6767_v13, %v6755_v28 }
 0x84d   :  { %v6801_v17 = vpack.c.bf16 %v6786_v46, %v6785_v62  ;;  %v6778_v20 = vadd.f32 %v6767_v13, %v6756_v54  ;;  %v6776_v47 = vadd.f32 %v6767_v13, %v6754_v12  ;;  %v6779_v50 = vadd.f32 %v6767_v13, %v6757_v0 }
 0x84e   :  { %v6802_v18 = vpack.c.bf16 %v6788_v52, %v6787_v44  ;;  %v6803_v38 = vpack.c.bf16 %v6790_v15, %v6789_v59  ;;  %v6793_v48 = vmax.f32 %v6777_v25, 0.0  ;;  %v6780_v9 = vadd.f32 %v6767_v13, %v6758_v14 }
 0x84f   :  { %7629 = vmatprep.mubr.msk.bf16.mxu1 %vm6638_vm1, %v6801_v17  ;;  %v6794_v1 = vmax.f32 %v6778_v20, 0.0  ;;  %v6781_v60 = vadd.f32 %v6767_v13, %v6759_v16  ;;  %v6795_v43 = vmax.f32 %v6779_v50, 0.0  ;;  %v6761_v10 = vmul.f32 %v6745_v32, %v12632_v53  ;;  %v7484_v53 = vld [vmem:[#allocation27] ss:$0 sm:$0xff] }
 0x850   :  { %7630 = vmatmul.mubr.msk.bf16.vlgmr.msra.gmra.mxu1 %vm6638_vm1, %v6802_v18  ;;  %v6762_v4 = vmul.f32 %v6745_v32, %v12640_v34  ;;  %v6796_v42 = vmax.f32 %v6780_v9, 0.0  ;;  %v6791_v2 = vmax.f32 %v6775_v35, 0.0  ;;  %v6792_v26 = vmax.f32 %v6776_v47, 0.0 }
 0x851   :  { %7633 = vmatprep.mubr.msk.bf16.mxu1 %vm6638_vm1, %v6803_v38  ;;  %v6805_v55 = vpack.c.bf16 %v6794_v1, %v6793_v48  ;;  %v6797_v40 = vmax.f32 %v6781_v60, 0.0  ;;  %v6783_v19 = vadd.f32 %v6767_v13, %v6761_v10 }
 0x852   :  { %v6784_v8 = vadd.f32 %v6767_v13, %v6762_v4  ;;  %v6806_v45 = vpack.c.bf16 %v6796_v42, %v6795_v43  ;;  %v6804_v24 = vpack.c.bf16 %v6792_v26, %v6791_v2 }
 0x853   :  { %v6807_v21 = vpack.c.bf16 %v6798_v6, %v6797_v40  ;;  %v6799_v56 = vmax.f32 %v6783_v19, 0.0 }
 0x854   :  { %v6800_v5 = vmax.f32 %v6784_v8, 0.0 }
 0x856   :  { %v6808_v61 = vpack.c.bf16 %v6800_v5, %v6799_v56 }
 0x858   :  { %7634 = vmatmul.mubr.msk.bf16.gmra.mxu1 %vm6638_vm1, %v6804_v24 }
 0x859   :  { %7637 = vmatprep.mubr.msk.bf16.mxu1 %vm6638_vm1, %v6805_v55 }
 0x860   :  { %7638 = vmatmul.mubr.msk.bf16.gmra.mxu1 %vm6638_vm1, %v6806_v45 }
 0x861   :  { %7641 = vmatprep.mubr.msk.bf16.mxu1 %vm6638_vm1, %v6807_v21 }
 0x868   :  { %7642 = vmatmul.mubr.msk.bf16.gmra.mxu1 %vm6638_vm1, %v6808_v61 }
 0x910   :  { %v7631_v34 = vpop.f32.mrf.mxu1 }
 0x911   :  { %v6915_v11 = vadd.f32 %v7631_v34, %v7484_v53 }
 0x912   :  { %v6906_v30 = vpop.f32.mrf.mxu1 }
 0x913   :  { %6971 = vst [vmem:[%s12752_s23 + $0x10] sm:$0xff] %v6915_v11  ;;  %v6907_v3 = vadd.f32 %v7484_v53, %v6906_v30 }
 0x914   :  { %v7632_v32 = vpop.f32.mrf.mxu1 }
 0x915   :  { %6969 = vst [vmem:[%s12752_s23] sm:$0xff] %v6907_v3  ;;  %v6918_v39 = vadd.f32 %v7632_v32, %v7484_v53 }
 0x916   :  { %v6909_v29 = vpop.f32.mrf.mxu1 }
 0x917   :  { %6972 = vst [vmem:[%s12752_s23 + $0x18] sm:$0xff] %v6918_v39  ;;  %v6910_v22 = vadd.f32 %v7484_v53, %v6909_v29 }
 0x918   :  { %v7635_v49 = vpop.f32.mrf.mxu1 }
 0x919   :  { %6970 = vst [vmem:[%s12752_s23 + $0x8] sm:$0xff] %v6910_v22  ;;  %v6931_v63 = vadd.f32 %v7635_v49, %v7484_v53 }
 0x91a   :  { %v6922_v31 = vpop.f32.mrf.mxu1 }
 0x91b   :  { %6975 = vst [vmem:[%s12752_s23 + $0x30] sm:$0xff] %v6931_v63  ;;  %v6923_v13 = vadd.f32 %v7484_v53, %v6922_v31 }
 0x91c   :  { %v7636_v27 = vpop.f32.mrf.mxu1 }
 0x91d   :  { %6973 = vst [vmem:[%s12752_s23 + $0x20] sm:$0xff] %v6923_v13  ;;  %v6934_v58 = vadd.f32 %v7636_v27, %v7484_v53 }
 0x91e   :  { %v6925_v23 = vpop.f32.mrf.mxu1 }
 0x91f   :  { %6976 = vst [vmem:[%s12752_s23 + $0x38] sm:$0xff] %v6934_v58  ;;  %v6926_v12 = vadd.f32 %v7484_v53, %v6925_v23 }
 0x920   :  { %v7639_v28 = vpop.f32.mrf.mxu1 }
 0x921   :  { %6974 = vst [vmem:[%s12752_s23 + $0x28] sm:$0xff] %v6926_v12  ;;  %v6947_v54 = vadd.f32 %v7639_v28, %v7484_v53 }
 0x922   :  { %v6938_v0 = vpop.f32.mrf.mxu1 }
 0x923   :  { %6979 = vst [vmem:[%s12752_s23 + $0x50] sm:$0xff] %v6947_v54  ;;  %v6939_v51 = vadd.f32 %v7484_v53, %v6938_v0 }
 0x924   :  { %v7640_v37 = vpop.f32.mrf.mxu1 }
 0x925   :  { %6977 = vst [vmem:[%s12752_s23 + $0x40] sm:$0xff] %v6939_v51  ;;  %v6950_v36 = vadd.f32 %v7640_v37, %v7484_v53 }
 0x926   :  { %v6941_v33 = vpop.f32.mrf.mxu1 }
 0x927   :  { %6980 = vst [vmem:[%s12752_s23 + $0x58] sm:$0xff] %v6950_v36  ;;  %v6942_v41 = vadd.f32 %v7484_v53, %v6941_v33 }
 0x928   :  { %v7643_v57 = vpop.f32.mrf.mxu1 }
 0x929   :  { %6978 = vst [vmem:[%s12752_s23 + $0x48] sm:$0xff] %v6942_v41  ;;  %v6963_v7 = vadd.f32 %v7643_v57, %v7484_v53 }
 0x92a   :  { %v6954_v14 = vpop.f32.mrf.mxu1 }
 0x92b   :  { %6983 = vst [vmem:[%s12752_s23 + $0x70] sm:$0xff] %v6963_v7  ;;  %v6955_v62 = vadd.f32 %v7484_v53, %v6954_v14 }
 0x92c   :  { %v7644_v46 = vpop.f32.mrf.mxu1 }
 0x92d   :  { %6981 = vst [vmem:[%s12752_s23 + $0x60] sm:$0xff] %v6955_v62  ;;  %v6966_v44 = vadd.f32 %v7644_v46, %v7484_v53 }
 0x92e   :  { %v6957_v16 = vpop.f32.mrf.mxu1 }
 0x92f   :  { %6984 = vst [vmem:[%s12752_s23 + $0x78] sm:$0xff] %v6966_v44  ;;  %v6958_v52 = vadd.f32 %v7484_v53, %v6957_v16 }
 0x931   :  { %6982 = vst [vmem:[%s12752_s23 + $0x68] sm:$0xff] %v6958_v52 }
 0x932   :  { %6989 = vsyncpa [#allocation3], 1 }
 0x933   :  { %6990 = vsyncpa [#allocation5], 1 }
 0x934   :  { %6991 = vsyncpa [#allocation8], 1 }
 0x935   :  { %6992 = vsyncpa [#allocation11], 1 }
 0x936   :  { %6993 = vsyncpa [#allocation14], 1 }
 0x937   :  { %6994 = vsyncpa [#allocation17], 1 }
 0x938   :  { %6995 = vsyncpa [#allocation20], 1 }
 0x939   :  { %6996 = vsyncpa [#allocation23], 1 }
 0x93a   :  { %6997 = vsyncpa [#allocation26], 1 }

</bundles_post_ra>
